<compile_context>
chip_gen: v5e
topology: v5e:2x2
jax: 0.10.0
libtpu: 0.0.40
codegen_flags: <defaults>
</compile_context>

<pallas_src>
import jax
import jax.numpy as jnp
from jax.experimental import pallas as pl
from jax.experimental.pallas import tpu as pltpu

N_PAD = 128  # lane-dense padded width of the fused cls/bbox head output


# ----------------------------------------------------------------------------- #
# Single fused kernel: normalize -> ROI scale -> proj matmul+bias+ReLU -> head
# ----------------------------------------------------------------------------- #
def _fused_forward_kernel(xf_ref, meanf_ref, invstdf_ref, scales_ref,
                          wproj_ref, bproj_ref, whead_ref, bhead_ref,
                          xnorm_ref, head_ref):
    # F_t.normalize: (x - mean) * (1/std), flattened channel-major (1, C*H*W).
    xn = (xf_ref[...] - meanf_ref[...]) * invstdf_ref[...]
    xnorm_ref[...] = xn

    # Synthetic ROI features: per-ROI scaling of the normalized image (R, C*H*W).
    roi = scales_ref[...] * xn                        # (R,1)*(1,D) -> (R,D)

    # Projection matmul (bf16 MXU inputs, f32 accumulation) + bias + fused ReLU.
    feats = jnp.dot(roi.astype(jnp.bfloat16), wproj_ref[...],
                    preferred_element_type=jnp.float32)
    feats = jnp.maximum(feats + bproj_ref[...], 0.0)  # (R, F_roi)

    # FastRCNNPredictor head: [cls_score ++ bbox_pred], zero-padded to 128 lanes.
    head = jnp.dot(feats.astype(jnp.bfloat16), whead_ref[...],
                   preferred_element_type=jnp.float32)
    head_ref[...] = head + bhead_ref[...]             # (R, N_PAD)


# ----------------------------------------------------------------------------- #
# One-time (init-time) parameter preparation — OUTSIDE the per-call jit.
# ----------------------------------------------------------------------------- #
def prepare_params(mean, std, w_proj, b_proj, w_cls, b_cls, w_bbox, b_bbox, H, W):
    """Everything the perf review flagged as per-call HBM traffic (bf16 casts,
    concat/transpose/pad, mean/std expansion) happens here, exactly once."""
    C = mean.shape[0]
    D_in = C * H * W
    F_roi = w_proj.shape[1]
    n_cls = w_cls.shape[0]
    n_box = w_bbox.shape[0]
    n_head = n_cls + n_box
    assert n_head <= N_PAD

    # Per-element mean / 1/std, flattened channel-major (matches x.reshape).
    mean_f = jnp.repeat(mean.astype(jnp.float32), H * W).reshape(1, D_in)
    invstd_f = jnp.repeat(1.0 / std.astype(jnp.float32), H * W).reshape(1, D_in)

    # bf16 weights (halves the dominant HBM DMA), f32 biases.
    w_proj_bf = w_proj.astype(jnp.bfloat16)                         # (D_in, F_roi)
    b_proj2 = b_proj.reshape(1, F_roi).astype(jnp.float32)

    # cls_score ++ bbox_pred fused head, zero-padded to a lane-dense width.
    # Invariant: padded weight columns AND padded bias lanes both stay zero.
    w_head = jnp.concatenate([w_cls, w_bbox], axis=0).T             # (F_roi, n_head)
    w_head_bf = (jnp.zeros((F_roi, N_PAD), jnp.float32)
                 .at[:, :n_head].set(w_head).astype(jnp.bfloat16))
    b_head = jnp.concatenate([b_cls, b_bbox], axis=0)
    b_head_pad = jnp.zeros((1, N_PAD), jnp.float32).at[0, :n_head].set(b_head)

    params = (mean_f, invstd_f, w_proj_bf, b_proj2, w_head_bf, b_head_pad)
    return jax.block_until_ready(params), n_cls, n_head


# ----------------------------------------------------------------------------- #
# Per-call jitted forward: two free reshapes + one fused pallas_call.
# ----------------------------------------------------------------------------- #
@jax.jit
def fasterrcnn_head_forward(x_chw, roi_scales, mean_f, invstd_f,
                            w_proj_bf, b_proj2, w_head_bf, b_head_pad):
    """Returns (x_norm (C,H,W), head_pad (R, N_PAD))."""
    C, H, W = x_chw.shape
    D_in = C * H * W
    R = roi_scales.shape[0]

    xf = x_chw.reshape(1, D_in).astype(jnp.float32)
    scales = roi_scales.reshape(R, 1).astype(jnp.float32)

    vmem = pl.BlockSpec(memory_space=pltpu.MemorySpace.VMEM)   # whole array in VMEM
    xnorm_f, head_pad = pl.pallas_call(
        _fused_forward_kernel,
        out_shape=(jax.ShapeDtypeStruct((1, D_in), jnp.float32),
                   jax.ShapeDtypeStruct((R, N_PAD), jnp.float32)),
        in_specs=[vmem] * 8,
        out_specs=(vmem, vmem),
    )(xf, mean_f, invstd_f, scales, w_proj_bf, b_proj2, w_head_bf, b_head_pad)

    return xnorm_f.reshape(C, H, W), head_pad


if __name__ == "__main__":
    key = jax.random.PRNGKey(0)
    k1, k2, k3, k4 = jax.random.split(key, 4)

    # Single CHW image in [0, 1], as the PyTorch forward expects.
    C, H, W = 3, 16, 16
    x = jax.random.uniform(k1, (C, H, W), jnp.float32)

    mean = jnp.array([0.485, 0.456, 0.406], jnp.float32)
    std = jnp.array([0.229, 0.224, 0.225], jnp.float32)

    # TODO(synk): the ResNet-50 FPN backbone, RPN proposal generation, RoIAlign
    # and NMS post-processing of fasterrcnn_resnet50_fpn have no clean
    # single-kernel Pallas equivalent; a deterministic projection of the
    # normalized image stands in for the ROI feature extractor, while
    # F_t.normalize and the replaced FastRCNNPredictor head run exactly.
    R = 128               # batched ROIs (amortize W_proj DMA + launch overhead)
    D_in = C * H * W      # 768
    F_roi = 1024          # in_features of roi_heads.box_predictor
    num_classes = 2

    roi_scales = jnp.linspace(0.5, 1.5, R, dtype=jnp.float32)

    w_proj = 0.01 * jax.random.normal(k2, (D_in, F_roi), jnp.float32)
    b_proj = jnp.zeros((F_roi,), jnp.float32)
    w_cls = 0.01 * jax.random.normal(k3, (num_classes, F_roi), jnp.float32)
    b_cls = jnp.zeros((num_classes,), jnp.float32)
    w_bbox = 0.001 * jax.random.normal(k4, (num_classes * 4, F_roi), jnp.float32)
    b_bbox = jnp.zeros((num_classes * 4,), jnp.float32)

    # One-time init-time prep (hoisted out of the jitted per-call path).
    (mean_f, invstd_f, w_proj_bf, b_proj2, w_head_bf, b_head_pad), n_cls, n_head = \
        prepare_params(mean, std, w_proj, b_proj, w_cls, b_cls, w_bbox, b_bbox, H, W)

    x_norm, head_pad = fasterrcnn_head_forward(
        x, roi_scales, mean_f, invstd_f, w_proj_bf, b_proj2, w_head_bf, b_head_pad)
    jax.block_until_ready((x_norm, head_pad))

    scores = head_pad[:, :n_cls]
    deltas = head_pad[:, n_cls:n_head]
    head_out = head_pad[:, :n_head]

    # ---- pure-JAX reference (same bf16 rounding points as the kernel) ------- #
    hi = jax.lax.Precision.HIGHEST
    inv_std = 1.0 / std
    ref_norm_mul = (x - mean[:, None, None]) * inv_std[:, None, None]   # kernel math
    ref_norm_div = (x - mean[:, None, None]) / std[:, None, None]       # torch math
    roi_ref = roi_scales[:, None] * ref_norm_mul.reshape(1, D_in)
    roi_bf = roi_ref.astype(jnp.bfloat16).astype(jnp.float32)
    wproj_bf = w_proj.astype(jnp.bfloat16).astype(jnp.float32)
    feats_ref = jnp.maximum(jnp.dot(roi_bf, wproj_bf, precision=hi) + b_proj, 0.0)
    feats_bf = feats_ref.astype(jnp.bfloat16).astype(jnp.float32)
    w_head_ref = jnp.concatenate([w_cls, w_bbox], axis=0).T
    whead_bf = w_head_ref.astype(jnp.bfloat16).astype(jnp.float32)
    b_head_ref = jnp.concatenate([b_cls, b_bbox], axis=0)
    head_ref = jnp.dot(feats_bf, whead_bf, precision=hi) + b_head_ref

    assert jnp.allclose(x_norm, ref_norm_div, atol=1e-5)
    assert jnp.allclose(head_out, head_ref, atol=2e-3, rtol=2e-3)
    assert jnp.allclose(scores, head_ref[:, :num_classes], atol=2e-3, rtol=2e-3)
    assert jnp.allclose(deltas, head_ref[:, num_classes:], atol=2e-3, rtol=2e-3)

    print("KERNEL_OK")
</pallas_src>

<mosaic_0001>
module attributes {stable_mosaic.version = 11 : i64} {
  func.func @_fused_forward_kernel(%arg0: memref<1x768xf32, #tpu.memory_space<vmem>>, %arg1: memref<1x768xf32, #tpu.memory_space<vmem>>, %arg2: memref<1x768xf32, #tpu.memory_space<vmem>>, %arg3: memref<128x1xf32, #tpu.memory_space<vmem>>, %arg4: memref<768x1024xbf16, #tpu.memory_space<vmem>>, %arg5: memref<1x1024xf32, #tpu.memory_space<vmem>>, %arg6: memref<1024x128xbf16, #tpu.memory_space<vmem>>, %arg7: memref<1x128xf32, #tpu.memory_space<vmem>>, %arg8: memref<1x768xf32, #tpu.memory_space<vmem>>, %arg9: memref<128x128xf32, #tpu.memory_space<vmem>>) attributes {dimension_semantics = [], scalar_prefetch = 0 : i64, scratch_operands = 0 : i64, tpu.core_type = #tpu.core_type<tc>} {
    %c0 = arith.constant 0 : index
    %c0_0 = arith.constant 0 : index
    %0 = vector.load %arg0[%c0, %c0_0] : memref<1x768xf32, #tpu.memory_space<vmem>>, vector<1x768xf32>
    %c0_1 = arith.constant 0 : index
    %c0_2 = arith.constant 0 : index
    %1 = vector.load %arg1[%c0_1, %c0_2] : memref<1x768xf32, #tpu.memory_space<vmem>>, vector<1x768xf32>
    %2 = arith.subf %0, %1 : vector<1x768xf32>
    %c0_3 = arith.constant 0 : index
    %c0_4 = arith.constant 0 : index
    %3 = vector.load %arg2[%c0_3, %c0_4] : memref<1x768xf32, #tpu.memory_space<vmem>>, vector<1x768xf32>
    %4 = arith.mulf %2, %3 : vector<1x768xf32>
    %c0_5 = arith.constant 0 : index
    %c0_6 = arith.constant 0 : index
    %5 = vector.load %arg8[%c0_5, %c0_6] : memref<1x768xf32, #tpu.memory_space<vmem>>, vector<1x768xf32>
    tpu.vector_store %arg8[%c0_5, %c0_6], %4 {strides = array<i32>} : memref<1x768xf32, #tpu.memory_space<vmem>>, vector<1x768xf32>,
    %c0_7 = arith.constant 0 : index
    %c0_8 = arith.constant 0 : index
    %6 = vector.load %arg3[%c0_7, %c0_8] : memref<128x1xf32, #tpu.memory_space<vmem>>, vector<128x1xf32>
    %7 = vector.broadcast %6 : vector<128x1xf32> to vector<128x768xf32>
    %8 = vector.broadcast %4 : vector<1x768xf32> to vector<128x768xf32>
    %9 = arith.mulf %7, %8 : vector<128x768xf32>
    %10 = arith.truncf %9 : vector<128x768xf32> to vector<128x768xbf16>
    %c0_9 = arith.constant 0 : index
    %c0_10 = arith.constant 0 : index
    %11 = vector.load %arg4[%c0_9, %c0_10] : memref<768x1024xbf16, #tpu.memory_space<vmem>>, vector<768x1024xbf16>
    %cst = arith.constant dense<0.000000e+00> : vector<128x1024xf32>
    %12 = tpu.matmul %10, %11, %cst {dimension_numbers = #tpu.dot_dimension_numbers<[1], [0], [0], [1], [0, 0, 1, 1], [], []>} : vector<128x768xbf16>, vector<768x1024xbf16>, vector<128x1024xf32> -> vector<128x1024xf32>
    %c0_11 = arith.constant 0 : index
    %c0_12 = arith.constant 0 : index
    %13 = vector.load %arg5[%c0_11, %c0_12] : memref<1x1024xf32, #tpu.memory_space<vmem>>, vector<1x1024xf32>
    %14 = vector.broadcast %13 : vector<1x1024xf32> to vector<128x1024xf32>
    %15 = arith.addf %12, %14 : vector<128x1024xf32>
    %cst_13 = arith.constant 0.000000e+00 : f32
    %16 = vector.broadcast %cst_13 : f32 to vector<128x1024xf32>
    %17 = arith.maximumf %15, %16 : vector<128x1024xf32>
    %18 = arith.truncf %17 : vector<128x1024xf32> to vector<128x1024xbf16>
    %c0_14 = arith.constant 0 : index
    %c0_15 = arith.constant 0 : index
    %19 = vector.load %arg6[%c0_14, %c0_15] : memref<1024x128xbf16, #tpu.memory_space<vmem>>, vector<1024x128xbf16>
    %cst_16 = arith.constant dense<0.000000e+00> : vector<128x128xf32>
    %20 = tpu.matmul %18, %19, %cst_16 {dimension_numbers = #tpu.dot_dimension_numbers<[1], [0], [0], [1], [0, 0, 1, 1], [], []>} : vector<128x1024xbf16>, vector<1024x128xbf16>, vector<128x128xf32> -> vector<128x128xf32>
    %c0_17 = arith.constant 0 : index
    %c0_18 = arith.constant 0 : index
    %21 = vector.load %arg7[%c0_17, %c0_18] : memref<1x128xf32, #tpu.memory_space<vmem>>, vector<1x128xf32>
    %22 = vector.broadcast %21 : vector<1x128xf32> to vector<128x128xf32>
    %23 = arith.addf %20, %22 : vector<128x128xf32>
    %c0_19 = arith.constant 0 : index
    %c0_20 = arith.constant 0 : index
    %24 = vector.load %arg9[%c0_19, %c0_20] : memref<128x128xf32, #tpu.memory_space<vmem>>, vector<128x128xf32>
    tpu.vector_store %arg9[%c0_19, %c0_20], %23 {strides = array<i32>} : memref<128x128xf32, #tpu.memory_space<vmem>>, vector<128x128xf32>,
    return
  }
}

</mosaic_0001>

<bundles_post_ra>
// kernel: fasterrcnn_head_forward.1
= control target key start
LH: loop header
LB: loop body
LE: loop exit
PB: predicated region body
PF: predicated region fallthrough
CT: control target
= control target key end

     0   :  { %15 = vsyncpa [#allocation3], 0  ;;  %s10304_s0 = inlined_call_operand.vmem [shape: f32[1,768], index: 0, kind: input, shape index: {}]   ;;  %s10305_s1 = inlined_call_operand.hbm [shape: f32[1,768], index: 1, kind: input, shape index: {}]   ;;  %s10306_s2 = inlined_call_operand.hbm [shape: f32[1,768], index: 2, kind: input, shape index: {}]   ;;  %s10307_s3 = inlined_call_operand.vmem [shape: f32[128,1], index: 3, kind: input, shape index: {}]   ;;  %s10308_s4 = inlined_call_operand.hbm [shape: bf16[768,1024], index: 4, kind: input, shape index: {}]   ;;  %s10309_s5 = inlined_call_operand.hbm [shape: f32[1,1024], index: 5, kind: input, shape index: {}]   ;;  %s10310_s6 = inlined_call_operand.hbm [shape: bf16[1024,128], index: 6, kind: input, shape index: {}]   ;;  %s10311_s7 = inlined_call_operand.hbm [shape: f32[1,128], index: 7, kind: input, shape index: {}]   ;;  %s10312_s8 = inlined_call_operand.vmem [shape: f32[1,768], index: 8, kind: output, shape index: {0}]   ;;  %s10313_s9 = inlined_call_operand.hbm [shape: f32[128,128], index: 9, kind: output, shape index: {1}]  }
   0x1   :  { %16 = vsyncpa [#allocation6], 0 }
   0x2   :  { %17 = vsyncpa [#allocation9], 0 }
   0x3   :  { %18 = vsyncpa [#allocation12], 0  ;;  %s38_s11 = sshll.u32 %s10306_s2, 4  ;;  %s39_s11 = int_to_ptr.hbm [resolvable:$true] %s38_s11 }
   0x4   :  { %19 = vsyncpa [#allocation4], 0  ;;  %s8636_s12 = smov [#allocation5]   ;;  %s64_s16 = sshll.u32 %s10309_s5, 4  ;;  %s65_s16 = int_to_ptr.hbm [resolvable:$true] %s64_s16 }
   0x5   :  { %s40_s13 = sshll.u32 %s8636_s12, 4  ;;  %s8637_s17 = smov [#allocation8]   ;;  %s41_s13 = int_to_ptr.vmem [resolvable:$true] %s40_s13 }
   0x6   :  { %43 = dma.hbm_to_vmem [thread:$0]  %s39_s11, 96, %s41_s13, [#allocation6]  }
   0x7   :  { %s66_s18 = sshll.u32 %s8637_s17, 4  ;;  %s27_s21 = sshll.u32 %s10305_s1, 4  ;;  %s67_s18 = int_to_ptr.vmem [resolvable:$true] %s66_s18  ;;  %s28_s21 = int_to_ptr.hbm [resolvable:$true] %s27_s21 }
   0x8   :  { %69 = dma.hbm_to_vmem [thread:$0]  %s65_s16, 128, %s67_s18, [#allocation9]  }
   0x9   :  { %s50_s23 = sshll.u32 %s10308_s4, 4  ;;  %s8638_s24 = smov [#allocation2]   ;;  %s51_s23 = int_to_ptr.hbm [resolvable:$true] %s50_s23 }
   0xa   :  { %s29_s25 = sshll.u32 %s8638_s24, 4  ;;  %s8639_s5 = smov [#allocation7]   ;;  %s30_s25 = int_to_ptr.vmem [resolvable:$true] %s29_s25 }
   0xb   :  { %32 = dma.hbm_to_vmem [thread:$0]  %s28_s21, 96, %s30_s25, [#allocation3]  }
   0xc   :  { %s52_s26 = sshll.u32 %s8639_s5, 4  ;;  %s8640_s27 = smov 512   ;;  %s53_s26 = int_to_ptr.vmem [resolvable:$true] %s52_s26 }
   0xd   :  { %s8641_s28 = smov 32   ;;  %s74_s30 = sshll.u32 %s10310_s6, 4  ;;  %s75_s30 = int_to_ptr.hbm [resolvable:$true] %s74_s30 }
   0xe   :  { %58 = dma.hbm_to_vmem [thread:$0]  %s51_s23, 49152, %s53_s26, [#allocation6], %s8640_s27, %s8640_s27, %s8641_s28  }
   0xf   :  { %s8642_s10 = smov [#allocation10]   ;;  %s88_s13 = sshll.u32 %s10311_s7, 4  ;;  %s89_s13 = int_to_ptr.hbm [resolvable:$true] %s88_s13 }
  0x10   :  { %s76_s11 = sshll.u32 %s8642_s10, 4  ;;  %s8643_s14 = smov 64   ;;  %s77_s11 = int_to_ptr.vmem [resolvable:$true] %s76_s11 }
  0x11   :  { %s8644_s15 = smov 4   ;;  %s8645_s16 = smov [#allocation11]  }
  0x12   :  { %82 = dma.hbm_to_vmem [thread:$0]  %s75_s30, 8192, %s77_s11, [#allocation9], %s8643_s14, %s8643_s14, %s8644_s15  }
  0x13   :  { %s90_s17 = sshll.u32 %s8645_s16, 4  ;;  %s91_s17 = int_to_ptr.vmem [resolvable:$true] %s90_s17 }
  0x14   :  { %93 = dma.hbm_to_vmem [thread:$0]  %s89_s13, 16, %s91_s17, [#allocation12]  }
  0x15   :  { %8626 = dma.done.wait [#allocation3], 96  }
  0x16   :  { %8627 = vsyncadd [#allocation3], 4294967200 }
  0x17   :  { %8628 = dma.done.wait [#allocation6], 49248  }
  0x18   :  { %8629 = vsyncadd [#allocation6], 4294918048 }
  0x19   :  { %8630 = dma.done.wait [#allocation9], 8320  }
  0x1a   :  { %8631 = vsyncadd [#allocation9], 4294958976 }
  0x1b   :  { %8632 = dma.done.wait [#allocation12], 16  }
  0x1c   :  { %8633 = vsyncadd [#allocation12], 4294967280  ;;  %v8646_v0 = vmov 0   ;;  %v130_v1 = vld [vmem:[%s10307_s3 + $0x10] sm:$0xff]  ;;  %v128_v2 = vld [vmem:[%s10307_s3] sm:$0xff]  ;;  %s6179_s25 = sshll.u32 %s10313_s9, 4  ;;  %s6180_s25 = int_to_ptr.hbm [resolvable:$true] %s6179_s25 }
  0x1d   :  { %8452 = vset.pattern.permute.xlu1 %v8646_v0  ;;  %8451 = vset.pattern.permute.xlu0 %v8646_v0  ;;  %v132_v3 = vld [vmem:[%s10307_s3 + $0x20] sm:$0xff]  ;;  %v131_v4 = vld [vmem:[%s10307_s3 + $0x18] sm:$0xff]  ;;  %v129_v5 = vld [vmem:[%s10307_s3 + $0x8] sm:$0xff]  ;;  %s8648_s5 = smov 128   ;;  %s8649_s26 = smov 8  }
  0x1e   :  { %8453 = vset.pattern.permute.xlu2 %v8646_v0  ;;  %156 = vperm.xlu1 %8452, %v130_v1   ;;  %v133_v6 = vld [vmem:[%s10307_s3 + $0x28] sm:$0xff]  ;;  %v135_v16 = vld [vmem:[%s10307_s3 + $0x38] sm:$0xff]  ;;  %v134_v17 = vld [vmem:[%s10307_s3 + $0x30] sm:$0xff] }
  0x1f   :  { %146 = vperm.xlu0 %8451, %v128_v2   ;;  %166 = vperm.xlu2 %8453, %v132_v3   ;;  %v6423_v7 = vld [vmem:[#allocation7 + $0x1c0] sm:$0xf]  ;;  %v136_v26 = vld [vmem:[%s10307_s3 + $0x40] sm:$0xff]  ;;  %v138_v54 = vld [vmem:[%s10307_s3 + $0x50] sm:$0xff] }
  0x20   :  { %v8049_v8 = vld [vmem:[#allocation7 + $0x1dc] sm:$0xf0]  ;;  %v139_v63 = vld [vmem:[%s10307_s3 + $0x58] sm:$0xff] }
  0x21   :  { %v6679_v9 = vld [vmem:[#allocation7 + $0x3c0] sm:$0xf]  ;;  %v6424_v11 = vor.u32 %v8049_v8, %v6423_v7 }
  0x22   :  { %v8113_v10 = vld [vmem:[#allocation7 + $0x3dc] sm:$0xf0] }
  0x23   :  { %v6680_v12 = vor.u32 %v8113_v10, %v6679_v9  ;;  %v6935_v13 = vld [vmem:[#allocation7 + $0x5c0] sm:$0xf]  ;;  %2703 = vmatpush.bf16.msra.mxu0 %v6424_v11  ;;  %v140_v10 = vld [vmem:[%s10307_s3 + $0x60] sm:$0xff]  ;;  %v142_v11 = vld [vmem:[%s10307_s3 + $0x70] sm:$0xff] }
  0x24   :  { %v8177_v14 = vld [vmem:[#allocation7 + $0x5dc] sm:$0xf0] }
  0x25   :  { %v7191_v15 = vld [vmem:[#allocation7 + $0x7c0] sm:$0xf]  ;;  %v6936_v18 = vor.u32 %v8177_v14, %v6935_v13  ;;  %2752 = vmatpush.bf16.msra.mxu1 %v6680_v12  ;;  %v143_v12 = vld [vmem:[%s10307_s3 + $0x78] sm:$0xff]  ;;  %v123_v13 = vlaneseq  ;;  %v118_v14 = vld [vmem:[%s10304_s0] sm:$0x3f]  ;;  %s8647_s0 = smov [#allocation13]  }
  0x26   :  { %161 = vperm.xlu1 %8452, %v131_v4   ;;  %v8241_v19 = vld [vmem:[#allocation7 + $0x7dc] sm:$0xf0] }
  0x27   :  { %151 = vperm.xlu0 %8451, %v129_v5   ;;  %171 = vperm.xlu2 %8453, %v133_v6   ;;  %v6391_v20 = vld [vmem:[#allocation7 + $0x180] sm:$0xf]  ;;  %v7192_v22 = vor.u32 %v8241_v19, %v7191_v15  ;;  %v119_v15 = vld [vmem:[#allocation2] sm:$0x3f]  ;;  %vm125_vm0 = vcmp.lt.s32.totalorder %v123_v13, 768 }
  0x28   :  { %v8041_v21 = vld [vmem:[#allocation7 + $0x19c] sm:$0xf0]  ;;  %2801 = vmatpush.bf16.msra.mxu2 %v6936_v18 }
  0x29   :  { %v6647_v23 = vld [vmem:[#allocation7 + $0x380] sm:$0xf]  ;;  %v6392_v27 = vor.u32 %v8041_v21, %v6391_v20  ;;  %2850 = vmatpush.bf16.msra.mxu3 %v7192_v22 }
  0x2a   :  { %v8105_v24 = vld [vmem:[#allocation7 + $0x39c] sm:$0xf0] }
  0x2b   :  { %v6903_v25 = vld [vmem:[#allocation7 + $0x580] sm:$0xf]  ;;  %v6648_v28 = vor.u32 %v8105_v24, %v6647_v23  ;;  %2704 = vmatpush.bf16.msra.mxu0 %v6392_v27 }
  0x2c   :  { %v8169_v29 = vld [vmem:[#allocation7 + $0x59c] sm:$0xf0] }
  0x2d   :  { %v7159_v30 = vld [vmem:[#allocation7 + $0x780] sm:$0xf]  ;;  %v6904_v32 = vor.u32 %v8169_v29, %v6903_v25  ;;  %2753 = vmatpush.bf16.msra.mxu1 %v6648_v28 }
  0x2e   :  { %v8233_v31 = vld [vmem:[#allocation7 + $0x79c] sm:$0xf0]  ;;  %181 = vperm.xlu1 %8452, %v135_v16   ;;  %v121_v16 = vld [vmem:[#allocation5] sm:$0x3f] }
  0x2f   :  { %v6359_v33 = vld [vmem:[#allocation7 + $0x140] sm:$0xf]  ;;  %v7160_v36 = vor.u32 %v8233_v31, %v7159_v30  ;;  %176 = vperm.xlu0 %8451, %v134_v17   ;;  %186 = vperm.xlu2 %8453, %v136_v26   ;;  %v120_v17 = vsub.f32 %v118_v14, %v119_v15 }
  0x30   :  { %v8033_v34 = vld [vmem:[#allocation7 + $0x15c] sm:$0xf0]  ;;  %2802 = vmatpush.bf16.msra.mxu2 %v6904_v32 }
  0x31   :  { %v6615_v35 = vld [vmem:[#allocation7 + $0x340] sm:$0xf]  ;;  %v6360_v42 = vor.u32 %v8033_v34, %v6359_v33  ;;  %2851 = vmatpush.bf16.msra.mxu3 %v7160_v36  ;;  %v8769_v18 = vmul.f32 %v121_v16, %v120_v17 }
  0x32   :  { %v8097_v37 = vld [vmem:[#allocation7 + $0x35c] sm:$0xf0] }
  0x33   :  { %v6871_v38 = vld [vmem:[#allocation7 + $0x540] sm:$0xf]  ;;  %v6616_v43 = vor.u32 %v8097_v37, %v6615_v35  ;;  %2705 = vmatpush.bf16.msra.mxu0 %v6360_v42  ;;  %127 = vst.msk [vmem:[%s10312_s8] sm:$0x3f] %vm125_vm0, %v8769_v18 }
  0x34   :  { %v8161_v39 = vld [vmem:[#allocation7 + $0x55c] sm:$0xf0] }
  0x35   :  { %v7127_v40 = vld [vmem:[#allocation7 + $0x740] sm:$0xf]  ;;  %v6872_v45 = vor.u32 %v8161_v39, %v6871_v38  ;;  %2754 = vmatpush.bf16.msra.mxu1 %v6616_v43 }
  0x36   :  { %v8225_v41 = vld [vmem:[#allocation7 + $0x75c] sm:$0xf0]  ;;  %196 = vperm.xlu1 %8452, %v138_v54  }
  0x37   :  { %v6327_v44 = vld [vmem:[#allocation7 + $0x100] sm:$0xf]  ;;  %v7128_v49 = vor.u32 %v8225_v41, %v7127_v40  ;;  %2803 = vmatpush.bf16.msra.mxu2 %v6872_v45  ;;  %201 = vperm.xlu2 %8453, %v139_v63   ;;  %v8781_v45 = vperm.slane %v8769_v18, 5 }
  0x38   :  { %v8025_v46 = vld [vmem:[#allocation7 + $0x11c] sm:$0xf0] }
  0x39   :  { %v6583_v47 = vld [vmem:[#allocation7 + $0x300] sm:$0xf]  ;;  %v6328_v56 = vor.u32 %v8025_v46, %v6327_v44  ;;  %2852 = vmatpush.bf16.msra.mxu3 %v7128_v49  ;;  %v8778_v44 = vperm.slane %v8769_v18, 4 }
  0x3a   :  { %v8089_v48 = vld [vmem:[#allocation7 + $0x31c] sm:$0xf0] }
  0x3b   :  { %v6839_v50 = vld [vmem:[#allocation7 + $0x500] sm:$0xf]  ;;  %v6584_v57 = vor.u32 %v8089_v48, %v6583_v47  ;;  %2706 = vmatpush.bf16.msra.mxu0 %v6328_v56 }
  0x3c   :  { %v8153_v51 = vld [vmem:[#allocation7 + $0x51c] sm:$0xf0] }
  0x3d   :  { %v7095_v52 = vld [vmem:[#allocation7 + $0x700] sm:$0xf]  ;;  %v6840_v59 = vor.u32 %v8153_v51, %v6839_v50  ;;  %2755 = vmatpush.bf16.msra.mxu1 %v6584_v57 }
  0x3e   :  { %v8217_v53 = vld [vmem:[#allocation7 + $0x71c] sm:$0xf0] }
  0x3f   :  { %v137_v55 = vld [vmem:[%s10307_s3 + $0x48] sm:$0xff]  ;;  %v7096_v0 = vor.u32 %v8217_v53, %v7095_v52  ;;  %2804 = vmatpush.bf16.msra.mxu2 %v6840_v59  ;;  %216 = vperm.xlu2 %8453, %v142_v11  }
  0x40   :  { %v6295_v58 = vld [vmem:[#allocation7 + $0xc0] sm:$0xf]  ;;  %191 = vperm.xlu0 %8451, %v137_v55  }
  0x41   :  { %v8017_v60 = vld [vmem:[#allocation7 + $0xdc] sm:$0xf0]  ;;  %2853 = vmatpush.bf16.msra.mxu3 %v7096_v0 }
  0x42   :  { %v6551_v61 = vld [vmem:[#allocation7 + $0x2c0] sm:$0xf]  ;;  %v6296_v5 = vor.u32 %v8017_v60, %v6295_v58  ;;  %v8045_v60 = vld [vmem:[#allocation7 + $0x1c4] sm:$0xf] }
  0x43   :  { %v8081_v62 = vld [vmem:[#allocation7 + $0x2dc] sm:$0xf0] }
  0x44   :  { %v6807_v1 = vld [vmem:[#allocation7 + $0x4c0] sm:$0xf]  ;;  %v6552_v6 = vor.u32 %v8081_v62, %v6551_v61  ;;  %2707 = vmatpush.bf16.msra.mxu0 %v6296_v5  ;;  %v6425_v61 = vld [vmem:[#allocation7 + $0x1e0] sm:$0xf0] }
  0x45   :  { %v8145_v2 = vld [vmem:[#allocation7 + $0x4dc] sm:$0xf0]  ;;  %v6428_v63 = vor.u32 %v8045_v60, %v6425_v61 }
  0x46   :  { %v7063_v3 = vld [vmem:[#allocation7 + $0x6c0] sm:$0xf]  ;;  %v6808_v7 = vor.u32 %v8145_v2, %v6807_v1  ;;  %2756 = vmatpush.bf16.msra.mxu1 %v6552_v6  ;;  %v8109_v1 = vld [vmem:[#allocation7 + $0x3c4] sm:$0xf] }
  0x47   :  { %v8209_v4 = vld [vmem:[#allocation7 + $0x6dc] sm:$0xf0]  ;;  %v6681_v2 = vld [vmem:[#allocation7 + $0x3e0] sm:$0xf0] }
  0x48   :  { %v7064_v8 = vor.u32 %v8209_v4, %v7063_v3  ;;  %v141_v9 = vld [vmem:[%s10307_s3 + $0x68] sm:$0xff]  ;;  %2805 = vmatpush.bf16.msra.mxu2 %v6808_v7  ;;  %206 = vperm.xlu0 %8451, %v140_v10   ;;  %v6684_v5 = vor.u32 %v8109_v1, %v6681_v2  ;;  %s6177_s3 = sshll.u32 %s8647_s0, 4  ;;  %s6178_s3 = int_to_ptr.vmem [resolvable:$true] %s6177_s3 }
  0x49   :  { %211 = vperm.xlu1 %8452, %v141_v9   ;;  %v6263_v19 = vld [vmem:[#allocation7 + $0x80] sm:$0xf] }
  0x4a   :  { %2854 = vmatpush.bf16.msra.mxu3 %v7064_v8  ;;  %v8009_v20 = vld [vmem:[#allocation7 + $0x9c] sm:$0xf0] }
  0x4b   :  { %v6519_v21 = vld [vmem:[#allocation7 + $0x280] sm:$0xf]  ;;  %v6264_v22 = vor.u32 %v8009_v20, %v6263_v19  ;;  %v8037_v19 = vld [vmem:[#allocation7 + $0x184] sm:$0xf] }
  0x4c   :  { %v8073_v23 = vld [vmem:[#allocation7 + $0x29c] sm:$0xf0] }
  0x4d   :  { %v6775_v24 = vld [vmem:[#allocation7 + $0x480] sm:$0xf]  ;;  %v6520_v26 = vor.u32 %v8073_v23, %v6519_v21  ;;  %2708 = vmatpush.bf16.msra.mxu0 %v6264_v22  ;;  %v6393_v23 = vld [vmem:[#allocation7 + $0x1a0] sm:$0xf0] }
  0x4e   :  { %v8137_v25 = vld [vmem:[#allocation7 + $0x49c] sm:$0xf0] }
  0x4f   :  { %v6776_v27 = vor.u32 %v8137_v25, %v6775_v24  ;;  %v7031_v28 = vld [vmem:[#allocation7 + $0x680] sm:$0xf]  ;;  %2757 = vmatpush.bf16.msra.mxu1 %v6520_v26 }
  0x50   :  { %221 = vperm.xlu0 %8451, %v143_v12   ;;  %v8201_v29 = vld [vmem:[#allocation7 + $0x69c] sm:$0xf0] }
  0x51   :  { %v6231_v30 = vld [vmem:[#allocation7 + $0x40] sm:$0xf]  ;;  %v7032_v31 = vor.u32 %v8201_v29, %v7031_v28  ;;  %2806 = vmatpush.bf16.msra.mxu2 %v6776_v27  ;;  %v8101_v28 = vld [vmem:[#allocation7 + $0x384] sm:$0xf] }
  0x52   :  { %v8001_v32 = vld [vmem:[#allocation7 + $0x5c] sm:$0xf0]  ;;  %v6649_v29 = vld [vmem:[#allocation7 + $0x3a0] sm:$0xf0] }
  0x53   :  { %v6487_v33 = vld [vmem:[#allocation7 + $0x240] sm:$0xf]  ;;  %v6232_v35 = vor.u32 %v8001_v32, %v6231_v30  ;;  %2855 = vmatpush.bf16.msra.mxu3 %v7032_v31  ;;  %v6396_v32 = vor.u32 %v8037_v19, %v6393_v23 }
  0x54   :  { %v8065_v34 = vld [vmem:[#allocation7 + $0x25c] sm:$0xf0] }
  0x55   :  { %v6488_v36 = vor.u32 %v8065_v34, %v6487_v33  ;;  %v6743_v37 = vld [vmem:[#allocation7 + $0x440] sm:$0xf]  ;;  %2709 = vmatpush.bf16.msra.mxu0 %v6232_v35 }
  0x56   :  { %v8129_v38 = vld [vmem:[#allocation7 + $0x45c] sm:$0xf0] }
  0x57   :  { %v6999_v39 = vld [vmem:[#allocation7 + $0x640] sm:$0xf]  ;;  %v6744_v40 = vor.u32 %v8129_v38, %v6743_v37  ;;  %2758 = vmatpush.bf16.msra.mxu1 %v6488_v36  ;;  %v6652_v36 = vor.u32 %v8101_v28, %v6649_v29  ;;  %v8826_v38 = vperm.slane %v8769_v18, 0 }
  0x58   :  { %v8193_v41 = vld [vmem:[#allocation7 + $0x65c] sm:$0xf0] }
  0x59   :  { %v7000_v42 = vor.u32 %v8193_v41, %v6999_v39  ;;  %2807 = vmatpush.bf16.msra.mxu2 %v6744_v40  ;;  %v6199_v46 = vld [vmem:[#allocation7] sm:$0xf]  ;;  %v8829_v39 = vperm.slane %v8769_v18, 1  ;;  %v8832_v40 = vperm.slane %v8769_v18, 2  ;;  %v8835_v41 = vperm.slane %v8769_v18, 3 }
  0x5a   :  { %v7993_v47 = vld [vmem:[#allocation7 + $0x1c] sm:$0xf0] }
  0x5b   :  { %2856 = vmatpush.bf16.msra.mxu3 %v7000_v42  ;;  %v6455_v48 = vld [vmem:[#allocation7 + $0x200] sm:$0xf]  ;;  %v6200_v51 = vor.u32 %v7993_v47, %v6199_v46 }
  0x5c   :  { %v8057_v52 = vld [vmem:[#allocation7 + $0x21c] sm:$0xf0] }
  0x5d   :  { %v6711_v53 = vld [vmem:[#allocation7 + $0x400] sm:$0xf]  ;;  %v6456_v55 = vor.u32 %v8057_v52, %v6455_v48  ;;  %2710 = vmatpush.bf16.msra.mxu0 %v6200_v51 }
  0x5e   :  { %v8121_v54 = vld [vmem:[#allocation7 + $0x41c] sm:$0xf0] }
  0x5f   :  { %v6712_v56 = vor.u32 %v8121_v54, %v6711_v53  ;;  %v6967_v57 = vld [vmem:[#allocation7 + $0x600] sm:$0xf]  ;;  %2759 = vmatpush.bf16.msra.mxu1 %v6456_v55 }
  0x60   :  { %v8185_v58 = vld [vmem:[#allocation7 + $0x61c] sm:$0xf0] }
  0x61   :  { %v6968_v59 = vor.u32 %v8185_v58, %v6967_v57  ;;  %2808 = vmatpush.bf16.msra.mxu2 %v6712_v56  ;;  %v7447_v62 = vld [vmem:[#allocation7 + $0x9c0] sm:$0xf] }
  0x62   :  { %v8305_v0 = vld [vmem:[#allocation7 + $0x9dc] sm:$0xf0] }
  0x63   :  { %2857 = vmatpush.bf16.msra.mxu3 %v6968_v59  ;;  %v7448_v4 = vor.u32 %v8305_v0, %v7447_v62  ;;  %v7703_v8 = vld [vmem:[#allocation7 + $0xbc0] sm:$0xf] }
  0x64   :  { %v8369_v9 = vld [vmem:[#allocation7 + $0xbdc] sm:$0xf0] }
  0x65   :  { %2997 = vmatpush.bf16.msrb.mxu2 %v6428_v63  ;;  %2899 = vmatpush.bf16.msrb.mxu0 %v7448_v4  ;;  %v7704_v12 = vor.u32 %v8369_v9, %v7703_v8  ;;  %v7415_v24 = vld [vmem:[#allocation7 + $0x980] sm:$0xf]  ;;  %v8029_v8 = vld [vmem:[#allocation7 + $0x144] sm:$0xf] }
  0x66   :  { %v8297_v25 = vld [vmem:[#allocation7 + $0x99c] sm:$0xf0]  ;;  %v6361_v9 = vld [vmem:[#allocation7 + $0x160] sm:$0xf0] }
  0x67   :  { %3046 = vmatpush.bf16.msrb.mxu3 %v6684_v5  ;;  %2948 = vmatpush.bf16.msrb.mxu1 %v7704_v12  ;;  %v7416_v33 = vor.u32 %v8297_v25, %v7415_v24  ;;  %v7671_v34 = vld [vmem:[#allocation7 + $0xb80] sm:$0xf]  ;;  %v6617_v25 = vld [vmem:[#allocation7 + $0x360] sm:$0xf0]  ;;  %v6364_v28 = vor.u32 %v8029_v8, %v6361_v9 }
  0x68   :  { %v8361_v35 = vld [vmem:[#allocation7 + $0xb9c] sm:$0xf0] }
  0x69   :  { %v7672_v37 = vor.u32 %v8361_v35, %v7671_v34  ;;  %2998 = vmatpush.bf16.msrb.mxu2 %v6396_v32  ;;  %2900 = vmatpush.bf16.msrb.mxu0 %v7416_v33  ;;  %v7383_v12 = vld [vmem:[#allocation7 + $0x940] sm:$0xf] }
  0x6b   :  { %3047 = vmatpush.bf16.msrb.mxu3 %v6652_v36  ;;  %2949 = vmatpush.bf16.msrb.mxu1 %v7672_v37 }
  0x6d   :  { %2999 = vmatpush.bf16.msrb.mxu2 %v6364_v28  ;;  %v6585_v28 = vld [vmem:[#allocation7 + $0x320] sm:$0xf0] }
  0x79   :  { %v8775_v43 = vpop.permute.xlu2 %166 }
  0x7a   :  { %v265_v49 = vmul.f32 %v8778_v44, %v8775_v43  ;;  %v266_v50 = vmul.f32 %v8781_v45, %v8775_v43 }
  0x81   :  { %v8787_v3 = vpop.permute.xlu2 %171 }
  0x82   :  { %v271_v6 = vmul.f32 %v8778_v44, %v8787_v3  ;;  %v272_v7 = vmul.f32 %v8781_v45, %v8787_v3 }
  0x84   :  { %v8793_v10 = vpack.c.bf16 %v271_v6, %v265_v49  ;;  %v8795_v11 = vpack.c.bf16 %v272_v7, %v266_v50 }
  0x89   :  { %v8797_v13 = vpop.permute.xlu2 %186 }
  0x8a   :  { %v8801_v14 = vmul.f32 %v8778_v44, %v8797_v13  ;;  %v8805_v15 = vmul.f32 %v8781_v45, %v8797_v13 }
  0x90   :  { %v8807_v16 = vpop.permute.xlu1 %156 }
  0x91   :  { %v147_v17 = vpop.permute.xlu0 %146  ;;  %v253_v20 = vmul.f32 %v8778_v44, %v8807_v16  ;;  %v254_v21 = vmul.f32 %v8781_v45, %v8807_v16  ;;  %v8813_v22 = vpop.permute.xlu2 %201  ;;  %v249_v36 = vmul.f32 %v8826_v38, %v8807_v16  ;;  %v250_v37 = vmul.f32 %v8829_v39, %v8807_v16 }
  0x92   :  { %v241_v26 = vmul.f32 %v8778_v44, %v147_v17  ;;  %v242_v27 = vmul.f32 %v8781_v45, %v147_v17  ;;  %v8819_v30 = vmul.f32 %v8778_v44, %v8813_v22  ;;  %v8823_v31 = vmul.f32 %v8781_v45, %v8813_v22 }
  0x93   :  { %v237_v18 = vmul.f32 %v8826_v38, %v147_v17  ;;  %v238_v51 = vmul.f32 %v8829_v39, %v147_v17  ;;  %v239_v52 = vmul.f32 %v8832_v40, %v147_v17  ;;  %v240_v53 = vmul.f32 %v8835_v41, %v147_v17  ;;  %v8289_v17 = vld [vmem:[#allocation7 + $0x95c] sm:$0xf0] }
  0x94   :  { %v7384_v29 = vor.u32 %v8289_v17, %v7383_v12 }
  0x96   :  { %2901 = vmatpush.bf16.msrb.mxu0 %v7384_v29  ;;  %v7607_v29 = vld [vmem:[#allocation7 + $0xb00] sm:$0xf] }
  0x98   :  { %v8837_v42 = vpop.permute.xlu1 %161 }
  0x99   :  { %v152_v46 = vpop.permute.xlu0 %151  ;;  %v259_v47 = vmul.f32 %v8778_v44, %v8837_v42  ;;  %v260_v48 = vmul.f32 %v8781_v45, %v8837_v42  ;;  %v8861_v62 = vpop.permute.xlu2 %216 }
  0x9a   :  { %v243_v49 = vmul.f32 %v8826_v38, %v152_v46  ;;  %v244_v50 = vmul.f32 %v8829_v39, %v152_v46  ;;  %v245_v56 = vmul.f32 %v8832_v40, %v152_v46  ;;  %v246_v57 = vmul.f32 %v8835_v41, %v152_v46 }
  0x9b   :  { %v8849_v54 = vpack.c.bf16 %v259_v47, %v253_v20  ;;  %v8851_v55 = vpack.c.bf16 %v260_v48, %v254_v21  ;;  %v247_v58 = vmul.f32 %v8778_v44, %v152_v46  ;;  %v248_v59 = vmul.f32 %v8781_v45, %v152_v46  ;;  %v8093_v21 = vld [vmem:[#allocation7 + $0x344] sm:$0xf] }
  0x9c   :  { %v8857_v60 = vpack.c.bf16 %v243_v49, %v237_v18  ;;  %v8859_v61 = vpack.c.bf16 %v244_v50, %v238_v51  ;;  %v8863_v63 = vpack.c.bf16 %v245_v56, %v239_v52  ;;  %v8865_v0 = vpack.c.bf16 %v246_v57, %v240_v53 }
  0x9d   :  { %v8867_v1 = vpack.c.bf16 %v247_v58, %v241_v26  ;;  %v8869_v2 = vpack.c.bf16 %v248_v59, %v242_v27  ;;  %v8881_v6 = vmul.f32 %v8778_v44, %v8861_v62  ;;  %v8885_v7 = vmul.f32 %v8781_v45, %v8861_v62  ;;  %v7639_v26 = vld [vmem:[#allocation7 + $0xb40] sm:$0xf] }
  0x9e   :  { %10411 = vst [vmem:[#allocation19_spill] sm:$0xff] %v8857_v60  ;;  %2711 = vmatmul.bf16.vlgmr.msra.gmra.mxu0 %v8857_v60  ;;  %2760 = vmatmul.bf16.vlgmr.msra.gmra.mxu1 %v8859_v61  ;;  %v8353_v27 = vld [vmem:[#allocation7 + $0xb5c] sm:$0xf0]  ;;  %v6620_v34 = vor.u32 %v8093_v21, %v6617_v25  ;;  %v251_v48 = vmul.f32 %v8832_v40, %v8807_v16  ;;  %v6329_v21 = vld [vmem:[#allocation7 + $0x120] sm:$0xf0] }
  0x9f   :  { %10412 = vst [vmem:[#allocation20_spill] sm:$0xff] %v8859_v61  ;;  %2809 = vmatmul.bf16.vlgmr.msra.gmra.mxu2 %v8863_v63  ;;  %2858 = vmatmul.bf16.vlgmr.msra.gmra.mxu3 %v8865_v0  ;;  %v7640_v35 = vor.u32 %v8353_v27, %v7639_v26  ;;  %v252_v49 = vmul.f32 %v8835_v41, %v8807_v16  ;;  %v8085_v25 = vld [vmem:[#allocation7 + $0x304] sm:$0xf] }
  0xa0   :  { %v8875_v4 = vpop.permute.xlu1 %181  ;;  %3048 = vmatpush.bf16.msrb.mxu3 %v6620_v34  ;;  %v255_v50 = vmul.f32 %v8826_v38, %v8837_v42  ;;  %v256_v18 = vmul.f32 %v8829_v39, %v8837_v42  ;;  %v257_v51 = vmul.f32 %v8832_v40, %v8837_v42  ;;  %v258_v52 = vmul.f32 %v8835_v41, %v8837_v42  ;;  %v8345_v34 = vld [vmem:[#allocation7 + $0xb1c] sm:$0xf0] }
  0xa1   :  { %v8877_v5 = vpop.permute.xlu0 %176  ;;  %v283_v19 = vmul.f32 %v8778_v44, %v8875_v4  ;;  %v284_v20 = vmul.f32 %v8781_v45, %v8875_v4  ;;  %2950 = vmatpush.bf16.msrb.mxu1 %v7640_v35 }
  0xa2   :  { %v277_v23 = vmul.f32 %v8778_v44, %v8877_v5  ;;  %v278_v24 = vmul.f32 %v8781_v45, %v8877_v5  ;;  %v8929_v58 = vpack.c.bf16 %v255_v50, %v249_v36  ;;  %v8931_v59 = vpack.c.bf16 %v256_v18, %v250_v37 }
  0xa3   :  { %v8937_v9 = vpack.c.bf16 %v257_v51, %v251_v48  ;;  %v8939_v12 = vpack.c.bf16 %v258_v52, %v252_v49  ;;  %v6588_v49 = vor.u32 %v8085_v25, %v6585_v28  ;;  %v7608_v50 = vor.u32 %v8345_v34, %v7607_v29  ;;  %v8077_v28 = vld [vmem:[#allocation7 + $0x2c4] sm:$0xf] }
  0xa4   :  { %v8895_v32 = vpack.c.bf16 %v283_v19, %v277_v23  ;;  %v8897_v33 = vpack.c.bf16 %v284_v20, %v278_v24  ;;  %10415 = vst [vmem:[#allocation23_spill] sm:$0xff] %v8929_v58  ;;  %v8021_v20 = vld [vmem:[#allocation7 + $0x104] sm:$0xf]  ;;  %v7351_v23 = vld [vmem:[#allocation7 + $0x900] sm:$0xf]  ;;  %v261_v18 = vmul.f32 %v8826_v38, %v8775_v43  ;;  %v262_v51 = vmul.f32 %v8829_v39, %v8775_v43 }
  0xa5   :  { %10416 = vst [vmem:[#allocation24_spill] sm:$0xff] %v8931_v59  ;;  %v6332_v35 = vor.u32 %v8021_v20, %v6329_v21  ;;  %3049 = vmatpush.bf16.msrb.mxu3 %v6588_v49  ;;  %2951 = vmatpush.bf16.msrb.mxu1 %v7608_v50  ;;  %v269_v20 = vmul.f32 %v8832_v40, %v8787_v3  ;;  %v6553_v29 = vld [vmem:[#allocation7 + $0x2e0] sm:$0xf0]  ;;  %v8337_v49 = vld [vmem:[#allocation7 + $0xadc] sm:$0xf0] }
  0xa6   :  { %v270_v21 = vmul.f32 %v8835_v41, %v8787_v3 }
  0xa7   :  { %3000 = vmatpush.bf16.msrb.mxu2 %v6332_v35  ;;  %v6556_v35 = vor.u32 %v8077_v28, %v6553_v29  ;;  %v8069_v28 = vld [vmem:[#allocation7 + $0x284] sm:$0xf] }
  0xa8   :  { %v8903_v46 = vpop.permute.xlu1 %196  ;;  %v6521_v29 = vld [vmem:[#allocation7 + $0x2a0] sm:$0xf0] }
  0xa9   :  { %v301_v53 = vmul.f32 %v8778_v44, %v8903_v46  ;;  %v302_v56 = vmul.f32 %v8781_v45, %v8903_v46  ;;  %3050 = vmatpush.bf16.msrb.mxu3 %v6556_v35  ;;  %v6524_v35 = vor.u32 %v8069_v28, %v6521_v29  ;;  %v7255_v28 = vld [vmem:[#allocation7 + $0x840] sm:$0xf] }
  0xaa   :  { %v8257_v29 = vld [vmem:[#allocation7 + $0x85c] sm:$0xf0] }
  0xab   :  { %v8924_v16 = vpack.c.bf16 %v8819_v30, %v301_v53  ;;  %v8927_v57 = vpack.c.bf16 %v8823_v31, %v302_v56  ;;  %v263_v53 = vmul.f32 %v8832_v40, %v8775_v43  ;;  %v264_v56 = vmul.f32 %v8835_v41, %v8775_v43 }
  0xad   :  { %10413 = vst [vmem:[#allocation21_spill] sm:$0xff] %v8924_v16  ;;  %3051 = vmatpush.bf16.msrb.mxu3 %v6524_v35  ;;  %v6489_v35 = vld [vmem:[#allocation7 + $0x260] sm:$0xf0] }
  0xae   :  { %10414 = vst [vmem:[#allocation22_spill] sm:$0xff] %v8927_v57  ;;  %2716 = vmatmul.bf16.gmra.mxu0 %v8929_v58  ;;  %2765 = vmatmul.bf16.gmra.mxu1 %v8931_v59 }
  0xaf   :  { %2814 = vmatmul.bf16.gmra.mxu2 %v8937_v9  ;;  %2863 = vmatmul.bf16.gmra.mxu3 %v8939_v12 }
  0xb2   :  { %v8905_v47 = vpop.permute.xlu0 %191 }
  0xb3   :  { %v295_v8 = vmul.f32 %v8778_v44, %v8905_v47  ;;  %v296_v42 = vmul.f32 %v8781_v45, %v8905_v47 }
  0xb5   :  { %v8942_v30 = vpack.c.bf16 %v295_v8, %v8801_v14  ;;  %v8945_v31 = vpack.c.bf16 %v296_v42, %v8805_v15  ;;  %v8281_v14 = vld [vmem:[#allocation7 + $0x91c] sm:$0xf0]  ;;  %v267_v8 = vmul.f32 %v8826_v38, %v8787_v3  ;;  %v268_v42 = vmul.f32 %v8829_v39, %v8787_v3 }
  0xb6   :  { %v7352_v36 = vor.u32 %v8281_v14, %v7351_v23  ;;  %v7319_v3 = vld [vmem:[#allocation7 + $0x8c0] sm:$0xf] }
  0xb7   :  { %10417 = vst [vmem:[#allocation25_spill] sm:$0xff] %v8945_v31  ;;  %v8997_v25 = vpack.c.bf16 %v268_v42, %v262_v51  ;;  %v280_v51 = vmul.f32 %v8829_v39, %v8875_v4  ;;  %v282_v42 = vmul.f32 %v8835_v41, %v8875_v4 }
  0xb8   :  { %2902 = vmatpush.bf16.msrb.mxu0 %v7352_v36  ;;  %v7575_v36 = vld [vmem:[#allocation7 + $0xac0] sm:$0xf] }
  0xb9   :  { %10423 = vst [vmem:[#allocation31_spill] sm:$0xff] %v8997_v25  ;;  %v7576_v50 = vor.u32 %v8337_v49, %v7575_v36  ;;  %v7543_v36 = vld [vmem:[#allocation7 + $0xa80] sm:$0xf] }
  0xba   :  { %v8953_v19 = vpop.permute.xlu0 %206  ;;  %v8329_v49 = vld [vmem:[#allocation7 + $0xa9c] sm:$0xf0] }
  0xbb   :  { %v8951_v17 = vpop.permute.xlu1 %211  ;;  %v313_v26 = vmul.f32 %v8778_v44, %v8953_v19  ;;  %v314_v27 = vmul.f32 %v8781_v45, %v8953_v19  ;;  %2952 = vmatpush.bf16.msrb.mxu1 %v7576_v50  ;;  %v7544_v50 = vor.u32 %v8329_v49, %v7543_v36  ;;  %v7256_v36 = vor.u32 %v8257_v29, %v7255_v28 }
  0xbc   :  { %v319_v15 = vmul.f32 %v8778_v44, %v8951_v17  ;;  %v320_v24 = vmul.f32 %v8781_v45, %v8951_v17 }
  0xbe   :  { %v8963_v37 = vpack.c.bf16 %v319_v15, %v313_v26  ;;  %v8965_v48 = vpack.c.bf16 %v320_v24, %v314_v27  ;;  %v8995_v24 = vpack.c.bf16 %v267_v8, %v261_v18  ;;  %v8999_v26 = vpack.c.bf16 %v269_v20, %v263_v53  ;;  %2770 = vmatmul.bf16.gmra.mxu1 %v8997_v25 }
  0xbf   :  { %v9001_v27 = vpack.c.bf16 %v270_v21, %v264_v56  ;;  %v279_v18 = vmul.f32 %v8826_v38, %v8875_v4  ;;  %v273_v53 = vmul.f32 %v8826_v38, %v8877_v5  ;;  %v274_v56 = vmul.f32 %v8829_v39, %v8877_v5  ;;  %2953 = vmatpush.bf16.msrb.mxu1 %v7544_v50  ;;  %v7511_v50 = vld [vmem:[#allocation7 + $0xa40] sm:$0xf] }
  0xc0   :  { %10418 = vst [vmem:[#allocation26_spill] sm:$0xff] %v8963_v37  ;;  %2721 = vmatmul.bf16.gmra.mxu0 %v8995_v24  ;;  %2819 = vmatmul.bf16.gmra.mxu2 %v8999_v26  ;;  %v281_v8 = vmul.f32 %v8832_v40, %v8875_v4  ;;  %v275_v20 = vmul.f32 %v8832_v40, %v8877_v5  ;;  %v8005_v4 = vld [vmem:[#allocation7 + $0x84] sm:$0xf] }
  0xc1   :  { %10419 = vst [vmem:[#allocation27_spill] sm:$0xff] %v8965_v48  ;;  %2868 = vmatmul.bf16.gmra.mxu3 %v9001_v27  ;;  %v276_v21 = vmul.f32 %v8835_v41, %v8877_v5 }
  0xc2   :  { %v8971_v52 = vpop.permute.xlu0 %221  ;;  %10422 = vst [vmem:[#allocation30_spill] sm:$0xff] %v8995_v24 }
  0xc3   :  { %v331_v23 = vmul.f32 %v8778_v44, %v8971_v52  ;;  %v332_v14 = vmul.f32 %v8781_v45, %v8971_v52  ;;  %v8013_v44 = vld [vmem:[#allocation7 + $0xc4] sm:$0xf] }
  0xc4   :  { %v6297_v45 = vld [vmem:[#allocation7 + $0xe0] sm:$0xf0] }
  0xc5   :  { %v8990_v43 = vpack.c.bf16 %v331_v23, %v8881_v6  ;;  %v8993_v15 = vpack.c.bf16 %v332_v14, %v8885_v7  ;;  %v6300_v6 = vor.u32 %v8013_v44, %v6297_v45  ;;  %v8273_v7 = vld [vmem:[#allocation7 + $0x8dc] sm:$0xf0]  ;;  %v9023_v23 = vpack.c.bf16 %v279_v18, %v273_v53 }
  0xc6   :  { %v7320_v34 = vor.u32 %v8273_v7, %v7319_v3  ;;  %v9025_v14 = vpack.c.bf16 %v280_v51, %v274_v56  ;;  %v9027_v44 = vpack.c.bf16 %v281_v8, %v275_v20  ;;  %v9029_v45 = vpack.c.bf16 %v282_v42, %v276_v21  ;;  %v6265_v3 = vld [vmem:[#allocation7 + $0xa0] sm:$0xf0]  ;;  %v8265_v7 = vld [vmem:[#allocation7 + $0x89c] sm:$0xf0] }
  0xc7   :  { %10420 = vst [vmem:[#allocation28_spill] sm:$0xff] %v8990_v43  ;;  %3001 = vmatpush.bf16.msrb.mxu2 %v6300_v6  ;;  %v7287_v6 = vld [vmem:[#allocation7 + $0x880] sm:$0xf]  ;;  %v6268_v5 = vor.u32 %v8005_v4, %v6265_v3  ;;  %v285_v18 = vmul.f32 %v8826_v38, %v8797_v13  ;;  %v286_v51 = vmul.f32 %v8829_v39, %v8797_v13 }
  0xc8   :  { %10421 = vst [vmem:[#allocation29_spill] sm:$0xff] %v8993_v15  ;;  %2903 = vmatpush.bf16.msrb.mxu0 %v7320_v34  ;;  %v7288_v34 = vor.u32 %v8265_v7, %v7287_v6  ;;  %v291_v53 = vmul.f32 %v8826_v38, %v8905_v47  ;;  %v292_v56 = vmul.f32 %v8829_v39, %v8905_v47  ;;  %v6233_v7 = vld [vmem:[#allocation7 + $0x60] sm:$0xf0] }
  0xc9   :  { %10424 = vst [vmem:[#allocation32_spill] sm:$0xff] %v9023_v23  ;;  %v287_v8 = vmul.f32 %v8832_v40, %v8797_v13  ;;  %v288_v42 = vmul.f32 %v8835_v41, %v8797_v13  ;;  %v293_v20 = vmul.f32 %v8832_v40, %v8905_v47  ;;  %v294_v21 = vmul.f32 %v8835_v41, %v8905_v47  ;;  %v7997_v13 = vld [vmem:[#allocation7 + $0x44] sm:$0xf] }
  0xca   :  { %10425 = vst [vmem:[#allocation33_spill] sm:$0xff] %v9025_v14  ;;  %v9051_v4 = vpack.c.bf16 %v291_v53, %v285_v18  ;;  %v9053_v3 = vpack.c.bf16 %v292_v56, %v286_v51  ;;  %v6236_v47 = vor.u32 %v7997_v13, %v6233_v7  ;;  %v8321_v18 = vld [vmem:[#allocation7 + $0xa5c] sm:$0xf0]  ;;  %v303_v53 = vmul.f32 %v8826_v38, %v8813_v22 }
  0xcb   :  { %3002 = vmatpush.bf16.msrb.mxu2 %v6268_v5  ;;  %v9055_v6 = vpack.c.bf16 %v293_v20, %v287_v8  ;;  %v9057_v5 = vpack.c.bf16 %v294_v21, %v288_v42  ;;  %v7512_v51 = vor.u32 %v8321_v18, %v7511_v50  ;;  %v304_v56 = vmul.f32 %v8829_v39, %v8813_v22  ;;  %v8053_v50 = vld [vmem:[#allocation7 + $0x204] sm:$0xf] }
  0xcc   :  { %2904 = vmatpush.bf16.msrb.mxu0 %v7288_v34  ;;  %10426 = vst [vmem:[#allocation34_spill] sm:$0xff] %v9051_v4  ;;  %v8061_v34 = vld [vmem:[#allocation7 + $0x244] sm:$0xf]  ;;  %v297_v8 = vmul.f32 %v8826_v38, %v8903_v46  ;;  %v298_v42 = vmul.f32 %v8829_v39, %v8903_v46  ;;  %v305_v20 = vmul.f32 %v8832_v40, %v8813_v22 }
  0xcd   :  { %10427 = vst [vmem:[#allocation35_spill] sm:$0xff] %v9053_v3  ;;  %v6492_v49 = vor.u32 %v8061_v34, %v6489_v35  ;;  %2954 = vmatpush.bf16.msrb.mxu1 %v7512_v51  ;;  %v306_v21 = vmul.f32 %v8835_v41, %v8813_v22  ;;  %v299_v13 = vmul.f32 %v8832_v40, %v8903_v46  ;;  %v7989_v22 = vld [vmem:[#allocation7 + $0x4] sm:$0xf] }
  0xce   :  { %2775 = vmatmul.bf16.gmra.mxu1 %v9025_v14  ;;  %v300_v7 = vmul.f32 %v8835_v41, %v8903_v46  ;;  %v9079_v28 = vpack.c.bf16 %v303_v53, %v297_v8  ;;  %v6201_v35 = vld [vmem:[#allocation7 + $0x20] sm:$0xf0]  ;;  %v8313_v8 = vld [vmem:[#allocation7 + $0xa1c] sm:$0xf0] }
  0xcf   :  { %3003 = vmatpush.bf16.msrb.mxu2 %v6236_v47  ;;  %3052 = vmatpush.bf16.msrb.mxu3 %v6492_v49  ;;  %v9081_v47 = vpack.c.bf16 %v304_v56, %v298_v42  ;;  %v9083_v29 = vpack.c.bf16 %v305_v20, %v299_v13  ;;  %v6204_v46 = vor.u32 %v7989_v22, %v6201_v35  ;;  %v8249_v49 = vld [vmem:[#allocation7 + $0x81c] sm:$0xf0]  ;;  %v6457_v18 = vld [vmem:[#allocation7 + $0x220] sm:$0xf0] }
  0xd0   :  { %2726 = vmatmul.bf16.gmra.mxu0 %v9023_v23  ;;  %2824 = vmatmul.bf16.gmra.mxu2 %v9027_v44  ;;  %10428 = vst [vmem:[#allocation36_spill] sm:$0xff] %v9079_v28  ;;  %v9085_v34 = vpack.c.bf16 %v306_v21, %v300_v7  ;;  %v6460_v53 = vor.u32 %v8053_v50, %v6457_v18  ;;  %v7479_v56 = vld [vmem:[#allocation7 + $0xa00] sm:$0xf] }
  0xd1   :  { %2873 = vmatmul.bf16.gmra.mxu3 %v9029_v45  ;;  %2905 = vmatpush.bf16.msrb.mxu0 %v7256_v36  ;;  %10429 = vst [vmem:[#allocation37_spill] sm:$0xff] %v9081_v47  ;;  %v7223_v36 = vld [vmem:[#allocation7 + $0x800] sm:$0xf]  ;;  %v7480_v42 = vor.u32 %v8313_v8, %v7479_v56  ;;  %v315_v20 = vmul.f32 %v8826_v38, %v8951_v17  ;;  %v8173_v56 = vld [vmem:[#allocation7 + $0x5c4] sm:$0xf] }
  0xd2   :  { %v7224_v51 = vor.u32 %v8249_v49, %v7223_v36  ;;  %v316_v21 = vmul.f32 %v8829_v39, %v8951_v17  ;;  %v309_v13 = vmul.f32 %v8826_v38, %v8953_v19  ;;  %v310_v7 = vmul.f32 %v8829_v39, %v8953_v19  ;;  %v6937_v8 = vld [vmem:[#allocation7 + $0x5e0] sm:$0xf0] }
  0xd3   :  { %3004 = vmatpush.bf16.msrb.mxu2 %v6204_v46  ;;  %3053 = vmatpush.bf16.msrb.mxu3 %v6460_v53  ;;  %v317_v22 = vmul.f32 %v8832_v40, %v8951_v17  ;;  %v318_v35 = vmul.f32 %v8835_v41, %v8951_v17  ;;  %v311_v36 = vmul.f32 %v8832_v40, %v8953_v19  ;;  %v8301_v17 = vld [vmem:[#allocation7 + $0x9c4] sm:$0xf] }
  0xd4   :  { %2955 = vmatpush.bf16.msrb.mxu1 %v7480_v42  ;;  %v312_v46 = vmul.f32 %v8835_v41, %v8953_v19  ;;  %v9107_v49 = vpack.c.bf16 %v315_v20, %v309_v13  ;;  %v9109_v50 = vpack.c.bf16 %v316_v21, %v310_v7  ;;  %v7449_v53 = vld [vmem:[#allocation7 + $0x9e0] sm:$0xf0]  ;;  %v6940_v21 = vor.u32 %v8173_v56, %v6937_v8 }
  0xd5   :  { %2906 = vmatpush.bf16.msrb.mxu0 %v7224_v51  ;;  %v9111_v18 = vpack.c.bf16 %v317_v22, %v311_v36  ;;  %v7452_v19 = vor.u32 %v8301_v17, %v7449_v53  ;;  %v8365_v42 = vld [vmem:[#allocation7 + $0xbc4] sm:$0xf]  ;;  %v327_v36 = vmul.f32 %v8826_v38, %v8971_v52  ;;  %v329_v17 = vmul.f32 %v8832_v40, %v8971_v52 }
  0xd6   :  { %10430 = vst [vmem:[#allocation38_spill] sm:$0xff] %v9107_v49  ;;  %v9113_v51 = vpack.c.bf16 %v318_v35, %v312_v46  ;;  %v7705_v20 = vld [vmem:[#allocation7 + $0xbe0] sm:$0xf0]  ;;  %v328_v46 = vmul.f32 %v8829_v39, %v8971_v52  ;;  %v330_v53 = vmul.f32 %v8835_v41, %v8971_v52  ;;  %v321_v56 = vmul.f32 %v8826_v38, %v8861_v62 }
  0xd7   :  { %10431 = vst [vmem:[#allocation39_spill] sm:$0xff] %v9109_v50  ;;  %v7708_v13 = vor.u32 %v8365_v42, %v7705_v20  ;;  %3193 = vmatpush.bf16.msra.mxu2 %v7452_v19  ;;  %v8237_v7 = vld [vmem:[#allocation7 + $0x7c4] sm:$0xf]  ;;  %v322_v19 = vmul.f32 %v8829_v39, %v8861_v62  ;;  %v323_v8 = vmul.f32 %v8832_v40, %v8861_v62 }
  0xd8   :  { %10432 = vst [vmem:[#allocation40_spill] sm:$0xff] %v9111_v18  ;;  %v7193_v22 = vld [vmem:[#allocation7 + $0x7e0] sm:$0xf0]  ;;  %v324_v42 = vmul.f32 %v8835_v41, %v8861_v62  ;;  %v9135_v20 = vpack.c.bf16 %v327_v36, %v321_v56 }
  0xd9   :  { %10433 = vst [vmem:[#allocation41_spill] sm:$0xff] %v9113_v51  ;;  %3095 = vmatpush.bf16.msra.mxu0 %v6940_v21  ;;  %3242 = vmatpush.bf16.msra.mxu3 %v7708_v13  ;;  %v7196_v35 = vor.u32 %v8237_v7, %v7193_v22  ;;  %v9137_v21 = vpack.c.bf16 %v328_v46, %v322_v19  ;;  %v8293_v38 = vld [vmem:[#allocation7 + $0x984] sm:$0xf] }
  0xda   :  { %10434 = vst [vmem:[#allocation42_spill] sm:$0xff] %v9135_v20  ;;  %v9139_v13 = vpack.c.bf16 %v329_v17, %v323_v8  ;;  %v9141_v7 = vpack.c.bf16 %v330_v53, %v324_v42  ;;  %v7417_v39 = vld [vmem:[#allocation7 + $0x9a0] sm:$0xf0] }
  0xdb   :  { %3144 = vmatpush.bf16.msra.mxu1 %v7196_v35  ;;  %10435 = vst [vmem:[#allocation43_spill] sm:$0xff] %v9137_v21  ;;  %v8165_v40 = vld [vmem:[#allocation7 + $0x584] sm:$0xf]  ;;  %v7420_v41 = vor.u32 %v8293_v38, %v7417_v39 }
  0xdc   :  { %10436 = vst [vmem:[#allocation44_spill] sm:$0xff] %v9139_v13  ;;  %v6905_v62 = vld [vmem:[#allocation7 + $0x5a0] sm:$0xf0] }
  0xdd   :  { %10437 = vst [vmem:[#allocation45_spill] sm:$0xff] %v9141_v7  ;;  %v8357_v52 = vld [vmem:[#allocation7 + $0xb84] sm:$0xf]  ;;  %v6908_v35 = vor.u32 %v8165_v40, %v6905_v62  ;;  %3194 = vmatpush.bf16.msra.mxu2 %v7420_v41 }
  0xde   :  { %2780 = vmatmul.bf16.gmra.mxu1 %v9053_v3  ;;  %v7673_v22 = vld [vmem:[#allocation7 + $0xba0] sm:$0xf0] }
  0xdf   :  { %v7676_v36 = vor.u32 %v8357_v52, %v7673_v22  ;;  %3096 = vmatpush.bf16.msra.mxu0 %v6908_v35  ;;  %v9147_v46 = vld [vmem:[#allocation8] sm:$0xff] }
  0xe0   :  { %2731 = vmatmul.bf16.gmra.mxu0 %v9051_v4  ;;  %2829 = vmatmul.bf16.gmra.mxu2 %v9055_v6  ;;  %v8229_v17 = vld [vmem:[#allocation7 + $0x784] sm:$0xf]  ;;  %v9150_v19 = vperm.slane %v9147_v46, 0 }
  0xe1   :  { %2878 = vmatmul.bf16.gmra.mxu3 %v9057_v5  ;;  %v7161_v53 = vld [vmem:[#allocation7 + $0x7a0] sm:$0xf0] }
  0xe2   :  { %3243 = vmatpush.bf16.msra.mxu3 %v7676_v36  ;;  %v7164_v56 = vor.u32 %v8229_v17, %v7161_v53  ;;  %v8285_v40 = vld [vmem:[#allocation7 + $0x944] sm:$0xf] }
  0xe3   :  { %v7385_v41 = vld [vmem:[#allocation7 + $0x960] sm:$0xf0] }
  0xe4   :  { %3145 = vmatpush.bf16.msra.mxu1 %v7164_v56  ;;  %v8157_v62 = vld [vmem:[#allocation7 + $0x544] sm:$0xf]  ;;  %v7388_v52 = vor.u32 %v8285_v40, %v7385_v41 }
  0xe5   :  { %v6873_v22 = vld [vmem:[#allocation7 + $0x560] sm:$0xf0] }
  0xe6   :  { %v8349_v35 = vld [vmem:[#allocation7 + $0xb44] sm:$0xf]  ;;  %v6876_v17 = vor.u32 %v8157_v62, %v6873_v22  ;;  %3195 = vmatpush.bf16.msra.mxu2 %v7388_v52 }
  0xe7   :  { %v7641_v36 = vld [vmem:[#allocation7 + $0xb60] sm:$0xf0] }
  0xe8   :  { %v7644_v53 = vor.u32 %v8349_v35, %v7641_v36  ;;  %3097 = vmatpush.bf16.msra.mxu0 %v6876_v17 }
  0xea   :  { %3244 = vmatpush.bf16.msra.mxu3 %v7644_v53  ;;  %v8341_v53 = vld [vmem:[#allocation7 + $0xb04] sm:$0xf] }
  0xee   :  { %2785 = vmatmul.bf16.gmra.mxu1 %v9081_v47 }
  0xf0   :  { %2736 = vmatmul.bf16.gmra.mxu0 %v9079_v28  ;;  %2834 = vmatmul.bf16.gmra.mxu2 %v9083_v29 }
  0xf1   :  { %2883 = vmatmul.bf16.gmra.mxu3 %v9085_v34 }
  0xfe   :  { %2790 = vmatmul.bf16.gmra.mxu1 %v9109_v50 }
 0x100   :  { %2741 = vmatmul.bf16.gmra.mxu0 %v9107_v49  ;;  %2839 = vmatmul.bf16.gmra.mxu2 %v9111_v18 }
 0x101   :  { %2888 = vmatmul.bf16.gmra.mxu3 %v9113_v51  ;;  %v7129_v51 = vld [vmem:[#allocation7 + $0x760] sm:$0xf0] }
 0x10e   :  { %2795 = vmatmul.bf16.gmra.mxu1 %v9137_v21 }
 0x110   :  { %2746 = vmatmul.bf16.gmra.mxu0 %v9135_v20  ;;  %2844 = vmatmul.bf16.gmra.mxu2 %v9139_v13  ;;  %v8221_v13 = vld [vmem:[#allocation7 + $0x744] sm:$0xf] }
 0x111   :  { %2893 = vmatmul.bf16.gmra.mxu3 %v9141_v7  ;;  %v7132_v41 = vor.u32 %v8221_v13, %v7129_v51  ;;  %v7353_v51 = vld [vmem:[#allocation7 + $0x920] sm:$0xf0] }
 0x112   :  { %v8149_v13 = vld [vmem:[#allocation7 + $0x504] sm:$0xf] }
 0x113   :  { %3146 = vmatpush.bf16.msra.mxu1 %v7132_v41 }
 0x11b   :  { %v2712_v8 = vpop.f32.mrf.mxu0  ;;  %v2761_v42 = vpop.f32.mrf.mxu1 }
 0x11c   :  { %v2713_v38 = vadd.f32 %v2712_v8, %v9150_v19 }
 0x11e   :  { %v2762_v39 = vadd.f32 %v2761_v42, %v2713_v38  ;;  %2956 = vmatmul.bf16.vlgmr.msrb.gmra.mxu1 %v8869_v2 }
 0x120   :  { %2907 = vmatmul.bf16.vlgmr.msrb.gmra.mxu0 %v8867_v1  ;;  %3005 = vmatmul.bf16.vlgmr.msrb.gmra.mxu2 %v8857_v60 }
 0x121   :  { %3054 = vmatmul.bf16.vlgmr.msrb.gmra.mxu3 %v8859_v61 }
 0x122   :  { %v2810_v56 = vpop.f32.mrf.mxu2  ;;  %v2859_v8 = vpop.f32.mrf.mxu3 }
 0x123   :  { %v2811_v42 = vadd.f32 %v2810_v56, %v2762_v39  ;;  %v2714_v38 = vpop.f32.mrf.mxu0  ;;  %v2763_v7 = vpop.f32.mrf.mxu1  ;;  %v7609_v56 = vld [vmem:[#allocation7 + $0xb20] sm:$0xf0] }
 0x124   :  { %v2715_v60 = vadd.f32 %v2714_v38, %v9150_v19 }
 0x125   :  { %v9158_v61 = vadd.f32 %v2859_v8, %v2811_v42  ;;  %v7612_v42 = vor.u32 %v8341_v53, %v7609_v56 }
 0x126   :  { %v2764_v40 = vadd.f32 %v2763_v7, %v2715_v60  ;;  %v8277_v60 = vld [vmem:[#allocation7 + $0x904] sm:$0xf] }
 0x127   :  { %v7356_v7 = vor.u32 %v8277_v60, %v7353_v51  ;;  %3245 = vmatpush.bf16.msra.mxu3 %v7612_v42  ;;  %v7321_v42 = vld [vmem:[#allocation7 + $0x8e0] sm:$0xf0] }
 0x129   :  { %3196 = vmatpush.bf16.msra.mxu2 %v7356_v7 }
 0x12a   :  { %v2812_v18 = vpop.f32.mrf.mxu2  ;;  %v2861_v62 = vpop.f32.mrf.mxu3 }
 0x12b   :  { %v2813_v22 = vadd.f32 %v2812_v18, %v2764_v40  ;;  %v2717_v35 = vpop.f32.mrf.mxu0  ;;  %v2766_v36 = vpop.f32.mrf.mxu1  ;;  %v6841_v18 = vld [vmem:[#allocation7 + $0x520] sm:$0xf0] }
 0x12c   :  { %v2718_v39 = vadd.f32 %v2717_v35, %v9150_v19  ;;  %v6844_v8 = vor.u32 %v8149_v13, %v6841_v18 }
 0x12d   :  { %v9161_v52 = vadd.f32 %v2861_v62, %v2813_v22 }
 0x12e   :  { %v2767_v17 = vadd.f32 %v2766_v36, %v2718_v39  ;;  %2961 = vmatmul.bf16.gmra.mxu1 %v8851_v55  ;;  %3098 = vmatpush.bf16.msra.mxu0 %v6844_v8  ;;  %v8213_v39 = vld [vmem:[#allocation7 + $0x704] sm:$0xf] }
 0x130   :  { %2912 = vmatmul.bf16.gmra.mxu0 %v8849_v54  ;;  %3010 = vmatmul.bf16.gmra.mxu2 %v8929_v58 }
 0x131   :  { %3059 = vmatmul.bf16.gmra.mxu3 %v8931_v59  ;;  %v7097_v59 = vld [vmem:[#allocation7 + $0x720] sm:$0xf0] }
 0x132   :  { %v2815_v38 = vpop.f32.mrf.mxu2  ;;  %v2864_v40 = vpop.f32.mrf.mxu3  ;;  %v7100_v51 = vor.u32 %v8213_v39, %v7097_v59  ;;  %v8269_v59 = vld [vmem:[#allocation7 + $0x8c4] sm:$0xf] }
 0x133   :  { %v2816_v41 = vadd.f32 %v2815_v38, %v2767_v17  ;;  %v2719_v62 = vpop.f32.mrf.mxu0  ;;  %v2768_v22 = vpop.f32.mrf.mxu1  ;;  %v8141_v38 = vld [vmem:[#allocation7 + $0x4c4] sm:$0xf] }
 0x134   :  { %v2720_v35 = vadd.f32 %v2719_v62, %v9150_v19  ;;  %3147 = vmatpush.bf16.msra.mxu1 %v7100_v51  ;;  %v7577_v62 = vld [vmem:[#allocation7 + $0xae0] sm:$0xf0] }
 0x135   :  { %v9168_v36 = vadd.f32 %v2864_v40, %v2816_v41  ;;  %v7324_v40 = vor.u32 %v8269_v59, %v7321_v42  ;;  %v8333_v41 = vld [vmem:[#allocation7 + $0xac4] sm:$0xf] }
 0x136   :  { %v2769_v60 = vadd.f32 %v2768_v22, %v2720_v35  ;;  %v7580_v35 = vor.u32 %v8333_v41, %v7577_v62 }
 0x137   :  { %3197 = vmatpush.bf16.msra.mxu2 %v7324_v40 }
 0x138   :  { %3246 = vmatpush.bf16.msra.mxu3 %v7580_v35  ;;  %v7289_v35 = vld [vmem:[#allocation7 + $0x8a0] sm:$0xf0] }
 0x13a   :  { %v2817_v58 = vpop.f32.mrf.mxu2  ;;  %v2866_v13 = vpop.f32.mrf.mxu3 }
 0x13b   :  { %v2818_v18 = vadd.f32 %v2817_v58, %v2769_v60  ;;  %v2771_v56 = vpop.f32.mrf.mxu1  ;;  %v6809_v58 = vld [vmem:[#allocation7 + $0x4e0] sm:$0xf0] }
 0x13c   :  { %v6812_v22 = vor.u32 %v8141_v38, %v6809_v58 }
 0x13d   :  { %v2722_v53 = vpop.f32.mrf.mxu0  ;;  %v9171_v7 = vadd.f32 %v2866_v13, %v2818_v18 }
 0x13e   :  { %v2723_v17 = vadd.f32 %v2722_v53, %v9150_v19  ;;  %2966 = vmatmul.bf16.gmra.mxu1 %v8795_v11  ;;  %3099 = vmatpush.bf16.msra.mxu0 %v6812_v22 }
 0x140   :  { %v2772_v8 = vadd.f32 %v2771_v56, %v2723_v17  ;;  %2917 = vmatmul.bf16.gmra.mxu0 %v8793_v10  ;;  %3015 = vmatmul.bf16.gmra.mxu2 %v8995_v24  ;;  %v8205_v17 = vld [vmem:[#allocation7 + $0x6c4] sm:$0xf] }
 0x141   :  { %3064 = vmatmul.bf16.gmra.mxu3 %v8997_v25  ;;  %v7065_v25 = vld [vmem:[#allocation7 + $0x6e0] sm:$0xf0] }
 0x142   :  { %v7068_v42 = vor.u32 %v8205_v17, %v7065_v25  ;;  %v8261_v25 = vld [vmem:[#allocation7 + $0x884] sm:$0xf] }
 0x143   :  { %v2820_v39 = vpop.f32.mrf.mxu2  ;;  %v2773_v18 = vpop.f32.mrf.mxu1 }
 0x144   :  { %v2869_v60 = vpop.f32.mrf.mxu3  ;;  %v2821_v51 = vadd.f32 %v2820_v39, %v2772_v8  ;;  %3148 = vmatpush.bf16.msra.mxu1 %v7068_v42  ;;  %v8133_v39 = vld [vmem:[#allocation7 + $0x484] sm:$0xf] }
 0x145   :  { %v2724_v13 = vpop.f32.mrf.mxu0 }
 0x146   :  { %v2725_v53 = vadd.f32 %v2724_v13, %v9150_v19  ;;  %v9178_v56 = vadd.f32 %v2869_v60, %v2821_v51  ;;  %v7292_v60 = vor.u32 %v8261_v25, %v7289_v35  ;;  %v8325_v51 = vld [vmem:[#allocation7 + $0xa84] sm:$0xf] }
 0x147   :  { %v7545_v13 = vld [vmem:[#allocation7 + $0xaa0] sm:$0xf0] }
 0x148   :  { %v2774_v59 = vadd.f32 %v2773_v18, %v2725_v53  ;;  %v7548_v53 = vor.u32 %v8325_v51, %v7545_v13  ;;  %3198 = vmatpush.bf16.msra.mxu2 %v7292_v60 }
 0x14a   :  { %3247 = vmatpush.bf16.msra.mxu3 %v7548_v53  ;;  %v7257_v53 = vld [vmem:[#allocation7 + $0x860] sm:$0xf0] }
 0x14b   :  { %v2822_v24 = vpop.f32.mrf.mxu2  ;;  %v2776_v62 = vpop.f32.mrf.mxu1 }
 0x14c   :  { %v2871_v38 = vpop.f32.mrf.mxu3  ;;  %v2823_v58 = vadd.f32 %v2822_v24, %v2774_v59  ;;  %v6777_v24 = vld [vmem:[#allocation7 + $0x4a0] sm:$0xf0] }
 0x14d   :  { %v2727_v41 = vpop.f32.mrf.mxu0  ;;  %v6780_v18 = vor.u32 %v8133_v39, %v6777_v24 }
 0x14e   :  { %v2728_v8 = vadd.f32 %v2727_v41, %v9150_v19  ;;  %v9181_v40 = vadd.f32 %v2871_v38, %v2823_v58  ;;  %2971 = vmatmul.bf16.gmra.mxu1 %v8897_v33 }
 0x14f   :  { %3100 = vmatpush.bf16.msra.mxu0 %v6780_v18 }
 0x150   :  { %v2777_v22 = vadd.f32 %v2776_v62, %v2728_v8  ;;  %2922 = vmatmul.bf16.gmra.mxu0 %v8895_v32  ;;  %3020 = vmatmul.bf16.gmra.mxu2 %v9023_v23  ;;  %v8197_v8 = vld [vmem:[#allocation7 + $0x684] sm:$0xf] }
 0x151   :  { %3069 = vmatmul.bf16.gmra.mxu3 %v9025_v14  ;;  %v7033_v14 = vld [vmem:[#allocation7 + $0x6a0] sm:$0xf0] }
 0x152   :  { %v7036_v35 = vor.u32 %v8197_v8, %v7033_v14  ;;  %v8253_v14 = vld [vmem:[#allocation7 + $0x844] sm:$0xf] }
 0x153   :  { %v2825_v17 = vpop.f32.mrf.mxu2  ;;  %v2778_v58 = vpop.f32.mrf.mxu1 }
 0x154   :  { %v2874_v59 = vpop.f32.mrf.mxu3  ;;  %v2826_v42 = vadd.f32 %v2825_v17, %v2777_v22  ;;  %3149 = vmatpush.bf16.msra.mxu1 %v7036_v35  ;;  %v8125_v17 = vld [vmem:[#allocation7 + $0x444] sm:$0xf] }
 0x155   :  { %v2729_v38 = vpop.f32.mrf.mxu0 }
 0x156   :  { %v2730_v41 = vadd.f32 %v2729_v38, %v9150_v19  ;;  %v9188_v62 = vadd.f32 %v2874_v59, %v2826_v42  ;;  %v7260_v59 = vor.u32 %v8253_v14, %v7257_v53  ;;  %v8317_v42 = vld [vmem:[#allocation7 + $0xa44] sm:$0xf] }
 0x157   :  { %v7513_v38 = vld [vmem:[#allocation7 + $0xa60] sm:$0xf0] }
 0x158   :  { %v2779_v25 = vadd.f32 %v2778_v58, %v2730_v41  ;;  %v7516_v41 = vor.u32 %v8317_v42, %v7513_v38  ;;  %3199 = vmatpush.bf16.msra.mxu2 %v7260_v59 }
 0x15a   :  { %3248 = vmatpush.bf16.msra.mxu3 %v7516_v41  ;;  %v7225_v41 = vld [vmem:[#allocation7 + $0x820] sm:$0xf0] }
 0x15b   :  { %v2827_v23 = vpop.f32.mrf.mxu2  ;;  %v2781_v13 = vpop.f32.mrf.mxu1 }
 0x15c   :  { %v2876_v39 = vpop.f32.mrf.mxu3  ;;  %v2828_v24 = vadd.f32 %v2827_v23, %v2779_v25  ;;  %v6745_v23 = vld [vmem:[#allocation7 + $0x460] sm:$0xf0] }
 0x15d   :  { %v2732_v51 = vpop.f32.mrf.mxu0  ;;  %v6748_v58 = vor.u32 %v8125_v17, %v6745_v23 }
 0x15e   :  { %v2733_v22 = vadd.f32 %v2732_v51, %v9150_v19  ;;  %v9191_v60 = vadd.f32 %v2876_v39, %v2828_v24  ;;  %2976 = vmatmul.bf16.gmra.mxu1 %v8945_v31 }
 0x15f   :  { %3101 = vmatpush.bf16.msra.mxu0 %v6748_v58 }
 0x160   :  { %v2782_v18 = vadd.f32 %v2781_v13, %v2733_v22  ;;  %2927 = vmatmul.bf16.gmra.mxu0 %v8942_v30  ;;  %3025 = vmatmul.bf16.gmra.mxu2 %v9051_v4  ;;  %v8189_v22 = vld [vmem:[#allocation7 + $0x644] sm:$0xf] }
 0x161   :  { %3074 = vmatmul.bf16.gmra.mxu3 %v9053_v3  ;;  %v7001_v3 = vld [vmem:[#allocation7 + $0x660] sm:$0xf0] }
 0x162   :  { %v7004_v53 = vor.u32 %v8189_v22, %v7001_v3  ;;  %v8245_v3 = vld [vmem:[#allocation7 + $0x804] sm:$0xf] }
 0x163   :  { %v2830_v8 = vpop.f32.mrf.mxu2  ;;  %v2783_v24 = vpop.f32.mrf.mxu1 }
 0x164   :  { %v2879_v25 = vpop.f32.mrf.mxu3  ;;  %v2831_v35 = vadd.f32 %v2830_v8, %v2782_v18  ;;  %3150 = vmatpush.bf16.msra.mxu1 %v7004_v53  ;;  %v8117_v8 = vld [vmem:[#allocation7 + $0x404] sm:$0xf] }
 0x165   :  { %v2734_v39 = vpop.f32.mrf.mxu0 }
 0x166   :  { %v2735_v51 = vadd.f32 %v2734_v39, %v9150_v19  ;;  %v9198_v13 = vadd.f32 %v2879_v25, %v2831_v35  ;;  %v7228_v25 = vor.u32 %v8245_v3, %v7225_v41  ;;  %v8309_v35 = vld [vmem:[#allocation7 + $0xa04] sm:$0xf] }
 0x167   :  { %v7481_v39 = vld [vmem:[#allocation7 + $0xa20] sm:$0xf0] }
 0x168   :  { %v2784_v14 = vadd.f32 %v2783_v24, %v2735_v51  ;;  %v7484_v51 = vor.u32 %v8309_v35, %v7481_v39  ;;  %3200 = vmatpush.bf16.msra.mxu2 %v7228_v25 }
 0x16a   :  { %3249 = vmatpush.bf16.msra.mxu3 %v7484_v51  ;;  %v8178_v51 = vld [vmem:[#allocation7 + $0x5e4] sm:$0xf0] }
 0x16b   :  { %v2832_v4 = vpop.f32.mrf.mxu2  ;;  %v2786_v38 = vpop.f32.mrf.mxu1 }
 0x16c   :  { %v2881_v17 = vpop.f32.mrf.mxu3  ;;  %v2833_v23 = vadd.f32 %v2832_v4, %v2784_v14  ;;  %v6713_v4 = vld [vmem:[#allocation7 + $0x420] sm:$0xf0] }
 0x16d   :  { %v2737_v42 = vpop.f32.mrf.mxu0  ;;  %v6716_v24 = vor.u32 %v8117_v8, %v6713_v4 }
 0x16e   :  { %v2738_v18 = vadd.f32 %v2737_v42, %v9150_v19  ;;  %v9201_v59 = vadd.f32 %v2881_v17, %v2833_v23  ;;  %2981 = vmatmul.bf16.gmra.mxu1 %v8927_v57 }
 0x16f   :  { %3102 = vmatpush.bf16.msra.mxu0 %v6716_v24 }
 0x170   :  { %v2787_v58 = vadd.f32 %v2786_v38, %v2738_v18  ;;  %2932 = vmatmul.bf16.gmra.mxu0 %v8924_v16  ;;  %3030 = vmatmul.bf16.gmra.mxu2 %v9079_v28  ;;  %v8181_v18 = vld [vmem:[#allocation7 + $0x604] sm:$0xf] }
 0x171   :  { %3079 = vmatmul.bf16.gmra.mxu3 %v9081_v47  ;;  %v6969_v47 = vld [vmem:[#allocation7 + $0x620] sm:$0xf0] }
 0x172   :  { %v6972_v41 = vor.u32 %v8181_v18, %v6969_v47  ;;  %v6943_v47 = vld [vmem:[#allocation7 + $0x5c8] sm:$0xf] }
 0x173   :  { %v2835_v22 = vpop.f32.mrf.mxu2  ;;  %v2788_v23 = vpop.f32.mrf.mxu1 }
 0x174   :  { %v2884_v14 = vpop.f32.mrf.mxu3  ;;  %v2836_v53 = vadd.f32 %v2835_v22, %v2787_v58  ;;  %3151 = vmatpush.bf16.msra.mxu1 %v6972_v41  ;;  %v6431_v22 = vld [vmem:[#allocation7 + $0x1c8] sm:$0xf] }
 0x175   :  { %v2739_v17 = vpop.f32.mrf.mxu0 }
 0x176   :  { %v2740_v42 = vadd.f32 %v2739_v17, %v9150_v19  ;;  %v9208_v38 = vadd.f32 %v2884_v14, %v2836_v53  ;;  %v6944_v14 = vor.u32 %v8178_v51, %v6943_v47  ;;  %v7199_v53 = vld [vmem:[#allocation7 + $0x7c8] sm:$0xf] }
 0x177   :  { %v8242_v17 = vld [vmem:[#allocation7 + $0x7e4] sm:$0xf0] }
 0x178   :  { %v2789_v3 = vadd.f32 %v2788_v23, %v2740_v42  ;;  %3389 = vmatpush.bf16.msrb.mxu2 %v6944_v14 }
 0x17b   :  { %v2837_v28 = vpop.f32.mrf.mxu2  ;;  %v2791_v39 = vpop.f32.mrf.mxu1 }
 0x17c   :  { %v2886_v8 = vpop.f32.mrf.mxu3  ;;  %v2838_v4 = vadd.f32 %v2837_v28, %v2789_v3  ;;  %v8050_v28 = vld [vmem:[#allocation7 + $0x1e4] sm:$0xf0]  ;;  %v7200_v3 = vor.u32 %v8242_v17, %v7199_v53 }
 0x17d   :  { %v2742_v35 = vpop.f32.mrf.mxu0  ;;  %v6432_v18 = vor.u32 %v8050_v28, %v6431_v22  ;;  %v8170_v17 = vld [vmem:[#allocation7 + $0x5a4] sm:$0xf0] }
 0x17e   :  { %v2743_v58 = vadd.f32 %v2742_v35, %v9150_v19  ;;  %v9211_v25 = vadd.f32 %v2886_v8, %v2838_v4  ;;  %2986 = vmatmul.bf16.gmra.mxu1 %v8965_v48  ;;  %3438 = vmatpush.bf16.msrb.mxu3 %v7200_v3  ;;  %v8234_v3 = vld [vmem:[#allocation7 + $0x7a4] sm:$0xf0] }
 0x17f   :  { %3291 = vmatpush.bf16.msrb.mxu0 %v6432_v18  ;;  %v7167_v18 = vld [vmem:[#allocation7 + $0x788] sm:$0xf] }
 0x180   :  { %v2792_v24 = vadd.f32 %v2791_v39, %v2743_v58  ;;  %2937 = vmatmul.bf16.gmra.mxu0 %v8963_v37  ;;  %3035 = vmatmul.bf16.gmra.mxu2 %v9107_v49  ;;  %v6687_v58 = vld [vmem:[#allocation7 + $0x3c8] sm:$0xf] }
 0x181   :  { %3084 = vmatmul.bf16.gmra.mxu3 %v9109_v50  ;;  %v8114_v50 = vld [vmem:[#allocation7 + $0x3e4] sm:$0xf0] }
 0x182   :  { %v6688_v51 = vor.u32 %v8114_v50, %v6687_v58  ;;  %v6911_v50 = vld [vmem:[#allocation7 + $0x588] sm:$0xf] }
 0x183   :  { %v2840_v23 = vpop.f32.mrf.mxu2  ;;  %v2793_v4 = vpop.f32.mrf.mxu1 }
 0x184   :  { %v2889_v42 = vpop.f32.mrf.mxu3  ;;  %v2841_v41 = vadd.f32 %v2840_v23, %v2792_v24  ;;  %3340 = vmatpush.bf16.msrb.mxu1 %v6688_v51  ;;  %v6399_v23 = vld [vmem:[#allocation7 + $0x188] sm:$0xf] }
 0x185   :  { %v2744_v8 = vpop.f32.mrf.mxu0 }
 0x186   :  { %v2745_v35 = vadd.f32 %v2744_v8, %v9150_v19  ;;  %v9218_v39 = vadd.f32 %v2889_v42, %v2841_v41  ;;  %v6912_v42 = vor.u32 %v8170_v17, %v6911_v50 }
 0x188   :  { %v2794_v47 = vadd.f32 %v2793_v4, %v2745_v35  ;;  %3390 = vmatpush.bf16.msrb.mxu2 %v6912_v42 }
 0x18b   :  { %v2842_v49 = vpop.f32.mrf.mxu2  ;;  %v2796_v28 = vpop.f32.mrf.mxu1 }
 0x18c   :  { %v2891_v48 = vpop.f32.mrf.mxu3  ;;  %v2843_v37 = vadd.f32 %v2842_v49, %v2794_v47  ;;  %v8042_v49 = vld [vmem:[#allocation7 + $0x1a4] sm:$0xf0] }
 0x18d   :  { %v2747_v22 = vpop.f32.mrf.mxu0 }
 0x18e   :  { %v2748_v24 = vadd.f32 %v2747_v22, %v9150_v19  ;;  %v9221_v53 = vadd.f32 %v2891_v48, %v2843_v37  ;;  %2991 = vmatmul.bf16.gmra.mxu1 %v8993_v15  ;;  %v6400_v37 = vor.u32 %v8042_v49, %v6399_v23  ;;  %v7168_v48 = vor.u32 %v8234_v3, %v7167_v18  ;;  %v6655_v22 = vld [vmem:[#allocation7 + $0x388] sm:$0xf] }
 0x18f   :  { %v6879_v3 = vld [vmem:[#allocation7 + $0x548] sm:$0xf] }
 0x190   :  { %v2797_v14 = vadd.f32 %v2796_v28, %v2748_v24  ;;  %2942 = vmatmul.bf16.gmra.mxu0 %v8990_v43  ;;  %3040 = vmatmul.bf16.gmra.mxu2 %v9135_v20  ;;  %v8106_v28 = vld [vmem:[#allocation7 + $0x3a4] sm:$0xf0] }
 0x191   :  { %3089 = vmatmul.bf16.gmra.mxu3 %v9137_v21  ;;  %3292 = vmatpush.bf16.msrb.mxu0 %v6400_v37  ;;  %v6656_v50 = vor.u32 %v8106_v28, %v6655_v22  ;;  %v6367_v37 = vld [vmem:[#allocation7 + $0x148] sm:$0xf] }
 0x192   :  { %3439 = vmatpush.bf16.msrb.mxu3 %v7168_v48  ;;  %v8034_v48 = vld [vmem:[#allocation7 + $0x164] sm:$0xf0] }
 0x193   :  { %v2845_v41 = vpop.f32.mrf.mxu2  ;;  %v2798_v58 = vpop.f32.mrf.mxu1  ;;  %3341 = vmatpush.bf16.msrb.mxu1 %v6656_v50  ;;  %v6623_v50 = vld [vmem:[#allocation7 + $0x348] sm:$0xf] }
 0x194   :  { %v2894_v8 = vpop.f32.mrf.mxu3  ;;  %v2846_v4 = vadd.f32 %v2845_v41, %v2797_v14  ;;  %v8162_v41 = vld [vmem:[#allocation7 + $0x564] sm:$0xf0] }
 0x195   :  { %v2749_v35 = vpop.f32.mrf.mxu0 }
 0x196   :  { %v2750_v47 = vadd.f32 %v2749_v35, %v9150_v19  ;;  %v9228_v51 = vadd.f32 %v2894_v8, %v2846_v4  ;;  %v9238_v19 = vperm.slane %v9147_v46, 1  ;;  %v6880_v8 = vor.u32 %v8162_v41, %v6879_v3  ;;  %v8226_v35 = vld [vmem:[#allocation7 + $0x764] sm:$0xf0] }
 0x197   :  { %v6368_v4 = vor.u32 %v8034_v48, %v6367_v37 }
 0x198   :  { %v2799_v24 = vadd.f32 %v2798_v58, %v2750_v47  ;;  %3391 = vmatpush.bf16.msrb.mxu2 %v6880_v8 }
 0x199   :  { %3293 = vmatpush.bf16.msrb.mxu0 %v6368_v4 }
 0x19b   :  { %v2847_v17 = vpop.f32.mrf.mxu2  ;;  %v2957_v49 = vpop.f32.mrf.mxu1 }
 0x19c   :  { %v2896_v21 = vpop.f32.mrf.mxu3  ;;  %v2848_v20 = vadd.f32 %v2847_v17, %v2799_v24  ;;  %v8098_v17 = vld [vmem:[#allocation7 + $0x364] sm:$0xf0] }
 0x19d   :  { %v2908_v23 = vpop.f32.mrf.mxu0 }
 0x19e   :  { %v2909_v14 = vadd.f32 %v2908_v23, %v9158_v61  ;;  %v9231_v18 = vadd.f32 %v2896_v21, %v2848_v20  ;;  %3152 = vmatmul.bf16.vlgmr.msra.gmra.mxu1 %v8865_v0  ;;  %v7135_v61 = vld [vmem:[#allocation7 + $0x748] sm:$0xf] }
 0x19f   :  { %v7136_v28 = vor.u32 %v8226_v35, %v7135_v61  ;;  %v8154_v35 = vld [vmem:[#allocation7 + $0x524] sm:$0xf0] }
 0x1a0   :  { %v2958_v42 = vadd.f32 %v2957_v49, %v2909_v14  ;;  %3103 = vmatmul.bf16.vlgmr.msra.gmra.mxu0 %v8863_v63  ;;  %3201 = vmatmul.bf16.vlgmr.msra.gmra.mxu2 %v8867_v1  ;;  %v6624_v49 = vor.u32 %v8098_v17, %v6623_v50  ;;  %v8218_v17 = vld [vmem:[#allocation7 + $0x724] sm:$0xf0] }
 0x1a1   :  { %3250 = vmatmul.bf16.vlgmr.msra.gmra.mxu3 %v8869_v2 }
 0x1a2   :  { %3440 = vmatpush.bf16.msrb.mxu3 %v7136_v28  ;;  %v5055_v14 = vmax.f32 %v2958_v42, 0.0  ;;  %3342 = vmatpush.bf16.msrb.mxu1 %v6624_v49  ;;  %v6847_v42 = vld [vmem:[#allocation7 + $0x508] sm:$0xf] }
 0x1a3   :  { %v3006_v20 = vpop.f32.mrf.mxu2  ;;  %v2959_v22 = vpop.f32.mrf.mxu1  ;;  %v7103_v28 = vld [vmem:[#allocation7 + $0x708] sm:$0xf] }
 0x1a4   :  { %v3055_v21 = vpop.f32.mrf.mxu3  ;;  %v3007_v58 = vadd.f32 %v3006_v20, %v9238_v19 }
 0x1a5   :  { %v2910_v47 = vpop.f32.mrf.mxu0 }
 0x1a6   :  { %v2911_v24 = vadd.f32 %v2910_v47, %v9161_v52  ;;  %v9242_v46 = vadd.f32 %v3055_v21, %v3007_v58  ;;  %v6848_v58 = vor.u32 %v8154_v35, %v6847_v42  ;;  %v6335_v47 = vld [vmem:[#allocation7 + $0x108] sm:$0xf] }
 0x1a8   :  { %v2960_v23 = vadd.f32 %v2959_v22, %v2911_v24  ;;  %v8026_v22 = vld [vmem:[#allocation7 + $0x124] sm:$0xf0]  ;;  %3392 = vmatpush.bf16.msrb.mxu2 %v6848_v58 }
 0x1aa   :  { %v5063_v3 = vmax.f32 %v2960_v23, 0.0 }
 0x1ab   :  { %v3008_v37 = vpop.f32.mrf.mxu2  ;;  %v2962_v20 = vpop.f32.mrf.mxu1 }
 0x1ac   :  { %v9244_v41 = vpack.c.bf16 %v5063_v3, %v5055_v14  ;;  %v3057_v48 = vpop.f32.mrf.mxu3  ;;  %v3009_v8 = vadd.f32 %v3008_v37, %v9238_v19  ;;  %v7104_v3 = vor.u32 %v8218_v17, %v7103_v28 }
 0x1ad   :  { %v2913_v61 = vpop.f32.mrf.mxu0 }
 0x1ae   :  { %10438 = vst [vmem:[#allocation46_spill] sm:$0xff] %v9244_v41  ;;  %v2914_v52 = vadd.f32 %v2913_v61, %v9168_v36  ;;  %v9248_v21 = vadd.f32 %v3057_v48, %v3009_v8  ;;  %3157 = vmatmul.bf16.gmra.mxu1 %v8939_v12  ;;  %v6336_v36 = vor.u32 %v8026_v22, %v6335_v47  ;;  %v6591_v8 = vld [vmem:[#allocation7 + $0x308] sm:$0xf] }
 0x1af   :  { %3441 = vmatpush.bf16.msrb.mxu3 %v7104_v3  ;;  %v8090_v61 = vld [vmem:[#allocation7 + $0x324] sm:$0xf0] }
 0x1b0   :  { %v2963_v4 = vadd.f32 %v2962_v20, %v2914_v52  ;;  %3108 = vmatmul.bf16.gmra.mxu0 %v8937_v9  ;;  %3206 = vmatmul.bf16.gmra.mxu2 %v8849_v54  ;;  %v6592_v52 = vor.u32 %v8090_v61, %v6591_v8  ;;  %v8018_v3 = vld [vmem:[#allocation7 + $0xe4] sm:$0xf0] }
 0x1b1   :  { %3255 = vmatmul.bf16.gmra.mxu3 %v8851_v55  ;;  %3294 = vmatpush.bf16.msrb.mxu0 %v6336_v36 }
 0x1b2   :  { %v5071_v42 = vmax.f32 %v2963_v4, 0.0  ;;  %3343 = vmatpush.bf16.msrb.mxu1 %v6592_v52  ;;  %v6815_v4 = vld [vmem:[#allocation7 + $0x4c8] sm:$0xf] }
 0x1b3   :  { %v3011_v24 = vpop.f32.mrf.mxu2  ;;  %v2964_v14 = vpop.f32.mrf.mxu1 }
 0x1b4   :  { %v3060_v50 = vpop.f32.mrf.mxu3  ;;  %v3012_v23 = vadd.f32 %v3011_v24, %v9238_v19 }
 0x1b5   :  { %v2915_v49 = vpop.f32.mrf.mxu0 }
 0x1b6   :  { %v2916_v37 = vadd.f32 %v2915_v49, %v9171_v7  ;;  %v9256_v48 = vadd.f32 %v3060_v50, %v3012_v23  ;;  %v8146_v23 = vld [vmem:[#allocation7 + $0x4e4] sm:$0xf0] }
 0x1b7   :  { %v6816_v49 = vor.u32 %v8146_v23, %v6815_v4 }
 0x1b8   :  { %v2965_v20 = vadd.f32 %v2964_v14, %v2916_v37  ;;  %v6303_v14 = vld [vmem:[#allocation7 + $0xc8] sm:$0xf] }
 0x1b9   :  { %v7071_v37 = vld [vmem:[#allocation7 + $0x6c8] sm:$0xf]  ;;  %3393 = vmatpush.bf16.msrb.mxu2 %v6816_v49 }
 0x1ba   :  { %v5079_v35 = vmax.f32 %v2965_v20, 0.0  ;;  %v8210_v20 = vld [vmem:[#allocation7 + $0x6e4] sm:$0xf0] }
 0x1bb   :  { %v3013_v47 = vpop.f32.mrf.mxu2  ;;  %v2967_v17 = vpop.f32.mrf.mxu1 }
 0x1bc   :  { %v3062_v22 = vpop.f32.mrf.mxu3  ;;  %v9258_v24 = vpack.c.bf16 %v5079_v35, %v5071_v42  ;;  %v3014_v58 = vadd.f32 %v3013_v47, %v9238_v19  ;;  %v7072_v47 = vor.u32 %v8210_v20, %v7071_v37 }
 0x1bd   :  { %v2918_v28 = vpop.f32.mrf.mxu0 }
 0x1be   :  { %10439 = vst [vmem:[#allocation47_spill] sm:$0xff] %v9258_v24  ;;  %v2919_v7 = vadd.f32 %v2918_v28, %v9178_v56  ;;  %v9262_v50 = vadd.f32 %v3062_v22, %v3014_v58  ;;  %3162 = vmatmul.bf16.gmra.mxu1 %v9001_v27  ;;  %v6304_v56 = vor.u32 %v8018_v3, %v6303_v14  ;;  %v6559_v28 = vld [vmem:[#allocation7 + $0x2c8] sm:$0xf] }
 0x1bf   :  { %3442 = vmatpush.bf16.msrb.mxu3 %v7072_v47  ;;  %v7039_v47 = vld [vmem:[#allocation7 + $0x688] sm:$0xf] }
 0x1c0   :  { %v2968_v36 = vadd.f32 %v2967_v17, %v2919_v7  ;;  %3113 = vmatmul.bf16.gmra.mxu0 %v8999_v26  ;;  %3211 = vmatmul.bf16.gmra.mxu2 %v8793_v10  ;;  %v8082_v17 = vld [vmem:[#allocation7 + $0x2e4] sm:$0xf0] }
 0x1c1   :  { %3260 = vmatmul.bf16.gmra.mxu3 %v8795_v11  ;;  %3295 = vmatpush.bf16.msrb.mxu0 %v6304_v56  ;;  %v6560_v4 = vor.u32 %v8082_v17, %v6559_v28  ;;  %v8202_v17 = vld [vmem:[#allocation7 + $0x6a4] sm:$0xf0] }
 0x1c2   :  { %v5087_v23 = vmax.f32 %v2968_v36, 0.0  ;;  %v6783_v36 = vld [vmem:[#allocation7 + $0x488] sm:$0xf] }
 0x1c3   :  { %v3016_v8 = vpop.f32.mrf.mxu2  ;;  %v2969_v35 = vpop.f32.mrf.mxu1  ;;  %3344 = vmatpush.bf16.msrb.mxu1 %v6560_v4 }
 0x1c4   :  { %v3065_v61 = vpop.f32.mrf.mxu3  ;;  %v3017_v52 = vadd.f32 %v3016_v8, %v9238_v19 }
 0x1c5   :  { %v2920_v42 = vpop.f32.mrf.mxu0 }
 0x1c6   :  { %v2921_v22 = vadd.f32 %v2920_v42, %v9181_v40  ;;  %v9270_v58 = vadd.f32 %v3065_v61, %v3017_v52  ;;  %v6271_v42 = vld [vmem:[#allocation7 + $0x88] sm:$0xf] }
 0x1c8   :  { %v2970_v7 = vadd.f32 %v2969_v35, %v2921_v22  ;;  %v8010_v35 = vld [vmem:[#allocation7 + $0xa4] sm:$0xf0] }
 0x1ca   :  { %v5095_v24 = vmax.f32 %v2970_v7, 0.0 }
 0x1cb   :  { %v3018_v14 = vpop.f32.mrf.mxu2  ;;  %v2972_v20 = vpop.f32.mrf.mxu1 }
 0x1cc   :  { %v3067_v3 = vpop.f32.mrf.mxu3  ;;  %v9272_v8 = vpack.c.bf16 %v5095_v24, %v5087_v23  ;;  %v3019_v49 = vadd.f32 %v3018_v14, %v9238_v19  ;;  %v8138_v24 = vld [vmem:[#allocation7 + $0x4a4] sm:$0xf0]  ;;  %v7040_v14 = vor.u32 %v8202_v17, %v7039_v47 }
 0x1cd   :  { %v2923_v37 = vpop.f32.mrf.mxu0  ;;  %v6784_v52 = vor.u32 %v8138_v24, %v6783_v36 }
 0x1ce   :  { %10440 = vst [vmem:[#allocation48_spill] sm:$0xff] %v9272_v8  ;;  %v2924_v40 = vadd.f32 %v2923_v37, %v9188_v62  ;;  %v9276_v61 = vadd.f32 %v3067_v3, %v3019_v49  ;;  %3167 = vmatmul.bf16.gmra.mxu1 %v9029_v45  ;;  %v6272_v62 = vor.u32 %v8010_v35, %v6271_v42  ;;  %v6527_v37 = vld [vmem:[#allocation7 + $0x288] sm:$0xf] }
 0x1cf   :  { %3394 = vmatpush.bf16.msrb.mxu2 %v6784_v52  ;;  %3443 = vmatpush.bf16.msrb.mxu3 %v7040_v14  ;;  %v7007_v14 = vld [vmem:[#allocation7 + $0x648] sm:$0xf] }
 0x1d0   :  { %v2973_v56 = vadd.f32 %v2972_v20, %v2924_v40  ;;  %3118 = vmatmul.bf16.gmra.mxu0 %v9027_v44  ;;  %3216 = vmatmul.bf16.gmra.mxu2 %v8895_v32  ;;  %v8074_v20 = vld [vmem:[#allocation7 + $0x2a4] sm:$0xf0] }
 0x1d1   :  { %3265 = vmatmul.bf16.gmra.mxu3 %v8897_v33  ;;  %3296 = vmatpush.bf16.msrb.mxu0 %v6272_v62  ;;  %v6528_v36 = vor.u32 %v8074_v20, %v6527_v37  ;;  %v8194_v20 = vld [vmem:[#allocation7 + $0x664] sm:$0xf0] }
 0x1d2   :  { %v5103_v24 = vmax.f32 %v2973_v56, 0.0  ;;  %v6751_v56 = vld [vmem:[#allocation7 + $0x448] sm:$0xf] }
 0x1d3   :  { %v3021_v22 = vpop.f32.mrf.mxu2  ;;  %v2974_v23 = vpop.f32.mrf.mxu1  ;;  %3345 = vmatpush.bf16.msrb.mxu1 %v6528_v36 }
 0x1d4   :  { %v3070_v28 = vpop.f32.mrf.mxu3  ;;  %v3022_v7 = vadd.f32 %v3021_v22, %v9238_v19 }
 0x1d5   :  { %v2925_v4 = vpop.f32.mrf.mxu0 }
 0x1d6   :  { %v2926_v3 = vadd.f32 %v2925_v4, %v9191_v60  ;;  %v9284_v49 = vadd.f32 %v3070_v28, %v3022_v7  ;;  %v6239_v4 = vld [vmem:[#allocation7 + $0x48] sm:$0xf] }
 0x1d8   :  { %v2975_v40 = vadd.f32 %v2974_v23, %v2926_v3  ;;  %v8002_v23 = vld [vmem:[#allocation7 + $0x64] sm:$0xf0] }
 0x1da   :  { %v5111_v8 = vmax.f32 %v2975_v40, 0.0 }
 0x1db   :  { %v3023_v42 = vpop.f32.mrf.mxu2  ;;  %v2977_v17 = vpop.f32.mrf.mxu1 }
 0x1dc   :  { %v3072_v35 = vpop.f32.mrf.mxu3  ;;  %v9286_v22 = vpack.c.bf16 %v5111_v8, %v5103_v24  ;;  %v3024_v52 = vadd.f32 %v3023_v42, %v9238_v19  ;;  %v8130_v8 = vld [vmem:[#allocation7 + $0x464] sm:$0xf0]  ;;  %v7008_v42 = vor.u32 %v8194_v20, %v7007_v14 }
 0x1dd   :  { %v2928_v47 = vpop.f32.mrf.mxu0  ;;  %v6752_v7 = vor.u32 %v8130_v8, %v6751_v56 }
 0x1de   :  { %10441 = vst [vmem:[#allocation49_spill] sm:$0xff] %v9286_v22  ;;  %v2929_v60 = vadd.f32 %v2928_v47, %v9198_v13  ;;  %v9290_v28 = vadd.f32 %v3072_v35, %v3024_v52  ;;  %3172 = vmatmul.bf16.gmra.mxu1 %v9057_v5  ;;  %v6240_v13 = vor.u32 %v8002_v23, %v6239_v4  ;;  %v6495_v47 = vld [vmem:[#allocation7 + $0x248] sm:$0xf] }
 0x1df   :  { %3395 = vmatpush.bf16.msrb.mxu2 %v6752_v7  ;;  %3444 = vmatpush.bf16.msrb.mxu3 %v7008_v42  ;;  %v6975_v42 = vld [vmem:[#allocation7 + $0x608] sm:$0xf] }
 0x1e0   :  { %v2978_v62 = vadd.f32 %v2977_v17, %v2929_v60  ;;  %3123 = vmatmul.bf16.gmra.mxu0 %v9055_v6  ;;  %3221 = vmatmul.bf16.gmra.mxu2 %v8942_v30  ;;  %v8066_v17 = vld [vmem:[#allocation7 + $0x264] sm:$0xf0] }
 0x1e1   :  { %3270 = vmatmul.bf16.gmra.mxu3 %v8945_v31  ;;  %3297 = vmatpush.bf16.msrb.mxu0 %v6240_v13  ;;  %v6496_v56 = vor.u32 %v8066_v17, %v6495_v47  ;;  %v8186_v17 = vld [vmem:[#allocation7 + $0x624] sm:$0xf0] }
 0x1e2   :  { %v5119_v8 = vmax.f32 %v2978_v62, 0.0  ;;  %v6719_v62 = vld [vmem:[#allocation7 + $0x408] sm:$0xf] }
 0x1e3   :  { %v3026_v3 = vpop.f32.mrf.mxu2  ;;  %v2979_v24 = vpop.f32.mrf.mxu1  ;;  %3346 = vmatpush.bf16.msrb.mxu1 %v6496_v56 }
 0x1e4   :  { %v3075_v37 = vpop.f32.mrf.mxu3  ;;  %v3027_v40 = vadd.f32 %v3026_v3, %v9238_v19 }
 0x1e5   :  { %v2930_v36 = vpop.f32.mrf.mxu0 }
 0x1e6   :  { %v2931_v35 = vadd.f32 %v2930_v36, %v9201_v59  ;;  %v9298_v52 = vadd.f32 %v3075_v37, %v3027_v40  ;;  %v6207_v36 = vld [vmem:[#allocation7 + $0x8] sm:$0xf] }
 0x1e8   :  { %v2980_v60 = vadd.f32 %v2979_v24, %v2931_v35  ;;  %v7994_v24 = vld [vmem:[#allocation7 + $0x24] sm:$0xf0] }
 0x1ea   :  { %v5127_v22 = vmax.f32 %v2980_v60, 0.0 }
 0x1eb   :  { %v3028_v4 = vpop.f32.mrf.mxu2  ;;  %v2982_v20 = vpop.f32.mrf.mxu1 }
 0x1ec   :  { %v3077_v23 = vpop.f32.mrf.mxu3  ;;  %v9300_v3 = vpack.c.bf16 %v5127_v22, %v5119_v8  ;;  %v3029_v7 = vadd.f32 %v3028_v4, %v9238_v19  ;;  %v8122_v22 = vld [vmem:[#allocation7 + $0x424] sm:$0xf0]  ;;  %v6976_v4 = vor.u32 %v8186_v17, %v6975_v42 }
 0x1ed   :  { %v2933_v14 = vpop.f32.mrf.mxu0  ;;  %v6720_v40 = vor.u32 %v8122_v22, %v6719_v62 }
 0x1ee   :  { %10442 = vst [vmem:[#allocation50_spill] sm:$0xff] %v9300_v3  ;;  %v2934_v59 = vadd.f32 %v2933_v14, %v9208_v38  ;;  %v9304_v37 = vadd.f32 %v3077_v23, %v3029_v7  ;;  %3177 = vmatmul.bf16.gmra.mxu1 %v9085_v34  ;;  %v6208_v38 = vor.u32 %v7994_v24, %v6207_v36  ;;  %v6463_v14 = vld [vmem:[#allocation7 + $0x208] sm:$0xf] }
 0x1ef   :  { %3396 = vmatpush.bf16.msrb.mxu2 %v6720_v40  ;;  %3445 = vmatpush.bf16.msrb.mxu3 %v6976_v4  ;;  %v8046_v4 = vld [vmem:[#allocation7 + $0x1cc] sm:$0xf] }
 0x1f0   :  { %v2983_v13 = vadd.f32 %v2982_v20, %v2934_v59  ;;  %3128 = vmatmul.bf16.gmra.mxu0 %v9083_v29  ;;  %3226 = vmatmul.bf16.gmra.mxu2 %v8924_v16  ;;  %v8058_v20 = vld [vmem:[#allocation7 + $0x224] sm:$0xf0] }
 0x1f1   :  { %3275 = vmatmul.bf16.gmra.mxu3 %v8927_v57  ;;  %3298 = vmatpush.bf16.msrb.mxu0 %v6208_v38  ;;  %v6464_v62 = vor.u32 %v8058_v20, %v6463_v14  ;;  %v8306_v20 = vld [vmem:[#allocation7 + $0x9e4] sm:$0xf0] }
 0x1f2   :  { %v5135_v22 = vmax.f32 %v2983_v13, 0.0  ;;  %v10446_v13 = vld [vmem:[#allocation26_spill] sm:$0xff] }
 0x1f3   :  { %v3031_v35 = vpop.f32.mrf.mxu2  ;;  %v2984_v8 = vpop.f32.mrf.mxu1  ;;  %3347 = vmatpush.bf16.msrb.mxu1 %v6464_v62 }
 0x1f4   :  { %v3080_v47 = vpop.f32.mrf.mxu3  ;;  %v3032_v60 = vadd.f32 %v3031_v35, %v9238_v19 }
 0x1f5   :  { %v2935_v56 = vpop.f32.mrf.mxu0 }
 0x1f6   :  { %v2936_v23 = vadd.f32 %v2935_v56, %v9211_v25  ;;  %v9312_v7 = vadd.f32 %v3080_v47, %v3032_v60  ;;  %v10444_v60 = vld [vmem:[#allocation40_spill] sm:$0xff]  ;;  %v10445_v56 = vld [vmem:[#allocation41_spill] sm:$0xff] }
 0x1f8   :  { %v2985_v59 = vadd.f32 %v2984_v8, %v2936_v23  ;;  %v10447_v8 = vld [vmem:[#allocation27_spill] sm:$0xff] }
 0x1f9   :  { %v7455_v23 = vld [vmem:[#allocation7 + $0x9c8] sm:$0xf] }
 0x1fa   :  { %v5143_v3 = vmax.f32 %v2985_v59, 0.0  ;;  %v8110_v59 = vld [vmem:[#allocation7 + $0x3cc] sm:$0xf]  ;;  %v7456_v62 = vor.u32 %v8306_v20, %v7455_v23 }
 0x1fb   :  { %v3033_v36 = vpop.f32.mrf.mxu2  ;;  %v2987_v17 = vpop.f32.mrf.mxu1 }
 0x1fc   :  { %v3082_v24 = vpop.f32.mrf.mxu3  ;;  %v9314_v35 = vpack.c.bf16 %v5143_v3, %v5135_v22  ;;  %v3034_v40 = vadd.f32 %v3033_v36, %v9238_v19  ;;  %v6433_v3 = vld [vmem:[#allocation7 + $0x1e8] sm:$0xf0]  ;;  %3487 = vmatpush.bf16.msra.mxu0 %v7456_v62 }
 0x1fd   :  { %v2938_v42 = vpop.f32.mrf.mxu0  ;;  %v6436_v14 = vor.u32 %v8046_v4, %v6433_v3  ;;  %v6689_v22 = vld [vmem:[#allocation7 + $0x3e8] sm:$0xf0]  ;;  %v7711_v4 = vld [vmem:[#allocation7 + $0xbc8] sm:$0xf] }
 0x1fe   :  { %10443 = vst [vmem:[#allocation51_spill] sm:$0xff] %v9314_v35  ;;  %v2939_v25 = vadd.f32 %v2938_v42, %v9218_v39  ;;  %v9318_v47 = vadd.f32 %v3082_v24, %v3034_v40  ;;  %3182 = vmatmul.bf16.gmra.mxu1 %v10445_v56  ;;  %v6692_v24 = vor.u32 %v8110_v59, %v6689_v22  ;;  %v8370_v3 = vld [vmem:[#allocation7 + $0xbe4] sm:$0xf0] }
 0x1ff   :  { %3585 = vmatpush.bf16.msra.mxu2 %v6436_v14  ;;  %v7712_v20 = vor.u32 %v8370_v3, %v7711_v4  ;;  %v8102_v4 = vld [vmem:[#allocation7 + $0x38c] sm:$0xf] }
 0x200   :  { %v2988_v38 = vadd.f32 %v2987_v17, %v2939_v25  ;;  %3133 = vmatmul.bf16.gmra.mxu0 %v10444_v60  ;;  %3231 = vmatmul.bf16.gmra.mxu2 %v10446_v13 }
 0x201   :  { %3280 = vmatmul.bf16.gmra.mxu3 %v10447_v8  ;;  %3536 = vmatpush.bf16.msra.mxu1 %v7712_v20 }
 0x202   :  { %3634 = vmatpush.bf16.msra.mxu3 %v6692_v24  ;;  %v5151_v8 = vmax.f32 %v2988_v38, 0.0  ;;  %v10449_v24 = vld [vmem:[#allocation44_spill] sm:$0xff]  ;;  %v6401_v38 = vld [vmem:[#allocation7 + $0x1a8] sm:$0xf0] }
 0x203   :  { %v3036_v39 = vpop.f32.mrf.mxu2  ;;  %v2989_v17 = vpop.f32.mrf.mxu1 }
 0x204   :  { %v3085_v36 = vpop.f32.mrf.mxu3  ;;  %v3037_v40 = vadd.f32 %v3036_v39, %v9238_v19 }
 0x205   :  { %v2940_v42 = vpop.f32.mrf.mxu0 }
 0x206   :  { %v2941_v25 = vadd.f32 %v2940_v42, %v9221_v53  ;;  %v9326_v35 = vadd.f32 %v3085_v36, %v3037_v40  ;;  %v10450_v40 = vld [vmem:[#allocation45_spill] sm:$0xff] }
 0x208   :  { %v2990_v41 = vadd.f32 %v2989_v17, %v2941_v25  ;;  %v8298_v25 = vld [vmem:[#allocation7 + $0x9a4] sm:$0xf0] }
 0x20a   :  { %v5159_v23 = vmax.f32 %v2990_v41, 0.0  ;;  %v8038_v41 = vld [vmem:[#allocation7 + $0x18c] sm:$0xf] }
 0x20b   :  { %v3038_v13 = vpop.f32.mrf.mxu2  ;;  %v2992_v62 = vpop.f32.mrf.mxu1  ;;  %v6404_v17 = vor.u32 %v8038_v41, %v6401_v38 }
 0x20c   :  { %v3087_v57 = vpop.f32.mrf.mxu3  ;;  %v9328_v14 = vpack.c.bf16 %v5159_v23, %v5151_v8  ;;  %v3039_v59 = vadd.f32 %v3038_v13, %v9238_v19  ;;  %v7423_v8 = vld [vmem:[#allocation7 + $0x988] sm:$0xf] }
 0x20d   :  { %v2943_v22 = vpop.f32.mrf.mxu0  ;;  %v7424_v20 = vor.u32 %v8298_v25, %v7423_v8  ;;  %3586 = vmatpush.bf16.msra.mxu2 %v6404_v17 }
 0x20e   :  { %10448 = vst [vmem:[#allocation40_spill] sm:$0xff] %v9328_v14  ;;  %v2944_v53 = vadd.f32 %v2943_v22, %v9228_v51  ;;  %v9332_v39 = vadd.f32 %v3087_v57, %v3039_v59  ;;  %3187 = vmatmul.bf16.gmra.mxu1 %v10450_v40  ;;  %v6657_v51 = vld [vmem:[#allocation7 + $0x3a8] sm:$0xf0]  ;;  %v7679_v14 = vld [vmem:[#allocation7 + $0xb88] sm:$0xf] }
 0x20f   :  { %v6660_v59 = vor.u32 %v8102_v4, %v6657_v51  ;;  %3488 = vmatpush.bf16.msra.mxu0 %v7424_v20  ;;  %v10452_v51 = vld [vmem:[#allocation19_spill] sm:$0xff] }
 0x210   :  { %v2993_v36 = vadd.f32 %v2992_v62, %v2944_v53  ;;  %3138 = vmatmul.bf16.gmra.mxu0 %v10449_v24  ;;  %3236 = vmatmul.bf16.gmra.mxu2 %v8990_v43 }
 0x211   :  { %3285 = vmatmul.bf16.gmra.mxu3 %v8993_v15  ;;  %v8362_v15 = vld [vmem:[#allocation7 + $0xba4] sm:$0xf0] }
 0x212   :  { %3635 = vmatpush.bf16.msra.mxu3 %v6660_v59  ;;  %v5167_v41 = vmax.f32 %v2993_v36, 0.0  ;;  %v7680_v43 = vor.u32 %v8362_v15, %v7679_v14  ;;  %v6369_v15 = vld [vmem:[#allocation7 + $0x168] sm:$0xf0]  ;;  %v7391_v14 = vld [vmem:[#allocation7 + $0x948] sm:$0xf] }
 0x213   :  { %v3041_v42 = vpop.f32.mrf.mxu2  ;;  %v2994_v23 = vpop.f32.mrf.mxu1 }
 0x214   :  { %v3090_v13 = vpop.f32.mrf.mxu3  ;;  %v3042_v57 = vadd.f32 %v3041_v42, %v9238_v19  ;;  %3537 = vmatpush.bf16.msra.mxu1 %v7680_v43  ;;  %v8030_v43 = vld [vmem:[#allocation7 + $0x14c] sm:$0xf] }
 0x215   :  { %v2945_v3 = vpop.f32.mrf.mxu0  ;;  %v6372_v36 = vor.u32 %v8030_v43, %v6369_v15 }
 0x216   :  { %v2946_v22 = vadd.f32 %v2945_v3, %v9231_v18  ;;  %v9340_v62 = vadd.f32 %v3090_v13, %v3042_v57  ;;  %v10453_v57 = vld [vmem:[#allocation20_spill] sm:$0xff]  ;;  %v6625_v3 = vld [vmem:[#allocation7 + $0x368] sm:$0xf0] }
 0x217   :  { %3587 = vmatpush.bf16.msra.mxu2 %v6372_v36 }
 0x218   :  { %v2995_v53 = vadd.f32 %v2994_v23, %v2946_v22 }
 0x21a   :  { %v5175_v38 = vmax.f32 %v2995_v53, 0.0 }
 0x21b   :  { %v3043_v16 = vpop.f32.mrf.mxu2  ;;  %v3153_v18 = vpop.f32.mrf.mxu1 }
 0x21c   :  { %v3092_v31 = vpop.f32.mrf.mxu3  ;;  %v9342_v42 = vpack.c.bf16 %v5175_v38, %v5167_v41  ;;  %v3044_v8 = vadd.f32 %v3043_v16, %v9238_v19  ;;  %v8290_v16 = vld [vmem:[#allocation7 + $0x964] sm:$0xf0]  ;;  %v8094_v19 = vld [vmem:[#allocation7 + $0x34c] sm:$0xf] }
 0x21d   :  { %v3104_v25 = vpop.f32.mrf.mxu0  ;;  %v7392_v23 = vor.u32 %v8290_v16, %v7391_v14 }
 0x21e   :  { %10451 = vst [vmem:[#allocation41_spill] sm:$0xff] %v9342_v42  ;;  %v3105_v13 = vadd.f32 %v3104_v25, %v9242_v46  ;;  %v9346_v17 = vadd.f32 %v3092_v31, %v3044_v8  ;;  %3348 = vmatmul.bf16.vlgmr.msrb.gmra.mxu1 %v10453_v57  ;;  %v6628_v46 = vor.u32 %v8094_v19, %v6625_v3  ;;  %v7647_v25 = vld [vmem:[#allocation7 + $0xb48] sm:$0xf] }
 0x21f   :  { %3489 = vmatpush.bf16.msra.mxu0 %v7392_v23  ;;  %v10455_v23 = vld [vmem:[#allocation24_spill] sm:$0xff] }
 0x220   :  { %v3154_v4 = vadd.f32 %v3153_v18, %v3105_v13  ;;  %3299 = vmatmul.bf16.vlgmr.msrb.gmra.mxu0 %v10452_v51  ;;  %3397 = vmatmul.bf16.vlgmr.msrb.gmra.mxu2 %v8863_v63  ;;  %v8354_v18 = vld [vmem:[#allocation7 + $0xb64] sm:$0xf0] }
 0x221   :  { %3446 = vmatmul.bf16.vlgmr.msrb.gmra.mxu3 %v8865_v0  ;;  %v7648_v13 = vor.u32 %v8354_v18, %v7647_v25  ;;  %v6593_v18 = vld [vmem:[#allocation7 + $0x328] sm:$0xf0] }
 0x222   :  { %3636 = vmatpush.bf16.msra.mxu3 %v6628_v46 }
 0x223   :  { %v3202_v31 = vpop.f32.mrf.mxu2  ;;  %v3155_v53 = vpop.f32.mrf.mxu1  ;;  %3538 = vmatpush.bf16.msra.mxu1 %v7648_v13 }
 0x224   :  { %v3251_v20 = vpop.f32.mrf.mxu3  ;;  %v3203_v59 = vadd.f32 %v3202_v31, %v3154_v4  ;;  %v10454_v31 = vld [vmem:[#allocation23_spill] sm:$0xff] }
 0x225   :  { %v3106_v22 = vpop.f32.mrf.mxu0 }
 0x226   :  { %v3107_v41 = vadd.f32 %v3106_v22, %v9248_v21  ;;  %v3252_v38 = vadd.f32 %v3251_v20, %v3203_v59  ;;  %v8022_v20 = vld [vmem:[#allocation7 + $0x10c] sm:$0xf] }
 0x227   :  { %v6337_v59 = vld [vmem:[#allocation7 + $0x128] sm:$0xf0] }
 0x228   :  { %v3156_v8 = vadd.f32 %v3155_v53, %v3107_v41  ;;  %v5056_v21 = vmax.f32 %v3252_v38, 0.0  ;;  %v6340_v22 = vor.u32 %v8022_v20, %v6337_v59  ;;  %v7359_v53 = vld [vmem:[#allocation7 + $0x908] sm:$0xf] }
 0x229   :  { %v8282_v41 = vld [vmem:[#allocation7 + $0x924] sm:$0xf0] }
 0x22a   :  { %3588 = vmatpush.bf16.msra.mxu2 %v6340_v22  ;;  %v7615_v20 = vld [vmem:[#allocation7 + $0xb08] sm:$0xf] }
 0x22b   :  { %v3204_v43 = vpop.f32.mrf.mxu2  ;;  %v3158_v19 = vpop.f32.mrf.mxu1  ;;  %v8346_v59 = vld [vmem:[#allocation7 + $0xb24] sm:$0xf0] }
 0x22c   :  { %v3253_v15 = vpop.f32.mrf.mxu3  ;;  %v3205_v14 = vadd.f32 %v3204_v43, %v3156_v8  ;;  %v8086_v8 = vld [vmem:[#allocation7 + $0x30c] sm:$0xf]  ;;  %v7616_v42 = vor.u32 %v8346_v59, %v7615_v20 }
 0x22d   :  { %v3109_v16 = vpop.f32.mrf.mxu0 }
 0x22e   :  { %v3110_v36 = vadd.f32 %v3109_v16, %v9256_v48  ;;  %v3254_v4 = vadd.f32 %v3253_v15, %v3205_v14  ;;  %3353 = vmatmul.bf16.gmra.mxu1 %v10455_v23  ;;  %v7360_v48 = vor.u32 %v8282_v41, %v7359_v53  ;;  %v6596_v15 = vor.u32 %v8086_v8, %v6593_v18  ;;  %v10457_v18 = vld [vmem:[#allocation30_spill] sm:$0xff] }
 0x22f   :  { %3539 = vmatpush.bf16.msra.mxu1 %v7616_v42 }
 0x230   :  { %v3159_v3 = vadd.f32 %v3158_v19, %v3110_v36  ;;  %3304 = vmatmul.bf16.gmra.mxu0 %v10454_v31  ;;  %v5064_v46 = vmax.f32 %v3254_v4, 0.0  ;;  %3402 = vmatmul.bf16.gmra.mxu2 %v8937_v9 }
 0x231   :  { %3451 = vmatmul.bf16.gmra.mxu3 %v8939_v12  ;;  %3490 = vmatpush.bf16.msra.mxu0 %v7360_v48  ;;  %v10458_v48 = vld [vmem:[#allocation31_spill] sm:$0xff] }
 0x232   :  { %v9358_v25 = vpack.c.bf16 %v5064_v46, %v5056_v21  ;;  %3637 = vmatpush.bf16.msra.mxu3 %v6596_v15  ;;  %v6305_v15 = vld [vmem:[#allocation7 + $0xe8] sm:$0xf0] }
 0x233   :  { %v3207_v13 = vpop.f32.mrf.mxu2  ;;  %v3160_v16 = vpop.f32.mrf.mxu1 }
 0x234   :  { %10456 = vst [vmem:[#allocation52_spill] sm:$0xff] %v9358_v25  ;;  %v3256_v43 = vpop.f32.mrf.mxu3  ;;  %v3208_v38 = vadd.f32 %v3207_v13, %v3159_v3 }
 0x235   :  { %v3111_v14 = vpop.f32.mrf.mxu0 }
 0x236   :  { %v3112_v19 = vadd.f32 %v3111_v14, %v9262_v50  ;;  %v3257_v36 = vadd.f32 %v3256_v43, %v3208_v38  ;;  %v8014_v43 = vld [vmem:[#allocation7 + $0xcc] sm:$0xf]  ;;  %v7327_v38 = vld [vmem:[#allocation7 + $0x8c8] sm:$0xf] }
 0x237   :  { %v6308_v42 = vor.u32 %v8014_v43, %v6305_v15  ;;  %v8274_v14 = vld [vmem:[#allocation7 + $0x8e4] sm:$0xf0] }
 0x238   :  { %v3161_v4 = vadd.f32 %v3160_v16, %v3112_v19  ;;  %v5072_v50 = vmax.f32 %v3257_v36, 0.0  ;;  %v8078_v16 = vld [vmem:[#allocation7 + $0x2cc] sm:$0xf]  ;;  %v7328_v19 = vor.u32 %v8274_v14, %v7327_v38  ;;  %v8338_v43 = vld [vmem:[#allocation7 + $0xae4] sm:$0xf0] }
 0x239   :  { %3589 = vmatpush.bf16.msra.mxu2 %v6308_v42 }
 0x23a   :  { %3491 = vmatpush.bf16.msra.mxu0 %v7328_v19  ;;  %v10461_v19 = vld [vmem:[#allocation33_spill] sm:$0xff] }
 0x23b   :  { %v3209_v21 = vpop.f32.mrf.mxu2  ;;  %v3163_v25 = vpop.f32.mrf.mxu1 }
 0x23c   :  { %v3258_v46 = vpop.f32.mrf.mxu3  ;;  %v3210_v53 = vadd.f32 %v3209_v21, %v3161_v4 }
 0x23d   :  { %v3114_v41 = vpop.f32.mrf.mxu0 }
 0x23e   :  { %v3115_v22 = vadd.f32 %v3114_v41, %v9270_v58  ;;  %v3259_v3 = vadd.f32 %v3258_v46, %v3210_v53  ;;  %3358 = vmatmul.bf16.gmra.mxu1 %v10458_v48  ;;  %v6561_v58 = vld [vmem:[#allocation7 + $0x2e8] sm:$0xf0] }
 0x23f   :  { %v6564_v59 = vor.u32 %v8078_v16, %v6561_v58  ;;  %v10460_v58 = vld [vmem:[#allocation32_spill] sm:$0xff] }
 0x240   :  { %v3164_v8 = vadd.f32 %v3163_v25, %v3115_v22  ;;  %3309 = vmatmul.bf16.gmra.mxu0 %v10457_v18  ;;  %v5080_v13 = vmax.f32 %v3259_v3, 0.0  ;;  %3407 = vmatmul.bf16.gmra.mxu2 %v8999_v26  ;;  %v7583_v3 = vld [vmem:[#allocation7 + $0xac8] sm:$0xf] }
 0x241   :  { %3456 = vmatmul.bf16.gmra.mxu3 %v9001_v27  ;;  %v7584_v15 = vor.u32 %v8338_v43, %v7583_v3 }
 0x242   :  { %v9366_v4 = vpack.c.bf16 %v5080_v13, %v5072_v50  ;;  %3638 = vmatpush.bf16.msra.mxu3 %v6564_v59  ;;  %v6273_v59 = vld [vmem:[#allocation7 + $0xa8] sm:$0xf0] }
 0x243   :  { %v3212_v25 = vpop.f32.mrf.mxu2  ;;  %v3165_v46 = vpop.f32.mrf.mxu1  ;;  %3540 = vmatpush.bf16.msra.mxu1 %v7584_v15 }
 0x244   :  { %10459 = vst [vmem:[#allocation53_spill] sm:$0xff] %v9366_v4  ;;  %v3261_v20 = vpop.f32.mrf.mxu3  ;;  %v3213_v36 = vadd.f32 %v3212_v25, %v3164_v8 }
 0x245   :  { %v3116_v21 = vpop.f32.mrf.mxu0 }
 0x246   :  { %v3117_v53 = vadd.f32 %v3116_v21, %v9276_v61  ;;  %v3262_v41 = vadd.f32 %v3261_v20, %v3213_v36  ;;  %v8006_v20 = vld [vmem:[#allocation7 + $0x8c] sm:$0xf]  ;;  %v7295_v21 = vld [vmem:[#allocation7 + $0x888] sm:$0xf] }
 0x247   :  { %v6276_v36 = vor.u32 %v8006_v20, %v6273_v59  ;;  %v8330_v20 = vld [vmem:[#allocation7 + $0xaa4] sm:$0xf0] }
 0x248   :  { %v3166_v22 = vadd.f32 %v3165_v46, %v3117_v53  ;;  %v5088_v61 = vmax.f32 %v3262_v41, 0.0  ;;  %v8266_v46 = vld [vmem:[#allocation7 + $0x8a4] sm:$0xf0]  ;;  %v8070_v53 = vld [vmem:[#allocation7 + $0x28c] sm:$0xf] }
 0x249   :  { %3590 = vmatpush.bf16.msra.mxu2 %v6276_v36 }
 0x24b   :  { %v3214_v38 = vpop.f32.mrf.mxu2  ;;  %v3168_v4 = vpop.f32.mrf.mxu1 }
 0x24c   :  { %v3263_v14 = vpop.f32.mrf.mxu3  ;;  %v3215_v50 = vadd.f32 %v3214_v38, %v3166_v22  ;;  %v7296_v22 = vor.u32 %v8266_v46, %v7295_v21 }
 0x24d   :  { %v3119_v13 = vpop.f32.mrf.mxu0 }
 0x24e   :  { %v3120_v42 = vadd.f32 %v3119_v13, %v9284_v49  ;;  %v3264_v8 = vadd.f32 %v3263_v14, %v3215_v50  ;;  %3363 = vmatmul.bf16.gmra.mxu1 %v10461_v19  ;;  %v6529_v49 = vld [vmem:[#allocation7 + $0x2a8] sm:$0xf0]  ;;  %3492 = vmatpush.bf16.msra.mxu0 %v7296_v22 }
 0x24f   :  { %v6532_v15 = vor.u32 %v8070_v53, %v6529_v49  ;;  %v10463_v49 = vld [vmem:[#allocation34_spill] sm:$0xff]  ;;  %v10464_v22 = vld [vmem:[#allocation35_spill] sm:$0xff] }
 0x250   :  { %v3169_v16 = vadd.f32 %v3168_v4, %v3120_v42  ;;  %3314 = vmatmul.bf16.gmra.mxu0 %v10460_v58  ;;  %v5096_v25 = vmax.f32 %v3264_v8, 0.0  ;;  %3412 = vmatmul.bf16.gmra.mxu2 %v9027_v44  ;;  %v7551_v8 = vld [vmem:[#allocation7 + $0xa88] sm:$0xf] }
 0x251   :  { %3461 = vmatmul.bf16.gmra.mxu3 %v9029_v45  ;;  %v7552_v59 = vor.u32 %v8330_v20, %v7551_v8 }
 0x252   :  { %v9374_v3 = vpack.c.bf16 %v5096_v25, %v5088_v61  ;;  %3639 = vmatpush.bf16.msra.mxu3 %v6532_v15  ;;  %v6241_v15 = vld [vmem:[#allocation7 + $0x68] sm:$0xf0] }
 0x253   :  { %v3217_v4 = vpop.f32.mrf.mxu2  ;;  %v3170_v14 = vpop.f32.mrf.mxu1  ;;  %3541 = vmatpush.bf16.msra.mxu1 %v7552_v59 }
 0x254   :  { %10462 = vst [vmem:[#allocation54_spill] sm:$0xff] %v9374_v3  ;;  %v3266_v43 = vpop.f32.mrf.mxu3  ;;  %v3218_v41 = vadd.f32 %v3217_v4, %v3169_v16 }
 0x255   :  { %v3121_v38 = vpop.f32.mrf.mxu0 }
 0x256   :  { %v3122_v50 = vadd.f32 %v3121_v38, %v9290_v28  ;;  %v3267_v13 = vadd.f32 %v3266_v43, %v3218_v41  ;;  %v7998_v43 = vld [vmem:[#allocation7 + $0x4c] sm:$0xf]  ;;  %v7263_v38 = vld [vmem:[#allocation7 + $0x848] sm:$0xf] }
 0x257   :  { %v6244_v41 = vor.u32 %v7998_v43, %v6241_v15  ;;  %v8322_v43 = vld [vmem:[#allocation7 + $0xa64] sm:$0xf0] }
 0x258   :  { %v3171_v42 = vadd.f32 %v3170_v14, %v3122_v50  ;;  %v5104_v28 = vmax.f32 %v3267_v13, 0.0  ;;  %v8258_v14 = vld [vmem:[#allocation7 + $0x864] sm:$0xf0]  ;;  %v8062_v50 = vld [vmem:[#allocation7 + $0x24c] sm:$0xf] }
 0x259   :  { %3591 = vmatpush.bf16.msra.mxu2 %v6244_v41 }
 0x25b   :  { %v3219_v21 = vpop.f32.mrf.mxu2  ;;  %v3173_v3 = vpop.f32.mrf.mxu1 }
 0x25c   :  { %v3268_v46 = vpop.f32.mrf.mxu3  ;;  %v3220_v61 = vadd.f32 %v3219_v21, %v3171_v42  ;;  %v7264_v42 = vor.u32 %v8258_v14, %v7263_v38 }
 0x25d   :  { %v3124_v25 = vpop.f32.mrf.mxu0 }
 0x25e   :  { %v3125_v36 = vadd.f32 %v3124_v25, %v9298_v52  ;;  %v3269_v16 = vadd.f32 %v3268_v46, %v3220_v61  ;;  %3368 = vmatmul.bf16.gmra.mxu1 %v10464_v22  ;;  %v6497_v52 = vld [vmem:[#allocation7 + $0x268] sm:$0xf0]  ;;  %3493 = vmatpush.bf16.msra.mxu0 %v7264_v42  ;;  %v10467_v42 = vld [vmem:[#allocation37_spill] sm:$0xff] }
 0x25f   :  { %v6500_v59 = vor.u32 %v8062_v50, %v6497_v52  ;;  %v10466_v52 = vld [vmem:[#allocation36_spill] sm:$0xff] }
 0x260   :  { %v3174_v53 = vadd.f32 %v3173_v3, %v3125_v36  ;;  %3319 = vmatmul.bf16.gmra.mxu0 %v10463_v49  ;;  %v5112_v4 = vmax.f32 %v3269_v16, 0.0  ;;  %3417 = vmatmul.bf16.gmra.mxu2 %v9055_v6  ;;  %v7519_v16 = vld [vmem:[#allocation7 + $0xa48] sm:$0xf] }
 0x261   :  { %3466 = vmatmul.bf16.gmra.mxu3 %v9057_v5  ;;  %v7520_v15 = vor.u32 %v8322_v43, %v7519_v16 }
 0x262   :  { %v9382_v8 = vpack.c.bf16 %v5112_v4, %v5104_v28  ;;  %3640 = vmatpush.bf16.msra.mxu3 %v6500_v59  ;;  %v6209_v59 = vld [vmem:[#allocation7 + $0x28] sm:$0xf0] }
 0x263   :  { %v3222_v3 = vpop.f32.mrf.mxu2  ;;  %v3175_v46 = vpop.f32.mrf.mxu1  ;;  %3542 = vmatpush.bf16.msra.mxu1 %v7520_v15 }
 0x264   :  { %10465 = vst [vmem:[#allocation55_spill] sm:$0xff] %v9382_v8  ;;  %v3271_v20 = vpop.f32.mrf.mxu3  ;;  %v3223_v13 = vadd.f32 %v3222_v3, %v3174_v53 }
 0x265   :  { %v3126_v21 = vpop.f32.mrf.mxu0 }
 0x266   :  { %v3127_v61 = vadd.f32 %v3126_v21, %v9304_v37  ;;  %v3272_v25 = vadd.f32 %v3271_v20, %v3223_v13  ;;  %v7990_v20 = vld [vmem:[#allocation7 + $0xc] sm:$0xf]  ;;  %v7231_v21 = vld [vmem:[#allocation7 + $0x808] sm:$0xf] }
 0x267   :  { %v6212_v13 = vor.u32 %v7990_v20, %v6209_v59  ;;  %v8314_v20 = vld [vmem:[#allocation7 + $0xa24] sm:$0xf0] }
 0x268   :  { %v3176_v36 = vadd.f32 %v3175_v46, %v3127_v61  ;;  %v5120_v37 = vmax.f32 %v3272_v25, 0.0  ;;  %v8250_v46 = vld [vmem:[#allocation7 + $0x824] sm:$0xf0]  ;;  %v8054_v61 = vld [vmem:[#allocation7 + $0x20c] sm:$0xf] }
 0x269   :  { %3592 = vmatpush.bf16.msra.mxu2 %v6212_v13 }
 0x26b   :  { %v3224_v38 = vpop.f32.mrf.mxu2  ;;  %v3178_v8 = vpop.f32.mrf.mxu1 }
 0x26c   :  { %v3273_v14 = vpop.f32.mrf.mxu3  ;;  %v3225_v28 = vadd.f32 %v3224_v38, %v3176_v36  ;;  %v7232_v36 = vor.u32 %v8250_v46, %v7231_v21 }
 0x26d   :  { %v3129_v4 = vpop.f32.mrf.mxu0 }
 0x26e   :  { %v3130_v41 = vadd.f32 %v3129_v4, %v9312_v7  ;;  %v3274_v53 = vadd.f32 %v3273_v14, %v3225_v28  ;;  %3373 = vmatmul.bf16.gmra.mxu1 %v10467_v42  ;;  %v6465_v7 = vld [vmem:[#allocation7 + $0x228] sm:$0xf0]  ;;  %3494 = vmatpush.bf16.msra.mxu0 %v7232_v36 }
 0x26f   :  { %v6468_v15 = vor.u32 %v8054_v61, %v6465_v7  ;;  %v10469_v7 = vld [vmem:[#allocation38_spill] sm:$0xff]  ;;  %v10470_v36 = vld [vmem:[#allocation39_spill] sm:$0xff] }
 0x270   :  { %v3179_v50 = vadd.f32 %v3178_v8, %v3130_v41  ;;  %3324 = vmatmul.bf16.gmra.mxu0 %v10466_v52  ;;  %v5128_v3 = vmax.f32 %v3274_v53, 0.0  ;;  %3422 = vmatmul.bf16.gmra.mxu2 %v9083_v29  ;;  %v7487_v53 = vld [vmem:[#allocation7 + $0xa08] sm:$0xf] }
 0x271   :  { %3471 = vmatmul.bf16.gmra.mxu3 %v9085_v34  ;;  %v7488_v59 = vor.u32 %v8314_v20, %v7487_v53 }
 0x272   :  { %v9390_v16 = vpack.c.bf16 %v5128_v3, %v5120_v37  ;;  %3641 = vmatpush.bf16.msra.mxu3 %v6468_v15  ;;  %v7457_v15 = vld [vmem:[#allocation7 + $0x9e8] sm:$0xf0] }
 0x273   :  { %v3227_v8 = vpop.f32.mrf.mxu2  ;;  %v3180_v14 = vpop.f32.mrf.mxu1  ;;  %3543 = vmatpush.bf16.msra.mxu1 %v7488_v59 }
 0x274   :  { %10468 = vst [vmem:[#allocation56_spill] sm:$0xff] %v9390_v16  ;;  %v3276_v43 = vpop.f32.mrf.mxu3  ;;  %v3228_v25 = vadd.f32 %v3227_v8, %v3179_v50 }
 0x275   :  { %v3131_v38 = vpop.f32.mrf.mxu0 }
 0x276   :  { %v3132_v28 = vadd.f32 %v3131_v38, %v9318_v47  ;;  %v3277_v4 = vadd.f32 %v3276_v43, %v3228_v25  ;;  %v8302_v43 = vld [vmem:[#allocation7 + $0x9cc] sm:$0xf] }
 0x277   :  { %v7460_v25 = vor.u32 %v8302_v43, %v7457_v15  ;;  %v8174_v38 = vld [vmem:[#allocation7 + $0x5cc] sm:$0xf] }
 0x278   :  { %v3181_v41 = vadd.f32 %v3180_v14, %v3132_v28  ;;  %v5136_v47 = vmax.f32 %v3277_v4, 0.0  ;;  %v6945_v14 = vld [vmem:[#allocation7 + $0x5e8] sm:$0xf0] }
 0x279   :  { %v8366_v28 = vld [vmem:[#allocation7 + $0xbcc] sm:$0xf]  ;;  %3781 = vmatpush.bf16.msrb.mxu2 %v7460_v25 }
 0x27b   :  { %v3229_v21 = vpop.f32.mrf.mxu2  ;;  %v3183_v16 = vpop.f32.mrf.mxu1 }
 0x27c   :  { %v3278_v46 = vpop.f32.mrf.mxu3  ;;  %v3230_v37 = vadd.f32 %v3229_v21, %v3181_v41  ;;  %v6948_v41 = vor.u32 %v8174_v38, %v6945_v14 }
 0x27d   :  { %v3134_v3 = vpop.f32.mrf.mxu0 }
 0x27e   :  { %v3135_v13 = vadd.f32 %v3134_v3, %v9326_v35  ;;  %v3279_v50 = vadd.f32 %v3278_v46, %v3230_v37  ;;  %3378 = vmatmul.bf16.gmra.mxu1 %v10470_v36  ;;  %v7713_v35 = vld [vmem:[#allocation7 + $0xbe8] sm:$0xf0]  ;;  %3683 = vmatpush.bf16.msrb.mxu0 %v6948_v41 }
 0x27f   :  { %v7716_v59 = vor.u32 %v8366_v28, %v7713_v35  ;;  %v10472_v35 = vld [vmem:[#allocation42_spill] sm:$0xff]  ;;  %v10473_v41 = vld [vmem:[#allocation43_spill] sm:$0xff] }
 0x280   :  { %v3184_v61 = vadd.f32 %v3183_v16, %v3135_v13  ;;  %3329 = vmatmul.bf16.gmra.mxu0 %v10469_v7  ;;  %v5144_v8 = vmax.f32 %v3279_v50, 0.0  ;;  %3427 = vmatmul.bf16.gmra.mxu2 %v10444_v60  ;;  %v8238_v13 = vld [vmem:[#allocation7 + $0x7cc] sm:$0xf] }
 0x281   :  { %3476 = vmatmul.bf16.gmra.mxu3 %v10445_v56  ;;  %v7201_v50 = vld [vmem:[#allocation7 + $0x7e8] sm:$0xf0] }
 0x282   :  { %v9398_v53 = vpack.c.bf16 %v5144_v8, %v5136_v47  ;;  %3830 = vmatpush.bf16.msrb.mxu3 %v7716_v59  ;;  %v7204_v15 = vor.u32 %v8238_v13, %v7201_v50  ;;  %v7425_v59 = vld [vmem:[#allocation7 + $0x9a8] sm:$0xf0] }
 0x283   :  { %v3232_v16 = vpop.f32.mrf.mxu2  ;;  %v3185_v46 = vpop.f32.mrf.mxu1 }
 0x284   :  { %10471 = vst [vmem:[#allocation57_spill] sm:$0xff] %v9398_v53  ;;  %v3281_v20 = vpop.f32.mrf.mxu3  ;;  %v3233_v4 = vadd.f32 %v3232_v16, %v3184_v61  ;;  %3732 = vmatpush.bf16.msrb.mxu1 %v7204_v15 }
 0x285   :  { %v3136_v21 = vpop.f32.mrf.mxu0 }
 0x286   :  { %v3137_v37 = vadd.f32 %v3136_v21, %v9332_v39  ;;  %v3282_v3 = vadd.f32 %v3281_v20, %v3233_v4  ;;  %v8294_v20 = vld [vmem:[#allocation7 + $0x98c] sm:$0xf] }
 0x287   :  { %v7428_v4 = vor.u32 %v8294_v20, %v7425_v59  ;;  %v8166_v21 = vld [vmem:[#allocation7 + $0x58c] sm:$0xf] }
 0x288   :  { %v3186_v43 = vadd.f32 %v3185_v46, %v3137_v37  ;;  %v5152_v39 = vmax.f32 %v3282_v3, 0.0  ;;  %v6913_v46 = vld [vmem:[#allocation7 + $0x5a8] sm:$0xf0] }
 0x289   :  { %v8358_v37 = vld [vmem:[#allocation7 + $0xb8c] sm:$0xf]  ;;  %v6916_v13 = vor.u32 %v8166_v21, %v6913_v46  ;;  %3782 = vmatpush.bf16.msrb.mxu2 %v7428_v4  ;;  %v9409_v21 = vld [vmem:[#allocation8] sm:$0xff] }
 0x28b   :  { %v3234_v38 = vpop.f32.mrf.mxu2  ;;  %v3188_v53 = vpop.f32.mrf.mxu1  ;;  %3684 = vmatpush.bf16.msrb.mxu0 %v6916_v13 }
 0x28c   :  { %v3283_v47 = vpop.f32.mrf.mxu3  ;;  %v3235_v8 = vadd.f32 %v3234_v38, %v3186_v43 }
 0x28d   :  { %v3139_v14 = vpop.f32.mrf.mxu0 }
 0x28e   :  { %v3140_v25 = vadd.f32 %v3139_v14, %v9340_v62  ;;  %v3284_v61 = vadd.f32 %v3283_v47, %v3235_v8  ;;  %3383 = vmatmul.bf16.gmra.mxu1 %v10473_v41  ;;  %v7681_v62 = vld [vmem:[#allocation7 + $0xba8] sm:$0xf0] }
 0x28f   :  { %v7684_v15 = vor.u32 %v8358_v37, %v7681_v62 }
 0x290   :  { %v3189_v28 = vadd.f32 %v3188_v53, %v3140_v25  ;;  %3334 = vmatmul.bf16.gmra.mxu0 %v10472_v35  ;;  %v5160_v16 = vmax.f32 %v3284_v61, 0.0  ;;  %3432 = vmatmul.bf16.gmra.mxu2 %v10449_v24  ;;  %v8230_v25 = vld [vmem:[#allocation7 + $0x78c] sm:$0xf] }
 0x291   :  { %3481 = vmatmul.bf16.gmra.mxu3 %v10450_v40  ;;  %v7169_v61 = vld [vmem:[#allocation7 + $0x7a8] sm:$0xf0]  ;;  %v8115_v40 = vld [vmem:[#allocation7 + $0x3ec] sm:$0xf0] }
 0x292   :  { %v9406_v50 = vpack.c.bf16 %v5160_v16, %v5152_v39  ;;  %3831 = vmatpush.bf16.msrb.mxu3 %v7684_v15  ;;  %v7172_v59 = vor.u32 %v8230_v25, %v7169_v61  ;;  %v9412_v39 = vperm.slane %v9409_v21, 2  ;;  %v8286_v15 = vld [vmem:[#allocation7 + $0x94c] sm:$0xf] }
 0x293   :  { %v3237_v53 = vpop.f32.mrf.mxu2  ;;  %v3190_v47 = vpop.f32.mrf.mxu1  ;;  %v8350_v25 = vld [vmem:[#allocation7 + $0xb4c] sm:$0xf] }
 0x294   :  { %10474 = vst [vmem:[#allocation58_spill] sm:$0xff] %v9406_v50  ;;  %v3286_v43 = vpop.f32.mrf.mxu3  ;;  %v3238_v3 = vadd.f32 %v3237_v53, %v3189_v28  ;;  %3733 = vmatpush.bf16.msrb.mxu1 %v7172_v59 }
 0x295   :  { %v3141_v38 = vpop.f32.mrf.mxu0 }
 0x296   :  { %v3142_v8 = vadd.f32 %v3141_v38, %v9346_v17  ;;  %v3287_v14 = vadd.f32 %v3286_v43, %v3238_v3  ;;  %v7393_v3 = vld [vmem:[#allocation7 + $0x968] sm:$0xf0] }
 0x297   :  { %v7396_v38 = vor.u32 %v8286_v15, %v7393_v3  ;;  %v8222_v15 = vld [vmem:[#allocation7 + $0x74c] sm:$0xf] }
 0x298   :  { %v3191_v20 = vadd.f32 %v3190_v47, %v3142_v8  ;;  %v5168_v53 = vmax.f32 %v3287_v14, 0.0  ;;  %v8158_v47 = vld [vmem:[#allocation7 + $0x54c] sm:$0xf] }
 0x299   :  { %v6881_v8 = vld [vmem:[#allocation7 + $0x568] sm:$0xf0]  ;;  %3783 = vmatpush.bf16.msrb.mxu2 %v7396_v38 }
 0x29a   :  { %v6884_v61 = vor.u32 %v8158_v47, %v6881_v8  ;;  %v7137_v3 = vld [vmem:[#allocation7 + $0x768] sm:$0xf0] }
 0x29b   :  { %v3239_v16 = vpop.f32.mrf.mxu2  ;;  %v3349_v37 = vpop.f32.mrf.mxu1  ;;  %v7140_v47 = vor.u32 %v8222_v15, %v7137_v3 }
 0x29c   :  { %v3288_v4 = vpop.f32.mrf.mxu3  ;;  %v3240_v28 = vadd.f32 %v3239_v16, %v3191_v20  ;;  %v7649_v20 = vld [vmem:[#allocation7 + $0xb68] sm:$0xf0]  ;;  %3685 = vmatpush.bf16.msrb.mxu0 %v6884_v61 }
 0x29d   :  { %v3300_v46 = vpop.f32.mrf.mxu0  ;;  %3734 = vmatpush.bf16.msrb.mxu1 %v7140_v47 }
 0x29e   :  { %v3301_v13 = vadd.f32 %v3300_v46, %v9412_v39  ;;  %v3289_v17 = vadd.f32 %v3288_v4, %v3240_v28  ;;  %3544 = vmatmul.bf16.vlgmr.msra.gmra.mxu1 %v8869_v2  ;;  %v7652_v28 = vor.u32 %v8350_v25, %v7649_v20  ;;  %v8278_v20 = vld [vmem:[#allocation7 + $0x90c] sm:$0xf] }
 0x2a0   :  { %v3350_v62 = vadd.f32 %v3349_v37, %v3301_v13  ;;  %3495 = vmatmul.bf16.vlgmr.msra.gmra.mxu0 %v8867_v1  ;;  %v5176_v43 = vmax.f32 %v3289_v17, 0.0  ;;  %3593 = vmatmul.bf16.vlgmr.msra.gmra.mxu2 %v10452_v51 }
 0x2a1   :  { %3642 = vmatmul.bf16.vlgmr.msra.gmra.mxu3 %v10453_v57  ;;  %v6977_v57 = vld [vmem:[#allocation7 + $0x628] sm:$0xf0] }
 0x2a2   :  { %v9419_v59 = vpack.c.bf16 %v5176_v43, %v5168_v53  ;;  %3832 = vmatpush.bf16.msrb.mxu3 %v7652_v28 }
 0x2a3   :  { %v3398_v16 = vpop.f32.mrf.mxu2  ;;  %v3351_v37 = vpop.f32.mrf.mxu1 }
 0x2a4   :  { %10475 = vst [vmem:[#allocation59_spill] sm:$0xff] %v9419_v59  ;;  %v3447_v4 = vpop.f32.mrf.mxu3  ;;  %v3399_v14 = vadd.f32 %v3398_v16, %v3350_v62  ;;  %v7361_v16 = vld [vmem:[#allocation7 + $0x928] sm:$0xf0] }
 0x2a5   :  { %v3302_v46 = vpop.f32.mrf.mxu0  ;;  %v7364_v28 = vor.u32 %v8278_v20, %v7361_v16 }
 0x2a6   :  { %v3303_v13 = vadd.f32 %v3302_v46, %v9412_v39  ;;  %v9422_v17 = vadd.f32 %v3447_v4, %v3399_v14  ;;  %v8150_v4 = vld [vmem:[#allocation7 + $0x50c] sm:$0xf] }
 0x2a7   :  { %v8342_v14 = vld [vmem:[#allocation7 + $0xb0c] sm:$0xf]  ;;  %3784 = vmatpush.bf16.msrb.mxu2 %v7364_v28 }
 0x2a8   :  { %v3352_v50 = vadd.f32 %v3351_v37, %v3303_v13  ;;  %v7617_v46 = vld [vmem:[#allocation7 + $0xb28] sm:$0xf0] }
 0x2ab   :  { %v3400_v53 = vpop.f32.mrf.mxu2  ;;  %v3354_v38 = vpop.f32.mrf.mxu1 }
 0x2ac   :  { %v3449_v43 = vpop.f32.mrf.mxu3  ;;  %v3401_v8 = vadd.f32 %v3400_v53, %v3352_v50  ;;  %v6849_v50 = vld [vmem:[#allocation7 + $0x528] sm:$0xf0] }
 0x2ad   :  { %v3305_v59 = vpop.f32.mrf.mxu0  ;;  %v6852_v37 = vor.u32 %v8150_v4, %v6849_v50 }
 0x2ae   :  { %v3306_v62 = vadd.f32 %v3305_v59, %v9412_v39  ;;  %v9425_v25 = vadd.f32 %v3449_v43, %v3401_v8  ;;  %3549 = vmatmul.bf16.gmra.mxu1 %v8851_v55  ;;  %v7620_v59 = vor.u32 %v8342_v14, %v7617_v46 }
 0x2af   :  { %3686 = vmatpush.bf16.msrb.mxu0 %v6852_v37 }
 0x2b0   :  { %v3355_v61 = vadd.f32 %v3354_v38, %v3306_v62  ;;  %3500 = vmatmul.bf16.gmra.mxu0 %v8849_v54  ;;  %3598 = vmatmul.bf16.gmra.mxu2 %v10454_v31  ;;  %v8214_v38 = vld [vmem:[#allocation7 + $0x70c] sm:$0xf] }
 0x2b1   :  { %3647 = vmatmul.bf16.gmra.mxu3 %v10455_v23  ;;  %v7105_v62 = vld [vmem:[#allocation7 + $0x728] sm:$0xf0] }
 0x2b2   :  { %3833 = vmatpush.bf16.msrb.mxu3 %v7620_v59  ;;  %v7108_v16 = vor.u32 %v8214_v38, %v7105_v62  ;;  %v8270_v59 = vld [vmem:[#allocation7 + $0x8cc] sm:$0xf] }
 0x2b3   :  { %v3403_v13 = vpop.f32.mrf.mxu2  ;;  %v3356_v53 = vpop.f32.mrf.mxu1 }
 0x2b4   :  { %v3452_v15 = vpop.f32.mrf.mxu3  ;;  %v3404_v3 = vadd.f32 %v3403_v13, %v3355_v61  ;;  %3735 = vmatpush.bf16.msrb.mxu1 %v7108_v16  ;;  %v7329_v13 = vld [vmem:[#allocation7 + $0x8e8] sm:$0xf0] }
 0x2b5   :  { %v3307_v47 = vpop.f32.mrf.mxu0 }
 0x2b6   :  { %v3308_v43 = vadd.f32 %v3307_v47, %v9412_v39  ;;  %v9432_v8 = vadd.f32 %v3452_v15, %v3404_v3  ;;  %v8142_v15 = vld [vmem:[#allocation7 + $0x4cc] sm:$0xf]  ;;  %v7332_v3 = vor.u32 %v8270_v59, %v7329_v13 }
 0x2b7   :  { %v8334_v47 = vld [vmem:[#allocation7 + $0xacc] sm:$0xf] }
 0x2b8   :  { %v3357_v20 = vadd.f32 %v3356_v53, %v3308_v43  ;;  %v7585_v53 = vld [vmem:[#allocation7 + $0xae8] sm:$0xf0]  ;;  %3785 = vmatpush.bf16.msrb.mxu2 %v7332_v3 }
 0x2b9   :  { %v7588_v38 = vor.u32 %v8334_v47, %v7585_v53 }
 0x2bb   :  { %v3405_v23 = vpop.f32.mrf.mxu2  ;;  %v3359_v46 = vpop.f32.mrf.mxu1  ;;  %3834 = vmatpush.bf16.msrb.mxu3 %v7588_v38  ;;  %v7297_v38 = vld [vmem:[#allocation7 + $0x8a8] sm:$0xf0] }
 0x2bc   :  { %v3454_v4 = vpop.f32.mrf.mxu3  ;;  %v3406_v50 = vadd.f32 %v3405_v23, %v3357_v20  ;;  %v6817_v23 = vld [vmem:[#allocation7 + $0x4e8] sm:$0xf0] }
 0x2bd   :  { %v3310_v14 = vpop.f32.mrf.mxu0  ;;  %v6820_v43 = vor.u32 %v8142_v15, %v6817_v23 }
 0x2be   :  { %v3311_v61 = vadd.f32 %v3310_v14, %v9412_v39  ;;  %v9435_v28 = vadd.f32 %v3454_v4, %v3406_v50  ;;  %3554 = vmatmul.bf16.gmra.mxu1 %v8795_v11 }
 0x2bf   :  { %3687 = vmatpush.bf16.msrb.mxu0 %v6820_v43 }
 0x2c0   :  { %v3360_v37 = vadd.f32 %v3359_v46, %v3311_v61  ;;  %3505 = vmatmul.bf16.gmra.mxu0 %v8793_v10  ;;  %3603 = vmatmul.bf16.gmra.mxu2 %v10457_v18  ;;  %v8206_v61 = vld [vmem:[#allocation7 + $0x6cc] sm:$0xf] }
 0x2c1   :  { %3652 = vmatmul.bf16.gmra.mxu3 %v10458_v48  ;;  %v7073_v48 = vld [vmem:[#allocation7 + $0x6e8] sm:$0xf0] }
 0x2c2   :  { %v7076_v13 = vor.u32 %v8206_v61, %v7073_v48  ;;  %v8262_v48 = vld [vmem:[#allocation7 + $0x88c] sm:$0xf] }
 0x2c3   :  { %v3408_v62 = vpop.f32.mrf.mxu2  ;;  %v3361_v50 = vpop.f32.mrf.mxu1 }
 0x2c4   :  { %v3457_v20 = vpop.f32.mrf.mxu3  ;;  %v3409_v16 = vadd.f32 %v3408_v62, %v3360_v37  ;;  %3736 = vmatpush.bf16.msrb.mxu1 %v7076_v13  ;;  %v8134_v62 = vld [vmem:[#allocation7 + $0x48c] sm:$0xf] }
 0x2c5   :  { %v3312_v4 = vpop.f32.mrf.mxu0 }
 0x2c6   :  { %v3313_v14 = vadd.f32 %v3312_v4, %v9412_v39  ;;  %v9442_v46 = vadd.f32 %v3457_v20, %v3409_v16  ;;  %v7300_v20 = vor.u32 %v8262_v48, %v7297_v38  ;;  %v8326_v16 = vld [vmem:[#allocation7 + $0xa8c] sm:$0xf] }
 0x2c7   :  { %v7553_v4 = vld [vmem:[#allocation7 + $0xaa8] sm:$0xf0] }
 0x2c8   :  { %v3362_v59 = vadd.f32 %v3361_v50, %v3313_v14  ;;  %v7556_v14 = vor.u32 %v8326_v16, %v7553_v4  ;;  %3786 = vmatpush.bf16.msrb.mxu2 %v7300_v20 }
 0x2ca   :  { %3835 = vmatpush.bf16.msrb.mxu3 %v7556_v14  ;;  %v10476_v14 = vld [vmem:[#allocation25_spill] sm:$0xff] }
 0x2cb   :  { %v3410_v18 = vpop.f32.mrf.mxu2  ;;  %v3364_v53 = vpop.f32.mrf.mxu1 }
 0x2cc   :  { %v3459_v15 = vpop.f32.mrf.mxu3  ;;  %v3411_v23 = vadd.f32 %v3410_v18, %v3362_v59  ;;  %v6785_v18 = vld [vmem:[#allocation7 + $0x4a8] sm:$0xf0] }
 0x2cd   :  { %v3315_v47 = vpop.f32.mrf.mxu0  ;;  %v6788_v50 = vor.u32 %v8134_v62, %v6785_v18 }
 0x2ce   :  { %v3316_v37 = vadd.f32 %v3315_v47, %v9412_v39  ;;  %v9445_v3 = vadd.f32 %v3459_v15, %v3411_v23  ;;  %3559 = vmatmul.bf16.gmra.mxu1 %v8897_v33 }
 0x2cf   :  { %3688 = vmatpush.bf16.msrb.mxu0 %v6788_v50 }
 0x2d0   :  { %v3365_v43 = vadd.f32 %v3364_v53, %v3316_v37  ;;  %3510 = vmatmul.bf16.gmra.mxu0 %v8895_v32  ;;  %3608 = vmatmul.bf16.gmra.mxu2 %v10460_v58  ;;  %v8198_v37 = vld [vmem:[#allocation7 + $0x68c] sm:$0xf] }
 0x2d1   :  { %3657 = vmatmul.bf16.gmra.mxu3 %v10461_v19  ;;  %v7041_v19 = vld [vmem:[#allocation7 + $0x6a8] sm:$0xf0] }
 0x2d2   :  { %v7044_v38 = vor.u32 %v8198_v37, %v7041_v19  ;;  %v8254_v19 = vld [vmem:[#allocation7 + $0x84c] sm:$0xf] }
 0x2d3   :  { %v3413_v61 = vpop.f32.mrf.mxu2  ;;  %v3366_v23 = vpop.f32.mrf.mxu1 }
 0x2d4   :  { %v3462_v59 = vpop.f32.mrf.mxu3  ;;  %v3414_v13 = vadd.f32 %v3413_v61, %v3365_v43  ;;  %3737 = vmatpush.bf16.msrb.mxu1 %v7044_v38  ;;  %v7265_v61 = vld [vmem:[#allocation7 + $0x868] sm:$0xf0] }
 0x2d5   :  { %v3317_v15 = vpop.f32.mrf.mxu0 }
 0x2d6   :  { %v3318_v47 = vadd.f32 %v3317_v15, %v9412_v39  ;;  %v9452_v53 = vadd.f32 %v3462_v59, %v3414_v13  ;;  %v8126_v59 = vld [vmem:[#allocation7 + $0x44c] sm:$0xf]  ;;  %v7268_v13 = vor.u32 %v8254_v19, %v7265_v61 }
 0x2d7   :  { %v8318_v15 = vld [vmem:[#allocation7 + $0xa4c] sm:$0xf] }
 0x2d8   :  { %v3367_v48 = vadd.f32 %v3366_v23, %v3318_v47  ;;  %v7521_v23 = vld [vmem:[#allocation7 + $0xa68] sm:$0xf0]  ;;  %3787 = vmatpush.bf16.msrb.mxu2 %v7268_v13 }
 0x2d9   :  { %v7524_v37 = vor.u32 %v8318_v15, %v7521_v23 }
 0x2db   :  { %v3415_v58 = vpop.f32.mrf.mxu2  ;;  %v3369_v4 = vpop.f32.mrf.mxu1  ;;  %3836 = vmatpush.bf16.msrb.mxu3 %v7524_v37  ;;  %v10477_v37 = vld [vmem:[#allocation21_spill] sm:$0xff] }
 0x2dc   :  { %v3464_v62 = vpop.f32.mrf.mxu3  ;;  %v3416_v18 = vadd.f32 %v3415_v58, %v3367_v48  ;;  %v6753_v58 = vld [vmem:[#allocation7 + $0x468] sm:$0xf0] }
 0x2dd   :  { %v3320_v16 = vpop.f32.mrf.mxu0  ;;  %v6756_v47 = vor.u32 %v8126_v59, %v6753_v58 }
 0x2de   :  { %v3321_v43 = vadd.f32 %v3320_v16, %v9412_v39  ;;  %v9455_v20 = vadd.f32 %v3464_v62, %v3416_v18  ;;  %3564 = vmatmul.bf16.gmra.mxu1 %v10476_v14 }
 0x2df   :  { %3689 = vmatpush.bf16.msrb.mxu0 %v6756_v47 }
 0x2e0   :  { %v3370_v50 = vadd.f32 %v3369_v4, %v3321_v43  ;;  %3515 = vmatmul.bf16.gmra.mxu0 %v8942_v30  ;;  %3613 = vmatmul.bf16.gmra.mxu2 %v10463_v49  ;;  %v7009_v49 = vld [vmem:[#allocation7 + $0x668] sm:$0xf0] }
 0x2e1   :  { %3662 = vmatmul.bf16.gmra.mxu3 %v10464_v22  ;;  %v8190_v22 = vld [vmem:[#allocation7 + $0x64c] sm:$0xf] }
 0x2e2   :  { %v7012_v61 = vor.u32 %v8190_v22, %v7009_v49  ;;  %v8246_v49 = vld [vmem:[#allocation7 + $0x80c] sm:$0xf] }
 0x2e3   :  { %v3418_v48 = vpop.f32.mrf.mxu2  ;;  %v3371_v16 = vpop.f32.mrf.mxu1  ;;  %v7233_v22 = vld [vmem:[#allocation7 + $0x828] sm:$0xf0] }
 0x2e4   :  { %v3467_v38 = vpop.f32.mrf.mxu3  ;;  %v3419_v62 = vadd.f32 %v3418_v48, %v3370_v50  ;;  %3738 = vmatpush.bf16.msrb.mxu1 %v7012_v61  ;;  %v10478_v48 = vld [vmem:[#allocation22_spill] sm:$0xff] }
 0x2e5   :  { %v3322_v18 = vpop.f32.mrf.mxu0 }
 0x2e6   :  { %v3323_v4 = vadd.f32 %v3322_v18, %v9412_v39  ;;  %v9462_v43 = vadd.f32 %v3467_v38, %v3419_v62  ;;  %v8118_v38 = vld [vmem:[#allocation7 + $0x40c] sm:$0xf]  ;;  %v7236_v62 = vor.u32 %v8246_v49, %v7233_v22 }
 0x2e7   :  { %v8310_v18 = vld [vmem:[#allocation7 + $0xa0c] sm:$0xf] }
 0x2e8   :  { %v3372_v19 = vadd.f32 %v3371_v16, %v3323_v4  ;;  %v7489_v16 = vld [vmem:[#allocation7 + $0xa28] sm:$0xf0]  ;;  %3788 = vmatpush.bf16.msrb.mxu2 %v7236_v62 }
 0x2eb   :  { %v3420_v31 = vpop.f32.mrf.mxu2  ;;  %v3374_v23 = vpop.f32.mrf.mxu1 }
 0x2ec   :  { %v3469_v59 = vpop.f32.mrf.mxu3  ;;  %v3421_v58 = vadd.f32 %v3420_v31, %v3372_v19  ;;  %v6721_v31 = vld [vmem:[#allocation7 + $0x428] sm:$0xf0]  ;;  %v7492_v19 = vor.u32 %v8310_v18, %v7489_v16 }
 0x2ed   :  { %v3325_v15 = vpop.f32.mrf.mxu0  ;;  %v6724_v4 = vor.u32 %v8118_v38, %v6721_v31 }
 0x2ee   :  { %v3326_v50 = vadd.f32 %v3325_v15, %v9412_v39  ;;  %v9465_v13 = vadd.f32 %v3469_v59, %v3421_v58  ;;  %3569 = vmatmul.bf16.gmra.mxu1 %v10478_v48  ;;  %3837 = vmatpush.bf16.msrb.mxu3 %v7492_v19  ;;  %v10479_v19 = vld [vmem:[#allocation26_spill] sm:$0xff] }
 0x2ef   :  { %3690 = vmatpush.bf16.msrb.mxu0 %v6724_v4 }
 0x2f0   :  { %v3375_v47 = vadd.f32 %v3374_v23, %v3326_v50  ;;  %3520 = vmatmul.bf16.gmra.mxu0 %v10477_v37  ;;  %3618 = vmatmul.bf16.gmra.mxu2 %v10466_v52  ;;  %v8182_v52 = vld [vmem:[#allocation7 + $0x60c] sm:$0xf] }
 0x2f1   :  { %3667 = vmatmul.bf16.gmra.mxu3 %v10467_v42  ;;  %v6980_v22 = vor.u32 %v8182_v52, %v6977_v57  ;;  %v6951_v57 = vld [vmem:[#allocation7 + $0x5d0] sm:$0xf] }
 0x2f2   :  { %v8179_v52 = vld [vmem:[#allocation7 + $0x5ec] sm:$0xf0] }
 0x2f3   :  { %v3423_v61 = vpop.f32.mrf.mxu2  ;;  %v3376_v23 = vpop.f32.mrf.mxu1  ;;  %3739 = vmatpush.bf16.msrb.mxu1 %v6980_v22 }
 0x2f4   :  { %v3472_v59 = vpop.f32.mrf.mxu3  ;;  %v3424_v58 = vadd.f32 %v3423_v61, %v3375_v47  ;;  %v10480_v61 = vld [vmem:[#allocation27_spill] sm:$0xff] }
 0x2f5   :  { %v3327_v15 = vpop.f32.mrf.mxu0 }
 0x2f6   :  { %v3328_v50 = vadd.f32 %v3327_v15, %v9412_v39  ;;  %v9472_v42 = vadd.f32 %v3472_v59, %v3424_v58  ;;  %v6439_v59 = vld [vmem:[#allocation7 + $0x1d0] sm:$0xf]  ;;  %v6952_v58 = vor.u32 %v8179_v52, %v6951_v57 }
 0x2f7   :  { %v7207_v15 = vld [vmem:[#allocation7 + $0x7d0] sm:$0xf] }
 0x2f8   :  { %v3377_v49 = vadd.f32 %v3376_v23, %v3328_v50  ;;  %v8243_v23 = vld [vmem:[#allocation7 + $0x7ec] sm:$0xf0]  ;;  %3977 = vmatpush.bf16.msra.mxu2 %v6952_v58 }
 0x2fb   :  { %v3425_v51 = vpop.f32.mrf.mxu2  ;;  %v3379_v16 = vpop.f32.mrf.mxu1 }
 0x2fc   :  { %v3474_v38 = vpop.f32.mrf.mxu3  ;;  %v3426_v31 = vadd.f32 %v3425_v51, %v3377_v49  ;;  %v8051_v51 = vld [vmem:[#allocation7 + $0x1ec] sm:$0xf0] }
 0x2fd   :  { %v3330_v18 = vpop.f32.mrf.mxu0  ;;  %v6440_v22 = vor.u32 %v8051_v51, %v6439_v59 }
 0x2fe   :  { %v3331_v47 = vadd.f32 %v3330_v18, %v9412_v39  ;;  %v9475_v62 = vadd.f32 %v3474_v38, %v3426_v31  ;;  %3574 = vmatmul.bf16.gmra.mxu1 %v10480_v61  ;;  %v7208_v38 = vor.u32 %v8243_v23, %v7207_v15  ;;  %v10481_v23 = vld [vmem:[#allocation28_spill] sm:$0xff] }
 0x2ff   :  { %3879 = vmatpush.bf16.msra.mxu0 %v6440_v22 }
 0x300   :  { %v3380_v4 = vadd.f32 %v3379_v16, %v3331_v47  ;;  %3525 = vmatmul.bf16.gmra.mxu0 %v10479_v19  ;;  %3623 = vmatmul.bf16.gmra.mxu2 %v10469_v7  ;;  %v6695_v7 = vld [vmem:[#allocation7 + $0x3d0] sm:$0xf] }
 0x301   :  { %3672 = vmatmul.bf16.gmra.mxu3 %v10470_v36  ;;  %v6696_v52 = vor.u32 %v8115_v40, %v6695_v7  ;;  %v6919_v40 = vld [vmem:[#allocation7 + $0x590] sm:$0xf] }
 0x302   :  { %4026 = vmatpush.bf16.msra.mxu3 %v7208_v38  ;;  %v8171_v7 = vld [vmem:[#allocation7 + $0x5ac] sm:$0xf0] }
 0x303   :  { %v3428_v50 = vpop.f32.mrf.mxu2  ;;  %v3381_v16 = vpop.f32.mrf.mxu1  ;;  %3928 = vmatpush.bf16.msra.mxu1 %v6696_v52  ;;  %v6920_v22 = vor.u32 %v8171_v7, %v6919_v40  ;;  %v7175_v38 = vld [vmem:[#allocation7 + $0x790] sm:$0xf] }
 0x304   :  { %v3477_v49 = vpop.f32.mrf.mxu3  ;;  %v3429_v31 = vadd.f32 %v3428_v50, %v3380_v4  ;;  %v10482_v50 = vld [vmem:[#allocation29_spill] sm:$0xff] }
 0x305   :  { %v3332_v18 = vpop.f32.mrf.mxu0  ;;  %3978 = vmatpush.bf16.msra.mxu2 %v6920_v22 }
 0x306   :  { %v3333_v47 = vadd.f32 %v3332_v18, %v9412_v39  ;;  %v9482_v36 = vadd.f32 %v3477_v49, %v3429_v31  ;;  %v6407_v49 = vld [vmem:[#allocation7 + $0x190] sm:$0xf] }
 0x307   :  { %v8235_v31 = vld [vmem:[#allocation7 + $0x7ac] sm:$0xf0] }
 0x308   :  { %v3382_v57 = vadd.f32 %v3381_v16, %v3333_v47 }
 0x30b   :  { %v3430_v24 = vpop.f32.mrf.mxu2  ;;  %v3384_v51 = vpop.f32.mrf.mxu1 }
 0x30c   :  { %v3479_v61 = vpop.f32.mrf.mxu3  ;;  %v3431_v19 = vadd.f32 %v3430_v24, %v3382_v57  ;;  %v8043_v24 = vld [vmem:[#allocation7 + $0x1ac] sm:$0xf0] }
 0x30d   :  { %v3335_v59 = vpop.f32.mrf.mxu0 }
 0x30e   :  { %v3336_v4 = vadd.f32 %v3335_v59, %v9412_v39  ;;  %v9485_v15 = vadd.f32 %v3479_v61, %v3431_v19  ;;  %3579 = vmatmul.bf16.gmra.mxu1 %v10482_v50  ;;  %v6408_v19 = vor.u32 %v8043_v24, %v6407_v49  ;;  %v7176_v61 = vor.u32 %v8235_v31, %v7175_v38 }
 0x310   :  { %v3385_v58 = vadd.f32 %v3384_v51, %v3336_v4  ;;  %3530 = vmatmul.bf16.gmra.mxu0 %v10481_v23  ;;  %3628 = vmatmul.bf16.gmra.mxu2 %v10472_v35  ;;  %v6663_v4 = vld [vmem:[#allocation7 + $0x390] sm:$0xf] }
 0x311   :  { %3677 = vmatmul.bf16.gmra.mxu3 %v10473_v41  ;;  %3880 = vmatpush.bf16.msra.mxu0 %v6408_v19  ;;  %v8107_v41 = vld [vmem:[#allocation7 + $0x3ac] sm:$0xf0] }
 0x312   :  { %4027 = vmatpush.bf16.msra.mxu3 %v7176_v61  ;;  %v6664_v7 = vor.u32 %v8107_v41, %v6663_v4  ;;  %v9502_v41 = vperm.slane %v9409_v21, 3  ;;  %v8227_v61 = vld [vmem:[#allocation7 + $0x76c] sm:$0xf0] }
 0x313   :  { %v3433_v18 = vpop.f32.mrf.mxu2  ;;  %v3386_v52 = vpop.f32.mrf.mxu1 }
 0x314   :  { %v3482_v16 = vpop.f32.mrf.mxu3  ;;  %v3434_v47 = vadd.f32 %v3433_v18, %v3385_v58  ;;  %3929 = vmatpush.bf16.msra.mxu1 %v6664_v7  ;;  %v6375_v18 = vld [vmem:[#allocation7 + $0x150] sm:$0xf] }
 0x315   :  { %v3337_v57 = vpop.f32.mrf.mxu0  ;;  %v8099_v7 = vld [vmem:[#allocation7 + $0x36c] sm:$0xf0] }
 0x316   :  { %v3338_v59 = vadd.f32 %v3337_v57, %v9412_v39  ;;  %v9492_v51 = vadd.f32 %v3482_v16, %v3434_v47  ;;  %v6887_v39 = vld [vmem:[#allocation7 + $0x550] sm:$0xf] }
 0x317   :  { %v8035_v16 = vld [vmem:[#allocation7 + $0x16c] sm:$0xf0] }
 0x318   :  { %v3387_v40 = vadd.f32 %v3386_v52, %v3338_v59  ;;  %v6376_v19 = vor.u32 %v8035_v16, %v6375_v18 }
 0x31a   :  { %3881 = vmatpush.bf16.msra.mxu0 %v6376_v19 }
 0x31b   :  { %v3435_v35 = vpop.f32.mrf.mxu2  ;;  %v3545_v24 = vpop.f32.mrf.mxu1 }
 0x31c   :  { %v3484_v50 = vpop.f32.mrf.mxu3  ;;  %v3436_v23 = vadd.f32 %v3435_v35, %v3387_v40  ;;  %v8163_v35 = vld [vmem:[#allocation7 + $0x56c] sm:$0xf0] }
 0x31d   :  { %v3496_v49 = vpop.f32.mrf.mxu0  ;;  %v6888_v31 = vor.u32 %v8163_v35, %v6887_v39  ;;  %v6631_v40 = vld [vmem:[#allocation7 + $0x350] sm:$0xf] }
 0x31e   :  { %v3497_v58 = vadd.f32 %v3496_v49, %v9422_v17  ;;  %v9495_v38 = vadd.f32 %v3484_v50, %v3436_v23  ;;  %3740 = vmatmul.bf16.vlgmr.msrb.gmra.mxu1 %v8865_v0  ;;  %v7143_v17 = vld [vmem:[#allocation7 + $0x750] sm:$0xf] }
 0x31f   :  { %3979 = vmatpush.bf16.msra.mxu2 %v6888_v31  ;;  %v7144_v59 = vor.u32 %v8227_v61, %v7143_v17  ;;  %v8155_v61 = vld [vmem:[#allocation7 + $0x52c] sm:$0xf0] }
 0x320   :  { %v3546_v22 = vadd.f32 %v3545_v24, %v3497_v58  ;;  %3691 = vmatmul.bf16.vlgmr.msrb.gmra.mxu0 %v8863_v63  ;;  %3789 = vmatmul.bf16.vlgmr.msrb.gmra.mxu2 %v8867_v1  ;;  %v6632_v24 = vor.u32 %v8099_v7, %v6631_v40  ;;  %v8219_v7 = vld [vmem:[#allocation7 + $0x72c] sm:$0xf0] }
 0x321   :  { %3838 = vmatmul.bf16.vlgmr.msrb.gmra.mxu3 %v8869_v2 }
 0x322   :  { %4028 = vmatpush.bf16.msra.mxu3 %v7144_v59  ;;  %v5057_v58 = vmax.f32 %v3546_v22, 0.0  ;;  %3930 = vmatpush.bf16.msra.mxu1 %v6632_v24  ;;  %v6855_v22 = vld [vmem:[#allocation7 + $0x510] sm:$0xf] }
 0x323   :  { %v3594_v23 = vpop.f32.mrf.mxu2  ;;  %v3547_v52 = vpop.f32.mrf.mxu1  ;;  %v7111_v59 = vld [vmem:[#allocation7 + $0x710] sm:$0xf] }
 0x324   :  { %v3643_v50 = vpop.f32.mrf.mxu3  ;;  %v3595_v47 = vadd.f32 %v3594_v23, %v9502_v41 }
 0x325   :  { %v3498_v57 = vpop.f32.mrf.mxu0 }
 0x326   :  { %v3499_v4 = vadd.f32 %v3498_v57, %v9425_v25  ;;  %v9506_v21 = vadd.f32 %v3643_v50, %v3595_v47  ;;  %v6856_v47 = vor.u32 %v8155_v61, %v6855_v22  ;;  %v6343_v57 = vld [vmem:[#allocation7 + $0x110] sm:$0xf] }
 0x328   :  { %v3548_v49 = vadd.f32 %v3547_v52, %v3499_v4  ;;  %v8027_v52 = vld [vmem:[#allocation7 + $0x12c] sm:$0xf0]  ;;  %3980 = vmatpush.bf16.msra.mxu2 %v6856_v47 }
 0x32a   :  { %v5065_v39 = vmax.f32 %v3548_v49, 0.0 }
 0x32b   :  { %v3596_v18 = vpop.f32.mrf.mxu2  ;;  %v3550_v23 = vpop.f32.mrf.mxu1 }
 0x32c   :  { %v9508_v35 = vpack.c.bf16 %v5065_v39, %v5057_v58  ;;  %v3645_v16 = vpop.f32.mrf.mxu3  ;;  %v3597_v31 = vadd.f32 %v3596_v18, %v9502_v41  ;;  %v7112_v39 = vor.u32 %v8219_v7, %v7111_v59 }
 0x32d   :  { %v3501_v17 = vpop.f32.mrf.mxu0 }
 0x32e   :  { %10483 = vst [vmem:[#allocation60_spill] sm:$0xff] %v9508_v35  ;;  %v3502_v25 = vadd.f32 %v3501_v17, %v9432_v8  ;;  %v9512_v50 = vadd.f32 %v3645_v16, %v3597_v31  ;;  %3745 = vmatmul.bf16.gmra.mxu1 %v8939_v12  ;;  %v6344_v8 = vor.u32 %v8027_v52, %v6343_v57  ;;  %v6599_v31 = vld [vmem:[#allocation7 + $0x310] sm:$0xf] }
 0x32f   :  { %4029 = vmatpush.bf16.msra.mxu3 %v7112_v39  ;;  %v8091_v17 = vld [vmem:[#allocation7 + $0x32c] sm:$0xf0] }
 0x330   :  { %v3551_v19 = vadd.f32 %v3550_v23, %v3502_v25  ;;  %3696 = vmatmul.bf16.gmra.mxu0 %v8937_v9  ;;  %3794 = vmatmul.bf16.gmra.mxu2 %v8849_v54  ;;  %v6600_v25 = vor.u32 %v8091_v17, %v6599_v31  ;;  %v8019_v39 = vld [vmem:[#allocation7 + $0xec] sm:$0xf0] }
 0x331   :  { %3843 = vmatmul.bf16.gmra.mxu3 %v8851_v55  ;;  %3882 = vmatpush.bf16.msra.mxu0 %v6344_v8 }
 0x332   :  { %v5073_v22 = vmax.f32 %v3551_v19, 0.0  ;;  %3931 = vmatpush.bf16.msra.mxu1 %v6600_v25  ;;  %v6823_v19 = vld [vmem:[#allocation7 + $0x4d0] sm:$0xf] }
 0x333   :  { %v3599_v4 = vpop.f32.mrf.mxu2  ;;  %v3552_v58 = vpop.f32.mrf.mxu1 }
 0x334   :  { %v3648_v40 = vpop.f32.mrf.mxu3  ;;  %v3600_v49 = vadd.f32 %v3599_v4, %v9502_v41 }
 0x335   :  { %v3503_v24 = vpop.f32.mrf.mxu0 }
 0x336   :  { %v3504_v18 = vadd.f32 %v3503_v24, %v9435_v28  ;;  %v9520_v16 = vadd.f32 %v3648_v40, %v3600_v49  ;;  %v8147_v49 = vld [vmem:[#allocation7 + $0x4ec] sm:$0xf0] }
 0x337   :  { %v6824_v24 = vor.u32 %v8147_v49, %v6823_v19 }
 0x338   :  { %v3553_v23 = vadd.f32 %v3552_v58, %v3504_v18  ;;  %v6311_v58 = vld [vmem:[#allocation7 + $0xd0] sm:$0xf] }
 0x339   :  { %v7079_v18 = vld [vmem:[#allocation7 + $0x6d0] sm:$0xf]  ;;  %3981 = vmatpush.bf16.msra.mxu2 %v6824_v24 }
 0x33a   :  { %v5081_v61 = vmax.f32 %v3553_v23, 0.0  ;;  %v8211_v23 = vld [vmem:[#allocation7 + $0x6ec] sm:$0xf0] }
 0x33b   :  { %v3601_v57 = vpop.f32.mrf.mxu2  ;;  %v3555_v7 = vpop.f32.mrf.mxu1 }
 0x33c   :  { %v3650_v52 = vpop.f32.mrf.mxu3  ;;  %v9522_v4 = vpack.c.bf16 %v5081_v61, %v5073_v22  ;;  %v3602_v47 = vadd.f32 %v3601_v57, %v9502_v41  ;;  %v7080_v57 = vor.u32 %v8211_v23, %v7079_v18 }
 0x33d   :  { %v3506_v59 = vpop.f32.mrf.mxu0 }
 0x33e   :  { %10484 = vst [vmem:[#allocation61_spill] sm:$0xff] %v9522_v4  ;;  %v3507_v28 = vadd.f32 %v3506_v59, %v9442_v46  ;;  %v9526_v40 = vadd.f32 %v3650_v52, %v3602_v47  ;;  %3750 = vmatmul.bf16.gmra.mxu1 %v9001_v27  ;;  %v6312_v46 = vor.u32 %v8019_v39, %v6311_v58  ;;  %v6567_v59 = vld [vmem:[#allocation7 + $0x2d0] sm:$0xf] }
 0x33f   :  { %4030 = vmatpush.bf16.msra.mxu3 %v7080_v57  ;;  %v7047_v57 = vld [vmem:[#allocation7 + $0x690] sm:$0xf] }
 0x340   :  { %v3556_v8 = vadd.f32 %v3555_v7, %v3507_v28  ;;  %3701 = vmatmul.bf16.gmra.mxu0 %v8999_v26  ;;  %3799 = vmatmul.bf16.gmra.mxu2 %v8793_v10  ;;  %v8083_v7 = vld [vmem:[#allocation7 + $0x2ec] sm:$0xf0] }
 0x341   :  { %3848 = vmatmul.bf16.gmra.mxu3 %v8795_v11  ;;  %3883 = vmatpush.bf16.msra.mxu0 %v6312_v46  ;;  %v6568_v19 = vor.u32 %v8083_v7, %v6567_v59  ;;  %v8203_v7 = vld [vmem:[#allocation7 + $0x6ac] sm:$0xf0] }
 0x342   :  { %v5089_v49 = vmax.f32 %v3556_v8, 0.0  ;;  %v6791_v8 = vld [vmem:[#allocation7 + $0x490] sm:$0xf] }
 0x343   :  { %v3604_v31 = vpop.f32.mrf.mxu2  ;;  %v3557_v61 = vpop.f32.mrf.mxu1  ;;  %3932 = vmatpush.bf16.msra.mxu1 %v6568_v19 }
 0x344   :  { %v3653_v17 = vpop.f32.mrf.mxu3  ;;  %v3605_v25 = vadd.f32 %v3604_v31, %v9502_v41 }
 0x345   :  { %v3508_v22 = vpop.f32.mrf.mxu0 }
 0x346   :  { %v3509_v52 = vadd.f32 %v3508_v22, %v9445_v3  ;;  %v9534_v47 = vadd.f32 %v3653_v17, %v3605_v25  ;;  %v6279_v22 = vld [vmem:[#allocation7 + $0x90] sm:$0xf] }
 0x348   :  { %v3558_v28 = vadd.f32 %v3557_v61, %v3509_v52  ;;  %v8011_v61 = vld [vmem:[#allocation7 + $0xac] sm:$0xf0] }
 0x34a   :  { %v5097_v4 = vmax.f32 %v3558_v28, 0.0 }
 0x34b   :  { %v3606_v58 = vpop.f32.mrf.mxu2  ;;  %v3560_v23 = vpop.f32.mrf.mxu1 }
 0x34c   :  { %v3655_v39 = vpop.f32.mrf.mxu3  ;;  %v9536_v31 = vpack.c.bf16 %v5097_v4, %v5089_v49  ;;  %v3607_v24 = vadd.f32 %v3606_v58, %v9502_v41  ;;  %v8139_v4 = vld [vmem:[#allocation7 + $0x4ac] sm:$0xf0]  ;;  %v7048_v58 = vor.u32 %v8203_v7, %v7047_v57 }
 0x34d   :  { %v3511_v18 = vpop.f32.mrf.mxu0  ;;  %v6792_v25 = vor.u32 %v8139_v4, %v6791_v8 }
 0x34e   :  { %10485 = vst [vmem:[#allocation62_spill] sm:$0xff] %v9536_v31  ;;  %v3512_v3 = vadd.f32 %v3511_v18, %v9452_v53  ;;  %v9540_v17 = vadd.f32 %v3655_v39, %v3607_v24  ;;  %3755 = vmatmul.bf16.gmra.mxu1 %v9029_v45  ;;  %v6280_v53 = vor.u32 %v8011_v61, %v6279_v22  ;;  %v6535_v18 = vld [vmem:[#allocation7 + $0x290] sm:$0xf] }
 0x34f   :  { %3982 = vmatpush.bf16.msra.mxu2 %v6792_v25  ;;  %4031 = vmatpush.bf16.msra.mxu3 %v7048_v58  ;;  %v7015_v58 = vld [vmem:[#allocation7 + $0x650] sm:$0xf] }
 0x350   :  { %v3561_v46 = vadd.f32 %v3560_v23, %v3512_v3  ;;  %3706 = vmatmul.bf16.gmra.mxu0 %v9027_v44  ;;  %3804 = vmatmul.bf16.gmra.mxu2 %v8895_v32  ;;  %v8075_v23 = vld [vmem:[#allocation7 + $0x2ac] sm:$0xf0] }
 0x351   :  { %3853 = vmatmul.bf16.gmra.mxu3 %v8897_v33  ;;  %3884 = vmatpush.bf16.msra.mxu0 %v6280_v53  ;;  %v6536_v8 = vor.u32 %v8075_v23, %v6535_v18  ;;  %v8195_v23 = vld [vmem:[#allocation7 + $0x66c] sm:$0xf0] }
 0x352   :  { %v5105_v4 = vmax.f32 %v3561_v46, 0.0  ;;  %v6759_v46 = vld [vmem:[#allocation7 + $0x450] sm:$0xf] }
 0x353   :  { %v3609_v52 = vpop.f32.mrf.mxu2  ;;  %v3562_v49 = vpop.f32.mrf.mxu1  ;;  %3933 = vmatpush.bf16.msra.mxu1 %v6536_v8 }
 0x354   :  { %v3658_v59 = vpop.f32.mrf.mxu3  ;;  %v3610_v28 = vadd.f32 %v3609_v52, %v9502_v41 }
 0x355   :  { %v3513_v19 = vpop.f32.mrf.mxu0 }
 0x356   :  { %v3514_v39 = vadd.f32 %v3513_v19, %v9455_v20  ;;  %v9548_v24 = vadd.f32 %v3658_v59, %v3610_v28  ;;  %v6247_v19 = vld [vmem:[#allocation7 + $0x50] sm:$0xf] }
 0x358   :  { %v3563_v3 = vadd.f32 %v3562_v49, %v3514_v39  ;;  %v8003_v49 = vld [vmem:[#allocation7 + $0x6c] sm:$0xf0] }
 0x35a   :  { %v5113_v31 = vmax.f32 %v3563_v3, 0.0 }
 0x35b   :  { %v3611_v22 = vpop.f32.mrf.mxu2  ;;  %v3565_v7 = vpop.f32.mrf.mxu1 }
 0x35c   :  { %v3660_v61 = vpop.f32.mrf.mxu3  ;;  %v9550_v52 = vpack.c.bf16 %v5113_v31, %v5105_v4  ;;  %v3612_v25 = vadd.f32 %v3611_v22, %v9502_v41  ;;  %v8131_v31 = vld [vmem:[#allocation7 + $0x46c] sm:$0xf0]  ;;  %v7016_v22 = vor.u32 %v8195_v23, %v7015_v58 }
 0x35d   :  { %v3516_v57 = vpop.f32.mrf.mxu0  ;;  %v6760_v28 = vor.u32 %v8131_v31, %v6759_v46 }
 0x35e   :  { %10486 = vst [vmem:[#allocation63_spill] sm:$0xff] %v9550_v52  ;;  %v3517_v20 = vadd.f32 %v3516_v57, %v9462_v43  ;;  %v9554_v59 = vadd.f32 %v3660_v61, %v3612_v25  ;;  %3760 = vmatmul.bf16.gmra.mxu1 %v9057_v5  ;;  %v6248_v43 = vor.u32 %v8003_v49, %v6247_v19  ;;  %v6503_v57 = vld [vmem:[#allocation7 + $0x250] sm:$0xf] }
 0x35f   :  { %3983 = vmatpush.bf16.msra.mxu2 %v6760_v28  ;;  %4032 = vmatpush.bf16.msra.mxu3 %v7016_v22  ;;  %v6983_v22 = vld [vmem:[#allocation7 + $0x610] sm:$0xf] }
 0x360   :  { %v3566_v53 = vadd.f32 %v3565_v7, %v3517_v20  ;;  %3711 = vmatmul.bf16.gmra.mxu0 %v9055_v6  ;;  %3809 = vmatmul.bf16.gmra.mxu2 %v8942_v30  ;;  %v8067_v7 = vld [vmem:[#allocation7 + $0x26c] sm:$0xf0] }
 0x361   :  { %3858 = vmatmul.bf16.gmra.mxu3 %v10476_v14  ;;  %3885 = vmatpush.bf16.msra.mxu0 %v6248_v43  ;;  %v6504_v46 = vor.u32 %v8067_v7, %v6503_v57  ;;  %v8187_v7 = vld [vmem:[#allocation7 + $0x62c] sm:$0xf0] }
 0x362   :  { %v5121_v31 = vmax.f32 %v3566_v53, 0.0  ;;  %v6727_v53 = vld [vmem:[#allocation7 + $0x410] sm:$0xf] }
 0x363   :  { %v3614_v39 = vpop.f32.mrf.mxu2  ;;  %v3567_v4 = vpop.f32.mrf.mxu1  ;;  %3934 = vmatpush.bf16.msra.mxu1 %v6504_v46 }
 0x364   :  { %v3663_v18 = vpop.f32.mrf.mxu3  ;;  %v3615_v3 = vadd.f32 %v3614_v39, %v9502_v41 }
 0x365   :  { %v3518_v8 = vpop.f32.mrf.mxu0 }
 0x366   :  { %v3519_v61 = vadd.f32 %v3518_v8, %v9465_v13  ;;  %v9562_v25 = vadd.f32 %v3663_v18, %v3615_v3  ;;  %v6215_v8 = vld [vmem:[#allocation7 + $0x10] sm:$0xf] }
 0x368   :  { %v3568_v20 = vadd.f32 %v3567_v4, %v3519_v61  ;;  %v7995_v4 = vld [vmem:[#allocation7 + $0x2c] sm:$0xf0] }
 0x36a   :  { %v5129_v52 = vmax.f32 %v3568_v20, 0.0 }
 0x36b   :  { %v3616_v19 = vpop.f32.mrf.mxu2  ;;  %v3570_v23 = vpop.f32.mrf.mxu1 }
 0x36c   :  { %v3665_v49 = vpop.f32.mrf.mxu3  ;;  %v9564_v39 = vpack.c.bf16 %v5129_v52, %v5121_v31  ;;  %v3617_v28 = vadd.f32 %v3616_v19, %v9502_v41  ;;  %v8123_v52 = vld [vmem:[#allocation7 + $0x42c] sm:$0xf0]  ;;  %v6984_v19 = vor.u32 %v8187_v7, %v6983_v22 }
 0x36d   :  { %v3521_v58 = vpop.f32.mrf.mxu0  ;;  %v6728_v3 = vor.u32 %v8123_v52, %v6727_v53 }
 0x36e   :  { %10487 = vst [vmem:[#allocation64_spill] sm:$0xff] %v9564_v39  ;;  %v3522_v13 = vadd.f32 %v3521_v58, %v9472_v42  ;;  %v9568_v18 = vadd.f32 %v3665_v49, %v3617_v28  ;;  %3765 = vmatmul.bf16.gmra.mxu1 %v9085_v34  ;;  %v6216_v42 = vor.u32 %v7995_v4, %v6215_v8  ;;  %v6471_v58 = vld [vmem:[#allocation7 + $0x210] sm:$0xf] }
 0x36f   :  { %3984 = vmatpush.bf16.msra.mxu2 %v6728_v3  ;;  %4033 = vmatpush.bf16.msra.mxu3 %v6984_v19 }
 0x370   :  { %v3571_v43 = vadd.f32 %v3570_v23, %v3522_v13  ;;  %3716 = vmatmul.bf16.gmra.mxu0 %v9083_v29  ;;  %3814 = vmatmul.bf16.gmra.mxu2 %v10477_v37  ;;  %v8059_v23 = vld [vmem:[#allocation7 + $0x22c] sm:$0xf0] }
 0x371   :  { %3863 = vmatmul.bf16.gmra.mxu3 %v10478_v48  ;;  %3886 = vmatpush.bf16.msra.mxu0 %v6216_v42  ;;  %v6472_v53 = vor.u32 %v8059_v23, %v6471_v58  ;;  %v8111_v58 = vld [vmem:[#allocation7 + $0x3d4] sm:$0xf] }
 0x372   :  { %v5137_v52 = vmax.f32 %v3571_v43, 0.0  ;;  %v10489_v43 = vld [vmem:[#allocation26_spill] sm:$0xff] }
 0x373   :  { %v3619_v61 = vpop.f32.mrf.mxu2  ;;  %v3572_v31 = vpop.f32.mrf.mxu1  ;;  %3935 = vmatpush.bf16.msra.mxu1 %v6472_v53 }
 0x374   :  { %v3668_v57 = vpop.f32.mrf.mxu3  ;;  %v3620_v20 = vadd.f32 %v3619_v61, %v9502_v41 }
 0x375   :  { %v3523_v46 = vpop.f32.mrf.mxu0 }
 0x376   :  { %v3524_v49 = vadd.f32 %v3523_v46, %v9475_v62  ;;  %v9576_v28 = vadd.f32 %v3668_v57, %v3620_v20  ;;  %v10490_v20 = vld [vmem:[#allocation27_spill] sm:$0xff]  ;;  %v8047_v46 = vld [vmem:[#allocation7 + $0x1d4] sm:$0xf] }
 0x378   :  { %v3573_v13 = vadd.f32 %v3572_v31, %v3524_v49  ;;  %v7463_v31 = vld [vmem:[#allocation7 + $0x9d0] sm:$0xf] }
 0x379   :  { %v8307_v49 = vld [vmem:[#allocation7 + $0x9ec] sm:$0xf0] }
 0x37a   :  { %v5145_v39 = vmax.f32 %v3573_v13, 0.0  ;;  %v7464_v23 = vor.u32 %v8307_v49, %v7463_v31  ;;  %v6697_v13 = vld [vmem:[#allocation7 + $0x3f0] sm:$0xf0] }
 0x37b   :  { %v3621_v8 = vpop.f32.mrf.mxu2  ;;  %v3575_v7 = vpop.f32.mrf.mxu1 }
 0x37c   :  { %v3670_v4 = vpop.f32.mrf.mxu3  ;;  %v9578_v61 = vpack.c.bf16 %v5145_v39, %v5137_v52  ;;  %v3622_v3 = vadd.f32 %v3621_v8, %v9502_v41  ;;  %v6441_v39 = vld [vmem:[#allocation7 + $0x1f0] sm:$0xf0]  ;;  %v6700_v52 = vor.u32 %v8111_v58, %v6697_v13  ;;  %4075 = vmatpush.bf16.msrb.mxu0 %v7464_v23 }
 0x37d   :  { %v3526_v22 = vpop.f32.mrf.mxu0  ;;  %v6444_v19 = vor.u32 %v8047_v46, %v6441_v39  ;;  %v7719_v46 = vld [vmem:[#allocation7 + $0xbd0] sm:$0xf] }
 0x37e   :  { %10488 = vst [vmem:[#allocation65_spill] sm:$0xff] %v9578_v61  ;;  %v3527_v62 = vadd.f32 %v3526_v22, %v9482_v36  ;;  %v9582_v57 = vadd.f32 %v3670_v4, %v3622_v3  ;;  %3770 = vmatmul.bf16.gmra.mxu1 %v10445_v56  ;;  %4222 = vmatpush.bf16.msrb.mxu3 %v6700_v52  ;;  %v8371_v39 = vld [vmem:[#allocation7 + $0xbec] sm:$0xf0] }
 0x37f   :  { %4173 = vmatpush.bf16.msrb.mxu2 %v6444_v19  ;;  %v7720_v49 = vor.u32 %v8371_v39, %v7719_v46  ;;  %v10492_v52 = vld [vmem:[#allocation44_spill] sm:$0xff] }
 0x380   :  { %v3576_v42 = vadd.f32 %v3575_v7, %v3527_v62  ;;  %3721 = vmatmul.bf16.gmra.mxu0 %v10444_v60  ;;  %3819 = vmatmul.bf16.gmra.mxu2 %v10489_v43  ;;  %v8299_v39 = vld [vmem:[#allocation7 + $0x9ac] sm:$0xf0] }
 0x381   :  { %3868 = vmatmul.bf16.gmra.mxu3 %v10490_v20  ;;  %4124 = vmatpush.bf16.msrb.mxu1 %v7720_v49  ;;  %v8363_v43 = vld [vmem:[#allocation7 + $0xbac] sm:$0xf0] }
 0x382   :  { %v5153_v61 = vmax.f32 %v3576_v42, 0.0  ;;  %v10494_v42 = vld [vmem:[#allocation28_spill] sm:$0xff] }
 0x383   :  { %v3624_v36 = vpop.f32.mrf.mxu2  ;;  %v3577_v3 = vpop.f32.mrf.mxu1 }
 0x384   :  { %v3673_v53 = vpop.f32.mrf.mxu3  ;;  %v3625_v8 = vadd.f32 %v3624_v36, %v9502_v41 }
 0x385   :  { %v3528_v4 = vpop.f32.mrf.mxu0 }
 0x386   :  { %v3529_v22 = vadd.f32 %v3528_v4, %v9485_v15  ;;  %v9590_v7 = vadd.f32 %v3673_v53, %v3625_v8  ;;  %v10493_v8 = vld [vmem:[#allocation45_spill] sm:$0xff] }
 0x387   :  { %v10495_v4 = vld [vmem:[#allocation29_spill] sm:$0xff] }
 0x388   :  { %v3578_v62 = vadd.f32 %v3577_v3, %v3529_v22  ;;  %v8039_v3 = vld [vmem:[#allocation7 + $0x194] sm:$0xf]  ;;  %v7431_v22 = vld [vmem:[#allocation7 + $0x990] sm:$0xf] }
 0x38a   :  { %v5161_v31 = vmax.f32 %v3578_v62, 0.0 }
 0x38b   :  { %v3626_v35 = vpop.f32.mrf.mxu2  ;;  %v3580_v23 = vpop.f32.mrf.mxu1 }
 0x38c   :  { %v3675_v20 = vpop.f32.mrf.mxu3  ;;  %v9592_v19 = vpack.c.bf16 %v5161_v31, %v5153_v61  ;;  %v3627_v58 = vadd.f32 %v3626_v35, %v9502_v41  ;;  %v6409_v61 = vld [vmem:[#allocation7 + $0x1b0] sm:$0xf0] }
 0x38d   :  { %v3531_v13 = vpop.f32.mrf.mxu0  ;;  %v6412_v46 = vor.u32 %v8039_v3, %v6409_v61  ;;  %v8103_v31 = vld [vmem:[#allocation7 + $0x394] sm:$0xf] }
 0x38e   :  { %10491 = vst [vmem:[#allocation66_spill] sm:$0xff] %v9592_v19  ;;  %v3532_v15 = vadd.f32 %v3531_v13, %v9492_v51  ;;  %v9596_v36 = vadd.f32 %v3675_v20, %v3627_v58  ;;  %3775 = vmatmul.bf16.gmra.mxu1 %v10493_v8  ;;  %v6665_v51 = vld [vmem:[#allocation7 + $0x3b0] sm:$0xf0]  ;;  %v7432_v13 = vor.u32 %v8299_v39, %v7431_v22 }
 0x38f   :  { %4174 = vmatpush.bf16.msrb.mxu2 %v6412_v46 }
 0x390   :  { %v3581_v53 = vadd.f32 %v3580_v23, %v3532_v15  ;;  %3726 = vmatmul.bf16.gmra.mxu0 %v10492_v52  ;;  %3824 = vmatmul.bf16.gmra.mxu2 %v10494_v42  ;;  %v6668_v23 = vor.u32 %v8103_v31, %v6665_v51  ;;  %v7687_v42 = vld [vmem:[#allocation7 + $0xb90] sm:$0xf] }
 0x391   :  { %3873 = vmatmul.bf16.gmra.mxu3 %v10495_v4  ;;  %4076 = vmatpush.bf16.msrb.mxu0 %v7432_v13  ;;  %v7688_v48 = vor.u32 %v8363_v43, %v7687_v42  ;;  %v10497_v51 = vld [vmem:[#allocation19_spill] sm:$0xff]  ;;  %v6377_v43 = vld [vmem:[#allocation7 + $0x170] sm:$0xf0] }
 0x392   :  { %4223 = vmatpush.bf16.msrb.mxu3 %v6668_v23  ;;  %v5169_v3 = vmax.f32 %v3581_v53, 0.0  ;;  %v7399_v53 = vld [vmem:[#allocation7 + $0x950] sm:$0xf] }
 0x393   :  { %v3629_v62 = vpop.f32.mrf.mxu2  ;;  %v3582_v58 = vpop.f32.mrf.mxu1  ;;  %4125 = vmatpush.bf16.msrb.mxu1 %v7688_v48  ;;  %v8031_v48 = vld [vmem:[#allocation7 + $0x154] sm:$0xf] }
 0x394   :  { %v3678_v35 = vpop.f32.mrf.mxu3  ;;  %v3630_v20 = vadd.f32 %v3629_v62, %v9502_v41  ;;  %v6380_v42 = vor.u32 %v8031_v48, %v6377_v43 }
 0x395   :  { %v3533_v49 = vpop.f32.mrf.mxu0 }
 0x396   :  { %v3534_v15 = vadd.f32 %v3533_v49, %v9495_v38  ;;  %v9604_v19 = vadd.f32 %v3678_v35, %v3630_v20  ;;  %v10498_v20 = vld [vmem:[#allocation20_spill] sm:$0xff]  ;;  %4175 = vmatpush.bf16.msrb.mxu2 %v6380_v42 }
 0x398   :  { %v3583_v4 = vadd.f32 %v3582_v58, %v3534_v15 }
 0x39a   :  { %v5177_v61 = vmax.f32 %v3583_v4, 0.0  ;;  %v6633_v4 = vld [vmem:[#allocation7 + $0x370] sm:$0xf0] }
 0x39b   :  { %v3631_v37 = vpop.f32.mrf.mxu2  ;;  %v3741_v38 = vpop.f32.mrf.mxu1 }
 0x39c   :  { %v3680_v14 = vpop.f32.mrf.mxu3  ;;  %v9606_v62 = vpack.c.bf16 %v5177_v61, %v5169_v3  ;;  %v3632_v22 = vadd.f32 %v3631_v37, %v9502_v41  ;;  %v8291_v37 = vld [vmem:[#allocation7 + $0x96c] sm:$0xf0]  ;;  %v8095_v41 = vld [vmem:[#allocation7 + $0x354] sm:$0xf] }
 0x39d   :  { %v3692_v39 = vpop.f32.mrf.mxu0  ;;  %v7400_v49 = vor.u32 %v8291_v37, %v7399_v53 }
 0x39e   :  { %10496 = vst [vmem:[#allocation67_spill] sm:$0xff] %v9606_v62  ;;  %v3693_v35 = vadd.f32 %v3692_v39, %v9506_v21  ;;  %v9610_v46 = vadd.f32 %v3680_v14, %v3632_v22  ;;  %3936 = vmatmul.bf16.vlgmr.msra.gmra.mxu1 %v10498_v20  ;;  %v6636_v21 = vor.u32 %v8095_v41, %v6633_v4  ;;  %v7655_v39 = vld [vmem:[#allocation7 + $0xb50] sm:$0xf] }
 0x39f   :  { %4077 = vmatpush.bf16.msrb.mxu0 %v7400_v49  ;;  %v10500_v49 = vld [vmem:[#allocation24_spill] sm:$0xff] }
 0x3a0   :  { %v3742_v31 = vadd.f32 %v3741_v38, %v3693_v35  ;;  %3887 = vmatmul.bf16.vlgmr.msra.gmra.mxu0 %v10497_v51  ;;  %3985 = vmatmul.bf16.vlgmr.msra.gmra.mxu2 %v8863_v63  ;;  %v8355_v38 = vld [vmem:[#allocation7 + $0xb6c] sm:$0xf0] }
 0x3a1   :  { %4034 = vmatmul.bf16.vlgmr.msra.gmra.mxu3 %v8865_v0  ;;  %v7656_v35 = vor.u32 %v8355_v38, %v7655_v39  ;;  %v6601_v38 = vld [vmem:[#allocation7 + $0x330] sm:$0xf0] }
 0x3a2   :  { %4224 = vmatpush.bf16.msrb.mxu3 %v6636_v21 }
 0x3a3   :  { %v3790_v14 = vpop.f32.mrf.mxu2  ;;  %v3743_v15 = vpop.f32.mrf.mxu1  ;;  %4126 = vmatpush.bf16.msrb.mxu1 %v7656_v35 }
 0x3a4   :  { %v3839_v58 = vpop.f32.mrf.mxu3  ;;  %v3791_v13 = vadd.f32 %v3790_v14, %v3742_v31  ;;  %v10499_v14 = vld [vmem:[#allocation23_spill] sm:$0xff] }
 0x3a5   :  { %v3694_v23 = vpop.f32.mrf.mxu0 }
 0x3a6   :  { %v3695_v3 = vadd.f32 %v3694_v23, %v9512_v50  ;;  %v3840_v61 = vadd.f32 %v3839_v58, %v3791_v13  ;;  %v8023_v58 = vld [vmem:[#allocation7 + $0x114] sm:$0xf] }
 0x3a7   :  { %v6345_v13 = vld [vmem:[#allocation7 + $0x130] sm:$0xf0] }
 0x3a8   :  { %v3744_v22 = vadd.f32 %v3743_v15, %v3695_v3  ;;  %v5058_v50 = vmax.f32 %v3840_v61, 0.0  ;;  %v6348_v23 = vor.u32 %v8023_v58, %v6345_v13  ;;  %v7367_v15 = vld [vmem:[#allocation7 + $0x910] sm:$0xf] }
 0x3a9   :  { %v8283_v3 = vld [vmem:[#allocation7 + $0x92c] sm:$0xf0] }
 0x3aa   :  { %4176 = vmatpush.bf16.msrb.mxu2 %v6348_v23  ;;  %v7623_v58 = vld [vmem:[#allocation7 + $0xb10] sm:$0xf] }
 0x3ab   :  { %v3792_v48 = vpop.f32.mrf.mxu2  ;;  %v3746_v41 = vpop.f32.mrf.mxu1  ;;  %v8347_v13 = vld [vmem:[#allocation7 + $0xb2c] sm:$0xf0] }
 0x3ac   :  { %v3841_v43 = vpop.f32.mrf.mxu3  ;;  %v3793_v53 = vadd.f32 %v3792_v48, %v3744_v22  ;;  %v8087_v22 = vld [vmem:[#allocation7 + $0x314] sm:$0xf]  ;;  %v7624_v62 = vor.u32 %v8347_v13, %v7623_v58 }
 0x3ad   :  { %v3697_v37 = vpop.f32.mrf.mxu0 }
 0x3ae   :  { %v3698_v42 = vadd.f32 %v3697_v37, %v9520_v16  ;;  %v3842_v31 = vadd.f32 %v3841_v43, %v3793_v53  ;;  %3941 = vmatmul.bf16.gmra.mxu1 %v10500_v49  ;;  %v7368_v16 = vor.u32 %v8283_v3, %v7367_v15  ;;  %v6604_v43 = vor.u32 %v8087_v22, %v6601_v38  ;;  %v10502_v38 = vld [vmem:[#allocation30_spill] sm:$0xff] }
 0x3af   :  { %4127 = vmatpush.bf16.msrb.mxu1 %v7624_v62 }
 0x3b0   :  { %v3747_v4 = vadd.f32 %v3746_v41, %v3698_v42  ;;  %3892 = vmatmul.bf16.gmra.mxu0 %v10499_v14  ;;  %v5066_v21 = vmax.f32 %v3842_v31, 0.0  ;;  %3990 = vmatmul.bf16.gmra.mxu2 %v8937_v9 }
 0x3b1   :  { %4039 = vmatmul.bf16.gmra.mxu3 %v8939_v12  ;;  %4078 = vmatpush.bf16.msrb.mxu0 %v7368_v16  ;;  %v10503_v16 = vld [vmem:[#allocation31_spill] sm:$0xff] }
 0x3b2   :  { %v9622_v39 = vpack.c.bf16 %v5066_v21, %v5058_v50  ;;  %4225 = vmatpush.bf16.msrb.mxu3 %v6604_v43  ;;  %v6313_v43 = vld [vmem:[#allocation7 + $0xf0] sm:$0xf0] }
 0x3b3   :  { %v3795_v35 = vpop.f32.mrf.mxu2  ;;  %v3748_v37 = vpop.f32.mrf.mxu1 }
 0x3b4   :  { %10501 = vst [vmem:[#allocation68_spill] sm:$0xff] %v9622_v39  ;;  %v3844_v48 = vpop.f32.mrf.mxu3  ;;  %v3796_v61 = vadd.f32 %v3795_v35, %v3747_v4 }
 0x3b5   :  { %v3699_v53 = vpop.f32.mrf.mxu0 }
 0x3b6   :  { %v3700_v41 = vadd.f32 %v3699_v53, %v9526_v40  ;;  %v3845_v42 = vadd.f32 %v3844_v48, %v3796_v61  ;;  %v8015_v48 = vld [vmem:[#allocation7 + $0xd4] sm:$0xf]  ;;  %v7335_v61 = vld [vmem:[#allocation7 + $0x8d0] sm:$0xf] }
 0x3b7   :  { %v6316_v62 = vor.u32 %v8015_v48, %v6313_v43  ;;  %v8275_v53 = vld [vmem:[#allocation7 + $0x8ec] sm:$0xf0] }
 0x3b8   :  { %v3749_v31 = vadd.f32 %v3748_v37, %v3700_v41  ;;  %v5074_v40 = vmax.f32 %v3845_v42, 0.0  ;;  %v8079_v37 = vld [vmem:[#allocation7 + $0x2d4] sm:$0xf]  ;;  %v7336_v41 = vor.u32 %v8275_v53, %v7335_v61  ;;  %v8339_v48 = vld [vmem:[#allocation7 + $0xaec] sm:$0xf0] }
 0x3b9   :  { %4177 = vmatpush.bf16.msrb.mxu2 %v6316_v62 }
 0x3ba   :  { %4079 = vmatpush.bf16.msrb.mxu0 %v7336_v41  ;;  %v10506_v41 = vld [vmem:[#allocation33_spill] sm:$0xff] }
 0x3bb   :  { %v3797_v50 = vpop.f32.mrf.mxu2  ;;  %v3751_v39 = vpop.f32.mrf.mxu1 }
 0x3bc   :  { %v3846_v21 = vpop.f32.mrf.mxu3  ;;  %v3798_v15 = vadd.f32 %v3797_v50, %v3749_v31 }
 0x3bd   :  { %v3702_v3 = vpop.f32.mrf.mxu0 }
 0x3be   :  { %v3703_v23 = vadd.f32 %v3702_v3, %v9534_v47  ;;  %v3847_v4 = vadd.f32 %v3846_v21, %v3798_v15  ;;  %3946 = vmatmul.bf16.gmra.mxu1 %v10503_v16  ;;  %v6569_v47 = vld [vmem:[#allocation7 + $0x2f0] sm:$0xf0] }
 0x3bf   :  { %v6572_v13 = vor.u32 %v8079_v37, %v6569_v47  ;;  %v10505_v47 = vld [vmem:[#allocation32_spill] sm:$0xff] }
 0x3c0   :  { %v3752_v22 = vadd.f32 %v3751_v39, %v3703_v23  ;;  %3897 = vmatmul.bf16.gmra.mxu0 %v10502_v38  ;;  %v5082_v35 = vmax.f32 %v3847_v4, 0.0  ;;  %3995 = vmatmul.bf16.gmra.mxu2 %v8999_v26  ;;  %v7591_v4 = vld [vmem:[#allocation7 + $0xad0] sm:$0xf] }
 0x3c1   :  { %4044 = vmatmul.bf16.gmra.mxu3 %v9001_v27  ;;  %v7592_v43 = vor.u32 %v8339_v48, %v7591_v4 }
 0x3c2   :  { %v9630_v31 = vpack.c.bf16 %v5082_v35, %v5074_v40  ;;  %4226 = vmatpush.bf16.msrb.mxu3 %v6572_v13  ;;  %v6281_v13 = vld [vmem:[#allocation7 + $0xb0] sm:$0xf0] }
 0x3c3   :  { %v3800_v39 = vpop.f32.mrf.mxu2  ;;  %v3753_v21 = vpop.f32.mrf.mxu1  ;;  %4128 = vmatpush.bf16.msrb.mxu1 %v7592_v43 }
 0x3c4   :  { %10504 = vst [vmem:[#allocation69_spill] sm:$0xff] %v9630_v31  ;;  %v3849_v58 = vpop.f32.mrf.mxu3  ;;  %v3801_v42 = vadd.f32 %v3800_v39, %v3752_v22 }
 0x3c5   :  { %v3704_v50 = vpop.f32.mrf.mxu0 }
 0x3c6   :  { %v3705_v15 = vadd.f32 %v3704_v50, %v9540_v17  ;;  %v3850_v3 = vadd.f32 %v3849_v58, %v3801_v42  ;;  %v8007_v58 = vld [vmem:[#allocation7 + $0x94] sm:$0xf]  ;;  %v7303_v50 = vld [vmem:[#allocation7 + $0x890] sm:$0xf] }
 0x3c7   :  { %v6284_v42 = vor.u32 %v8007_v58, %v6281_v13  ;;  %v8331_v58 = vld [vmem:[#allocation7 + $0xaac] sm:$0xf0] }
 0x3c8   :  { %v3754_v23 = vadd.f32 %v3753_v21, %v3705_v15  ;;  %v5090_v17 = vmax.f32 %v3850_v3, 0.0  ;;  %v8267_v21 = vld [vmem:[#allocation7 + $0x8ac] sm:$0xf0]  ;;  %v8071_v15 = vld [vmem:[#allocation7 + $0x294] sm:$0xf] }
 0x3c9   :  { %4178 = vmatpush.bf16.msrb.mxu2 %v6284_v42 }
 0x3cb   :  { %v3802_v61 = vpop.f32.mrf.mxu2  ;;  %v3756_v31 = vpop.f32.mrf.mxu1 }
 0x3cc   :  { %v3851_v53 = vpop.f32.mrf.mxu3  ;;  %v3803_v40 = vadd.f32 %v3802_v61, %v3754_v23  ;;  %v7304_v23 = vor.u32 %v8267_v21, %v7303_v50 }
 0x3cd   :  { %v3707_v35 = vpop.f32.mrf.mxu0 }
 0x3ce   :  { %v3708_v62 = vadd.f32 %v3707_v35, %v9548_v24  ;;  %v3852_v22 = vadd.f32 %v3851_v53, %v3803_v40  ;;  %3951 = vmatmul.bf16.gmra.mxu1 %v10506_v41  ;;  %v6537_v24 = vld [vmem:[#allocation7 + $0x2b0] sm:$0xf0]  ;;  %4080 = vmatpush.bf16.msrb.mxu0 %v7304_v23  ;;  %v10509_v23 = vld [vmem:[#allocation35_spill] sm:$0xff] }
 0x3cf   :  { %v6540_v43 = vor.u32 %v8071_v15, %v6537_v24  ;;  %v10508_v24 = vld [vmem:[#allocation34_spill] sm:$0xff] }
 0x3d0   :  { %v3757_v37 = vadd.f32 %v3756_v31, %v3708_v62  ;;  %3902 = vmatmul.bf16.gmra.mxu0 %v10505_v47  ;;  %v5098_v39 = vmax.f32 %v3852_v22, 0.0  ;;  %4000 = vmatmul.bf16.gmra.mxu2 %v9027_v44  ;;  %v7559_v22 = vld [vmem:[#allocation7 + $0xa90] sm:$0xf] }
 0x3d1   :  { %4049 = vmatmul.bf16.gmra.mxu3 %v9029_v45  ;;  %v7560_v13 = vor.u32 %v8331_v58, %v7559_v22 }
 0x3d2   :  { %v9638_v4 = vpack.c.bf16 %v5098_v39, %v5090_v17  ;;  %4227 = vmatpush.bf16.msrb.mxu3 %v6540_v43  ;;  %v6249_v43 = vld [vmem:[#allocation7 + $0x70] sm:$0xf0] }
 0x3d3   :  { %v3805_v31 = vpop.f32.mrf.mxu2  ;;  %v3758_v53 = vpop.f32.mrf.mxu1  ;;  %4129 = vmatpush.bf16.msrb.mxu1 %v7560_v13 }
 0x3d4   :  { %10507 = vst [vmem:[#allocation70_spill] sm:$0xff] %v9638_v4  ;;  %v3854_v48 = vpop.f32.mrf.mxu3  ;;  %v3806_v3 = vadd.f32 %v3805_v31, %v3757_v37 }
 0x3d5   :  { %v3709_v61 = vpop.f32.mrf.mxu0 }
 0x3d6   :  { %v3710_v40 = vadd.f32 %v3709_v61, %v9554_v59  ;;  %v3855_v35 = vadd.f32 %v3854_v48, %v3806_v3  ;;  %v7999_v48 = vld [vmem:[#allocation7 + $0x54] sm:$0xf]  ;;  %v7271_v61 = vld [vmem:[#allocation7 + $0x850] sm:$0xf] }
 0x3d7   :  { %v6252_v3 = vor.u32 %v7999_v48, %v6249_v43  ;;  %v8323_v48 = vld [vmem:[#allocation7 + $0xa6c] sm:$0xf0] }
 0x3d8   :  { %v3759_v62 = vadd.f32 %v3758_v53, %v3710_v40  ;;  %v5106_v59 = vmax.f32 %v3855_v35, 0.0  ;;  %v8259_v53 = vld [vmem:[#allocation7 + $0x86c] sm:$0xf0]  ;;  %v8063_v40 = vld [vmem:[#allocation7 + $0x254] sm:$0xf] }
 0x3d9   :  { %4179 = vmatpush.bf16.msrb.mxu2 %v6252_v3 }
 0x3db   :  { %v3807_v50 = vpop.f32.mrf.mxu2  ;;  %v3761_v4 = vpop.f32.mrf.mxu1 }
 0x3dc   :  { %v3856_v21 = vpop.f32.mrf.mxu3  ;;  %v3808_v17 = vadd.f32 %v3807_v50, %v3759_v62  ;;  %v7272_v62 = vor.u32 %v8259_v53, %v7271_v61 }
 0x3dd   :  { %v3712_v39 = vpop.f32.mrf.mxu0 }
 0x3de   :  { %v3713_v42 = vadd.f32 %v3712_v39, %v9562_v25  ;;  %v3857_v37 = vadd.f32 %v3856_v21, %v3808_v17  ;;  %3956 = vmatmul.bf16.gmra.mxu1 %v10509_v23  ;;  %v6505_v25 = vld [vmem:[#allocation7 + $0x270] sm:$0xf0]  ;;  %4081 = vmatpush.bf16.msrb.mxu0 %v7272_v62  ;;  %v10512_v62 = vld [vmem:[#allocation37_spill] sm:$0xff] }
 0x3df   :  { %v6508_v13 = vor.u32 %v8063_v40, %v6505_v25  ;;  %v10511_v25 = vld [vmem:[#allocation36_spill] sm:$0xff] }
 0x3e0   :  { %v3762_v15 = vadd.f32 %v3761_v4, %v3713_v42  ;;  %3907 = vmatmul.bf16.gmra.mxu0 %v10508_v24  ;;  %v5114_v31 = vmax.f32 %v3857_v37, 0.0  ;;  %4005 = vmatmul.bf16.gmra.mxu2 %v9055_v6  ;;  %v7527_v37 = vld [vmem:[#allocation7 + $0xa50] sm:$0xf] }
 0x3e1   :  { %4054 = vmatmul.bf16.gmra.mxu3 %v9057_v5  ;;  %v7528_v43 = vor.u32 %v8323_v48, %v7527_v37 }
 0x3e2   :  { %v9646_v22 = vpack.c.bf16 %v5114_v31, %v5106_v59  ;;  %4228 = vmatpush.bf16.msrb.mxu3 %v6508_v13  ;;  %v6217_v13 = vld [vmem:[#allocation7 + $0x30] sm:$0xf0] }
 0x3e3   :  { %v3810_v4 = vpop.f32.mrf.mxu2  ;;  %v3763_v21 = vpop.f32.mrf.mxu1  ;;  %4130 = vmatpush.bf16.msrb.mxu1 %v7528_v43 }
 0x3e4   :  { %10510 = vst [vmem:[#allocation71_spill] sm:$0xff] %v9646_v22  ;;  %v3859_v58 = vpop.f32.mrf.mxu3  ;;  %v3811_v35 = vadd.f32 %v3810_v4, %v3762_v15 }
 0x3e5   :  { %v3714_v50 = vpop.f32.mrf.mxu0 }
 0x3e6   :  { %v3715_v17 = vadd.f32 %v3714_v50, %v9568_v18  ;;  %v3860_v39 = vadd.f32 %v3859_v58, %v3811_v35  ;;  %v7991_v58 = vld [vmem:[#allocation7 + $0x14] sm:$0xf]  ;;  %v7239_v50 = vld [vmem:[#allocation7 + $0x810] sm:$0xf] }
 0x3e7   :  { %v6220_v35 = vor.u32 %v7991_v58, %v6217_v13  ;;  %v8315_v58 = vld [vmem:[#allocation7 + $0xa2c] sm:$0xf0] }
 0x3e8   :  { %v3764_v42 = vadd.f32 %v3763_v21, %v3715_v17  ;;  %v5122_v18 = vmax.f32 %v3860_v39, 0.0  ;;  %v8251_v21 = vld [vmem:[#allocation7 + $0x82c] sm:$0xf0]  ;;  %v8055_v17 = vld [vmem:[#allocation7 + $0x214] sm:$0xf] }
 0x3e9   :  { %4180 = vmatpush.bf16.msrb.mxu2 %v6220_v35 }
 0x3eb   :  { %v3812_v61 = vpop.f32.mrf.mxu2  ;;  %v3766_v22 = vpop.f32.mrf.mxu1 }
 0x3ec   :  { %v3861_v53 = vpop.f32.mrf.mxu3  ;;  %v3813_v59 = vadd.f32 %v3812_v61, %v3764_v42  ;;  %v7240_v42 = vor.u32 %v8251_v21, %v7239_v50 }
 0x3ed   :  { %v3717_v31 = vpop.f32.mrf.mxu0 }
 0x3ee   :  { %v3718_v3 = vadd.f32 %v3717_v31, %v9576_v28  ;;  %v3862_v15 = vadd.f32 %v3861_v53, %v3813_v59  ;;  %3961 = vmatmul.bf16.gmra.mxu1 %v10512_v62  ;;  %v6473_v28 = vld [vmem:[#allocation7 + $0x230] sm:$0xf0]  ;;  %4082 = vmatpush.bf16.msrb.mxu0 %v7240_v42  ;;  %v10515_v42 = vld [vmem:[#allocation39_spill] sm:$0xff] }
 0x3ef   :  { %v6476_v43 = vor.u32 %v8055_v17, %v6473_v28  ;;  %v10514_v28 = vld [vmem:[#allocation38_spill] sm:$0xff] }
 0x3f0   :  { %v3767_v40 = vadd.f32 %v3766_v22, %v3718_v3  ;;  %3912 = vmatmul.bf16.gmra.mxu0 %v10511_v25  ;;  %v5130_v4 = vmax.f32 %v3862_v15, 0.0  ;;  %4010 = vmatmul.bf16.gmra.mxu2 %v9083_v29  ;;  %v7495_v15 = vld [vmem:[#allocation7 + $0xa10] sm:$0xf] }
 0x3f1   :  { %4059 = vmatmul.bf16.gmra.mxu3 %v9085_v34  ;;  %v7496_v13 = vor.u32 %v8315_v58, %v7495_v15 }
 0x3f2   :  { %v9654_v37 = vpack.c.bf16 %v5130_v4, %v5122_v18  ;;  %4229 = vmatpush.bf16.msrb.mxu3 %v6476_v43  ;;  %v7465_v43 = vld [vmem:[#allocation7 + $0x9f0] sm:$0xf0] }
 0x3f3   :  { %v3815_v22 = vpop.f32.mrf.mxu2  ;;  %v3768_v53 = vpop.f32.mrf.mxu1  ;;  %4131 = vmatpush.bf16.msrb.mxu1 %v7496_v13 }
 0x3f4   :  { %10513 = vst [vmem:[#allocation72_spill] sm:$0xff] %v9654_v37  ;;  %v3864_v48 = vpop.f32.mrf.mxu3  ;;  %v3816_v39 = vadd.f32 %v3815_v22, %v3767_v40 }
 0x3f5   :  { %v3719_v61 = vpop.f32.mrf.mxu0 }
 0x3f6   :  { %v3720_v59 = vadd.f32 %v3719_v61, %v9582_v57  ;;  %v3865_v31 = vadd.f32 %v3864_v48, %v3816_v39  ;;  %v8303_v48 = vld [vmem:[#allocation7 + $0x9d4] sm:$0xf] }
 0x3f7   :  { %v7468_v39 = vor.u32 %v8303_v48, %v7465_v43  ;;  %v8175_v61 = vld [vmem:[#allocation7 + $0x5d4] sm:$0xf] }
 0x3f8   :  { %v3769_v3 = vadd.f32 %v3768_v53, %v3720_v59  ;;  %v5138_v57 = vmax.f32 %v3865_v31, 0.0  ;;  %v6953_v53 = vld [vmem:[#allocation7 + $0x5f0] sm:$0xf0] }
 0x3f9   :  { %v8367_v59 = vld [vmem:[#allocation7 + $0xbd4] sm:$0xf]  ;;  %4369 = vmatpush.bf16.msra.mxu2 %v7468_v39 }
 0x3fb   :  { %v3817_v50 = vpop.f32.mrf.mxu2  ;;  %v3771_v37 = vpop.f32.mrf.mxu1 }
 0x3fc   :  { %v3866_v21 = vpop.f32.mrf.mxu3  ;;  %v3818_v18 = vadd.f32 %v3817_v50, %v3769_v3  ;;  %v6956_v3 = vor.u32 %v8175_v61, %v6953_v53 }
 0x3fd   :  { %v3722_v4 = vpop.f32.mrf.mxu0 }
 0x3fe   :  { %v3723_v35 = vadd.f32 %v3722_v4, %v9590_v7  ;;  %v3867_v40 = vadd.f32 %v3866_v21, %v3818_v18  ;;  %3966 = vmatmul.bf16.gmra.mxu1 %v10515_v42  ;;  %v7721_v7 = vld [vmem:[#allocation7 + $0xbf0] sm:$0xf0]  ;;  %4271 = vmatpush.bf16.msra.mxu0 %v6956_v3  ;;  %v10518_v3 = vld [vmem:[#allocation43_spill] sm:$0xff] }
 0x3ff   :  { %v7724_v13 = vor.u32 %v8367_v59, %v7721_v7  ;;  %v10517_v7 = vld [vmem:[#allocation42_spill] sm:$0xff] }
 0x400   :  { %v3772_v17 = vadd.f32 %v3771_v37, %v3723_v35  ;;  %3917 = vmatmul.bf16.gmra.mxu0 %v10514_v28  ;;  %v5146_v22 = vmax.f32 %v3867_v40, 0.0  ;;  %4015 = vmatmul.bf16.gmra.mxu2 %v10444_v60  ;;  %v8239_v35 = vld [vmem:[#allocation7 + $0x7d4] sm:$0xf] }
 0x401   :  { %4064 = vmatmul.bf16.gmra.mxu3 %v10445_v56  ;;  %v7209_v40 = vld [vmem:[#allocation7 + $0x7f0] sm:$0xf0] }
 0x402   :  { %v9662_v15 = vpack.c.bf16 %v5146_v22, %v5138_v57  ;;  %4418 = vmatpush.bf16.msra.mxu3 %v7724_v13  ;;  %v7212_v43 = vor.u32 %v8239_v35, %v7209_v40  ;;  %v7433_v13 = vld [vmem:[#allocation7 + $0x9b0] sm:$0xf0] }
 0x403   :  { %v3820_v37 = vpop.f32.mrf.mxu2  ;;  %v3773_v21 = vpop.f32.mrf.mxu1 }
 0x404   :  { %10516 = vst [vmem:[#allocation73_spill] sm:$0xff] %v9662_v15  ;;  %v3869_v58 = vpop.f32.mrf.mxu3  ;;  %v3821_v31 = vadd.f32 %v3820_v37, %v3772_v17  ;;  %4320 = vmatpush.bf16.msra.mxu1 %v7212_v43 }
 0x405   :  { %v3724_v50 = vpop.f32.mrf.mxu0 }
 0x406   :  { %v3725_v18 = vadd.f32 %v3724_v50, %v9596_v36  ;;  %v3870_v4 = vadd.f32 %v3869_v58, %v3821_v31  ;;  %v8295_v58 = vld [vmem:[#allocation7 + $0x994] sm:$0xf] }
 0x407   :  { %v7436_v31 = vor.u32 %v8295_v58, %v7433_v13  ;;  %v8167_v50 = vld [vmem:[#allocation7 + $0x594] sm:$0xf] }
 0x408   :  { %v3774_v48 = vadd.f32 %v3773_v21, %v3725_v18  ;;  %v5154_v36 = vmax.f32 %v3870_v4, 0.0  ;;  %v6921_v21 = vld [vmem:[#allocation7 + $0x5b0] sm:$0xf0] }
 0x409   :  { %v8359_v18 = vld [vmem:[#allocation7 + $0xb94] sm:$0xf]  ;;  %v6924_v35 = vor.u32 %v8167_v50, %v6921_v21  ;;  %4370 = vmatpush.bf16.msra.mxu2 %v7436_v31  ;;  %v9673_v50 = vld [vmem:[#allocation8] sm:$0xff] }
 0x40b   :  { %v3822_v61 = vpop.f32.mrf.mxu2  ;;  %v3776_v15 = vpop.f32.mrf.mxu1  ;;  %4272 = vmatpush.bf16.msra.mxu0 %v6924_v35 }
 0x40c   :  { %v3871_v57 = vpop.f32.mrf.mxu3  ;;  %v3823_v22 = vadd.f32 %v3822_v61, %v3774_v48 }
 0x40d   :  { %v3727_v53 = vpop.f32.mrf.mxu0 }
 0x40e   :  { %v3728_v39 = vadd.f32 %v3727_v53, %v9604_v19  ;;  %v3872_v17 = vadd.f32 %v3871_v57, %v3823_v22  ;;  %3971 = vmatmul.bf16.gmra.mxu1 %v10518_v3  ;;  %v7689_v19 = vld [vmem:[#allocation7 + $0xbb0] sm:$0xf0] }
 0x40f   :  { %v7692_v43 = vor.u32 %v8359_v18, %v7689_v19 }
 0x410   :  { %v3777_v59 = vadd.f32 %v3776_v15, %v3728_v39  ;;  %3922 = vmatmul.bf16.gmra.mxu0 %v10517_v7  ;;  %v5162_v37 = vmax.f32 %v3872_v17, 0.0  ;;  %4020 = vmatmul.bf16.gmra.mxu2 %v10492_v52  ;;  %v8231_v39 = vld [vmem:[#allocation7 + $0x794] sm:$0xf] }
 0x411   :  { %4069 = vmatmul.bf16.gmra.mxu3 %v10493_v8  ;;  %v7177_v17 = vld [vmem:[#allocation7 + $0x7b0] sm:$0xf0]  ;;  %v8116_v8 = vld [vmem:[#allocation7 + $0x3f4] sm:$0xf0] }
 0x412   :  { %v9670_v40 = vpack.c.bf16 %v5162_v37, %v5154_v36  ;;  %4419 = vmatpush.bf16.msra.mxu3 %v7692_v43  ;;  %v7180_v13 = vor.u32 %v8231_v39, %v7177_v17  ;;  %v9676_v36 = vperm.slane %v9673_v50, 4  ;;  %v8287_v43 = vld [vmem:[#allocation7 + $0x954] sm:$0xf] }
 0x413   :  { %v3825_v15 = vpop.f32.mrf.mxu2  ;;  %v3778_v57 = vpop.f32.mrf.mxu1  ;;  %v8351_v39 = vld [vmem:[#allocation7 + $0xb54] sm:$0xf] }
 0x414   :  { %10519 = vst [vmem:[#allocation74_spill] sm:$0xff] %v9670_v40  ;;  %v3874_v48 = vpop.f32.mrf.mxu3  ;;  %v3826_v4 = vadd.f32 %v3825_v15, %v3777_v59  ;;  %4321 = vmatpush.bf16.msra.mxu1 %v7180_v13 }
 0x415   :  { %v3729_v61 = vpop.f32.mrf.mxu0 }
 0x416   :  { %v3730_v22 = vadd.f32 %v3729_v61, %v9610_v46  ;;  %v3875_v53 = vadd.f32 %v3874_v48, %v3826_v4  ;;  %v7401_v4 = vld [vmem:[#allocation7 + $0x970] sm:$0xf0] }
 0x417   :  { %v7404_v61 = vor.u32 %v8287_v43, %v7401_v4  ;;  %v8223_v43 = vld [vmem:[#allocation7 + $0x754] sm:$0xf] }
 0x418   :  { %v3779_v58 = vadd.f32 %v3778_v57, %v3730_v22  ;;  %v5170_v15 = vmax.f32 %v3875_v53, 0.0  ;;  %v8159_v57 = vld [vmem:[#allocation7 + $0x554] sm:$0xf] }
 0x419   :  { %v6889_v22 = vld [vmem:[#allocation7 + $0x570] sm:$0xf0]  ;;  %4371 = vmatpush.bf16.msra.mxu2 %v7404_v61 }
 0x41a   :  { %v6892_v17 = vor.u32 %v8159_v57, %v6889_v22  ;;  %v7145_v4 = vld [vmem:[#allocation7 + $0x770] sm:$0xf0] }
 0x41b   :  { %v3827_v37 = vpop.f32.mrf.mxu2  ;;  %v3937_v18 = vpop.f32.mrf.mxu1  ;;  %v7148_v57 = vor.u32 %v8223_v43, %v7145_v4 }
 0x41c   :  { %v3876_v31 = vpop.f32.mrf.mxu3  ;;  %v3828_v59 = vadd.f32 %v3827_v37, %v3779_v58  ;;  %v7657_v58 = vld [vmem:[#allocation7 + $0xb70] sm:$0xf0]  ;;  %4273 = vmatpush.bf16.msra.mxu0 %v6892_v17 }
 0x41d   :  { %v3888_v21 = vpop.f32.mrf.mxu0  ;;  %4322 = vmatpush.bf16.msra.mxu1 %v7148_v57 }
 0x41e   :  { %v3889_v35 = vadd.f32 %v3888_v21, %v9676_v36  ;;  %v3877_v46 = vadd.f32 %v3876_v31, %v3828_v59  ;;  %4132 = vmatmul.bf16.vlgmr.msrb.gmra.mxu1 %v8869_v2  ;;  %v7660_v59 = vor.u32 %v8351_v39, %v7657_v58  ;;  %v8279_v58 = vld [vmem:[#allocation7 + $0x914] sm:$0xf] }
 0x420   :  { %v3938_v19 = vadd.f32 %v3937_v18, %v3889_v35  ;;  %4083 = vmatmul.bf16.vlgmr.msrb.gmra.mxu0 %v8867_v1  ;;  %v5178_v48 = vmax.f32 %v3877_v46, 0.0  ;;  %4181 = vmatmul.bf16.vlgmr.msrb.gmra.mxu2 %v10497_v51 }
 0x421   :  { %4230 = vmatmul.bf16.vlgmr.msrb.gmra.mxu3 %v10498_v20  ;;  %v6985_v20 = vld [vmem:[#allocation7 + $0x630] sm:$0xf0] }
 0x422   :  { %v9683_v13 = vpack.c.bf16 %v5178_v48, %v5170_v15  ;;  %4420 = vmatpush.bf16.msra.mxu3 %v7660_v59 }
 0x423   :  { %v3986_v37 = vpop.f32.mrf.mxu2  ;;  %v3939_v18 = vpop.f32.mrf.mxu1 }
 0x424   :  { %10520 = vst [vmem:[#allocation75_spill] sm:$0xff] %v9683_v13  ;;  %v4035_v31 = vpop.f32.mrf.mxu3  ;;  %v3987_v53 = vadd.f32 %v3986_v37, %v3938_v19  ;;  %v7369_v37 = vld [vmem:[#allocation7 + $0x930] sm:$0xf0] }
 0x425   :  { %v3890_v21 = vpop.f32.mrf.mxu0  ;;  %v7372_v59 = vor.u32 %v8279_v58, %v7369_v37 }
 0x426   :  { %v3891_v35 = vadd.f32 %v3890_v21, %v9676_v36  ;;  %v9686_v46 = vadd.f32 %v4035_v31, %v3987_v53  ;;  %v8151_v31 = vld [vmem:[#allocation7 + $0x514] sm:$0xf] }
 0x427   :  { %v8343_v53 = vld [vmem:[#allocation7 + $0xb14] sm:$0xf]  ;;  %4372 = vmatpush.bf16.msra.mxu2 %v7372_v59 }
 0x428   :  { %v3940_v40 = vadd.f32 %v3939_v18, %v3891_v35  ;;  %v7625_v21 = vld [vmem:[#allocation7 + $0xb30] sm:$0xf0] }
 0x42b   :  { %v3988_v15 = vpop.f32.mrf.mxu2  ;;  %v3942_v61 = vpop.f32.mrf.mxu1 }
 0x42c   :  { %v4037_v48 = vpop.f32.mrf.mxu3  ;;  %v3989_v22 = vadd.f32 %v3988_v15, %v3940_v40  ;;  %v6857_v40 = vld [vmem:[#allocation7 + $0x530] sm:$0xf0] }
 0x42d   :  { %v3893_v13 = vpop.f32.mrf.mxu0  ;;  %v6860_v18 = vor.u32 %v8151_v31, %v6857_v40 }
 0x42e   :  { %v3894_v19 = vadd.f32 %v3893_v13, %v9676_v36  ;;  %v9689_v39 = vadd.f32 %v4037_v48, %v3989_v22  ;;  %4137 = vmatmul.bf16.gmra.mxu1 %v8851_v55  ;;  %v7628_v13 = vor.u32 %v8343_v53, %v7625_v21 }
 0x42f   :  { %4274 = vmatpush.bf16.msra.mxu0 %v6860_v18 }
 0x430   :  { %v3943_v17 = vadd.f32 %v3942_v61, %v3894_v19  ;;  %4088 = vmatmul.bf16.gmra.mxu0 %v8849_v54  ;;  %4186 = vmatmul.bf16.gmra.mxu2 %v10499_v14  ;;  %v8215_v61 = vld [vmem:[#allocation7 + $0x714] sm:$0xf] }
 0x431   :  { %4235 = vmatmul.bf16.gmra.mxu3 %v10500_v49  ;;  %v7113_v19 = vld [vmem:[#allocation7 + $0x730] sm:$0xf0] }
 0x432   :  { %4421 = vmatpush.bf16.msra.mxu3 %v7628_v13  ;;  %v7116_v37 = vor.u32 %v8215_v61, %v7113_v19  ;;  %v8271_v13 = vld [vmem:[#allocation7 + $0x8d4] sm:$0xf] }
 0x433   :  { %v3991_v35 = vpop.f32.mrf.mxu2  ;;  %v3944_v15 = vpop.f32.mrf.mxu1 }
 0x434   :  { %v4040_v43 = vpop.f32.mrf.mxu3  ;;  %v3992_v4 = vadd.f32 %v3991_v35, %v3943_v17  ;;  %4323 = vmatpush.bf16.msra.mxu1 %v7116_v37  ;;  %v7337_v35 = vld [vmem:[#allocation7 + $0x8f0] sm:$0xf0] }
 0x435   :  { %v3895_v57 = vpop.f32.mrf.mxu0 }
 0x436   :  { %v3896_v48 = vadd.f32 %v3895_v57, %v9676_v36  ;;  %v9696_v22 = vadd.f32 %v4040_v43, %v3992_v4  ;;  %v8143_v43 = vld [vmem:[#allocation7 + $0x4d4] sm:$0xf]  ;;  %v7340_v4 = vor.u32 %v8271_v13, %v7337_v35 }
 0x437   :  { %v8335_v57 = vld [vmem:[#allocation7 + $0xad4] sm:$0xf] }
 0x438   :  { %v3945_v58 = vadd.f32 %v3944_v15, %v3896_v48  ;;  %v7593_v15 = vld [vmem:[#allocation7 + $0xaf0] sm:$0xf0]  ;;  %4373 = vmatpush.bf16.msra.mxu2 %v7340_v4 }
 0x439   :  { %v7596_v61 = vor.u32 %v8335_v57, %v7593_v15 }
 0x43b   :  { %v3993_v49 = vpop.f32.mrf.mxu2  ;;  %v3947_v21 = vpop.f32.mrf.mxu1  ;;  %4422 = vmatpush.bf16.msra.mxu3 %v7596_v61  ;;  %v7305_v61 = vld [vmem:[#allocation7 + $0x8b0] sm:$0xf0] }
 0x43c   :  { %v4042_v31 = vpop.f32.mrf.mxu3  ;;  %v3994_v40 = vadd.f32 %v3993_v49, %v3945_v58  ;;  %v6825_v49 = vld [vmem:[#allocation7 + $0x4f0] sm:$0xf0] }
 0x43d   :  { %v3898_v53 = vpop.f32.mrf.mxu0  ;;  %v6828_v48 = vor.u32 %v8143_v43, %v6825_v49 }
 0x43e   :  { %v3899_v17 = vadd.f32 %v3898_v53, %v9676_v36  ;;  %v9699_v59 = vadd.f32 %v4042_v31, %v3994_v40  ;;  %4142 = vmatmul.bf16.gmra.mxu1 %v8795_v11 }
 0x43f   :  { %4275 = vmatpush.bf16.msra.mxu0 %v6828_v48 }
 0x440   :  { %v3948_v18 = vadd.f32 %v3947_v21, %v3899_v17  ;;  %4093 = vmatmul.bf16.gmra.mxu0 %v8793_v10  ;;  %4191 = vmatmul.bf16.gmra.mxu2 %v10502_v38  ;;  %v8207_v17 = vld [vmem:[#allocation7 + $0x6d4] sm:$0xf] }
 0x441   :  { %4240 = vmatmul.bf16.gmra.mxu3 %v10503_v16  ;;  %v7081_v16 = vld [vmem:[#allocation7 + $0x6f0] sm:$0xf0] }
 0x442   :  { %v7084_v35 = vor.u32 %v8207_v17, %v7081_v16  ;;  %v8263_v16 = vld [vmem:[#allocation7 + $0x894] sm:$0xf] }
 0x443   :  { %v3996_v19 = vpop.f32.mrf.mxu2  ;;  %v3949_v40 = vpop.f32.mrf.mxu1 }
 0x444   :  { %v4045_v58 = vpop.f32.mrf.mxu3  ;;  %v3997_v37 = vadd.f32 %v3996_v19, %v3948_v18  ;;  %4324 = vmatpush.bf16.msra.mxu1 %v7084_v35  ;;  %v8135_v19 = vld [vmem:[#allocation7 + $0x494] sm:$0xf] }
 0x445   :  { %v3900_v31 = vpop.f32.mrf.mxu0 }
 0x446   :  { %v3901_v53 = vadd.f32 %v3900_v31, %v9676_v36  ;;  %v9706_v21 = vadd.f32 %v4045_v58, %v3997_v37  ;;  %v7308_v58 = vor.u32 %v8263_v16, %v7305_v61  ;;  %v8327_v37 = vld [vmem:[#allocation7 + $0xa94] sm:$0xf] }
 0x447   :  { %v7561_v31 = vld [vmem:[#allocation7 + $0xab0] sm:$0xf0] }
 0x448   :  { %v3950_v13 = vadd.f32 %v3949_v40, %v3901_v53  ;;  %v7564_v53 = vor.u32 %v8327_v37, %v7561_v31  ;;  %4374 = vmatpush.bf16.msra.mxu2 %v7308_v58 }
 0x44a   :  { %4423 = vmatpush.bf16.msra.mxu3 %v7564_v53  ;;  %v10521_v53 = vld [vmem:[#allocation25_spill] sm:$0xff] }
 0x44b   :  { %v3998_v38 = vpop.f32.mrf.mxu2  ;;  %v3952_v15 = vpop.f32.mrf.mxu1 }
 0x44c   :  { %v4047_v43 = vpop.f32.mrf.mxu3  ;;  %v3999_v49 = vadd.f32 %v3998_v38, %v3950_v13  ;;  %v6793_v38 = vld [vmem:[#allocation7 + $0x4b0] sm:$0xf0] }
 0x44d   :  { %v3903_v57 = vpop.f32.mrf.mxu0  ;;  %v6796_v40 = vor.u32 %v8135_v19, %v6793_v38 }
 0x44e   :  { %v3904_v18 = vadd.f32 %v3903_v57, %v9676_v36  ;;  %v9709_v4 = vadd.f32 %v4047_v43, %v3999_v49  ;;  %4147 = vmatmul.bf16.gmra.mxu1 %v8897_v33 }
 0x44f   :  { %4276 = vmatpush.bf16.msra.mxu0 %v6796_v40 }
 0x450   :  { %v3953_v48 = vadd.f32 %v3952_v15, %v3904_v18  ;;  %4098 = vmatmul.bf16.gmra.mxu0 %v8895_v32  ;;  %4196 = vmatmul.bf16.gmra.mxu2 %v10505_v47  ;;  %v8199_v18 = vld [vmem:[#allocation7 + $0x694] sm:$0xf] }
 0x451   :  { %4245 = vmatmul.bf16.gmra.mxu3 %v10506_v41  ;;  %v7049_v41 = vld [vmem:[#allocation7 + $0x6b0] sm:$0xf0] }
 0x452   :  { %v7052_v61 = vor.u32 %v8199_v18, %v7049_v41  ;;  %v8255_v41 = vld [vmem:[#allocation7 + $0x854] sm:$0xf] }
 0x453   :  { %v4001_v17 = vpop.f32.mrf.mxu2  ;;  %v3954_v49 = vpop.f32.mrf.mxu1 }
 0x454   :  { %v4050_v13 = vpop.f32.mrf.mxu3  ;;  %v4002_v35 = vadd.f32 %v4001_v17, %v3953_v48  ;;  %4325 = vmatpush.bf16.msra.mxu1 %v7052_v61  ;;  %v7273_v17 = vld [vmem:[#allocation7 + $0x870] sm:$0xf0] }
 0x455   :  { %v3905_v43 = vpop.f32.mrf.mxu0 }
 0x456   :  { %v3906_v57 = vadd.f32 %v3905_v43, %v9676_v36  ;;  %v9716_v15 = vadd.f32 %v4050_v13, %v4002_v35  ;;  %v8127_v13 = vld [vmem:[#allocation7 + $0x454] sm:$0xf]  ;;  %v7276_v35 = vor.u32 %v8255_v41, %v7273_v17 }
 0x457   :  { %v8319_v43 = vld [vmem:[#allocation7 + $0xa54] sm:$0xf] }
 0x458   :  { %v3955_v16 = vadd.f32 %v3954_v49, %v3906_v57  ;;  %v7529_v49 = vld [vmem:[#allocation7 + $0xa70] sm:$0xf0]  ;;  %4375 = vmatpush.bf16.msra.mxu2 %v7276_v35 }
 0x459   :  { %v7532_v18 = vor.u32 %v8319_v43, %v7529_v49 }
 0x45b   :  { %v4003_v47 = vpop.f32.mrf.mxu2  ;;  %v3957_v31 = vpop.f32.mrf.mxu1  ;;  %4424 = vmatpush.bf16.msra.mxu3 %v7532_v18  ;;  %v10522_v18 = vld [vmem:[#allocation21_spill] sm:$0xff] }
 0x45c   :  { %v4052_v19 = vpop.f32.mrf.mxu3  ;;  %v4004_v38 = vadd.f32 %v4003_v47, %v3955_v16  ;;  %v6761_v47 = vld [vmem:[#allocation7 + $0x470] sm:$0xf0] }
 0x45d   :  { %v3908_v37 = vpop.f32.mrf.mxu0  ;;  %v6764_v57 = vor.u32 %v8127_v13, %v6761_v47 }
 0x45e   :  { %v3909_v48 = vadd.f32 %v3908_v37, %v9676_v36  ;;  %v9719_v58 = vadd.f32 %v4052_v19, %v4004_v38  ;;  %4152 = vmatmul.bf16.gmra.mxu1 %v10521_v53 }
 0x45f   :  { %4277 = vmatpush.bf16.msra.mxu0 %v6764_v57 }
 0x460   :  { %v3958_v40 = vadd.f32 %v3957_v31, %v3909_v48  ;;  %4103 = vmatmul.bf16.gmra.mxu0 %v8942_v30  ;;  %4201 = vmatmul.bf16.gmra.mxu2 %v10508_v24  ;;  %v7017_v24 = vld [vmem:[#allocation7 + $0x670] sm:$0xf0] }
 0x461   :  { %4250 = vmatmul.bf16.gmra.mxu3 %v10509_v23  ;;  %v8191_v23 = vld [vmem:[#allocation7 + $0x654] sm:$0xf] }
 0x462   :  { %v7020_v17 = vor.u32 %v8191_v23, %v7017_v24  ;;  %v8247_v24 = vld [vmem:[#allocation7 + $0x814] sm:$0xf] }
 0x463   :  { %v4006_v16 = vpop.f32.mrf.mxu2  ;;  %v3959_v37 = vpop.f32.mrf.mxu1  ;;  %v7241_v23 = vld [vmem:[#allocation7 + $0x830] sm:$0xf0] }
 0x464   :  { %v4055_v61 = vpop.f32.mrf.mxu3  ;;  %v4007_v19 = vadd.f32 %v4006_v16, %v3958_v40  ;;  %4326 = vmatpush.bf16.msra.mxu1 %v7020_v17  ;;  %v10523_v16 = vld [vmem:[#allocation22_spill] sm:$0xff] }
 0x465   :  { %v3910_v38 = vpop.f32.mrf.mxu0 }
 0x466   :  { %v3911_v31 = vadd.f32 %v3910_v38, %v9676_v36  ;;  %v9726_v48 = vadd.f32 %v4055_v61, %v4007_v19  ;;  %v8119_v61 = vld [vmem:[#allocation7 + $0x414] sm:$0xf]  ;;  %v7244_v19 = vor.u32 %v8247_v24, %v7241_v23 }
 0x467   :  { %v8311_v38 = vld [vmem:[#allocation7 + $0xa14] sm:$0xf] }
 0x468   :  { %v3960_v41 = vadd.f32 %v3959_v37, %v3911_v31  ;;  %v7497_v37 = vld [vmem:[#allocation7 + $0xa30] sm:$0xf0]  ;;  %4376 = vmatpush.bf16.msra.mxu2 %v7244_v19 }
 0x46b   :  { %v4008_v14 = vpop.f32.mrf.mxu2  ;;  %v3962_v49 = vpop.f32.mrf.mxu1 }
 0x46c   :  { %v4057_v13 = vpop.f32.mrf.mxu3  ;;  %v4009_v47 = vadd.f32 %v4008_v14, %v3960_v41  ;;  %v6729_v14 = vld [vmem:[#allocation7 + $0x430] sm:$0xf0]  ;;  %v7500_v41 = vor.u32 %v8311_v38, %v7497_v37 }
 0x46d   :  { %v3913_v43 = vpop.f32.mrf.mxu0  ;;  %v6732_v31 = vor.u32 %v8119_v61, %v6729_v14 }
 0x46e   :  { %v3914_v40 = vadd.f32 %v3913_v43, %v9676_v36  ;;  %v9729_v35 = vadd.f32 %v4057_v13, %v4009_v47  ;;  %4157 = vmatmul.bf16.gmra.mxu1 %v10523_v16  ;;  %4425 = vmatpush.bf16.msra.mxu3 %v7500_v41  ;;  %v10524_v41 = vld [vmem:[#allocation26_spill] sm:$0xff] }
 0x46f   :  { %4278 = vmatpush.bf16.msra.mxu0 %v6732_v31 }
 0x470   :  { %v3963_v57 = vadd.f32 %v3962_v49, %v3914_v40  ;;  %4108 = vmatmul.bf16.gmra.mxu0 %v10522_v18  ;;  %4206 = vmatmul.bf16.gmra.mxu2 %v10511_v25  ;;  %v8183_v25 = vld [vmem:[#allocation7 + $0x614] sm:$0xf] }
 0x471   :  { %4255 = vmatmul.bf16.gmra.mxu3 %v10512_v62  ;;  %v6988_v23 = vor.u32 %v8183_v25, %v6985_v20  ;;  %v6959_v20 = vld [vmem:[#allocation7 + $0x5d8] sm:$0xf] }
 0x472   :  { %v8180_v25 = vld [vmem:[#allocation7 + $0x5f4] sm:$0xf0] }
 0x473   :  { %v4011_v17 = vpop.f32.mrf.mxu2  ;;  %v3964_v49 = vpop.f32.mrf.mxu1  ;;  %4327 = vmatpush.bf16.msra.mxu1 %v6988_v23 }
 0x474   :  { %v4060_v13 = vpop.f32.mrf.mxu3  ;;  %v4012_v47 = vadd.f32 %v4011_v17, %v3963_v57  ;;  %v10525_v17 = vld [vmem:[#allocation27_spill] sm:$0xff] }
 0x475   :  { %v3915_v43 = vpop.f32.mrf.mxu0 }
 0x476   :  { %v3916_v40 = vadd.f32 %v3915_v43, %v9676_v36  ;;  %v9736_v62 = vadd.f32 %v4060_v13, %v4012_v47  ;;  %v6447_v13 = vld [vmem:[#allocation7 + $0x1d8] sm:$0xf]  ;;  %v6960_v47 = vor.u32 %v8180_v25, %v6959_v20 }
 0x477   :  { %v7215_v43 = vld [vmem:[#allocation7 + $0x7d8] sm:$0xf] }
 0x478   :  { %v3965_v24 = vadd.f32 %v3964_v49, %v3916_v40  ;;  %v8244_v49 = vld [vmem:[#allocation7 + $0x7f4] sm:$0xf0]  ;;  %4565 = vmatpush.bf16.msrb.mxu2 %v6960_v47 }
 0x47b   :  { %v4013_v51 = vpop.f32.mrf.mxu2  ;;  %v3967_v37 = vpop.f32.mrf.mxu1 }
 0x47c   :  { %v4062_v61 = vpop.f32.mrf.mxu3  ;;  %v4014_v14 = vadd.f32 %v4013_v51, %v3965_v24  ;;  %v8052_v51 = vld [vmem:[#allocation7 + $0x1f4] sm:$0xf0] }
 0x47d   :  { %v3918_v38 = vpop.f32.mrf.mxu0  ;;  %v6448_v23 = vor.u32 %v8052_v51, %v6447_v13 }
 0x47e   :  { %v3919_v57 = vadd.f32 %v3918_v38, %v9676_v36  ;;  %v9739_v19 = vadd.f32 %v4062_v61, %v4014_v14  ;;  %4162 = vmatmul.bf16.gmra.mxu1 %v10525_v17  ;;  %v7216_v61 = vor.u32 %v8244_v49, %v7215_v43  ;;  %v10526_v49 = vld [vmem:[#allocation28_spill] sm:$0xff] }
 0x47f   :  { %4467 = vmatpush.bf16.msrb.mxu0 %v6448_v23 }
 0x480   :  { %v3968_v31 = vadd.f32 %v3967_v37, %v3919_v57  ;;  %4113 = vmatmul.bf16.gmra.mxu0 %v10524_v41  ;;  %4211 = vmatmul.bf16.gmra.mxu2 %v10514_v28  ;;  %v6703_v28 = vld [vmem:[#allocation7 + $0x3d8] sm:$0xf] }
 0x481   :  { %4260 = vmatmul.bf16.gmra.mxu3 %v10515_v42  ;;  %v6704_v25 = vor.u32 %v8116_v8, %v6703_v28  ;;  %v6927_v8 = vld [vmem:[#allocation7 + $0x598] sm:$0xf] }
 0x482   :  { %4614 = vmatpush.bf16.msrb.mxu3 %v7216_v61  ;;  %v8172_v28 = vld [vmem:[#allocation7 + $0x5b4] sm:$0xf0] }
 0x483   :  { %v4016_v40 = vpop.f32.mrf.mxu2  ;;  %v3969_v37 = vpop.f32.mrf.mxu1  ;;  %4516 = vmatpush.bf16.msrb.mxu1 %v6704_v25  ;;  %v6928_v23 = vor.u32 %v8172_v28, %v6927_v8  ;;  %v7183_v61 = vld [vmem:[#allocation7 + $0x798] sm:$0xf] }
 0x484   :  { %v4065_v24 = vpop.f32.mrf.mxu3  ;;  %v4017_v14 = vadd.f32 %v4016_v40, %v3968_v31  ;;  %v10527_v40 = vld [vmem:[#allocation29_spill] sm:$0xff] }
 0x485   :  { %v3920_v38 = vpop.f32.mrf.mxu0  ;;  %4566 = vmatpush.bf16.msrb.mxu2 %v6928_v23 }
 0x486   :  { %v3921_v57 = vadd.f32 %v3920_v38, %v9676_v36  ;;  %v9746_v42 = vadd.f32 %v4065_v24, %v4017_v14  ;;  %v6415_v24 = vld [vmem:[#allocation7 + $0x198] sm:$0xf] }
 0x487   :  { %v8236_v14 = vld [vmem:[#allocation7 + $0x7b4] sm:$0xf0] }
 0x488   :  { %v3970_v20 = vadd.f32 %v3969_v37, %v3921_v57 }
 0x48b   :  { %v4018_v52 = vpop.f32.mrf.mxu2  ;;  %v3972_v51 = vpop.f32.mrf.mxu1 }
 0x48c   :  { %v4067_v17 = vpop.f32.mrf.mxu3  ;;  %v4019_v41 = vadd.f32 %v4018_v52, %v3970_v20  ;;  %v8044_v52 = vld [vmem:[#allocation7 + $0x1b4] sm:$0xf0] }
 0x48d   :  { %v3923_v13 = vpop.f32.mrf.mxu0 }
 0x48e   :  { %v3924_v31 = vadd.f32 %v3923_v13, %v9676_v36  ;;  %v9749_v43 = vadd.f32 %v4067_v17, %v4019_v41  ;;  %4167 = vmatmul.bf16.gmra.mxu1 %v10527_v40  ;;  %v6416_v41 = vor.u32 %v8044_v52, %v6415_v24  ;;  %v7184_v17 = vor.u32 %v8236_v14, %v7183_v61 }
 0x490   :  { %v3973_v47 = vadd.f32 %v3972_v51, %v3924_v31  ;;  %4118 = vmatmul.bf16.gmra.mxu0 %v10526_v49  ;;  %4216 = vmatmul.bf16.gmra.mxu2 %v10517_v7  ;;  %v6671_v31 = vld [vmem:[#allocation7 + $0x398] sm:$0xf] }
 0x491   :  { %4265 = vmatmul.bf16.gmra.mxu3 %v10518_v3  ;;  %4468 = vmatpush.bf16.msrb.mxu0 %v6416_v41  ;;  %v8108_v3 = vld [vmem:[#allocation7 + $0x3b4] sm:$0xf0] }
 0x492   :  { %4615 = vmatpush.bf16.msrb.mxu3 %v7184_v17  ;;  %v6672_v28 = vor.u32 %v8108_v3, %v6671_v31  ;;  %v9766_v3 = vperm.slane %v9673_v50, 5  ;;  %v8228_v17 = vld [vmem:[#allocation7 + $0x774] sm:$0xf0] }
 0x493   :  { %v4021_v38 = vpop.f32.mrf.mxu2  ;;  %v3974_v25 = vpop.f32.mrf.mxu1 }
 0x494   :  { %v4070_v37 = vpop.f32.mrf.mxu3  ;;  %v4022_v57 = vadd.f32 %v4021_v38, %v3973_v47  ;;  %4517 = vmatpush.bf16.msrb.mxu1 %v6672_v28  ;;  %v6383_v38 = vld [vmem:[#allocation7 + $0x158] sm:$0xf] }
 0x495   :  { %v3925_v20 = vpop.f32.mrf.mxu0  ;;  %v8100_v28 = vld [vmem:[#allocation7 + $0x374] sm:$0xf0] }
 0x496   :  { %v3926_v13 = vadd.f32 %v3925_v20, %v9676_v36  ;;  %v9756_v51 = vadd.f32 %v4070_v37, %v4022_v57  ;;  %v6895_v36 = vld [vmem:[#allocation7 + $0x558] sm:$0xf] }
 0x497   :  { %v8036_v37 = vld [vmem:[#allocation7 + $0x174] sm:$0xf0] }
 0x498   :  { %v3975_v8 = vadd.f32 %v3974_v25, %v3926_v13  ;;  %v6384_v41 = vor.u32 %v8036_v37, %v6383_v38 }
 0x49a   :  { %4469 = vmatpush.bf16.msrb.mxu0 %v6384_v41 }
 0x49b   :  { %v4023_v7 = vpop.f32.mrf.mxu2  ;;  %v4133_v52 = vpop.f32.mrf.mxu1 }
 0x49c   :  { %v4072_v40 = vpop.f32.mrf.mxu3  ;;  %v4024_v49 = vadd.f32 %v4023_v7, %v3975_v8  ;;  %v8164_v7 = vld [vmem:[#allocation7 + $0x574] sm:$0xf0] }
 0x49d   :  { %v4084_v24 = vpop.f32.mrf.mxu0  ;;  %v6896_v14 = vor.u32 %v8164_v7, %v6895_v36  ;;  %v6639_v8 = vld [vmem:[#allocation7 + $0x358] sm:$0xf] }
 0x49e   :  { %v4085_v47 = vadd.f32 %v4084_v24, %v9686_v46  ;;  %v9759_v61 = vadd.f32 %v4072_v40, %v4024_v49  ;;  %4328 = vmatmul.bf16.vlgmr.msra.gmra.mxu1 %v8865_v0  ;;  %v7151_v46 = vld [vmem:[#allocation7 + $0x758] sm:$0xf] }
 0x49f   :  { %4567 = vmatpush.bf16.msrb.mxu2 %v6896_v14  ;;  %v7152_v13 = vor.u32 %v8228_v17, %v7151_v46  ;;  %v8156_v17 = vld [vmem:[#allocation7 + $0x534] sm:$0xf0] }
 0x4a0   :  { %v4134_v23 = vadd.f32 %v4133_v52, %v4085_v47  ;;  %4279 = vmatmul.bf16.vlgmr.msra.gmra.mxu0 %v8863_v63  ;;  %4377 = vmatmul.bf16.vlgmr.msra.gmra.mxu2 %v8867_v1  ;;  %v6640_v52 = vor.u32 %v8100_v28, %v6639_v8  ;;  %v8220_v28 = vld [vmem:[#allocation7 + $0x734] sm:$0xf0] }
 0x4a1   :  { %4426 = vmatmul.bf16.vlgmr.msra.gmra.mxu3 %v8869_v2 }
 0x4a2   :  { %4616 = vmatpush.bf16.msrb.mxu3 %v7152_v13  ;;  %v5059_v47 = vmax.f32 %v4134_v23, 0.0  ;;  %4518 = vmatpush.bf16.msrb.mxu1 %v6640_v52  ;;  %v6863_v23 = vld [vmem:[#allocation7 + $0x518] sm:$0xf] }
 0x4a3   :  { %v4182_v49 = vpop.f32.mrf.mxu2  ;;  %v4135_v25 = vpop.f32.mrf.mxu1  ;;  %v7119_v13 = vld [vmem:[#allocation7 + $0x718] sm:$0xf] }
 0x4a4   :  { %v4231_v40 = vpop.f32.mrf.mxu3  ;;  %v4183_v57 = vadd.f32 %v4182_v49, %v9766_v3 }
 0x4a5   :  { %v4086_v20 = vpop.f32.mrf.mxu0 }
 0x4a6   :  { %v4087_v31 = vadd.f32 %v4086_v20, %v9689_v39  ;;  %v9770_v50 = vadd.f32 %v4231_v40, %v4183_v57  ;;  %v6864_v57 = vor.u32 %v8156_v17, %v6863_v23  ;;  %v6351_v20 = vld [vmem:[#allocation7 + $0x118] sm:$0xf] }
 0x4a8   :  { %v4136_v24 = vadd.f32 %v4135_v25, %v4087_v31  ;;  %v8028_v25 = vld [vmem:[#allocation7 + $0x134] sm:$0xf0]  ;;  %4568 = vmatpush.bf16.msrb.mxu2 %v6864_v57 }
 0x4aa   :  { %v5067_v36 = vmax.f32 %v4136_v24, 0.0 }
 0x4ab   :  { %v4184_v38 = vpop.f32.mrf.mxu2  ;;  %v4138_v49 = vpop.f32.mrf.mxu1 }
 0x4ac   :  { %v9772_v7 = vpack.c.bf16 %v5067_v36, %v5059_v47  ;;  %v4233_v37 = vpop.f32.mrf.mxu3  ;;  %v4185_v14 = vadd.f32 %v4184_v38, %v9766_v3  ;;  %v7120_v36 = vor.u32 %v8220_v28, %v7119_v13 }
 0x4ad   :  { %v4089_v46 = vpop.f32.mrf.mxu0 }
 0x4ae   :  { %10528 = vst [vmem:[#allocation76_spill] sm:$0xff] %v9772_v7  ;;  %v4090_v39 = vadd.f32 %v4089_v46, %v9696_v22  ;;  %v9776_v40 = vadd.f32 %v4233_v37, %v4185_v14  ;;  %4333 = vmatmul.bf16.gmra.mxu1 %v8939_v12  ;;  %v6352_v22 = vor.u32 %v8028_v25, %v6351_v20  ;;  %v6607_v14 = vld [vmem:[#allocation7 + $0x318] sm:$0xf] }
 0x4af   :  { %4617 = vmatpush.bf16.msrb.mxu3 %v7120_v36  ;;  %v8092_v46 = vld [vmem:[#allocation7 + $0x334] sm:$0xf0] }
 0x4b0   :  { %v4139_v41 = vadd.f32 %v4138_v49, %v4090_v39  ;;  %4284 = vmatmul.bf16.gmra.mxu0 %v8937_v9  ;;  %4382 = vmatmul.bf16.gmra.mxu2 %v8849_v54  ;;  %v6608_v39 = vor.u32 %v8092_v46, %v6607_v14  ;;  %v8020_v36 = vld [vmem:[#allocation7 + $0xf4] sm:$0xf0] }
 0x4b1   :  { %4431 = vmatmul.bf16.gmra.mxu3 %v8851_v55  ;;  %4470 = vmatpush.bf16.msrb.mxu0 %v6352_v22 }
 0x4b2   :  { %v5075_v23 = vmax.f32 %v4139_v41, 0.0  ;;  %4519 = vmatpush.bf16.msrb.mxu1 %v6608_v39  ;;  %v6831_v41 = vld [vmem:[#allocation7 + $0x4d8] sm:$0xf] }
 0x4b3   :  { %v4187_v31 = vpop.f32.mrf.mxu2  ;;  %v4140_v47 = vpop.f32.mrf.mxu1 }
 0x4b4   :  { %v4236_v8 = vpop.f32.mrf.mxu3  ;;  %v4188_v24 = vadd.f32 %v4187_v31, %v9766_v3 }
 0x4b5   :  { %v4091_v52 = vpop.f32.mrf.mxu0 }
 0x4b6   :  { %v4092_v38 = vadd.f32 %v4091_v52, %v9699_v59  ;;  %v9784_v37 = vadd.f32 %v4236_v8, %v4188_v24  ;;  %v8148_v24 = vld [vmem:[#allocation7 + $0x4f4] sm:$0xf0] }
 0x4b7   :  { %v6832_v52 = vor.u32 %v8148_v24, %v6831_v41 }
 0x4b8   :  { %v4141_v49 = vadd.f32 %v4140_v47, %v4092_v38  ;;  %v6319_v47 = vld [vmem:[#allocation7 + $0xd8] sm:$0xf] }
 0x4b9   :  { %v7087_v38 = vld [vmem:[#allocation7 + $0x6d8] sm:$0xf]  ;;  %4569 = vmatpush.bf16.msrb.mxu2 %v6832_v52 }
 0x4ba   :  { %v5083_v17 = vmax.f32 %v4141_v49, 0.0  ;;  %v8212_v49 = vld [vmem:[#allocation7 + $0x6f4] sm:$0xf0] }
 0x4bb   :  { %v4189_v20 = vpop.f32.mrf.mxu2  ;;  %v4143_v28 = vpop.f32.mrf.mxu1 }
 0x4bc   :  { %v4238_v25 = vpop.f32.mrf.mxu3  ;;  %v9786_v31 = vpack.c.bf16 %v5083_v17, %v5075_v23  ;;  %v4190_v57 = vadd.f32 %v4189_v20, %v9766_v3  ;;  %v7088_v20 = vor.u32 %v8212_v49, %v7087_v38 }
 0x4bd   :  { %v4094_v13 = vpop.f32.mrf.mxu0 }
 0x4be   :  { %10529 = vst [vmem:[#allocation77_spill] sm:$0xff] %v9786_v31  ;;  %v4095_v59 = vadd.f32 %v4094_v13, %v9706_v21  ;;  %v9790_v8 = vadd.f32 %v4238_v25, %v4190_v57  ;;  %4338 = vmatmul.bf16.gmra.mxu1 %v9001_v27  ;;  %v6320_v21 = vor.u32 %v8020_v36, %v6319_v47  ;;  %v6575_v13 = vld [vmem:[#allocation7 + $0x2d8] sm:$0xf] }
 0x4bf   :  { %4618 = vmatpush.bf16.msrb.mxu3 %v7088_v20  ;;  %v7055_v20 = vld [vmem:[#allocation7 + $0x698] sm:$0xf] }
 0x4c0   :  { %v4144_v22 = vadd.f32 %v4143_v28, %v4095_v59  ;;  %4289 = vmatmul.bf16.gmra.mxu0 %v8999_v26  ;;  %4387 = vmatmul.bf16.gmra.mxu2 %v8793_v10  ;;  %v8084_v28 = vld [vmem:[#allocation7 + $0x2f4] sm:$0xf0] }
 0x4c1   :  { %4436 = vmatmul.bf16.gmra.mxu3 %v8795_v11  ;;  %4471 = vmatpush.bf16.msrb.mxu0 %v6320_v21  ;;  %v6576_v41 = vor.u32 %v8084_v28, %v6575_v13  ;;  %v8204_v28 = vld [vmem:[#allocation7 + $0x6b4] sm:$0xf0] }
 0x4c2   :  { %v5091_v24 = vmax.f32 %v4144_v22, 0.0  ;;  %v6799_v22 = vld [vmem:[#allocation7 + $0x498] sm:$0xf] }
 0x4c3   :  { %v4192_v14 = vpop.f32.mrf.mxu2  ;;  %v4145_v17 = vpop.f32.mrf.mxu1  ;;  %4520 = vmatpush.bf16.msrb.mxu1 %v6576_v41 }
 0x4c4   :  { %v4241_v46 = vpop.f32.mrf.mxu3  ;;  %v4193_v39 = vadd.f32 %v4192_v14, %v9766_v3 }
 0x4c5   :  { %v4096_v23 = vpop.f32.mrf.mxu0 }
 0x4c6   :  { %v4097_v25 = vadd.f32 %v4096_v23, %v9709_v4  ;;  %v9798_v57 = vadd.f32 %v4241_v46, %v4193_v39  ;;  %v6287_v23 = vld [vmem:[#allocation7 + $0x98] sm:$0xf] }
 0x4c8   :  { %v4146_v59 = vadd.f32 %v4145_v17, %v4097_v25  ;;  %v8012_v17 = vld [vmem:[#allocation7 + $0xb4] sm:$0xf0] }
 0x4ca   :  { %v5099_v31 = vmax.f32 %v4146_v59, 0.0 }
 0x4cb   :  { %v4194_v47 = vpop.f32.mrf.mxu2  ;;  %v4148_v49 = vpop.f32.mrf.mxu1 }
 0x4cc   :  { %v4243_v36 = vpop.f32.mrf.mxu3  ;;  %v9800_v14 = vpack.c.bf16 %v5099_v31, %v5091_v24  ;;  %v4195_v52 = vadd.f32 %v4194_v47, %v9766_v3  ;;  %v8140_v31 = vld [vmem:[#allocation7 + $0x4b4] sm:$0xf0]  ;;  %v7056_v47 = vor.u32 %v8204_v28, %v7055_v20 }
 0x4cd   :  { %v4099_v38 = vpop.f32.mrf.mxu0  ;;  %v6800_v39 = vor.u32 %v8140_v31, %v6799_v22 }
 0x4ce   :  { %10530 = vst [vmem:[#allocation78_spill] sm:$0xff] %v9800_v14  ;;  %v4100_v4 = vadd.f32 %v4099_v38, %v9716_v15  ;;  %v9804_v46 = vadd.f32 %v4243_v36, %v4195_v52  ;;  %4343 = vmatmul.bf16.gmra.mxu1 %v9029_v45  ;;  %v6288_v15 = vor.u32 %v8012_v17, %v6287_v23  ;;  %v6543_v38 = vld [vmem:[#allocation7 + $0x298] sm:$0xf] }
 0x4cf   :  { %4570 = vmatpush.bf16.msrb.mxu2 %v6800_v39  ;;  %4619 = vmatpush.bf16.msrb.mxu3 %v7056_v47  ;;  %v7023_v47 = vld [vmem:[#allocation7 + $0x658] sm:$0xf] }
 0x4d0   :  { %v4149_v21 = vadd.f32 %v4148_v49, %v4100_v4  ;;  %4294 = vmatmul.bf16.gmra.mxu0 %v9027_v44  ;;  %4392 = vmatmul.bf16.gmra.mxu2 %v8895_v32  ;;  %v8076_v49 = vld [vmem:[#allocation7 + $0x2b4] sm:$0xf0] }
 0x4d1   :  { %4441 = vmatmul.bf16.gmra.mxu3 %v8897_v33  ;;  %4472 = vmatpush.bf16.msrb.mxu0 %v6288_v15  ;;  %v6544_v22 = vor.u32 %v8076_v49, %v6543_v38  ;;  %v8196_v49 = vld [vmem:[#allocation7 + $0x674] sm:$0xf0] }
 0x4d2   :  { %v5107_v31 = vmax.f32 %v4149_v21, 0.0  ;;  %v6767_v21 = vld [vmem:[#allocation7 + $0x458] sm:$0xf] }
 0x4d3   :  { %v4197_v25 = vpop.f32.mrf.mxu2  ;;  %v4150_v24 = vpop.f32.mrf.mxu1  ;;  %4521 = vmatpush.bf16.msrb.mxu1 %v6544_v22 }
 0x4d4   :  { %v4246_v13 = vpop.f32.mrf.mxu3  ;;  %v4198_v59 = vadd.f32 %v4197_v25, %v9766_v3 }
 0x4d5   :  { %v4101_v41 = vpop.f32.mrf.mxu0 }
 0x4d6   :  { %v4102_v36 = vadd.f32 %v4101_v41, %v9719_v58  ;;  %v9812_v52 = vadd.f32 %v4246_v13, %v4198_v59  ;;  %v6255_v41 = vld [vmem:[#allocation7 + $0x58] sm:$0xf] }
 0x4d8   :  { %v4151_v4 = vadd.f32 %v4150_v24, %v4102_v36  ;;  %v8004_v24 = vld [vmem:[#allocation7 + $0x74] sm:$0xf0] }
 0x4da   :  { %v5115_v14 = vmax.f32 %v4151_v4, 0.0 }
 0x4db   :  { %v4199_v23 = vpop.f32.mrf.mxu2  ;;  %v4153_v28 = vpop.f32.mrf.mxu1 }
 0x4dc   :  { %v4248_v17 = vpop.f32.mrf.mxu3  ;;  %v9814_v25 = vpack.c.bf16 %v5115_v14, %v5107_v31  ;;  %v4200_v39 = vadd.f32 %v4199_v23, %v9766_v3  ;;  %v8132_v14 = vld [vmem:[#allocation7 + $0x474] sm:$0xf0]  ;;  %v7024_v23 = vor.u32 %v8196_v49, %v7023_v47 }
 0x4dd   :  { %v4104_v20 = vpop.f32.mrf.mxu0  ;;  %v6768_v59 = vor.u32 %v8132_v14, %v6767_v21 }
 0x4de   :  { %10531 = vst [vmem:[#allocation79_spill] sm:$0xff] %v9814_v25  ;;  %v4105_v58 = vadd.f32 %v4104_v20, %v9726_v48  ;;  %v9818_v13 = vadd.f32 %v4248_v17, %v4200_v39  ;;  %4348 = vmatmul.bf16.gmra.mxu1 %v9057_v5  ;;  %v6256_v48 = vor.u32 %v8004_v24, %v6255_v41  ;;  %v6511_v20 = vld [vmem:[#allocation7 + $0x258] sm:$0xf] }
 0x4df   :  { %4571 = vmatpush.bf16.msrb.mxu2 %v6768_v59  ;;  %4620 = vmatpush.bf16.msrb.mxu3 %v7024_v23  ;;  %v6991_v23 = vld [vmem:[#allocation7 + $0x618] sm:$0xf] }
 0x4e0   :  { %v4154_v15 = vadd.f32 %v4153_v28, %v4105_v58  ;;  %4299 = vmatmul.bf16.gmra.mxu0 %v9055_v6  ;;  %4397 = vmatmul.bf16.gmra.mxu2 %v8942_v30  ;;  %v8068_v28 = vld [vmem:[#allocation7 + $0x274] sm:$0xf0] }
 0x4e1   :  { %4446 = vmatmul.bf16.gmra.mxu3 %v10521_v53  ;;  %4473 = vmatpush.bf16.msrb.mxu0 %v6256_v48  ;;  %v6512_v21 = vor.u32 %v8068_v28, %v6511_v20  ;;  %v8188_v28 = vld [vmem:[#allocation7 + $0x634] sm:$0xf0] }
 0x4e2   :  { %v5123_v14 = vmax.f32 %v4154_v15, 0.0  ;;  %v6735_v15 = vld [vmem:[#allocation7 + $0x418] sm:$0xf] }
 0x4e3   :  { %v4202_v36 = vpop.f32.mrf.mxu2  ;;  %v4155_v31 = vpop.f32.mrf.mxu1  ;;  %4522 = vmatpush.bf16.msrb.mxu1 %v6512_v21 }
 0x4e4   :  { %v4251_v38 = vpop.f32.mrf.mxu3  ;;  %v4203_v4 = vadd.f32 %v4202_v36, %v9766_v3 }
 0x4e5   :  { %v4106_v22 = vpop.f32.mrf.mxu0 }
 0x4e6   :  { %v4107_v17 = vadd.f32 %v4106_v22, %v9729_v35  ;;  %v9826_v39 = vadd.f32 %v4251_v38, %v4203_v4  ;;  %v6223_v22 = vld [vmem:[#allocation7 + $0x18] sm:$0xf] }
 0x4e8   :  { %v4156_v58 = vadd.f32 %v4155_v31, %v4107_v17  ;;  %v7996_v31 = vld [vmem:[#allocation7 + $0x34] sm:$0xf0] }
 0x4ea   :  { %v5131_v25 = vmax.f32 %v4156_v58, 0.0 }
 0x4eb   :  { %v4204_v41 = vpop.f32.mrf.mxu2  ;;  %v4158_v49 = vpop.f32.mrf.mxu1 }
 0x4ec   :  { %v4253_v24 = vpop.f32.mrf.mxu3  ;;  %v9828_v36 = vpack.c.bf16 %v5131_v25, %v5123_v14  ;;  %v4205_v59 = vadd.f32 %v4204_v41, %v9766_v3  ;;  %v8124_v25 = vld [vmem:[#allocation7 + $0x434] sm:$0xf0]  ;;  %v6992_v41 = vor.u32 %v8188_v28, %v6991_v23 }
 0x4ed   :  { %v4109_v47 = vpop.f32.mrf.mxu0  ;;  %v6736_v4 = vor.u32 %v8124_v25, %v6735_v15 }
 0x4ee   :  { %10532 = vst [vmem:[#allocation80_spill] sm:$0xff] %v9828_v36  ;;  %v4110_v35 = vadd.f32 %v4109_v47, %v9736_v62  ;;  %v9832_v38 = vadd.f32 %v4253_v24, %v4205_v59  ;;  %4353 = vmatmul.bf16.gmra.mxu1 %v9085_v34  ;;  %v6224_v62 = vor.u32 %v7996_v31, %v6223_v22  ;;  %v6479_v47 = vld [vmem:[#allocation7 + $0x218] sm:$0xf] }
 0x4ef   :  { %4572 = vmatpush.bf16.msrb.mxu2 %v6736_v4  ;;  %4621 = vmatpush.bf16.msrb.mxu3 %v6992_v41 }
 0x4f0   :  { %v4159_v48 = vadd.f32 %v4158_v49, %v4110_v35  ;;  %4304 = vmatmul.bf16.gmra.mxu0 %v9083_v29  ;;  %4402 = vmatmul.bf16.gmra.mxu2 %v10522_v18  ;;  %v8060_v49 = vld [vmem:[#allocation7 + $0x234] sm:$0xf0] }
 0x4f1   :  { %4451 = vmatmul.bf16.gmra.mxu3 %v10523_v16  ;;  %4474 = vmatpush.bf16.msrb.mxu0 %v6224_v62  ;;  %v6480_v15 = vor.u32 %v8060_v49, %v6479_v47  ;;  %v8112_v47 = vld [vmem:[#allocation7 + $0x3dc] sm:$0xf] }
 0x4f2   :  { %v5139_v25 = vmax.f32 %v4159_v48, 0.0  ;;  %v10534_v48 = vld [vmem:[#allocation26_spill] sm:$0xff] }
 0x4f3   :  { %v4207_v17 = vpop.f32.mrf.mxu2  ;;  %v4160_v14 = vpop.f32.mrf.mxu1  ;;  %4523 = vmatpush.bf16.msrb.mxu1 %v6480_v15 }
 0x4f4   :  { %v4256_v20 = vpop.f32.mrf.mxu3  ;;  %v4208_v58 = vadd.f32 %v4207_v17, %v9766_v3 }
 0x4f5   :  { %v4111_v21 = vpop.f32.mrf.mxu0 }
 0x4f6   :  { %v4112_v24 = vadd.f32 %v4111_v21, %v9739_v19  ;;  %v9840_v59 = vadd.f32 %v4256_v20, %v4208_v58  ;;  %v10535_v58 = vld [vmem:[#allocation27_spill] sm:$0xff]  ;;  %v8048_v21 = vld [vmem:[#allocation7 + $0x1dc] sm:$0xf] }
 0x4f8   :  { %v4161_v35 = vadd.f32 %v4160_v14, %v4112_v24  ;;  %v7471_v14 = vld [vmem:[#allocation7 + $0x9d8] sm:$0xf] }
 0x4f9   :  { %v8308_v24 = vld [vmem:[#allocation7 + $0x9f4] sm:$0xf0] }
 0x4fa   :  { %v5147_v36 = vmax.f32 %v4161_v35, 0.0  ;;  %v7472_v49 = vor.u32 %v8308_v24, %v7471_v14  ;;  %v6705_v35 = vld [vmem:[#allocation7 + $0x3f8] sm:$0xf0] }
 0x4fb   :  { %v4209_v22 = vpop.f32.mrf.mxu2  ;;  %v4163_v28 = vpop.f32.mrf.mxu1 }
 0x4fc   :  { %v4258_v31 = vpop.f32.mrf.mxu3  ;;  %v9842_v17 = vpack.c.bf16 %v5147_v36, %v5139_v25  ;;  %v4210_v4 = vadd.f32 %v4209_v22, %v9766_v3  ;;  %v6449_v36 = vld [vmem:[#allocation7 + $0x1f8] sm:$0xf0]  ;;  %v6708_v25 = vor.u32 %v8112_v47, %v6705_v35  ;;  %4663 = vmatpush.bf16.msra.mxu0 %v7472_v49 }
 0x4fd   :  { %v4114_v23 = vpop.f32.mrf.mxu0  ;;  %v6452_v41 = vor.u32 %v8048_v21, %v6449_v36  ;;  %v7727_v21 = vld [vmem:[#allocation7 + $0xbd8] sm:$0xf] }
 0x4fe   :  { %10533 = vst [vmem:[#allocation81_spill] sm:$0xff] %v9842_v17  ;;  %v4115_v19 = vadd.f32 %v4114_v23, %v9746_v42  ;;  %v9846_v20 = vadd.f32 %v4258_v31, %v4210_v4  ;;  %4358 = vmatmul.bf16.gmra.mxu1 %v10445_v56  ;;  %4810 = vmatpush.bf16.msra.mxu3 %v6708_v25  ;;  %v8372_v36 = vld [vmem:[#allocation7 + $0xbf4] sm:$0xf0] }
 0x4ff   :  { %4761 = vmatpush.bf16.msra.mxu2 %v6452_v41  ;;  %v7728_v24 = vor.u32 %v8372_v36, %v7727_v21  ;;  %v10537_v25 = vld [vmem:[#allocation44_spill] sm:$0xff] }
 0x500   :  { %v4164_v62 = vadd.f32 %v4163_v28, %v4115_v19  ;;  %4309 = vmatmul.bf16.gmra.mxu0 %v10444_v60  ;;  %4407 = vmatmul.bf16.gmra.mxu2 %v10534_v48  ;;  %v8300_v36 = vld [vmem:[#allocation7 + $0x9b4] sm:$0xf0] }
 0x501   :  { %4456 = vmatmul.bf16.gmra.mxu3 %v10535_v58  ;;  %4712 = vmatpush.bf16.msra.mxu1 %v7728_v24  ;;  %v8364_v48 = vld [vmem:[#allocation7 + $0xbb4] sm:$0xf0] }
 0x502   :  { %v5155_v17 = vmax.f32 %v4164_v62, 0.0  ;;  %v10539_v62 = vld [vmem:[#allocation28_spill] sm:$0xff] }
 0x503   :  { %v4212_v42 = vpop.f32.mrf.mxu2  ;;  %v4165_v4 = vpop.f32.mrf.mxu1 }
 0x504   :  { %v4261_v15 = vpop.f32.mrf.mxu3  ;;  %v4213_v22 = vadd.f32 %v4212_v42, %v9766_v3 }
 0x505   :  { %v4116_v31 = vpop.f32.mrf.mxu0 }
 0x506   :  { %v4117_v23 = vadd.f32 %v4116_v31, %v9749_v43  ;;  %v9854_v28 = vadd.f32 %v4261_v15, %v4213_v22  ;;  %v10538_v22 = vld [vmem:[#allocation45_spill] sm:$0xff] }
 0x507   :  { %v10540_v31 = vld [vmem:[#allocation29_spill] sm:$0xff] }
 0x508   :  { %v4166_v19 = vadd.f32 %v4165_v4, %v4117_v23  ;;  %v8040_v4 = vld [vmem:[#allocation7 + $0x19c] sm:$0xf]  ;;  %v7439_v23 = vld [vmem:[#allocation7 + $0x998] sm:$0xf] }
 0x50a   :  { %v5163_v14 = vmax.f32 %v4166_v19, 0.0 }
 0x50b   :  { %v4214_v7 = vpop.f32.mrf.mxu2  ;;  %v4168_v49 = vpop.f32.mrf.mxu1 }
 0x50c   :  { %v4263_v58 = vpop.f32.mrf.mxu3  ;;  %v9856_v41 = vpack.c.bf16 %v5163_v14, %v5155_v17  ;;  %v4215_v47 = vadd.f32 %v4214_v7, %v9766_v3  ;;  %v6417_v17 = vld [vmem:[#allocation7 + $0x1b8] sm:$0xf0] }
 0x50d   :  { %v4119_v35 = vpop.f32.mrf.mxu0  ;;  %v6420_v21 = vor.u32 %v8040_v4, %v6417_v17  ;;  %v8104_v14 = vld [vmem:[#allocation7 + $0x39c] sm:$0xf] }
 0x50e   :  { %10536 = vst [vmem:[#allocation82_spill] sm:$0xff] %v9856_v41  ;;  %v4120_v43 = vadd.f32 %v4119_v35, %v9756_v51  ;;  %v9860_v42 = vadd.f32 %v4263_v58, %v4215_v47  ;;  %4363 = vmatmul.bf16.gmra.mxu1 %v10538_v22  ;;  %v6673_v51 = vld [vmem:[#allocation7 + $0x3b8] sm:$0xf0]  ;;  %v7440_v35 = vor.u32 %v8300_v36, %v7439_v23 }
 0x50f   :  { %4762 = vmatpush.bf16.msra.mxu2 %v6420_v21 }
 0x510   :  { %v4169_v15 = vadd.f32 %v4168_v49, %v4120_v43  ;;  %4314 = vmatmul.bf16.gmra.mxu0 %v10537_v25  ;;  %4412 = vmatmul.bf16.gmra.mxu2 %v10539_v62  ;;  %v6676_v49 = vor.u32 %v8104_v14, %v6673_v51  ;;  %v7695_v62 = vld [vmem:[#allocation7 + $0xb98] sm:$0xf]  ;;  %v10542_v51 = vld [vmem:[#allocation19_spill] sm:$0xff] }
 0x511   :  { %4461 = vmatmul.bf16.gmra.mxu3 %v10540_v31  ;;  %4664 = vmatpush.bf16.msra.mxu0 %v7440_v35  ;;  %v7696_v16 = vor.u32 %v8364_v48, %v7695_v62  ;;  %v6385_v48 = vld [vmem:[#allocation7 + $0x178] sm:$0xf0] }
 0x512   :  { %4811 = vmatpush.bf16.msra.mxu3 %v6676_v49  ;;  %v5171_v4 = vmax.f32 %v4169_v15, 0.0  ;;  %v7407_v15 = vld [vmem:[#allocation7 + $0x958] sm:$0xf] }
 0x513   :  { %v4217_v19 = vpop.f32.mrf.mxu2  ;;  %v4170_v47 = vpop.f32.mrf.mxu1  ;;  %4713 = vmatpush.bf16.msra.mxu1 %v7696_v16  ;;  %v8032_v16 = vld [vmem:[#allocation7 + $0x15c] sm:$0xf] }
 0x514   :  { %v4266_v7 = vpop.f32.mrf.mxu3  ;;  %v4218_v58 = vadd.f32 %v4217_v19, %v9766_v3  ;;  %v6388_v62 = vor.u32 %v8032_v16, %v6385_v48 }
 0x515   :  { %v4121_v24 = vpop.f32.mrf.mxu0 }
 0x516   :  { %v4122_v43 = vadd.f32 %v4121_v24, %v9759_v61  ;;  %v9868_v41 = vadd.f32 %v4266_v7, %v4218_v58  ;;  %v10543_v58 = vld [vmem:[#allocation20_spill] sm:$0xff]  ;;  %4763 = vmatpush.bf16.msra.mxu2 %v6388_v62 }
 0x518   :  { %v4171_v31 = vadd.f32 %v4170_v47, %v4122_v43 }
 0x51a   :  { %v5179_v17 = vmax.f32 %v4171_v31, 0.0  ;;  %v6641_v31 = vld [vmem:[#allocation7 + $0x378] sm:$0xf0] }
 0x51b   :  { %v4219_v18 = vpop.f32.mrf.mxu2  ;;  %v4329_v61 = vpop.f32.mrf.mxu1 }
 0x51c   :  { %v4268_v53 = vpop.f32.mrf.mxu3  ;;  %v9870_v19 = vpack.c.bf16 %v5179_v17, %v5171_v4  ;;  %v4220_v23 = vadd.f32 %v4219_v18, %v9766_v3  ;;  %v8292_v18 = vld [vmem:[#allocation7 + $0x974] sm:$0xf0]  ;;  %v8096_v3 = vld [vmem:[#allocation7 + $0x35c] sm:$0xf] }
 0x51d   :  { %v4280_v36 = vpop.f32.mrf.mxu0  ;;  %v7408_v24 = vor.u32 %v8292_v18, %v7407_v15 }
 0x51e   :  { %10541 = vst [vmem:[#allocation44_spill] sm:$0xff] %v9870_v19  ;;  %v4281_v7 = vadd.f32 %v4280_v36, %v9770_v50  ;;  %v9874_v21 = vadd.f32 %v4268_v53, %v4220_v23  ;;  %4524 = vmatmul.bf16.vlgmr.msrb.gmra.mxu1 %v10543_v58  ;;  %v6644_v50 = vor.u32 %v8096_v3, %v6641_v31  ;;  %v7663_v36 = vld [vmem:[#allocation7 + $0xb58] sm:$0xf] }
 0x51f   :  { %4665 = vmatpush.bf16.msra.mxu0 %v7408_v24  ;;  %v10545_v24 = vld [vmem:[#allocation24_spill] sm:$0xff] }
 0x520   :  { %v4330_v14 = vadd.f32 %v4329_v61, %v4281_v7  ;;  %4475 = vmatmul.bf16.vlgmr.msrb.gmra.mxu0 %v10542_v51  ;;  %4573 = vmatmul.bf16.vlgmr.msrb.gmra.mxu2 %v8863_v63  ;;  %v8356_v61 = vld [vmem:[#allocation7 + $0xb74] sm:$0xf0] }
 0x521   :  { %4622 = vmatmul.bf16.vlgmr.msrb.gmra.mxu3 %v8865_v0  ;;  %v7664_v7 = vor.u32 %v8356_v61, %v7663_v36  ;;  %v6609_v61 = vld [vmem:[#allocation7 + $0x338] sm:$0xf0] }
 0x522   :  { %4812 = vmatpush.bf16.msra.mxu3 %v6644_v50 }
 0x523   :  { %v4378_v53 = vpop.f32.mrf.mxu2  ;;  %v4331_v43 = vpop.f32.mrf.mxu1  ;;  %4714 = vmatpush.bf16.msra.mxu1 %v7664_v7 }
 0x524   :  { %v4427_v47 = vpop.f32.mrf.mxu3  ;;  %v4379_v35 = vadd.f32 %v4378_v53, %v4330_v14  ;;  %v10544_v53 = vld [vmem:[#allocation23_spill] sm:$0xff] }
 0x525   :  { %v4282_v49 = vpop.f32.mrf.mxu0 }
 0x526   :  { %v4283_v4 = vadd.f32 %v4282_v49, %v9776_v40  ;;  %v4428_v17 = vadd.f32 %v4427_v47, %v4379_v35  ;;  %v8024_v47 = vld [vmem:[#allocation7 + $0x11c] sm:$0xf] }
 0x527   :  { %v6353_v35 = vld [vmem:[#allocation7 + $0x138] sm:$0xf0] }
 0x528   :  { %v4332_v23 = vadd.f32 %v4331_v43, %v4283_v4  ;;  %v5060_v40 = vmax.f32 %v4428_v17, 0.0  ;;  %v6356_v49 = vor.u32 %v8024_v47, %v6353_v35  ;;  %v7375_v43 = vld [vmem:[#allocation7 + $0x918] sm:$0xf] }
 0x529   :  { %v8284_v4 = vld [vmem:[#allocation7 + $0x934] sm:$0xf0] }
 0x52a   :  { %4764 = vmatpush.bf16.msra.mxu2 %v6356_v49  ;;  %v7631_v47 = vld [vmem:[#allocation7 + $0xb18] sm:$0xf] }
 0x52b   :  { %v4380_v16 = vpop.f32.mrf.mxu2  ;;  %v4334_v3 = vpop.f32.mrf.mxu1  ;;  %v8348_v35 = vld [vmem:[#allocation7 + $0xb34] sm:$0xf0] }
 0x52c   :  { %v4429_v48 = vpop.f32.mrf.mxu3  ;;  %v4381_v15 = vadd.f32 %v4380_v16, %v4332_v23  ;;  %v8088_v23 = vld [vmem:[#allocation7 + $0x31c] sm:$0xf]  ;;  %v7632_v19 = vor.u32 %v8348_v35, %v7631_v47 }
 0x52d   :  { %v4285_v18 = vpop.f32.mrf.mxu0 }
 0x52e   :  { %v4286_v62 = vadd.f32 %v4285_v18, %v9784_v37  ;;  %v4430_v14 = vadd.f32 %v4429_v48, %v4381_v15  ;;  %4529 = vmatmul.bf16.gmra.mxu1 %v10545_v24  ;;  %v7376_v37 = vor.u32 %v8284_v4, %v7375_v43  ;;  %v6612_v48 = vor.u32 %v8088_v23, %v6609_v61  ;;  %v10547_v61 = vld [vmem:[#allocation30_spill] sm:$0xff] }
 0x52f   :  { %4715 = vmatpush.bf16.msra.mxu1 %v7632_v19 }
 0x530   :  { %v4335_v31 = vadd.f32 %v4334_v3, %v4286_v62  ;;  %4480 = vmatmul.bf16.gmra.mxu0 %v10544_v53  ;;  %v5068_v50 = vmax.f32 %v4430_v14, 0.0  ;;  %4578 = vmatmul.bf16.gmra.mxu2 %v8937_v9 }
 0x531   :  { %4627 = vmatmul.bf16.gmra.mxu3 %v8939_v12  ;;  %4666 = vmatpush.bf16.msra.mxu0 %v7376_v37  ;;  %v10548_v37 = vld [vmem:[#allocation31_spill] sm:$0xff] }
 0x532   :  { %v9886_v36 = vpack.c.bf16 %v5068_v50, %v5060_v40  ;;  %4813 = vmatpush.bf16.msra.mxu3 %v6612_v48  ;;  %v6321_v48 = vld [vmem:[#allocation7 + $0xf8] sm:$0xf0] }
 0x533   :  { %v4383_v7 = vpop.f32.mrf.mxu2  ;;  %v4336_v18 = vpop.f32.mrf.mxu1 }
 0x534   :  { %10546 = vst [vmem:[#allocation19_spill] sm:$0xff] %v9886_v36  ;;  %v4432_v16 = vpop.f32.mrf.mxu3  ;;  %v4384_v17 = vadd.f32 %v4383_v7, %v4335_v31 }
 0x535   :  { %v4287_v15 = vpop.f32.mrf.mxu0 }
 0x536   :  { %v4288_v3 = vadd.f32 %v4287_v15, %v9790_v8  ;;  %v4433_v62 = vadd.f32 %v4432_v16, %v4384_v17  ;;  %v8016_v16 = vld [vmem:[#allocation7 + $0xdc] sm:$0xf]  ;;  %v7343_v17 = vld [vmem:[#allocation7 + $0x8d8] sm:$0xf] }
 0x537   :  { %v6324_v19 = vor.u32 %v8016_v16, %v6321_v48  ;;  %v8276_v15 = vld [vmem:[#allocation7 + $0x8f4] sm:$0xf0] }
 0x538   :  { %v4337_v14 = vadd.f32 %v4336_v18, %v4288_v3  ;;  %v5076_v8 = vmax.f32 %v4433_v62, 0.0  ;;  %v8080_v18 = vld [vmem:[#allocation7 + $0x2dc] sm:$0xf]  ;;  %v7344_v3 = vor.u32 %v8276_v15, %v7343_v17  ;;  %v8340_v16 = vld [vmem:[#allocation7 + $0xaf4] sm:$0xf0] }
 0x539   :  { %4765 = vmatpush.bf16.msra.mxu2 %v6324_v19 }
 0x53a   :  { %4667 = vmatpush.bf16.msra.mxu0 %v7344_v3  ;;  %v10551_v3 = vld [vmem:[#allocation33_spill] sm:$0xff] }
 0x53b   :  { %v4385_v40 = vpop.f32.mrf.mxu2  ;;  %v4339_v36 = vpop.f32.mrf.mxu1 }
 0x53c   :  { %v4434_v50 = vpop.f32.mrf.mxu3  ;;  %v4386_v43 = vadd.f32 %v4385_v40, %v4337_v14 }
 0x53d   :  { %v4290_v4 = vpop.f32.mrf.mxu0 }
 0x53e   :  { %v4291_v49 = vadd.f32 %v4290_v4, %v9798_v57  ;;  %v4435_v31 = vadd.f32 %v4434_v50, %v4386_v43  ;;  %4534 = vmatmul.bf16.gmra.mxu1 %v10548_v37  ;;  %v6577_v57 = vld [vmem:[#allocation7 + $0x2f8] sm:$0xf0] }
 0x53f   :  { %v6580_v35 = vor.u32 %v8080_v18, %v6577_v57  ;;  %v10550_v57 = vld [vmem:[#allocation32_spill] sm:$0xff] }
 0x540   :  { %v4340_v23 = vadd.f32 %v4339_v36, %v4291_v49  ;;  %4485 = vmatmul.bf16.gmra.mxu0 %v10547_v61  ;;  %v5084_v7 = vmax.f32 %v4435_v31, 0.0  ;;  %4583 = vmatmul.bf16.gmra.mxu2 %v8999_v26  ;;  %v7599_v31 = vld [vmem:[#allocation7 + $0xad8] sm:$0xf] }
 0x541   :  { %4632 = vmatmul.bf16.gmra.mxu3 %v9001_v27  ;;  %v7600_v48 = vor.u32 %v8340_v16, %v7599_v31 }
 0x542   :  { %v9894_v14 = vpack.c.bf16 %v5084_v7, %v5076_v8  ;;  %4814 = vmatpush.bf16.msra.mxu3 %v6580_v35  ;;  %v6289_v35 = vld [vmem:[#allocation7 + $0xb8] sm:$0xf0] }
 0x543   :  { %v4388_v36 = vpop.f32.mrf.mxu2  ;;  %v4341_v50 = vpop.f32.mrf.mxu1  ;;  %4716 = vmatpush.bf16.msra.mxu1 %v7600_v48 }
 0x544   :  { %10549 = vst [vmem:[#allocation20_spill] sm:$0xff] %v9894_v14  ;;  %v4437_v47 = vpop.f32.mrf.mxu3  ;;  %v4389_v62 = vadd.f32 %v4388_v36, %v4340_v23 }
 0x545   :  { %v4292_v40 = vpop.f32.mrf.mxu0 }
 0x546   :  { %v4293_v43 = vadd.f32 %v4292_v40, %v9804_v46  ;;  %v4438_v4 = vadd.f32 %v4437_v47, %v4389_v62  ;;  %v8008_v47 = vld [vmem:[#allocation7 + $0x9c] sm:$0xf]  ;;  %v7311_v40 = vld [vmem:[#allocation7 + $0x898] sm:$0xf] }
 0x547   :  { %v6292_v62 = vor.u32 %v8008_v47, %v6289_v35  ;;  %v8332_v47 = vld [vmem:[#allocation7 + $0xab4] sm:$0xf0] }
 0x548   :  { %v4342_v49 = vadd.f32 %v4341_v50, %v4293_v43  ;;  %v5092_v46 = vmax.f32 %v4438_v4, 0.0  ;;  %v8268_v50 = vld [vmem:[#allocation7 + $0x8b4] sm:$0xf0]  ;;  %v8072_v43 = vld [vmem:[#allocation7 + $0x29c] sm:$0xf] }
 0x549   :  { %4766 = vmatpush.bf16.msra.mxu2 %v6292_v62 }
 0x54b   :  { %v4390_v17 = vpop.f32.mrf.mxu2  ;;  %v4344_v14 = vpop.f32.mrf.mxu1 }
 0x54c   :  { %v4439_v15 = vpop.f32.mrf.mxu3  ;;  %v4391_v8 = vadd.f32 %v4390_v17, %v4342_v49  ;;  %v7312_v49 = vor.u32 %v8268_v50, %v7311_v40 }
 0x54d   :  { %v4295_v7 = vpop.f32.mrf.mxu0 }
 0x54e   :  { %v4296_v19 = vadd.f32 %v4295_v7, %v9812_v52  ;;  %v4440_v23 = vadd.f32 %v4439_v15, %v4391_v8  ;;  %4539 = vmatmul.bf16.gmra.mxu1 %v10551_v3  ;;  %v6545_v52 = vld [vmem:[#allocation7 + $0x2b8] sm:$0xf0]  ;;  %4668 = vmatpush.bf16.msra.mxu0 %v7312_v49  ;;  %v10554_v49 = vld [vmem:[#allocation35_spill] sm:$0xff] }
 0x54f   :  { %v6548_v48 = vor.u32 %v8072_v43, %v6545_v52  ;;  %v10553_v52 = vld [vmem:[#allocation34_spill] sm:$0xff] }
 0x550   :  { %v4345_v18 = vadd.f32 %v4344_v14, %v4296_v19  ;;  %4490 = vmatmul.bf16.gmra.mxu0 %v10550_v57  ;;  %v5100_v36 = vmax.f32 %v4440_v23, 0.0  ;;  %4588 = vmatmul.bf16.gmra.mxu2 %v9027_v44  ;;  %v7567_v23 = vld [vmem:[#allocation7 + $0xa98] sm:$0xf] }
 0x551   :  { %4637 = vmatmul.bf16.gmra.mxu3 %v9029_v45  ;;  %v7568_v35 = vor.u32 %v8332_v47, %v7567_v23 }
 0x552   :  { %v9902_v31 = vpack.c.bf16 %v5100_v36, %v5092_v46  ;;  %4815 = vmatpush.bf16.msra.mxu3 %v6548_v48  ;;  %v6257_v48 = vld [vmem:[#allocation7 + $0x78] sm:$0xf0] }
 0x553   :  { %v4393_v14 = vpop.f32.mrf.mxu2  ;;  %v4346_v15 = vpop.f32.mrf.mxu1  ;;  %4717 = vmatpush.bf16.msra.mxu1 %v7568_v35 }
 0x554   :  { %10552 = vst [vmem:[#allocation23_spill] sm:$0xff] %v9902_v31  ;;  %v4442_v16 = vpop.f32.mrf.mxu3  ;;  %v4394_v4 = vadd.f32 %v4393_v14, %v4345_v18 }
 0x555   :  { %v4297_v17 = vpop.f32.mrf.mxu0 }
 0x556   :  { %v4298_v8 = vadd.f32 %v4297_v17, %v9818_v13  ;;  %v4443_v7 = vadd.f32 %v4442_v16, %v4394_v4  ;;  %v8000_v16 = vld [vmem:[#allocation7 + $0x5c] sm:$0xf]  ;;  %v7279_v17 = vld [vmem:[#allocation7 + $0x858] sm:$0xf] }
 0x557   :  { %v6260_v4 = vor.u32 %v8000_v16, %v6257_v48  ;;  %v8324_v16 = vld [vmem:[#allocation7 + $0xa74] sm:$0xf0] }
 0x558   :  { %v4347_v19 = vadd.f32 %v4346_v15, %v4298_v8  ;;  %v5108_v13 = vmax.f32 %v4443_v7, 0.0  ;;  %v8260_v15 = vld [vmem:[#allocation7 + $0x874] sm:$0xf0]  ;;  %v8064_v8 = vld [vmem:[#allocation7 + $0x25c] sm:$0xf] }
 0x559   :  { %4767 = vmatpush.bf16.msra.mxu2 %v6260_v4 }
 0x55b   :  { %v4395_v40 = vpop.f32.mrf.mxu2  ;;  %v4349_v31 = vpop.f32.mrf.mxu1 }
 0x55c   :  { %v4444_v50 = vpop.f32.mrf.mxu3  ;;  %v4396_v46 = vadd.f32 %v4395_v40, %v4347_v19  ;;  %v7280_v19 = vor.u32 %v8260_v15, %v7279_v17 }
 0x55d   :  { %v4300_v36 = vpop.f32.mrf.mxu0 }
 0x55e   :  { %v4301_v62 = vadd.f32 %v4300_v36, %v9826_v39  ;;  %v4445_v18 = vadd.f32 %v4444_v50, %v4396_v46  ;;  %4544 = vmatmul.bf16.gmra.mxu1 %v10554_v49  ;;  %v6513_v39 = vld [vmem:[#allocation7 + $0x278] sm:$0xf0]  ;;  %4669 = vmatpush.bf16.msra.mxu0 %v7280_v19 }
 0x55f   :  { %v6516_v35 = vor.u32 %v8064_v8, %v6513_v39  ;;  %v10556_v39 = vld [vmem:[#allocation36_spill] sm:$0xff]  ;;  %v10557_v19 = vld [vmem:[#allocation37_spill] sm:$0xff] }
 0x560   :  { %v4350_v43 = vadd.f32 %v4349_v31, %v4301_v62  ;;  %4495 = vmatmul.bf16.gmra.mxu0 %v10553_v52  ;;  %v5116_v14 = vmax.f32 %v4445_v18, 0.0  ;;  %4593 = vmatmul.bf16.gmra.mxu2 %v9055_v6  ;;  %v7535_v18 = vld [vmem:[#allocation7 + $0xa58] sm:$0xf] }
 0x561   :  { %4642 = vmatmul.bf16.gmra.mxu3 %v9057_v5  ;;  %v7536_v48 = vor.u32 %v8324_v16, %v7535_v18 }
 0x562   :  { %v9910_v23 = vpack.c.bf16 %v5116_v14, %v5108_v13  ;;  %4816 = vmatpush.bf16.msra.mxu3 %v6516_v35  ;;  %v6225_v35 = vld [vmem:[#allocation7 + $0x38] sm:$0xf0] }
 0x563   :  { %v4398_v31 = vpop.f32.mrf.mxu2  ;;  %v4351_v50 = vpop.f32.mrf.mxu1  ;;  %4718 = vmatpush.bf16.msra.mxu1 %v7536_v48 }
 0x564   :  { %10555 = vst [vmem:[#allocation24_spill] sm:$0xff] %v9910_v23  ;;  %v4447_v47 = vpop.f32.mrf.mxu3  ;;  %v4399_v7 = vadd.f32 %v4398_v31, %v4350_v43 }
 0x565   :  { %v4302_v40 = vpop.f32.mrf.mxu0 }
 0x566   :  { %v4303_v46 = vadd.f32 %v4302_v40, %v9832_v38  ;;  %v4448_v36 = vadd.f32 %v4447_v47, %v4399_v7  ;;  %v7992_v47 = vld [vmem:[#allocation7 + $0x1c] sm:$0xf]  ;;  %v7247_v40 = vld [vmem:[#allocation7 + $0x818] sm:$0xf] }
 0x567   :  { %v6228_v7 = vor.u32 %v7992_v47, %v6225_v35  ;;  %v8316_v47 = vld [vmem:[#allocation7 + $0xa34] sm:$0xf0] }
 0x568   :  { %v4352_v62 = vadd.f32 %v4351_v50, %v4303_v46  ;;  %v5124_v38 = vmax.f32 %v4448_v36, 0.0  ;;  %v8252_v50 = vld [vmem:[#allocation7 + $0x834] sm:$0xf0]  ;;  %v8056_v46 = vld [vmem:[#allocation7 + $0x21c] sm:$0xf] }
 0x569   :  { %4768 = vmatpush.bf16.msra.mxu2 %v6228_v7 }
 0x56b   :  { %v4400_v17 = vpop.f32.mrf.mxu2  ;;  %v4354_v23 = vpop.f32.mrf.mxu1 }
 0x56c   :  { %v4449_v15 = vpop.f32.mrf.mxu3  ;;  %v4401_v13 = vadd.f32 %v4400_v17, %v4352_v62  ;;  %v7248_v62 = vor.u32 %v8252_v50, %v7247_v40 }
 0x56d   :  { %v4305_v14 = vpop.f32.mrf.mxu0 }
 0x56e   :  { %v4306_v4 = vadd.f32 %v4305_v14, %v9840_v59  ;;  %v4450_v43 = vadd.f32 %v4449_v15, %v4401_v13  ;;  %4549 = vmatmul.bf16.gmra.mxu1 %v10557_v19  ;;  %v6481_v59 = vld [vmem:[#allocation7 + $0x238] sm:$0xf0]  ;;  %4670 = vmatpush.bf16.msra.mxu0 %v7248_v62  ;;  %v10560_v62 = vld [vmem:[#allocation39_spill] sm:$0xff] }
 0x56f   :  { %v6484_v48 = vor.u32 %v8056_v46, %v6481_v59  ;;  %v10559_v59 = vld [vmem:[#allocation38_spill] sm:$0xff] }
 0x570   :  { %v4355_v8 = vadd.f32 %v4354_v23, %v4306_v4  ;;  %4500 = vmatmul.bf16.gmra.mxu0 %v10556_v39  ;;  %v5132_v31 = vmax.f32 %v4450_v43, 0.0  ;;  %4598 = vmatmul.bf16.gmra.mxu2 %v9083_v29  ;;  %v7503_v43 = vld [vmem:[#allocation7 + $0xa18] sm:$0xf] }
 0x571   :  { %4647 = vmatmul.bf16.gmra.mxu3 %v9085_v34  ;;  %v7504_v35 = vor.u32 %v8316_v47, %v7503_v43 }
 0x572   :  { %v9918_v18 = vpack.c.bf16 %v5132_v31, %v5124_v38  ;;  %4817 = vmatpush.bf16.msra.mxu3 %v6484_v48  ;;  %v7473_v48 = vld [vmem:[#allocation7 + $0x9f8] sm:$0xf0] }
 0x573   :  { %v4403_v23 = vpop.f32.mrf.mxu2  ;;  %v4356_v15 = vpop.f32.mrf.mxu1  ;;  %4719 = vmatpush.bf16.msra.mxu1 %v7504_v35 }
 0x574   :  { %10558 = vst [vmem:[#allocation30_spill] sm:$0xff] %v9918_v18  ;;  %v4452_v16 = vpop.f32.mrf.mxu3  ;;  %v4404_v36 = vadd.f32 %v4403_v23, %v4355_v8 }
 0x575   :  { %v4307_v17 = vpop.f32.mrf.mxu0 }
 0x576   :  { %v4308_v13 = vadd.f32 %v4307_v17, %v9846_v20  ;;  %v4453_v14 = vadd.f32 %v4452_v16, %v4404_v36  ;;  %v8304_v16 = vld [vmem:[#allocation7 + $0x9dc] sm:$0xf] }
 0x577   :  { %v7476_v36 = vor.u32 %v8304_v16, %v7473_v48  ;;  %v8176_v17 = vld [vmem:[#allocation7 + $0x5dc] sm:$0xf] }
 0x578   :  { %v4357_v4 = vadd.f32 %v4356_v15, %v4308_v13  ;;  %v5140_v20 = vmax.f32 %v4453_v14, 0.0  ;;  %v6961_v15 = vld [vmem:[#allocation7 + $0x5f8] sm:$0xf0] }
 0x579   :  { %v8368_v13 = vld [vmem:[#allocation7 + $0xbdc] sm:$0xf]  ;;  %4957 = vmatpush.bf16.msrb.mxu2 %v7476_v36 }
 0x57b   :  { %v4405_v40 = vpop.f32.mrf.mxu2  ;;  %v4359_v18 = vpop.f32.mrf.mxu1 }
 0x57c   :  { %v4454_v50 = vpop.f32.mrf.mxu3  ;;  %v4406_v38 = vadd.f32 %v4405_v40, %v4357_v4  ;;  %v6964_v4 = vor.u32 %v8176_v17, %v6961_v15 }
 0x57d   :  { %v4310_v31 = vpop.f32.mrf.mxu0 }
 0x57e   :  { %v4311_v7 = vadd.f32 %v4310_v31, %v9854_v28  ;;  %v4455_v8 = vadd.f32 %v4454_v50, %v4406_v38  ;;  %4554 = vmatmul.bf16.gmra.mxu1 %v10560_v62  ;;  %v7729_v28 = vld [vmem:[#allocation7 + $0xbf8] sm:$0xf0]  ;;  %4859 = vmatpush.bf16.msrb.mxu0 %v6964_v4  ;;  %v10563_v4 = vld [vmem:[#allocation43_spill] sm:$0xff] }
 0x57f   :  { %v7732_v35 = vor.u32 %v8368_v13, %v7729_v28  ;;  %v10562_v28 = vld [vmem:[#allocation42_spill] sm:$0xff] }
 0x580   :  { %v4360_v46 = vadd.f32 %v4359_v18, %v4311_v7  ;;  %4505 = vmatmul.bf16.gmra.mxu0 %v10559_v59  ;;  %v5148_v23 = vmax.f32 %v4455_v8, 0.0  ;;  %4603 = vmatmul.bf16.gmra.mxu2 %v10444_v60  ;;  %v8240_v7 = vld [vmem:[#allocation7 + $0x7dc] sm:$0xf] }
 0x581   :  { %4652 = vmatmul.bf16.gmra.mxu3 %v10445_v56  ;;  %v7217_v8 = vld [vmem:[#allocation7 + $0x7f8] sm:$0xf0] }
 0x582   :  { %v9926_v43 = vpack.c.bf16 %v5148_v23, %v5140_v20  ;;  %5006 = vmatpush.bf16.msrb.mxu3 %v7732_v35  ;;  %v7220_v48 = vor.u32 %v8240_v7, %v7217_v8  ;;  %v7441_v35 = vld [vmem:[#allocation7 + $0x9b8] sm:$0xf0] }
 0x583   :  { %v4408_v18 = vpop.f32.mrf.mxu2  ;;  %v4361_v50 = vpop.f32.mrf.mxu1 }
 0x584   :  { %10561 = vst [vmem:[#allocation31_spill] sm:$0xff] %v9926_v43  ;;  %v4457_v47 = vpop.f32.mrf.mxu3  ;;  %v4409_v14 = vadd.f32 %v4408_v18, %v4360_v46  ;;  %4908 = vmatpush.bf16.msrb.mxu1 %v7220_v48 }
 0x585   :  { %v4312_v40 = vpop.f32.mrf.mxu0 }
 0x586   :  { %v4313_v38 = vadd.f32 %v4312_v40, %v9860_v42  ;;  %v4458_v31 = vadd.f32 %v4457_v47, %v4409_v14  ;;  %v8296_v47 = vld [vmem:[#allocation7 + $0x99c] sm:$0xf] }
 0x587   :  { %v7444_v14 = vor.u32 %v8296_v47, %v7441_v35  ;;  %v8168_v40 = vld [vmem:[#allocation7 + $0x59c] sm:$0xf] }
 0x588   :  { %v4362_v16 = vadd.f32 %v4361_v50, %v4313_v38  ;;  %v5156_v42 = vmax.f32 %v4458_v31, 0.0  ;;  %v6929_v50 = vld [vmem:[#allocation7 + $0x5b8] sm:$0xf0] }
 0x589   :  { %v8360_v38 = vld [vmem:[#allocation7 + $0xb9c] sm:$0xf]  ;;  %v6932_v7 = vor.u32 %v8168_v40, %v6929_v50  ;;  %4958 = vmatpush.bf16.msrb.mxu2 %v7444_v14  ;;  %v9937_v40 = vld [vmem:[#allocation8] sm:$0xff] }
 0x58b   :  { %v4410_v17 = vpop.f32.mrf.mxu2  ;;  %v4364_v43 = vpop.f32.mrf.mxu1  ;;  %4860 = vmatpush.bf16.msrb.mxu0 %v6932_v7 }
 0x58c   :  { %v4459_v20 = vpop.f32.mrf.mxu3  ;;  %v4411_v23 = vadd.f32 %v4410_v17, %v4362_v16 }
 0x58d   :  { %v4315_v15 = vpop.f32.mrf.mxu0 }
 0x58e   :  { %v4316_v36 = vadd.f32 %v4315_v15, %v9868_v41  ;;  %v4460_v46 = vadd.f32 %v4459_v20, %v4411_v23  ;;  %4559 = vmatmul.bf16.gmra.mxu1 %v10563_v4  ;;  %v7697_v41 = vld [vmem:[#allocation7 + $0xbb8] sm:$0xf0] }
 0x58f   :  { %v7700_v48 = vor.u32 %v8360_v38, %v7697_v41 }
 0x590   :  { %v4365_v13 = vadd.f32 %v4364_v43, %v4316_v36  ;;  %4510 = vmatmul.bf16.gmra.mxu0 %v10562_v28  ;;  %v5164_v18 = vmax.f32 %v4460_v46, 0.0  ;;  %4608 = vmatmul.bf16.gmra.mxu2 %v10537_v25  ;;  %v8232_v36 = vld [vmem:[#allocation7 + $0x79c] sm:$0xf] }
 0x591   :  { %4657 = vmatmul.bf16.gmra.mxu3 %v10538_v22  ;;  %v7185_v46 = vld [vmem:[#allocation7 + $0x7b8] sm:$0xf0] }
 0x592   :  { %v9934_v8 = vpack.c.bf16 %v5164_v18, %v5156_v42  ;;  %5007 = vmatpush.bf16.msrb.mxu3 %v7700_v48  ;;  %v7188_v35 = vor.u32 %v8232_v36, %v7185_v46  ;;  %v9940_v42 = vperm.slane %v9937_v40, 6  ;;  %v8288_v48 = vld [vmem:[#allocation7 + $0x95c] sm:$0xf] }
 0x593   :  { %v4413_v43 = vpop.f32.mrf.mxu2  ;;  %v4366_v20 = vpop.f32.mrf.mxu1  ;;  %v8352_v36 = vld [vmem:[#allocation7 + $0xb5c] sm:$0xf] }
 0x594   :  { %10564 = vst [vmem:[#allocation32_spill] sm:$0xff] %v9934_v8  ;;  %v4462_v16 = vpop.f32.mrf.mxu3  ;;  %v4414_v31 = vadd.f32 %v4413_v43, %v4365_v13  ;;  %4909 = vmatpush.bf16.msrb.mxu1 %v7188_v35 }
 0x595   :  { %v4317_v17 = vpop.f32.mrf.mxu0 }
 0x596   :  { %v4318_v23 = vadd.f32 %v4317_v17, %v9874_v21  ;;  %v4463_v15 = vadd.f32 %v4462_v16, %v4414_v31  ;;  %v7409_v31 = vld [vmem:[#allocation7 + $0x978] sm:$0xf0] }
 0x597   :  { %v7412_v17 = vor.u32 %v8288_v48, %v7409_v31 }
 0x598   :  { %v4367_v47 = vadd.f32 %v4366_v20, %v4318_v23  ;;  %v5172_v43 = vmax.f32 %v4463_v15, 0.0  ;;  %v8160_v20 = vld [vmem:[#allocation7 + $0x55c] sm:$0xf] }
 0x599   :  { %v6897_v23 = vld [vmem:[#allocation7 + $0x578] sm:$0xf0]  ;;  %4959 = vmatpush.bf16.msrb.mxu2 %v7412_v17 }
 0x59a   :  { %v6900_v46 = vor.u32 %v8160_v20, %v6897_v23 }
 0x59b   :  { %v4415_v18 = vpop.f32.mrf.mxu2  ;;  %v4525_v38 = vpop.f32.mrf.mxu1 }
 0x59c   :  { %v4464_v14 = vpop.f32.mrf.mxu3  ;;  %v4416_v13 = vadd.f32 %v4415_v18, %v4367_v47  ;;  %v7665_v47 = vld [vmem:[#allocation7 + $0xb78] sm:$0xf0]  ;;  %4861 = vmatpush.bf16.msrb.mxu0 %v6900_v46 }
 0x59d   :  { %v4476_v50 = vpop.f32.mrf.mxu0 }
 0x59e   :  { %v4477_v7 = vadd.f32 %v4476_v50, %v9940_v42  ;;  %v4465_v21 = vadd.f32 %v4464_v14, %v4416_v13  ;;  %4720 = vmatmul.bf16.vlgmr.msra.gmra.mxu1 %v8869_v2  ;;  %v7668_v13 = vor.u32 %v8352_v36, %v7665_v47  ;;  %v8280_v47 = vld [vmem:[#allocation7 + $0x91c] sm:$0xf] }
 0x5a0   :  { %v4526_v41 = vadd.f32 %v4525_v38, %v4477_v7  ;;  %4671 = vmatmul.bf16.vlgmr.msra.gmra.mxu0 %v8867_v1  ;;  %v5180_v16 = vmax.f32 %v4465_v21, 0.0  ;;  %4769 = vmatmul.bf16.vlgmr.msra.gmra.mxu2 %v10542_v51  ;;  %v8224_v7 = vld [vmem:[#allocation7 + $0x75c] sm:$0xf] }
 0x5a1   :  { %4818 = vmatmul.bf16.vlgmr.msra.gmra.mxu3 %v10543_v58  ;;  %v7153_v21 = vld [vmem:[#allocation7 + $0x778] sm:$0xf0] }
 0x5a2   :  { %v9947_v35 = vpack.c.bf16 %v5180_v16, %v5172_v43  ;;  %5008 = vmatpush.bf16.msrb.mxu3 %v7668_v13  ;;  %v7156_v31 = vor.u32 %v8224_v7, %v7153_v21 }
 0x5a3   :  { %v4574_v18 = vpop.f32.mrf.mxu2  ;;  %v4527_v38 = vpop.f32.mrf.mxu1 }
 0x5a4   :  { %10565 = vst [vmem:[#allocation33_spill] sm:$0xff] %v9947_v35  ;;  %v4623_v14 = vpop.f32.mrf.mxu3  ;;  %v4575_v15 = vadd.f32 %v4574_v18, %v4526_v41  ;;  %4910 = vmatpush.bf16.msrb.mxu1 %v7156_v31  ;;  %v7377_v18 = vld [vmem:[#allocation7 + $0x938] sm:$0xf0] }
 0x5a5   :  { %v4478_v50 = vpop.f32.mrf.mxu0  ;;  %v7380_v13 = vor.u32 %v8280_v47, %v7377_v18  ;;  %v6993_v35 = vld [vmem:[#allocation7 + $0x638] sm:$0xf0] }
 0x5a6   :  { %v4479_v51 = vadd.f32 %v4478_v50, %v9940_v42  ;;  %v9950_v58 = vadd.f32 %v4623_v14, %v4575_v15  ;;  %v8152_v14 = vld [vmem:[#allocation7 + $0x51c] sm:$0xf] }
 0x5a7   :  { %v6865_v15 = vld [vmem:[#allocation7 + $0x538] sm:$0xf0]  ;;  %4960 = vmatpush.bf16.msrb.mxu2 %v7380_v13 }
 0x5a8   :  { %v4528_v48 = vadd.f32 %v4527_v38, %v4479_v51  ;;  %v8344_v50 = vld [vmem:[#allocation7 + $0xb1c] sm:$0xf]  ;;  %v6868_v51 = vor.u32 %v8152_v14, %v6865_v15 }
 0x5a9   :  { %v7633_v38 = vld [vmem:[#allocation7 + $0xb38] sm:$0xf0] }
 0x5aa   :  { %v7636_v7 = vor.u32 %v8344_v50, %v7633_v38  ;;  %4862 = vmatpush.bf16.msrb.mxu0 %v6868_v51  ;;  %v8272_v51 = vld [vmem:[#allocation7 + $0x8dc] sm:$0xf] }
 0x5ab   :  { %v4576_v43 = vpop.f32.mrf.mxu2  ;;  %v4530_v17 = vpop.f32.mrf.mxu1 }
 0x5ac   :  { %v4625_v16 = vpop.f32.mrf.mxu3  ;;  %v4577_v20 = vadd.f32 %v4576_v43, %v4528_v48  ;;  %5009 = vmatpush.bf16.msrb.mxu3 %v7636_v7  ;;  %v7345_v7 = vld [vmem:[#allocation7 + $0x8f8] sm:$0xf0] }
 0x5ad   :  { %v4481_v23 = vpop.f32.mrf.mxu0 }
 0x5ae   :  { %v4482_v41 = vadd.f32 %v4481_v23, %v9940_v42  ;;  %v9953_v36 = vadd.f32 %v4625_v16, %v4577_v20  ;;  %4725 = vmatmul.bf16.gmra.mxu1 %v8851_v55  ;;  %v8216_v20 = vld [vmem:[#allocation7 + $0x71c] sm:$0xf] }
 0x5af   :  { %v7121_v23 = vld [vmem:[#allocation7 + $0x738] sm:$0xf0] }
 0x5b0   :  { %v4531_v46 = vadd.f32 %v4530_v17, %v4482_v41  ;;  %4676 = vmatmul.bf16.gmra.mxu0 %v8849_v54  ;;  %4774 = vmatmul.bf16.gmra.mxu2 %v10544_v53  ;;  %v7124_v41 = vor.u32 %v8216_v20, %v7121_v23 }
 0x5b1   :  { %4823 = vmatmul.bf16.gmra.mxu3 %v10545_v24 }
 0x5b2   :  { %4911 = vmatpush.bf16.msrb.mxu1 %v7124_v41 }
 0x5b3   :  { %v4579_v21 = vpop.f32.mrf.mxu2  ;;  %v4532_v16 = vpop.f32.mrf.mxu1 }
 0x5b4   :  { %v4628_v48 = vpop.f32.mrf.mxu3  ;;  %v4580_v31 = vadd.f32 %v4579_v21, %v4531_v46  ;;  %v8144_v21 = vld [vmem:[#allocation7 + $0x4dc] sm:$0xf] }
 0x5b5   :  { %v4483_v43 = vpop.f32.mrf.mxu0 }
 0x5b6   :  { %v4484_v53 = vadd.f32 %v4483_v43, %v9940_v42  ;;  %v9960_v24 = vadd.f32 %v4628_v48, %v4580_v31  ;;  %v7348_v48 = vor.u32 %v8272_v51, %v7345_v7  ;;  %v6833_v31 = vld [vmem:[#allocation7 + $0x4f8] sm:$0xf0] }
 0x5b7   :  { %v8336_v43 = vld [vmem:[#allocation7 + $0xadc] sm:$0xf] }
 0x5b8   :  { %v4533_v17 = vadd.f32 %v4532_v16, %v4484_v53  ;;  %v7601_v16 = vld [vmem:[#allocation7 + $0xaf8] sm:$0xf0]  ;;  %v6836_v53 = vor.u32 %v8144_v21, %v6833_v31  ;;  %4961 = vmatpush.bf16.msrb.mxu2 %v7348_v48 }
 0x5b9   :  { %v7604_v20 = vor.u32 %v8336_v43, %v7601_v16 }
 0x5ba   :  { %4863 = vmatpush.bf16.msrb.mxu0 %v6836_v53  ;;  %v8264_v53 = vld [vmem:[#allocation7 + $0x89c] sm:$0xf] }
 0x5bb   :  { %v4581_v47 = vpop.f32.mrf.mxu2  ;;  %v4535_v50 = vpop.f32.mrf.mxu1  ;;  %5010 = vmatpush.bf16.msrb.mxu3 %v7604_v20  ;;  %v7313_v20 = vld [vmem:[#allocation7 + $0x8b8] sm:$0xf0] }
 0x5bc   :  { %v4630_v18 = vpop.f32.mrf.mxu3  ;;  %v4582_v14 = vadd.f32 %v4581_v47, %v4533_v17 }
 0x5bd   :  { %v4486_v15 = vpop.f32.mrf.mxu0 }
 0x5be   :  { %v4487_v46 = vadd.f32 %v4486_v15, %v9940_v42  ;;  %v9963_v13 = vadd.f32 %v4630_v18, %v4582_v14  ;;  %4730 = vmatmul.bf16.gmra.mxu1 %v8795_v11  ;;  %v8208_v14 = vld [vmem:[#allocation7 + $0x6dc] sm:$0xf] }
 0x5bf   :  { %v7089_v15 = vld [vmem:[#allocation7 + $0x6f8] sm:$0xf0] }
 0x5c0   :  { %v4536_v38 = vadd.f32 %v4535_v50, %v4487_v46  ;;  %4681 = vmatmul.bf16.gmra.mxu0 %v8793_v10  ;;  %4779 = vmatmul.bf16.gmra.mxu2 %v10547_v61  ;;  %v7092_v46 = vor.u32 %v8208_v14, %v7089_v15 }
 0x5c1   :  { %4828 = vmatmul.bf16.gmra.mxu3 %v10548_v37 }
 0x5c2   :  { %4912 = vmatpush.bf16.msrb.mxu1 %v7092_v46 }
 0x5c3   :  { %v4584_v23 = vpop.f32.mrf.mxu2  ;;  %v4537_v18 = vpop.f32.mrf.mxu1 }
 0x5c4   :  { %v4633_v17 = vpop.f32.mrf.mxu3  ;;  %v4585_v41 = vadd.f32 %v4584_v23, %v4536_v38  ;;  %v8136_v23 = vld [vmem:[#allocation7 + $0x49c] sm:$0xf] }
 0x5c5   :  { %v4488_v47 = vpop.f32.mrf.mxu0 }
 0x5c6   :  { %v4489_v61 = vadd.f32 %v4488_v47, %v9940_v42  ;;  %v9970_v37 = vadd.f32 %v4633_v17, %v4585_v41  ;;  %v7316_v17 = vor.u32 %v8264_v53, %v7313_v20  ;;  %v6801_v41 = vld [vmem:[#allocation7 + $0x4b8] sm:$0xf0] }
 0x5c7   :  { %v8328_v47 = vld [vmem:[#allocation7 + $0xa9c] sm:$0xf] }
 0x5c8   :  { %v4538_v50 = vadd.f32 %v4537_v18, %v4489_v61  ;;  %v7569_v18 = vld [vmem:[#allocation7 + $0xab8] sm:$0xf0]  ;;  %v6804_v61 = vor.u32 %v8136_v23, %v6801_v41  ;;  %4962 = vmatpush.bf16.msrb.mxu2 %v7316_v17 }
 0x5c9   :  { %v7572_v14 = vor.u32 %v8328_v47, %v7569_v18 }
 0x5ca   :  { %4864 = vmatpush.bf16.msrb.mxu0 %v6804_v61  ;;  %v10566_v61 = vld [vmem:[#allocation25_spill] sm:$0xff] }
 0x5cb   :  { %v4586_v51 = vpop.f32.mrf.mxu2  ;;  %v4540_v43 = vpop.f32.mrf.mxu1  ;;  %5011 = vmatpush.bf16.msrb.mxu3 %v7572_v14  ;;  %v8256_v14 = vld [vmem:[#allocation7 + $0x85c] sm:$0xf] }
 0x5cc   :  { %v4635_v7 = vpop.f32.mrf.mxu3  ;;  %v4587_v21 = vadd.f32 %v4586_v51, %v4538_v50 }
 0x5cd   :  { %v4491_v31 = vpop.f32.mrf.mxu0 }
 0x5ce   :  { %v4492_v38 = vadd.f32 %v4491_v31, %v9940_v42  ;;  %v9973_v48 = vadd.f32 %v4635_v7, %v4587_v21  ;;  %4735 = vmatmul.bf16.gmra.mxu1 %v8897_v33  ;;  %v8200_v21 = vld [vmem:[#allocation7 + $0x69c] sm:$0xf] }
 0x5cf   :  { %v7057_v31 = vld [vmem:[#allocation7 + $0x6b8] sm:$0xf0] }
 0x5d0   :  { %v4541_v16 = vadd.f32 %v4540_v43, %v4492_v38  ;;  %4686 = vmatmul.bf16.gmra.mxu0 %v8895_v32  ;;  %4784 = vmatmul.bf16.gmra.mxu2 %v10550_v57  ;;  %v7060_v38 = vor.u32 %v8200_v21, %v7057_v31 }
 0x5d1   :  { %4833 = vmatmul.bf16.gmra.mxu3 %v10551_v3 }
 0x5d2   :  { %4913 = vmatpush.bf16.msrb.mxu1 %v7060_v38 }
 0x5d3   :  { %v4589_v15 = vpop.f32.mrf.mxu2  ;;  %v4542_v7 = vpop.f32.mrf.mxu1 }
 0x5d4   :  { %v4638_v50 = vpop.f32.mrf.mxu3  ;;  %v4590_v46 = vadd.f32 %v4589_v15, %v4541_v16  ;;  %v7281_v15 = vld [vmem:[#allocation7 + $0x878] sm:$0xf0] }
 0x5d5   :  { %v4493_v51 = vpop.f32.mrf.mxu0 }
 0x5d6   :  { %v4494_v57 = vadd.f32 %v4493_v51, %v9940_v42  ;;  %v9980_v3 = vadd.f32 %v4638_v50, %v4590_v46  ;;  %v8128_v50 = vld [vmem:[#allocation7 + $0x45c] sm:$0xf]  ;;  %v7284_v46 = vor.u32 %v8256_v14, %v7281_v15 }
 0x5d7   :  { %v6769_v51 = vld [vmem:[#allocation7 + $0x478] sm:$0xf0] }
 0x5d8   :  { %v4543_v43 = vadd.f32 %v4542_v7, %v4494_v57  ;;  %v8320_v7 = vld [vmem:[#allocation7 + $0xa5c] sm:$0xf]  ;;  %v6772_v21 = vor.u32 %v8128_v50, %v6769_v51  ;;  %4963 = vmatpush.bf16.msrb.mxu2 %v7284_v46 }
 0x5d9   :  { %v7537_v57 = vld [vmem:[#allocation7 + $0xa78] sm:$0xf0] }
 0x5da   :  { %v7540_v31 = vor.u32 %v8320_v7, %v7537_v57  ;;  %4865 = vmatpush.bf16.msrb.mxu0 %v6772_v21 }
 0x5db   :  { %v4591_v53 = vpop.f32.mrf.mxu2  ;;  %v4545_v47 = vpop.f32.mrf.mxu1 }
 0x5dc   :  { %v4640_v20 = vpop.f32.mrf.mxu3  ;;  %v4592_v23 = vadd.f32 %v4591_v53, %v4543_v43  ;;  %5012 = vmatpush.bf16.msrb.mxu3 %v7540_v31  ;;  %v10567_v31 = vld [vmem:[#allocation21_spill] sm:$0xff] }
 0x5dd   :  { %v4496_v41 = vpop.f32.mrf.mxu0 }
 0x5de   :  { %v4497_v16 = vadd.f32 %v4496_v41, %v9940_v42  ;;  %v9983_v17 = vadd.f32 %v4640_v20, %v4592_v23  ;;  %4740 = vmatmul.bf16.gmra.mxu1 %v10566_v61  ;;  %v8192_v41 = vld [vmem:[#allocation7 + $0x65c] sm:$0xf] }
 0x5e0   :  { %v4546_v18 = vadd.f32 %v4545_v47, %v4497_v16  ;;  %4691 = vmatmul.bf16.gmra.mxu0 %v8942_v30  ;;  %4789 = vmatmul.bf16.gmra.mxu2 %v10553_v52  ;;  %v7025_v47 = vld [vmem:[#allocation7 + $0x678] sm:$0xf0] }
 0x5e1   :  { %4838 = vmatmul.bf16.gmra.mxu3 %v10554_v49  ;;  %v7028_v14 = vor.u32 %v8192_v41, %v7025_v47  ;;  %v8312_v41 = vld [vmem:[#allocation7 + $0xa1c] sm:$0xf] }
 0x5e2   :  { %v7505_v47 = vld [vmem:[#allocation7 + $0xa38] sm:$0xf0] }
 0x5e3   :  { %v4594_v43 = vpop.f32.mrf.mxu2  ;;  %v4547_v23 = vpop.f32.mrf.mxu1  ;;  %4914 = vmatpush.bf16.msrb.mxu1 %v7028_v14  ;;  %v7508_v14 = vor.u32 %v8312_v41, %v7505_v47 }
 0x5e4   :  { %v4643_v38 = vpop.f32.mrf.mxu3  ;;  %v4595_v53 = vadd.f32 %v4594_v43, %v4546_v18  ;;  %v10568_v43 = vld [vmem:[#allocation22_spill] sm:$0xff] }
 0x5e5   :  { %v4498_v20 = vpop.f32.mrf.mxu0  ;;  %5013 = vmatpush.bf16.msrb.mxu3 %v7508_v14  ;;  %v10569_v14 = vld [vmem:[#allocation26_spill] sm:$0xff] }
 0x5e6   :  { %v4499_v52 = vadd.f32 %v4498_v20, %v9940_v42  ;;  %v9990_v49 = vadd.f32 %v4643_v38, %v4595_v53  ;;  %v8248_v38 = vld [vmem:[#allocation7 + $0x81c] sm:$0xf] }
 0x5e7   :  { %v7249_v53 = vld [vmem:[#allocation7 + $0x838] sm:$0xf0] }
 0x5e8   :  { %v4548_v16 = vadd.f32 %v4547_v23, %v4499_v52  ;;  %v8120_v20 = vld [vmem:[#allocation7 + $0x41c] sm:$0xf]  ;;  %v7252_v23 = vor.u32 %v8248_v38, %v7249_v53 }
 0x5e9   :  { %v6737_v52 = vld [vmem:[#allocation7 + $0x438] sm:$0xf0] }
 0x5ea   :  { %4964 = vmatpush.bf16.msrb.mxu2 %v7252_v23 }
 0x5eb   :  { %v4596_v15 = vpop.f32.mrf.mxu2  ;;  %v4550_v57 = vpop.f32.mrf.mxu1 }
 0x5ec   :  { %v4645_v50 = vpop.f32.mrf.mxu3  ;;  %v4597_v51 = vadd.f32 %v4596_v15, %v4548_v16  ;;  %v6740_v16 = vor.u32 %v8120_v20, %v6737_v52 }
 0x5ed   :  { %v4501_v7 = vpop.f32.mrf.mxu0 }
 0x5ee   :  { %v4502_v18 = vadd.f32 %v4501_v7, %v9940_v42  ;;  %v9993_v46 = vadd.f32 %v4645_v50, %v4597_v51  ;;  %4745 = vmatmul.bf16.gmra.mxu1 %v10568_v43  ;;  %4866 = vmatpush.bf16.msrb.mxu0 %v6740_v16 }
 0x5f0   :  { %v4551_v21 = vadd.f32 %v4550_v57, %v4502_v18  ;;  %4696 = vmatmul.bf16.gmra.mxu0 %v10567_v31  ;;  %4794 = vmatmul.bf16.gmra.mxu2 %v10556_v39  ;;  %v8184_v18 = vld [vmem:[#allocation7 + $0x61c] sm:$0xf] }
 0x5f1   :  { %4843 = vmatmul.bf16.gmra.mxu3 %v10557_v19  ;;  %v6996_v53 = vor.u32 %v8184_v18, %v6993_v35  ;;  %v8396_v35 = vld [vmem:[#allocation10 + $0xb8] sm:$0xff] }
 0x5f2   :  { %5861 = vmatpush.bf16.msra.mxu2 %v8396_v35 }
 0x5f3   :  { %v4599_v15 = vpop.f32.mrf.mxu2  ;;  %v4552_v57 = vpop.f32.mrf.mxu1  ;;  %4915 = vmatpush.bf16.msrb.mxu1 %v6996_v53 }
 0x5f4   :  { %v4648_v50 = vpop.f32.mrf.mxu3  ;;  %v4600_v51 = vadd.f32 %v4599_v15, %v4551_v21  ;;  %v10570_v15 = vld [vmem:[#allocation27_spill] sm:$0xff] }
 0x5f5   :  { %v4503_v7 = vpop.f32.mrf.mxu0 }
 0x5f6   :  { %v4504_v39 = vadd.f32 %v4503_v7, %v9940_v42  ;;  %v10000_v19 = vadd.f32 %v4648_v50, %v4600_v51  ;;  %v8380_v50 = vld [vmem:[#allocation10 + $0x38] sm:$0xff] }
 0x5f7   :  { %v8404_v51 = vld [vmem:[#allocation10 + $0xf8] sm:$0xff]  ;;  %5763 = vmatpush.bf16.msra.mxu0 %v8380_v50  ;;  %v10571_v50 = vld [vmem:[#allocation28_spill] sm:$0xff] }
 0x5f8   :  { %v4553_v38 = vadd.f32 %v4552_v57, %v4504_v39  ;;  %5910 = vmatpush.bf16.msra.mxu3 %v8404_v51  ;;  %v10572_v51 = vld [vmem:[#allocation29_spill] sm:$0xff] }
 0x5fb   :  { %v4601_v8 = vpop.f32.mrf.mxu2  ;;  %v4555_v47 = vpop.f32.mrf.mxu1 }
 0x5fc   :  { %v4650_v20 = vpop.f32.mrf.mxu3  ;;  %v4602_v52 = vadd.f32 %v4601_v8, %v4553_v38 }
 0x5fd   :  { %v4506_v41 = vpop.f32.mrf.mxu0 }
 0x5fe   :  { %v4507_v21 = vadd.f32 %v4506_v41, %v9940_v42  ;;  %v10003_v23 = vadd.f32 %v4650_v20, %v4602_v52  ;;  %4750 = vmatmul.bf16.gmra.mxu1 %v10570_v15  ;;  %v8388_v20 = vld [vmem:[#allocation10 + $0x78] sm:$0xff] }
 0x5ff   :  { %5812 = vmatpush.bf16.msra.mxu1 %v8388_v20 }
 0x600   :  { %v4556_v16 = vadd.f32 %v4555_v47, %v4507_v21  ;;  %4701 = vmatmul.bf16.gmra.mxu0 %v10569_v14  ;;  %4799 = vmatmul.bf16.gmra.mxu2 %v10559_v59 }
 0x601   :  { %4848 = vmatmul.bf16.gmra.mxu3 %v10560_v62 }
 0x603   :  { %v4604_v7 = vpop.f32.mrf.mxu2  ;;  %v4557_v18 = vpop.f32.mrf.mxu1 }
 0x604   :  { %v4653_v8 = vpop.f32.mrf.mxu3  ;;  %v4605_v57 = vadd.f32 %v4604_v7, %v4556_v16  ;;  %v8395_v7 = vld [vmem:[#allocation10 + $0xb0] sm:$0xff] }
 0x605   :  { %v4508_v39 = vpop.f32.mrf.mxu0  ;;  %5862 = vmatpush.bf16.msra.mxu2 %v8395_v7 }
 0x606   :  { %v4509_v38 = vadd.f32 %v4508_v39, %v9940_v42  ;;  %v10010_v53 = vadd.f32 %v4653_v8, %v4605_v57  ;;  %v8379_v8 = vld [vmem:[#allocation10 + $0x30] sm:$0xff] }
 0x607   :  { %v8403_v57 = vld [vmem:[#allocation10 + $0xf0] sm:$0xff]  ;;  %5764 = vmatpush.bf16.msra.mxu0 %v8379_v8  ;;  %v8394_v8 = vld [vmem:[#allocation10 + $0xa8] sm:$0xff] }
 0x608   :  { %v4558_v52 = vadd.f32 %v4557_v18, %v4509_v38  ;;  %5911 = vmatpush.bf16.msra.mxu3 %v8403_v57  ;;  %v8378_v57 = vld [vmem:[#allocation10 + $0x28] sm:$0xff] }
 0x609   :  { %5863 = vmatpush.bf16.msra.mxu2 %v8394_v8  ;;  %v8377_v8 = vld [vmem:[#allocation10 + $0x20] sm:$0xff] }
 0x60b   :  { %v4606_v59 = vpop.f32.mrf.mxu2  ;;  %v4560_v21 = vpop.f32.mrf.mxu1  ;;  %5765 = vmatpush.bf16.msra.mxu0 %v8378_v57  ;;  %v8401_v57 = vld [vmem:[#allocation10 + $0xe0] sm:$0xff] }
 0x60c   :  { %v4655_v62 = vpop.f32.mrf.mxu3  ;;  %v4607_v41 = vadd.f32 %v4606_v59, %v4558_v52 }
 0x60d   :  { %v4511_v47 = vpop.f32.mrf.mxu0 }
 0x60e   :  { %v4512_v22 = vadd.f32 %v4511_v47, %v9940_v42  ;;  %v10013_v35 = vadd.f32 %v4655_v62, %v4607_v41  ;;  %4755 = vmatmul.bf16.gmra.mxu1 %v10572_v51  ;;  %v8387_v62 = vld [vmem:[#allocation10 + $0x70] sm:$0xff] }
 0x60f   :  { %5813 = vmatpush.bf16.msra.mxu1 %v8387_v62  ;;  %5766 = vmatpush.bf16.msra.mxu0 %v8377_v8 }
 0x610   :  { %v4561_v16 = vadd.f32 %v4560_v21, %v4512_v22  ;;  %4706 = vmatmul.bf16.gmra.mxu0 %v10571_v50  ;;  %4804 = vmatmul.bf16.gmra.mxu2 %v10562_v28 }
 0x611   :  { %4853 = vmatmul.bf16.gmra.mxu3 %v10563_v4 }
 0x613   :  { %v4609_v39 = vpop.f32.mrf.mxu2  ;;  %v4562_v52 = vpop.f32.mrf.mxu1 }
 0x614   :  { %v4658_v18 = vpop.f32.mrf.mxu3  ;;  %v4610_v38 = vadd.f32 %v4609_v39, %v4561_v16  ;;  %v8402_v39 = vld [vmem:[#allocation10 + $0xe8] sm:$0xff] }
 0x615   :  { %v4513_v20 = vpop.f32.mrf.mxu0  ;;  %5912 = vmatpush.bf16.msra.mxu3 %v8402_v39 }
 0x616   :  { %v4514_v22 = vadd.f32 %v4513_v20, %v9940_v42  ;;  %v10020_v59 = vadd.f32 %v4658_v18, %v4610_v38  ;;  %v10030_v42 = vperm.slane %v9937_v40, 7 }
 0x618   :  { %v4563_v41 = vadd.f32 %v4562_v52, %v4514_v22 }
 0x619   :  { %5913 = vmatpush.bf16.msra.mxu3 %v8401_v57 }
 0x61b   :  { %v4611_v28 = vpop.f32.mrf.mxu2  ;;  %v4721_v51 = vpop.f32.mrf.mxu1 }
 0x61c   :  { %v4660_v4 = vpop.f32.mrf.mxu3  ;;  %v4612_v47 = vadd.f32 %v4611_v28, %v4563_v41 }
 0x61d   :  { %v4672_v21 = vpop.f32.mrf.mxu0 }
 0x61e   :  { %v4673_v50 = vadd.f32 %v4672_v21, %v9950_v58  ;;  %v10023_v7 = vadd.f32 %v4660_v4, %v4612_v47  ;;  %4916 = vmatmul.bf16.vlgmr.msrb.gmra.mxu1 %v8865_v0 }
 0x620   :  { %v4722_v16 = vadd.f32 %v4721_v51, %v4673_v50  ;;  %4867 = vmatmul.bf16.vlgmr.msrb.gmra.mxu0 %v8863_v63  ;;  %4965 = vmatmul.bf16.vlgmr.msrb.gmra.mxu2 %v8867_v1 }
 0x621   :  { %5014 = vmatmul.bf16.vlgmr.msrb.gmra.mxu3 %v8869_v2  ;;  %v8386_v2 = vld [vmem:[#allocation10 + $0x68] sm:$0xff] }
 0x622   :  { %5814 = vmatpush.bf16.msra.mxu1 %v8386_v2  ;;  %v5061_v40 = vmax.f32 %v4722_v16, 0.0  ;;  %v8393_v16 = vld [vmem:[#allocation10 + $0xa0] sm:$0xff] }
 0x623   :  { %v4770_v18 = vpop.f32.mrf.mxu2  ;;  %v4723_v63 = vpop.f32.mrf.mxu1  ;;  %5864 = vmatpush.bf16.msra.mxu2 %v8393_v16 }
 0x624   :  { %v4819_v38 = vpop.f32.mrf.mxu3  ;;  %v4771_v58 = vadd.f32 %v4770_v18, %v10030_v42 }
 0x625   :  { %v4674_v50 = vpop.f32.mrf.mxu0 }
 0x626   :  { %v4675_v0 = vadd.f32 %v4674_v50, %v9953_v36  ;;  %v10034_v1 = vadd.f32 %v4819_v38, %v4771_v58 }
 0x628   :  { %v4724_v51 = vadd.f32 %v4723_v63, %v4675_v0 }
 0x62a   :  { %v5069_v20 = vmax.f32 %v4724_v51, 0.0 }
 0x62b   :  { %v4772_v22 = vpop.f32.mrf.mxu2  ;;  %v4726_v4 = vpop.f32.mrf.mxu1 }
 0x62c   :  { %v10036_v52 = vpack.c.bf16 %v5069_v20, %v5061_v40  ;;  %v4821_v62 = vpop.f32.mrf.mxu3  ;;  %v4773_v41 = vadd.f32 %v4772_v22, %v10030_v42 }
 0x62d   :  { %v4677_v28 = vpop.f32.mrf.mxu0 }
 0x62e   :  { %v4678_v47 = vadd.f32 %v4677_v28, %v9960_v24  ;;  %v10040_v21 = vadd.f32 %v4821_v62, %v4773_v41  ;;  %4921 = vmatmul.bf16.gmra.mxu1 %v8939_v12  ;;  %v8385_v12 = vld [vmem:[#allocation10 + $0x60] sm:$0xff]  ;;  %v8392_v28 = vld [vmem:[#allocation10 + $0x98] sm:$0xff] }
 0x62f   :  { %5815 = vmatpush.bf16.msra.mxu1 %v8385_v12  ;;  %5865 = vmatpush.bf16.msra.mxu2 %v8392_v28 }
 0x630   :  { %v4727_v36 = vadd.f32 %v4726_v4, %v4678_v47  ;;  %4872 = vmatmul.bf16.gmra.mxu0 %v8937_v9  ;;  %4970 = vmatmul.bf16.gmra.mxu2 %v8849_v54  ;;  %v8376_v4 = vld [vmem:[#allocation10 + $0x18] sm:$0xff] }
 0x631   :  { %5019 = vmatmul.bf16.gmra.mxu3 %v8851_v55  ;;  %v8400_v47 = vld [vmem:[#allocation10 + $0xd8] sm:$0xff]  ;;  %5767 = vmatpush.bf16.msra.mxu0 %v8376_v4 }
 0x632   :  { %v5077_v55 = vmax.f32 %v4727_v36, 0.0  ;;  %5914 = vmatpush.bf16.msra.mxu3 %v8400_v47 }
 0x633   :  { %v4775_v39 = vpop.f32.mrf.mxu2  ;;  %v4728_v58 = vpop.f32.mrf.mxu1 }
 0x634   :  { %v4824_v18 = vpop.f32.mrf.mxu3  ;;  %v4776_v24 = vadd.f32 %v4775_v39, %v10030_v42 }
 0x635   :  { %v4679_v38 = vpop.f32.mrf.mxu0 }
 0x636   :  { %v4680_v9 = vadd.f32 %v4679_v38, %v9963_v13  ;;  %v10048_v50 = vadd.f32 %v4824_v18, %v4776_v24 }
 0x638   :  { %v4729_v54 = vadd.f32 %v4728_v58, %v4680_v9 }
 0x63a   :  { %v5085_v63 = vmax.f32 %v4729_v54, 0.0 }
 0x63b   :  { %v4777_v0 = vpop.f32.mrf.mxu2  ;;  %v4731_v22 = vpop.f32.mrf.mxu1 }
 0x63c   :  { %v4826_v2 = vpop.f32.mrf.mxu3  ;;  %v10050_v51 = vpack.c.bf16 %v5085_v63, %v5077_v55  ;;  %v4778_v40 = vadd.f32 %v4777_v0, %v10030_v42  ;;  %v8391_v0 = vld [vmem:[#allocation10 + $0x90] sm:$0xff] }
 0x63d   :  { %v4682_v20 = vpop.f32.mrf.mxu0  ;;  %5866 = vmatpush.bf16.msra.mxu2 %v8391_v0 }
 0x63e   :  { %v4683_v62 = vadd.f32 %v4682_v20, %v9970_v37  ;;  %v10054_v41 = vadd.f32 %v4826_v2, %v4778_v40  ;;  %4926 = vmatmul.bf16.gmra.mxu1 %v9001_v27  ;;  %v8384_v27 = vld [vmem:[#allocation10 + $0x58] sm:$0xff]  ;;  %v8375_v2 = vld [vmem:[#allocation10 + $0x10] sm:$0xff] }
 0x63f   :  { %5816 = vmatpush.bf16.msra.mxu1 %v8384_v27  ;;  %v8399_v40 = vld [vmem:[#allocation10 + $0xd0] sm:$0xff]  ;;  %5768 = vmatpush.bf16.msra.mxu0 %v8375_v2 }
 0x640   :  { %v4732_v13 = vadd.f32 %v4731_v22, %v4683_v62  ;;  %4877 = vmatmul.bf16.gmra.mxu0 %v8999_v26  ;;  %4975 = vmatmul.bf16.gmra.mxu2 %v8793_v10 }
 0x641   :  { %5024 = vmatmul.bf16.gmra.mxu3 %v8795_v11 }
 0x642   :  { %v5093_v11 = vmax.f32 %v4732_v13, 0.0  ;;  %5915 = vmatpush.bf16.msra.mxu3 %v8399_v40 }
 0x643   :  { %v4780_v36 = vpop.f32.mrf.mxu2  ;;  %v4733_v57 = vpop.f32.mrf.mxu1 }
 0x644   :  { %v4829_v16 = vpop.f32.mrf.mxu3  ;;  %v4781_v37 = vadd.f32 %v4780_v36, %v10030_v42 }
 0x645   :  { %v4684_v8 = vpop.f32.mrf.mxu0 }
 0x646   :  { %v4685_v26 = vadd.f32 %v4684_v8, %v9973_v48  ;;  %v10062_v39 = vadd.f32 %v4829_v16, %v4781_v37 }
 0x648   :  { %v4734_v10 = vadd.f32 %v4733_v57, %v4685_v26 }
 0x64a   :  { %v5101_v18 = vmax.f32 %v4734_v10, 0.0  ;;  %v8390_v10 = vld [vmem:[#allocation10 + $0x88] sm:$0xff] }
 0x64b   :  { %v4782_v24 = vpop.f32.mrf.mxu2  ;;  %v4736_v54 = vpop.f32.mrf.mxu1  ;;  %5867 = vmatpush.bf16.msra.mxu2 %v8390_v10 }
 0x64c   :  { %v4831_v38 = vpop.f32.mrf.mxu3  ;;  %v10064_v58 = vpack.c.bf16 %v5101_v18, %v5093_v11  ;;  %v4783_v9 = vadd.f32 %v4782_v24, %v10030_v42  ;;  %v8374_v11 = vld [vmem:[#allocation10 + $0x8] sm:$0xff] }
 0x64d   :  { %v4687_v12 = vpop.f32.mrf.mxu0  ;;  %v8398_v18 = vld [vmem:[#allocation10 + $0xc8] sm:$0xff]  ;;  %5769 = vmatpush.bf16.msra.mxu0 %v8374_v11 }
 0x64e   :  { %v4688_v55 = vadd.f32 %v4687_v12, %v9980_v3  ;;  %v10068_v63 = vadd.f32 %v4831_v38, %v4783_v9  ;;  %4931 = vmatmul.bf16.gmra.mxu1 %v9029_v45  ;;  %v8383_v45 = vld [vmem:[#allocation10 + $0x50] sm:$0xff]  ;;  %5916 = vmatpush.bf16.msra.mxu3 %v8398_v18 }
 0x64f   :  { %5817 = vmatpush.bf16.msra.mxu1 %v8383_v45  ;;  %v8397_v45 = vld [vmem:[#allocation10 + $0xc0] sm:$0xff] }
 0x650   :  { %v4737_v48 = vadd.f32 %v4736_v54, %v4688_v55  ;;  %4882 = vmatmul.bf16.gmra.mxu0 %v9027_v44  ;;  %4980 = vmatmul.bf16.gmra.mxu2 %v8895_v32 }
 0x651   :  { %5029 = vmatmul.bf16.gmra.mxu3 %v8897_v33 }
 0x652   :  { %v5109_v33 = vmax.f32 %v4737_v48, 0.0  ;;  %5917 = vmatpush.bf16.msra.mxu3 %v8397_v45  ;;  %v10574_v45 = vld [vmem:[#allocation28_spill] sm:$0xff] }
 0x653   :  { %v4785_v20 = vpop.f32.mrf.mxu2  ;;  %v4738_v13 = vpop.f32.mrf.mxu1 }
 0x654   :  { %v4834_v22 = vpop.f32.mrf.mxu3  ;;  %v4786_v3 = vadd.f32 %v4785_v20, %v10030_v42 }
 0x655   :  { %v4689_v62 = vpop.f32.mrf.mxu0 }
 0x656   :  { %v4690_v44 = vadd.f32 %v4689_v62, %v9983_v17  ;;  %v10076_v28 = vadd.f32 %v4834_v22, %v4786_v3 }
 0x658   :  { %v4739_v32 = vadd.f32 %v4738_v13, %v4690_v44  ;;  %v8389_v13 = vld [vmem:[#allocation10 + $0x80] sm:$0xff] }
 0x659   :  { %v8373_v44 = vld [vmem:[#allocation10] sm:$0xff]  ;;  %5868 = vmatpush.bf16.msra.mxu2 %v8389_v13 }
 0x65a   :  { %v5117_v4 = vmax.f32 %v4739_v32, 0.0  ;;  %5770 = vmatpush.bf16.msra.mxu0 %v8373_v44  ;;  %v10573_v44 = vld [vmem:[#allocation45_spill] sm:$0xff] }
 0x65b   :  { %v4787_v47 = vpop.f32.mrf.mxu2  ;;  %v4741_v57 = vpop.f32.mrf.mxu1 }
 0x65c   :  { %v4836_v36 = vpop.f32.mrf.mxu3  ;;  %v10078_v16 = vpack.c.bf16 %v5117_v4, %v5109_v33  ;;  %v4788_v37 = vadd.f32 %v4787_v47, %v10030_v42 }
 0x65d   :  { %v4692_v8 = vpop.f32.mrf.mxu0 }
 0x65e   :  { %v4693_v26 = vadd.f32 %v4692_v8, %v9990_v49  ;;  %v10082_v27 = vadd.f32 %v4836_v36, %v4788_v37  ;;  %4936 = vmatmul.bf16.gmra.mxu1 %v9057_v5  ;;  %v8382_v5 = vld [vmem:[#allocation10 + $0x48] sm:$0xff] }
 0x65f   :  { %5818 = vmatpush.bf16.msra.mxu1 %v8382_v5 }
 0x660   :  { %v4742_v17 = vadd.f32 %v4741_v57, %v4693_v26  ;;  %4887 = vmatmul.bf16.gmra.mxu0 %v9055_v6  ;;  %4985 = vmatmul.bf16.gmra.mxu2 %v8942_v30 }
 0x661   :  { %5034 = vmatmul.bf16.gmra.mxu3 %v10566_v61 }
 0x662   :  { %v5125_v61 = vmax.f32 %v4742_v17, 0.0 }
 0x663   :  { %v4790_v24 = vpop.f32.mrf.mxu2  ;;  %v4743_v12 = vpop.f32.mrf.mxu1 }
 0x664   :  { %v4839_v38 = vpop.f32.mrf.mxu3  ;;  %v4791_v49 = vadd.f32 %v4790_v24, %v10030_v42 }
 0x665   :  { %v4694_v9 = vpop.f32.mrf.mxu0 }
 0x666   :  { %v4695_v6 = vadd.f32 %v4694_v9, %v9993_v46  ;;  %v10090_v54 = vadd.f32 %v4839_v38, %v4791_v49  ;;  %v8428_v38 = vld [vmem:[#allocation10 + $0x1b8] sm:$0xff] }
 0x667   :  { %v8412_v49 = vld [vmem:[#allocation10 + $0x138] sm:$0xff]  ;;  %6057 = vmatpush.bf16.msrb.mxu2 %v8428_v38 }
 0x668   :  { %v4744_v30 = vadd.f32 %v4743_v12, %v4695_v6  ;;  %v8436_v9 = vld [vmem:[#allocation10 + $0x1f8] sm:$0xff]  ;;  %5959 = vmatpush.bf16.msrb.mxu0 %v8412_v49 }
 0x669   :  { %6106 = vmatpush.bf16.msrb.mxu3 %v8436_v9 }
 0x66a   :  { %v5133_v55 = vmax.f32 %v4744_v30, 0.0 }
 0x66b   :  { %v4792_v48 = vpop.f32.mrf.mxu2  ;;  %v4746_v22 = vpop.f32.mrf.mxu1 }
 0x66c   :  { %v4841_v0 = vpop.f32.mrf.mxu3  ;;  %v10092_v2 = vpack.c.bf16 %v5133_v55, %v5125_v61  ;;  %v4793_v40 = vadd.f32 %v4792_v48, %v10030_v42 }
 0x66d   :  { %v4697_v20 = vpop.f32.mrf.mxu0 }
 0x66e   :  { %v4698_v3 = vadd.f32 %v4697_v20, %v10000_v19  ;;  %v10096_v62 = vadd.f32 %v4841_v0, %v4793_v40  ;;  %4941 = vmatmul.bf16.gmra.mxu1 %v9085_v34  ;;  %v8381_v34 = vld [vmem:[#allocation10 + $0x40] sm:$0xff] }
 0x66f   :  { %5819 = vmatpush.bf16.msra.mxu1 %v8381_v34 }
 0x670   :  { %v4747_v46 = vadd.f32 %v4746_v22, %v4698_v3  ;;  %4892 = vmatmul.bf16.gmra.mxu0 %v9083_v29  ;;  %4990 = vmatmul.bf16.gmra.mxu2 %v10567_v31 }
 0x671   :  { %5039 = vmatmul.bf16.gmra.mxu3 %v10568_v43 }
 0x672   :  { %v5141_v43 = vmax.f32 %v4747_v46, 0.0 }
 0x673   :  { %v4795_v32 = vpop.f32.mrf.mxu2  ;;  %v4748_v47 = vpop.f32.mrf.mxu1 }
 0x674   :  { %v4844_v33 = vpop.f32.mrf.mxu3  ;;  %v4796_v19 = vadd.f32 %v4795_v32, %v10030_v42  ;;  %v10575_v32 = vld [vmem:[#allocation29_spill] sm:$0xff] }
 0x675   :  { %v4699_v4 = vpop.f32.mrf.mxu0 }
 0x676   :  { %v4700_v29 = vadd.f32 %v4699_v4, %v10003_v23  ;;  %v10104_v36 = vadd.f32 %v4844_v33, %v4796_v19  ;;  %v8427_v33 = vld [vmem:[#allocation10 + $0x1b0] sm:$0xff] }
 0x677   :  { %v8411_v19 = vld [vmem:[#allocation10 + $0x130] sm:$0xff]  ;;  %6058 = vmatpush.bf16.msrb.mxu2 %v8427_v33 }
 0x678   :  { %v4749_v31 = vadd.f32 %v4748_v47, %v4700_v29  ;;  %v8435_v4 = vld [vmem:[#allocation10 + $0x1f0] sm:$0xff]  ;;  %5960 = vmatpush.bf16.msrb.mxu0 %v8411_v19 }
 0x679   :  { %6107 = vmatpush.bf16.msrb.mxu3 %v8435_v4 }
 0x67a   :  { %v5149_v37 = vmax.f32 %v4749_v31, 0.0 }
 0x67b   :  { %v4797_v8 = vpop.f32.mrf.mxu2  ;;  %v4751_v11 = vpop.f32.mrf.mxu1 }
 0x67c   :  { %v4846_v57 = vpop.f32.mrf.mxu3  ;;  %v10106_v26 = vpack.c.bf16 %v5149_v37, %v5141_v43  ;;  %v4798_v17 = vadd.f32 %v4797_v8, %v10030_v42  ;;  %v8419_v8 = vld [vmem:[#allocation10 + $0x170] sm:$0xff] }
 0x67d   :  { %v4702_v10 = vpop.f32.mrf.mxu0 }
 0x67e   :  { %v4703_v18 = vadd.f32 %v4702_v10, %v10010_v53  ;;  %v10110_v24 = vadd.f32 %v4846_v57, %v4798_v17  ;;  %4946 = vmatmul.bf16.gmra.mxu1 %v10445_v56 }
 0x680   :  { %v4752_v23 = vadd.f32 %v4751_v11, %v4703_v18  ;;  %4897 = vmatmul.bf16.gmra.mxu0 %v10444_v60  ;;  %4995 = vmatmul.bf16.gmra.mxu2 %v10569_v14  ;;  %v8420_v14 = vld [vmem:[#allocation10 + $0x178] sm:$0xff] }
 0x681   :  { %5044 = vmatmul.bf16.gmra.mxu3 %v10570_v15  ;;  %6008 = vmatpush.bf16.msrb.mxu1 %v8420_v14  ;;  %v8434_v14 = vld [vmem:[#allocation10 + $0x1e8] sm:$0xff] }
 0x682   :  { %v5157_v55 = vmax.f32 %v4752_v23, 0.0  ;;  %6108 = vmatpush.bf16.msrb.mxu3 %v8434_v14 }
 0x683   :  { %v4800_v12 = vpop.f32.mrf.mxu2  ;;  %v4753_v30 = vpop.f32.mrf.mxu1 }
 0x684   :  { %v4849_v6 = vpop.f32.mrf.mxu3  ;;  %v4801_v53 = vadd.f32 %v4800_v12, %v10030_v42 }
 0x685   :  { %v4704_v5 = vpop.f32.mrf.mxu0  ;;  %6009 = vmatpush.bf16.msrb.mxu1 %v8419_v8  ;;  %v8433_v8 = vld [vmem:[#allocation10 + $0x1e0] sm:$0xff] }
 0x686   :  { %v4705_v60 = vadd.f32 %v4704_v5, %v10013_v35  ;;  %v10118_v61 = vadd.f32 %v4849_v6, %v4801_v53  ;;  %v10576_v6 = vld [vmem:[#allocation46_spill] sm:$0xff]  ;;  %v10577_v53 = vld [vmem:[#allocation52_spill] sm:$0xff]  ;;  %6109 = vmatpush.bf16.msrb.mxu3 %v8433_v8 }
 0x687   :  { %v10578_v5 = vld [vmem:[#allocation60_spill] sm:$0xff] }
 0x688   :  { %v4754_v56 = vadd.f32 %v4753_v30, %v4705_v60  ;;  %v10579_v30 = vld [vmem:[#allocation68_spill] sm:$0xff] }
 0x689   :  { %v8426_v60 = vld [vmem:[#allocation10 + $0x1a8] sm:$0xff] }
 0x68a   :  { %v5165_v15 = vmax.f32 %v4754_v56, 0.0  ;;  %v8410_v56 = vld [vmem:[#allocation10 + $0x128] sm:$0xff]  ;;  %6059 = vmatpush.bf16.msrb.mxu2 %v8426_v60 }
 0x68b   :  { %v4802_v48 = vpop.f32.mrf.mxu2  ;;  %v4756_v3 = vpop.f32.mrf.mxu1  ;;  %5961 = vmatpush.bf16.msrb.mxu0 %v8410_v56 }
 0x68c   :  { %v4851_v0 = vpop.f32.mrf.mxu3  ;;  %v10120_v40 = vpack.c.bf16 %v5165_v15, %v5157_v55  ;;  %v4803_v20 = vadd.f32 %v4802_v48, %v10030_v42 }
 0x68d   :  { %v4707_v22 = vpop.f32.mrf.mxu0 }
 0x68e   :  { %v4708_v46 = vadd.f32 %v4707_v22, %v10020_v59  ;;  %v10124_v13 = vadd.f32 %v4851_v0, %v4803_v20  ;;  %4951 = vmatmul.bf16.gmra.mxu1 %v10573_v44 }
 0x690   :  { %v4757_v35 = vadd.f32 %v4756_v3, %v4708_v46  ;;  %4902 = vmatmul.bf16.gmra.mxu0 %v10537_v25  ;;  %5000 = vmatmul.bf16.gmra.mxu2 %v10574_v45  ;;  %v8418_v3 = vld [vmem:[#allocation10 + $0x168] sm:$0xff] }
 0x691   :  { %5049 = vmatmul.bf16.gmra.mxu3 %v10575_v32  ;;  %6010 = vmatpush.bf16.msrb.mxu1 %v8418_v3  ;;  %v8432_v3 = vld [vmem:[#allocation10 + $0x1d8] sm:$0xff] }
 0x692   :  { %v5173_v57 = vmax.f32 %v4757_v35, 0.0  ;;  %6110 = vmatpush.bf16.msrb.mxu3 %v8432_v3  ;;  %v10592_v3 = vld [vmem:[#allocation50_spill] sm:$0xff] }
 0x693   :  { %v4805_v47 = vpop.f32.mrf.mxu2  ;;  %v4758_v59 = vpop.f32.mrf.mxu1 }
 0x694   :  { %v4854_v29 = vpop.f32.mrf.mxu3  ;;  %v4806_v34 = vadd.f32 %v4805_v47, %v10030_v42  ;;  %v10580_v47 = vld [vmem:[#allocation47_spill] sm:$0xff] }
 0x695   :  { %v4709_v31 = vpop.f32.mrf.mxu0 }
 0x696   :  { %v4710_v43 = vadd.f32 %v4709_v31, %v10023_v7  ;;  %v10132_v25 = vadd.f32 %v4854_v29, %v4806_v34  ;;  %v10581_v29 = vld [vmem:[#allocation53_spill] sm:$0xff] }
 0x698   :  { %v4759_v37 = vadd.f32 %v4758_v59, %v4710_v43  ;;  %v10583_v59 = vld [vmem:[#allocation69_spill] sm:$0xff]  ;;  %v8425_v43 = vld [vmem:[#allocation10 + $0x1a0] sm:$0xff] }
 0x699   :  { %6060 = vmatpush.bf16.msrb.mxu2 %v8425_v43 }
 0x69a   :  { %v5181_v17 = vmax.f32 %v4759_v37, 0.0  ;;  %v8409_v37 = vld [vmem:[#allocation10 + $0x120] sm:$0xff] }
 0x69b   :  { %v4807_v10 = vpop.f32.mrf.mxu2  ;;  %v4917_v49 = vpop.f32.mrf.mxu1  ;;  %5962 = vmatpush.bf16.msrb.mxu0 %v8409_v37 }
 0x69c   :  { %v4856_v11 = vpop.f32.mrf.mxu3  ;;  %v10134_v18 = vpack.c.bf16 %v5181_v17, %v5173_v57  ;;  %v4808_v23 = vadd.f32 %v4807_v10, %v10030_v42 }
 0x69d   :  { %v4868_v38 = vpop.f32.mrf.mxu0 }
 0x69e   :  { %v4869_v9 = vadd.f32 %v4868_v38, %v10034_v1  ;;  %v10138_v12 = vadd.f32 %v4856_v11, %v4808_v23  ;;  %5820 = vmatmul.bf16.vlgmr.msra.gmra.mxu1 %v10577_v53 }
 0x6a0   :  { %v4918_v7 = vadd.f32 %v4917_v49, %v4869_v9  ;;  %5771 = vmatmul.bf16.vlgmr.msra.gmra.mxu0 %v10576_v6  ;;  %5869 = vmatmul.bf16.vlgmr.msra.gmra.mxu2 %v10578_v5 }
 0x6a1   :  { %5918 = vmatmul.bf16.vlgmr.msra.gmra.mxu3 %v10579_v30 }
 0x6a3   :  { %v4966_v42 = vpop.f32.mrf.mxu2  ;;  %v4919_v48 = vpop.f32.mrf.mxu1 }
 0x6a4   :  { %v5015_v55 = vpop.f32.mrf.mxu3  ;;  %v4967_v1 = vadd.f32 %v4966_v42, %v4918_v7  ;;  %v8417_v7 = vld [vmem:[#allocation10 + $0x160] sm:$0xff] }
 0x6a5   :  { %v4870_v15 = vpop.f32.mrf.mxu0  ;;  %6011 = vmatpush.bf16.msrb.mxu1 %v8417_v7 }
 0x6a6   :  { %v4871_v0 = vadd.f32 %v4870_v15, %v10040_v21  ;;  %v5016_v20 = vadd.f32 %v5015_v55, %v4967_v1  ;;  %v10582_v21 = vld [vmem:[#allocation61_spill] sm:$0xff]  ;;  %v10584_v55 = vld [vmem:[#allocation48_spill] sm:$0xff]  ;;  %v10585_v1 = vld [vmem:[#allocation54_spill] sm:$0xff] }
 0x6a8   :  { %v4920_v22 = vadd.f32 %v4919_v48, %v4871_v0  ;;  %v5062_v34 = vmax.f32 %v5016_v20, 0.0  ;;  %v10587_v0 = vld [vmem:[#allocation70_spill] sm:$0xff] }
 0x6a9   :  { %v8424_v20 = vld [vmem:[#allocation10 + $0x198] sm:$0xff] }
 0x6aa   :  { %6061 = vmatpush.bf16.msrb.mxu2 %v8424_v20 }
 0x6ab   :  { %v4968_v46 = vpop.f32.mrf.mxu2  ;;  %v4922_v32 = vpop.f32.mrf.mxu1 }
 0x6ac   :  { %v5017_v35 = vpop.f32.mrf.mxu3  ;;  %v4969_v44 = vadd.f32 %v4968_v46, %v4920_v22  ;;  %v8408_v22 = vld [vmem:[#allocation10 + $0x118] sm:$0xff] }
 0x6ad   :  { %v4873_v45 = vpop.f32.mrf.mxu0  ;;  %5963 = vmatpush.bf16.msrb.mxu0 %v8408_v22 }
 0x6ae   :  { %v4874_v33 = vadd.f32 %v4873_v45, %v10048_v50  ;;  %v5018_v19 = vadd.f32 %v5017_v35, %v4969_v44  ;;  %5825 = vmatmul.bf16.gmra.mxu1 %v10581_v29 }
 0x6b0   :  { %v4923_v4 = vadd.f32 %v4922_v32, %v4874_v33  ;;  %5776 = vmatmul.bf16.gmra.mxu0 %v10580_v47  ;;  %v5070_v31 = vmax.f32 %v5018_v19, 0.0  ;;  %5874 = vmatmul.bf16.gmra.mxu2 %v10582_v21  ;;  %v8416_v47 = vld [vmem:[#allocation10 + $0x158] sm:$0xff] }
 0x6b1   :  { %5923 = vmatmul.bf16.gmra.mxu3 %v10583_v59  ;;  %6012 = vmatpush.bf16.msrb.mxu1 %v8416_v47 }
 0x6b2   :  { %v10150_v57 = vpack.c.bf16 %v5070_v31, %v5062_v34 }
 0x6b3   :  { %v4971_v50 = vpop.f32.mrf.mxu2  ;;  %v4924_v23 = vpop.f32.mrf.mxu1 }
 0x6b4   :  { %v5020_v17 = vpop.f32.mrf.mxu3  ;;  %v4972_v10 = vadd.f32 %v4971_v50, %v4923_v4  ;;  %v10588_v50 = vld [vmem:[#allocation49_spill] sm:$0xff] }
 0x6b5   :  { %v4875_v11 = vpop.f32.mrf.mxu0 }
 0x6b6   :  { %v4876_v38 = vadd.f32 %v4875_v11, %v10054_v41  ;;  %v5021_v49 = vadd.f32 %v5020_v17, %v4972_v10  ;;  %v10586_v41 = vld [vmem:[#allocation62_spill] sm:$0xff]  ;;  %v10589_v17 = vld [vmem:[#allocation55_spill] sm:$0xff] }
 0x6b8   :  { %v4925_v9 = vadd.f32 %v4924_v23, %v4876_v38  ;;  %v5078_v15 = vmax.f32 %v5021_v49, 0.0  ;;  %v10591_v23 = vld [vmem:[#allocation71_spill] sm:$0xff]  ;;  %v8423_v38 = vld [vmem:[#allocation10 + $0x190] sm:$0xff] }
 0x6b9   :  { %v8407_v49 = vld [vmem:[#allocation10 + $0x110] sm:$0xff]  ;;  %6062 = vmatpush.bf16.msrb.mxu2 %v8423_v38 }
 0x6ba   :  { %5964 = vmatpush.bf16.msrb.mxu0 %v8407_v49  ;;  %v10596_v49 = vld [vmem:[#allocation51_spill] sm:$0xff] }
 0x6bb   :  { %v4973_v6 = vpop.f32.mrf.mxu2  ;;  %v4927_v60 = vpop.f32.mrf.mxu1 }
 0x6bc   :  { %v5022_v53 = vpop.f32.mrf.mxu3  ;;  %v4974_v5 = vadd.f32 %v4973_v6, %v4925_v9  ;;  %v8431_v9 = vld [vmem:[#allocation10 + $0x1d0] sm:$0xff] }
 0x6bd   :  { %v4878_v30 = vpop.f32.mrf.mxu0  ;;  %6111 = vmatpush.bf16.msrb.mxu3 %v8431_v9  ;;  %v10597_v9 = vld [vmem:[#allocation57_spill] sm:$0xff] }
 0x6be   :  { %v4879_v56 = vadd.f32 %v4878_v30, %v10062_v39  ;;  %v5023_v14 = vadd.f32 %v5022_v53, %v4974_v5  ;;  %5830 = vmatmul.bf16.gmra.mxu1 %v10585_v1 }
 0x6c0   :  { %v4928_v42 = vadd.f32 %v4927_v60, %v4879_v56  ;;  %5781 = vmatmul.bf16.gmra.mxu0 %v10584_v55  ;;  %v5086_v48 = vmax.f32 %v5023_v14, 0.0  ;;  %5879 = vmatmul.bf16.gmra.mxu2 %v10586_v41 }
 0x6c1   :  { %5928 = vmatmul.bf16.gmra.mxu3 %v10587_v0 }
 0x6c2   :  { %v10158_v46 = vpack.c.bf16 %v5086_v48, %v5078_v15 }
 0x6c3   :  { %v4976_v39 = vpop.f32.mrf.mxu2  ;;  %v4929_v32 = vpop.f32.mrf.mxu1 }
 0x6c4   :  { %v5025_v35 = vpop.f32.mrf.mxu3  ;;  %v4977_v44 = vadd.f32 %v4976_v39, %v4928_v42  ;;  %v8415_v42 = vld [vmem:[#allocation10 + $0x150] sm:$0xff] }
 0x6c5   :  { %v4880_v45 = vpop.f32.mrf.mxu0  ;;  %6013 = vmatpush.bf16.msrb.mxu1 %v8415_v42  ;;  %v10593_v39 = vld [vmem:[#allocation56_spill] sm:$0xff] }
 0x6c6   :  { %v4881_v33 = vadd.f32 %v4880_v45, %v10068_v63  ;;  %v5026_v19 = vadd.f32 %v5025_v35, %v4977_v44  ;;  %v10590_v63 = vld [vmem:[#allocation63_spill] sm:$0xff]  ;;  %v10595_v45 = vld [vmem:[#allocation72_spill] sm:$0xff] }
 0x6c8   :  { %v4930_v4 = vadd.f32 %v4929_v32, %v4881_v33  ;;  %v5094_v10 = vmax.f32 %v5026_v19, 0.0  ;;  %v8422_v32 = vld [vmem:[#allocation10 + $0x188] sm:$0xff] }
 0x6c9   :  { %v8406_v33 = vld [vmem:[#allocation10 + $0x108] sm:$0xff]  ;;  %6063 = vmatpush.bf16.msrb.mxu2 %v8422_v32 }
 0x6ca   :  { %v8430_v19 = vld [vmem:[#allocation10 + $0x1c8] sm:$0xff]  ;;  %5965 = vmatpush.bf16.msrb.mxu0 %v8406_v33  ;;  %v10601_v33 = vld [vmem:[#allocation58_spill] sm:$0xff] }
 0x6cb   :  { %v4978_v29 = vpop.f32.mrf.mxu2  ;;  %v4932_v59 = vpop.f32.mrf.mxu1  ;;  %6112 = vmatpush.bf16.msrb.mxu3 %v8430_v19  ;;  %v10600_v32 = vld [vmem:[#allocation40_spill] sm:$0xff] }
 0x6cc   :  { %v5027_v34 = vpop.f32.mrf.mxu3  ;;  %v4979_v31 = vadd.f32 %v4978_v29, %v4930_v4 }
 0x6cd   :  { %v4883_v21 = vpop.f32.mrf.mxu0 }
 0x6ce   :  { %v4884_v43 = vadd.f32 %v4883_v21, %v10076_v28  ;;  %v5028_v37 = vadd.f32 %v5027_v34, %v4979_v31  ;;  %5835 = vmatmul.bf16.gmra.mxu1 %v10589_v17 }
 0x6d0   :  { %v4933_v8 = vadd.f32 %v4932_v59, %v4884_v43  ;;  %5786 = vmatmul.bf16.gmra.mxu0 %v10588_v50  ;;  %v5102_v11 = vmax.f32 %v5028_v37, 0.0  ;;  %5884 = vmatmul.bf16.gmra.mxu2 %v10590_v63  ;;  %v8414_v37 = vld [vmem:[#allocation10 + $0x148] sm:$0xff] }
 0x6d1   :  { %5933 = vmatmul.bf16.gmra.mxu3 %v10591_v23  ;;  %6014 = vmatpush.bf16.msrb.mxu1 %v8414_v37 }
 0x6d2   :  { %v10166_v7 = vpack.c.bf16 %v5102_v11, %v5094_v10 }
 0x6d3   :  { %v4981_v28 = vpop.f32.mrf.mxu2  ;;  %v4934_v30 = vpop.f32.mrf.mxu1 }
 0x6d4   :  { %v5030_v6 = vpop.f32.mrf.mxu3  ;;  %v4982_v53 = vadd.f32 %v4981_v28, %v4933_v8 }
 0x6d5   :  { %v4885_v5 = vpop.f32.mrf.mxu0 }
 0x6d6   :  { %v4886_v60 = vadd.f32 %v4885_v5, %v10082_v27  ;;  %v5031_v56 = vadd.f32 %v5030_v6, %v4982_v53  ;;  %v10594_v27 = vld [vmem:[#allocation64_spill] sm:$0xff]  ;;  %v10599_v53 = vld [vmem:[#allocation73_spill] sm:$0xff]  ;;  %v8421_v5 = vld [vmem:[#allocation10 + $0x180] sm:$0xff] }
 0x6d7   :  { %6064 = vmatpush.bf16.msrb.mxu2 %v8421_v5 }
 0x6d8   :  { %v4935_v14 = vadd.f32 %v4934_v30, %v4886_v60  ;;  %v5110_v35 = vmax.f32 %v5031_v56, 0.0  ;;  %v8405_v30 = vld [vmem:[#allocation10 + $0x100] sm:$0xff] }
 0x6d9   :  { %v8429_v60 = vld [vmem:[#allocation10 + $0x1c0] sm:$0xff]  ;;  %5966 = vmatpush.bf16.msrb.mxu0 %v8405_v30 }
 0x6da   :  { %6113 = vmatpush.bf16.msrb.mxu3 %v8429_v60 }
 0x6db   :  { %v4983_v55 = vpop.f32.mrf.mxu2  ;;  %v4937_v41 = vpop.f32.mrf.mxu1 }
 0x6dc   :  { %v5032_v1 = vpop.f32.mrf.mxu3  ;;  %v4984_v15 = vadd.f32 %v4983_v55, %v4935_v14 }
 0x6dd   :  { %v4888_v48 = vpop.f32.mrf.mxu0 }
 0x6de   :  { %v4889_v0 = vadd.f32 %v4888_v48, %v10090_v54  ;;  %v5033_v20 = vadd.f32 %v5032_v1, %v4984_v15  ;;  %5840 = vmatmul.bf16.gmra.mxu1 %v10593_v39 }
 0x6e0   :  { %v4938_v22 = vadd.f32 %v4937_v41, %v4889_v0  ;;  %5791 = vmatmul.bf16.gmra.mxu0 %v10592_v3  ;;  %v5118_v44 = vmax.f32 %v5033_v20, 0.0  ;;  %5889 = vmatmul.bf16.gmra.mxu2 %v10594_v27  ;;  %v8413_v0 = vld [vmem:[#allocation10 + $0x140] sm:$0xff] }
 0x6e1   :  { %5938 = vmatmul.bf16.gmra.mxu3 %v10595_v45  ;;  %6015 = vmatpush.bf16.msrb.mxu1 %v8413_v0 }
 0x6e2   :  { %v10174_v4 = vpack.c.bf16 %v5118_v44, %v5110_v35 }
 0x6e3   :  { %v4986_v54 = vpop.f32.mrf.mxu2  ;;  %v4939_v31 = vpop.f32.mrf.mxu1 }
 0x6e4   :  { %v5035_v47 = vpop.f32.mrf.mxu3  ;;  %v4987_v29 = vadd.f32 %v4986_v54, %v4938_v22 }
 0x6e5   :  { %v4890_v34 = vpop.f32.mrf.mxu0 }
 0x6e6   :  { %v4891_v21 = vadd.f32 %v4890_v34, %v10096_v62  ;;  %v5036_v59 = vadd.f32 %v5035_v47, %v4987_v29  ;;  %v10598_v62 = vld [vmem:[#allocation65_spill] sm:$0xff]  ;;  %v10603_v47 = vld [vmem:[#allocation74_spill] sm:$0xff] }
 0x6e8   :  { %v4940_v43 = vadd.f32 %v4939_v31, %v4891_v21  ;;  %v5126_v28 = vmax.f32 %v5036_v59, 0.0 }
 0x6eb   :  { %v4988_v8 = vpop.f32.mrf.mxu2  ;;  %v4942_v11 = vpop.f32.mrf.mxu1 }
 0x6ec   :  { %v5037_v50 = vpop.f32.mrf.mxu3  ;;  %v4989_v17 = vadd.f32 %v4988_v8, %v4940_v43 }
 0x6ed   :  { %v4893_v10 = vpop.f32.mrf.mxu0 }
 0x6ee   :  { %v4894_v63 = vadd.f32 %v4893_v10, %v10104_v36  ;;  %v5038_v23 = vadd.f32 %v5037_v50, %v4989_v17  ;;  %5845 = vmatmul.bf16.gmra.mxu1 %v10597_v9  ;;  %v10604_v9 = vld [vmem:[#allocation41_spill] sm:$0xff] }
 0x6f0   :  { %v4943_v38 = vadd.f32 %v4942_v11, %v4894_v63  ;;  %5796 = vmatmul.bf16.gmra.mxu0 %v10596_v49  ;;  %v5134_v6 = vmax.f32 %v5038_v23, 0.0  ;;  %5894 = vmatmul.bf16.gmra.mxu2 %v10598_v62 }
 0x6f1   :  { %5943 = vmatmul.bf16.gmra.mxu3 %v10599_v53  ;;  %v10606_v53 = vld [vmem:[#allocation67_spill] sm:$0xff] }
 0x6f2   :  { %v10182_v56 = vpack.c.bf16 %v5134_v6, %v5126_v28  ;;  %v10605_v28 = vld [vmem:[#allocation59_spill] sm:$0xff] }
 0x6f3   :  { %v4991_v36 = vpop.f32.mrf.mxu2  ;;  %v4944_v1 = vpop.f32.mrf.mxu1 }
 0x6f4   :  { %v5040_v14 = vpop.f32.mrf.mxu3  ;;  %v4992_v42 = vadd.f32 %v4991_v36, %v4943_v38 }
 0x6f5   :  { %v4895_v55 = vpop.f32.mrf.mxu0 }
 0x6f6   :  { %v4896_v15 = vadd.f32 %v4895_v55, %v10110_v24  ;;  %v5041_v48 = vadd.f32 %v5040_v14, %v4992_v42  ;;  %v10602_v24 = vld [vmem:[#allocation66_spill] sm:$0xff] }
 0x6f8   :  { %v4945_v41 = vadd.f32 %v4944_v1, %v4896_v15  ;;  %v5142_v19 = vmax.f32 %v5041_v48, 0.0  ;;  %v10201_v15 = vld [vmem:[#allocation11] ss:$0 sm:$0xff] }
 0x6fb   :  { %v4993_v20 = vpop.f32.mrf.mxu2  ;;  %v4947_v35 = vpop.f32.mrf.mxu1 }
 0x6fc   :  { %v5042_v22 = vpop.f32.mrf.mxu3  ;;  %v4994_v3 = vadd.f32 %v4993_v20, %v4945_v41 }
 0x6fd   :  { %v4898_v39 = vpop.f32.mrf.mxu0 }
 0x6fe   :  { %v4899_v44 = vadd.f32 %v4898_v39, %v10118_v61  ;;  %v5043_v27 = vadd.f32 %v5042_v22, %v4994_v3  ;;  %5850 = vmatmul.bf16.gmra.mxu1 %v10601_v33 }
 0x700   :  { %v4948_v45 = vadd.f32 %v4947_v35, %v4899_v44  ;;  %5801 = vmatmul.bf16.gmra.mxu0 %v10600_v32  ;;  %v5150_v54 = vmax.f32 %v5043_v27, 0.0  ;;  %5899 = vmatmul.bf16.gmra.mxu2 %v10602_v24  ;;  %v10608_v44 = vld [vmem:[#allocation76_spill] sm:$0xff]  ;;  %v10609_v27 = vld [vmem:[#allocation19_spill] sm:$0xff] }
 0x701   :  { %5948 = vmatmul.bf16.gmra.mxu3 %v10603_v47 }
 0x702   :  { %v10190_v29 = vpack.c.bf16 %v5150_v54, %v5142_v19 }
 0x703   :  { %v4996_v34 = vpop.f32.mrf.mxu2  ;;  %v4949_v43 = vpop.f32.mrf.mxu1 }
 0x704   :  { %v5045_v31 = vpop.f32.mrf.mxu3  ;;  %v4997_v21 = vadd.f32 %v4996_v34, %v4948_v45 }
 0x705   :  { %v4900_v59 = vpop.f32.mrf.mxu0 }
 0x706   :  { %v4901_v61 = vadd.f32 %v4900_v59, %v10124_v13  ;;  %v5046_v37 = vadd.f32 %v5045_v31, %v4997_v21  ;;  %v10607_v13 = vld [vmem:[#allocation75_spill] sm:$0xff] }
 0x708   :  { %v4950_v8 = vadd.f32 %v4949_v43, %v4901_v61  ;;  %v5158_v6 = vmax.f32 %v5046_v37, 0.0 }
 0x70b   :  { %v4998_v50 = vpop.f32.mrf.mxu2  ;;  %v4952_v63 = vpop.f32.mrf.mxu1 }
 0x70c   :  { %v5047_v17 = vpop.f32.mrf.mxu3  ;;  %v4999_v10 = vadd.f32 %v4998_v50, %v4950_v8 }
 0x70d   :  { %v4903_v11 = vpop.f32.mrf.mxu0 }
 0x70e   :  { %v4904_v23 = vadd.f32 %v4903_v11, %v10132_v25  ;;  %v5048_v38 = vadd.f32 %v5047_v17, %v4999_v10  ;;  %5855 = vmatmul.bf16.gmra.mxu1 %v10605_v28  ;;  %v10610_v17 = vld [vmem:[#allocation77_spill] sm:$0xff]  ;;  %v10611_v10 = vld [vmem:[#allocation20_spill] sm:$0xff] }
 0x710   :  { %v4953_v49 = vadd.f32 %v4952_v63, %v4904_v23  ;;  %5806 = vmatmul.bf16.gmra.mxu0 %v10604_v9  ;;  %v5166_v62 = vmax.f32 %v5048_v38, 0.0  ;;  %5904 = vmatmul.bf16.gmra.mxu2 %v10606_v53 }
 0x711   :  { %5953 = vmatmul.bf16.gmra.mxu3 %v10607_v13 }
 0x712   :  { %v10198_v5 = vpack.c.bf16 %v5166_v62, %v5158_v6 }
 0x713   :  { %v5001_v30 = vpop.f32.mrf.mxu2  ;;  %v4954_v42 = vpop.f32.mrf.mxu1 }
 0x714   :  { %v5050_v60 = vpop.f32.mrf.mxu3  ;;  %v5002_v36 = vadd.f32 %v5001_v30, %v4953_v49 }
 0x715   :  { %v4905_v14 = vpop.f32.mrf.mxu0 }
 0x716   :  { %v4906_v25 = vadd.f32 %v4905_v14, %v10138_v12  ;;  %v5051_v55 = vadd.f32 %v5050_v60, %v5002_v36  ;;  %v10612_v14 = vld [vmem:[#allocation78_spill] sm:$0xff] }
 0x718   :  { %v4955_v1 = vadd.f32 %v4954_v42, %v4906_v25  ;;  %v5174_v45 = vmax.f32 %v5051_v55, 0.0  ;;  %v10613_v42 = vld [vmem:[#allocation23_spill] sm:$0xff] }
 0x71b   :  { %v5003_v48 = vpop.f32.mrf.mxu2  ;;  %v5821_v22 = vpop.f32.mrf.mxu1 }
 0x71c   :  { %v5052_v41 = vpop.f32.mrf.mxu3  ;;  %v5004_v0 = vadd.f32 %v5003_v48, %v4955_v1 }
 0x71d   :  { %v5772_v20 = vpop.f32.mrf.mxu0 }
 0x71e   :  { %v5773_v3 = vadd.f32 %v10201_v15, %v5772_v20  ;;  %v5053_v39 = vadd.f32 %v5052_v41, %v5004_v0  ;;  %6016 = vmatmul.bf16.vlgmr.msrb.gmra.mxu1 %v10609_v27 }
 0x720   :  { %v5822_v35 = vadd.f32 %v5821_v22, %v5773_v3  ;;  %5967 = vmatmul.bf16.vlgmr.msrb.gmra.mxu0 %v10608_v44  ;;  %v5182_v32 = vmax.f32 %v5053_v39, 0.0  ;;  %6065 = vmatmul.bf16.vlgmr.msrb.gmra.mxu2 %v10036_v52 }
 0x721   :  { %6114 = vmatmul.bf16.vlgmr.msrb.gmra.mxu3 %v10150_v57 }
 0x722   :  { %v10208_v12 = vpack.c.bf16 %v5182_v32, %v5174_v45  ;;  %v10614_v32 = vld [vmem:[#allocation79_spill] sm:$0xff] }
 0x723   :  { %v5870_v33 = vpop.f32.mrf.mxu2  ;;  %v5823_v47 = vpop.f32.mrf.mxu1 }
 0x724   :  { %v5919_v19 = vpop.f32.mrf.mxu3  ;;  %v5871_v54 = vadd.f32 %v5870_v33, %v5822_v35  ;;  %v10615_v33 = vld [vmem:[#allocation24_spill] sm:$0xff] }
 0x725   :  { %v5774_v24 = vpop.f32.mrf.mxu0 }
 0x726   :  { %v5775_v34 = vadd.f32 %v10201_v15, %v5774_v24  ;;  %v10211_v31 = vadd.f32 %v5919_v19, %v5871_v54 }
 0x728   :  { %v5824_v21 = vadd.f32 %v5823_v47, %v5775_v34 }
 0x72b   :  { %v5872_v59 = vpop.f32.mrf.mxu2  ;;  %v5826_v8 = vpop.f32.mrf.mxu1 }
 0x72c   :  { %v5921_v43 = vpop.f32.mrf.mxu3  ;;  %v5873_v61 = vadd.f32 %v5872_v59, %v5824_v21 }
 0x72d   :  { %v5777_v37 = vpop.f32.mrf.mxu0 }
 0x72e   :  { %v5778_v52 = vadd.f32 %v10201_v15, %v5777_v37  ;;  %v10214_v57 = vadd.f32 %v5921_v43, %v5873_v61  ;;  %6021 = vmatmul.bf16.gmra.mxu1 %v10611_v10  ;;  %v10616_v10 = vld [vmem:[#allocation80_spill] sm:$0xff] }
 0x730   :  { %v5827_v50 = vadd.f32 %v5826_v8, %v5778_v52  ;;  %5972 = vmatmul.bf16.gmra.mxu0 %v10610_v17  ;;  %6070 = vmatmul.bf16.gmra.mxu2 %v10050_v51 }
 0x731   :  { %6119 = vmatmul.bf16.gmra.mxu3 %v10158_v46 }
 0x733   :  { %v5875_v11 = vpop.f32.mrf.mxu2  ;;  %v5828_v49 = vpop.f32.mrf.mxu1 }
 0x734   :  { %v5924_v63 = vpop.f32.mrf.mxu3  ;;  %v5876_v23 = vadd.f32 %v5875_v11, %v5827_v50  ;;  %v10617_v11 = vld [vmem:[#allocation30_spill] sm:$0xff] }
 0x735   :  { %v5779_v38 = vpop.f32.mrf.mxu0 }
 0x736   :  { %v5780_v9 = vadd.f32 %v10201_v15, %v5779_v38  ;;  %v10221_v28 = vadd.f32 %v5924_v63, %v5876_v23 }
 0x738   :  { %v5829_v6 = vadd.f32 %v5828_v49, %v5780_v9 }
 0x73b   :  { %v5877_v62 = vpop.f32.mrf.mxu2  ;;  %v5831_v60 = vpop.f32.mrf.mxu1 }
 0x73c   :  { %v5926_v53 = vpop.f32.mrf.mxu3  ;;  %v5878_v13 = vadd.f32 %v5877_v62, %v5829_v6 }
 0x73d   :  { %v5782_v30 = vpop.f32.mrf.mxu0 }
 0x73e   :  { %v5783_v36 = vadd.f32 %v10201_v15, %v5782_v30  ;;  %v10224_v51 = vadd.f32 %v5926_v53, %v5878_v13  ;;  %6026 = vmatmul.bf16.gmra.mxu1 %v10613_v42  ;;  %v10618_v42 = vld [vmem:[#allocation81_spill] sm:$0xff] }
 0x740   :  { %v5832_v46 = vadd.f32 %v5831_v60, %v5783_v36  ;;  %5977 = vmatmul.bf16.gmra.mxu0 %v10612_v14  ;;  %6075 = vmatmul.bf16.gmra.mxu2 %v10064_v58 }
 0x741   :  { %6124 = vmatmul.bf16.gmra.mxu3 %v10166_v7 }
 0x743   :  { %v5880_v25 = vpop.f32.mrf.mxu2  ;;  %v5833_v41 = vpop.f32.mrf.mxu1 }
 0x744   :  { %v5929_v55 = vpop.f32.mrf.mxu3  ;;  %v5881_v1 = vadd.f32 %v5880_v25, %v5832_v46  ;;  %v10619_v25 = vld [vmem:[#allocation31_spill] sm:$0xff] }
 0x745   :  { %v5784_v48 = vpop.f32.mrf.mxu0 }
 0x746   :  { %v5785_v0 = vadd.f32 %v10201_v15, %v5784_v48  ;;  %v10231_v20 = vadd.f32 %v5929_v55, %v5881_v1 }
 0x748   :  { %v5834_v22 = vadd.f32 %v5833_v41, %v5785_v0 }
 0x74b   :  { %v5882_v3 = vpop.f32.mrf.mxu2  ;;  %v5836_v27 = vpop.f32.mrf.mxu1 }
 0x74c   :  { %v5931_v39 = vpop.f32.mrf.mxu3  ;;  %v5883_v35 = vadd.f32 %v5882_v3, %v5834_v22 }
 0x74d   :  { %v5787_v44 = vpop.f32.mrf.mxu0 }
 0x74e   :  { %v5788_v45 = vadd.f32 %v10201_v15, %v5787_v44  ;;  %v10234_v58 = vadd.f32 %v5931_v39, %v5883_v35  ;;  %6031 = vmatmul.bf16.gmra.mxu1 %v10615_v33  ;;  %v10620_v33 = vld [vmem:[#allocation82_spill] sm:$0xff] }
 0x750   :  { %v5837_v7 = vadd.f32 %v5836_v27, %v5788_v45  ;;  %5982 = vmatmul.bf16.gmra.mxu0 %v10614_v32  ;;  %6080 = vmatmul.bf16.gmra.mxu2 %v10078_v16 }
 0x751   :  { %6129 = vmatmul.bf16.gmra.mxu3 %v10174_v4 }
 0x753   :  { %v5885_v19 = vpop.f32.mrf.mxu2  ;;  %v5838_v34 = vpop.f32.mrf.mxu1 }
 0x754   :  { %v5934_v54 = vpop.f32.mrf.mxu3  ;;  %v5886_v24 = vadd.f32 %v5885_v19, %v5837_v7  ;;  %v10621_v19 = vld [vmem:[#allocation32_spill] sm:$0xff] }
 0x755   :  { %v5789_v47 = vpop.f32.mrf.mxu0 }
 0x756   :  { %v5790_v21 = vadd.f32 %v10201_v15, %v5789_v47  ;;  %v10241_v59 = vadd.f32 %v5934_v54, %v5886_v24 }
 0x758   :  { %v5839_v43 = vadd.f32 %v5838_v34, %v5790_v21 }
 0x75b   :  { %v5887_v61 = vpop.f32.mrf.mxu2  ;;  %v5841_v50 = vpop.f32.mrf.mxu1 }
 0x75c   :  { %v5936_v37 = vpop.f32.mrf.mxu3  ;;  %v5888_v8 = vadd.f32 %v5887_v61, %v5839_v43 }
 0x75d   :  { %v5792_v52 = vpop.f32.mrf.mxu0 }
 0x75e   :  { %v5793_v17 = vadd.f32 %v10201_v15, %v5792_v52  ;;  %v10244_v16 = vadd.f32 %v5936_v37, %v5888_v8  ;;  %6036 = vmatmul.bf16.gmra.mxu1 %v10617_v11  ;;  %v10622_v11 = vld [vmem:[#allocation44_spill] sm:$0xff] }
 0x760   :  { %v5842_v4 = vadd.f32 %v5841_v50, %v5793_v17  ;;  %5987 = vmatmul.bf16.gmra.mxu0 %v10616_v10  ;;  %6085 = vmatmul.bf16.gmra.mxu2 %v10092_v2 }
 0x761   :  { %6134 = vmatmul.bf16.gmra.mxu3 %v10182_v56 }
 0x763   :  { %v5890_v63 = vpop.f32.mrf.mxu2  ;;  %v5843_v9 = vpop.f32.mrf.mxu1 }
 0x764   :  { %v5939_v23 = vpop.f32.mrf.mxu3  ;;  %v5891_v38 = vadd.f32 %v5890_v63, %v5842_v4  ;;  %v10623_v63 = vld [vmem:[#allocation33_spill] sm:$0xff] }
 0x765   :  { %v5794_v49 = vpop.f32.mrf.mxu0 }
 0x766   :  { %v5795_v6 = vadd.f32 %v10201_v15, %v5794_v49  ;;  %v10251_v62 = vadd.f32 %v5939_v23, %v5891_v38 }
 0x768   :  { %v5844_v53 = vadd.f32 %v5843_v9, %v5795_v6 }
 0x76b   :  { %v5892_v13 = vpop.f32.mrf.mxu2  ;;  %v5846_v46 = vpop.f32.mrf.mxu1 }
 0x76c   :  { %v5941_v30 = vpop.f32.mrf.mxu3  ;;  %v5893_v60 = vadd.f32 %v5892_v13, %v5844_v53 }
 0x76d   :  { %v5797_v36 = vpop.f32.mrf.mxu0 }
 0x76e   :  { %v5798_v14 = vadd.f32 %v10201_v15, %v5797_v36  ;;  %v10254_v2 = vadd.f32 %v5941_v30, %v5893_v60  ;;  %6041 = vmatmul.bf16.gmra.mxu1 %v10619_v25 }
 0x770   :  { %v5847_v56 = vadd.f32 %v5846_v46, %v5798_v14  ;;  %5992 = vmatmul.bf16.gmra.mxu0 %v10618_v42  ;;  %6090 = vmatmul.bf16.gmra.mxu2 %v10106_v26 }
 0x771   :  { %6139 = vmatmul.bf16.gmra.mxu3 %v10190_v29 }
 0x773   :  { %v5895_v55 = vpop.f32.mrf.mxu2  ;;  %v5848_v0 = vpop.f32.mrf.mxu1 }
 0x774   :  { %v5944_v1 = vpop.f32.mrf.mxu3  ;;  %v5896_v48 = vadd.f32 %v5895_v55, %v5847_v56 }
 0x775   :  { %v5799_v41 = vpop.f32.mrf.mxu0 }
 0x776   :  { %v5800_v22 = vadd.f32 %v10201_v15, %v5799_v41  ;;  %v10261_v3 = vadd.f32 %v5944_v1, %v5896_v48 }
 0x778   :  { %v5849_v39 = vadd.f32 %v5848_v0, %v5800_v22 }
 0x77b   :  { %v5897_v35 = vpop.f32.mrf.mxu2  ;;  %v5851_v7 = vpop.f32.mrf.mxu1 }
 0x77c   :  { %v5946_v44 = vpop.f32.mrf.mxu3  ;;  %v5898_v27 = vadd.f32 %v5897_v35, %v5849_v39 }
 0x77d   :  { %v5802_v45 = vpop.f32.mrf.mxu0 }
 0x77e   :  { %v5803_v32 = vadd.f32 %v10201_v15, %v5802_v45  ;;  %v10264_v26 = vadd.f32 %v5946_v44, %v5898_v27  ;;  %6046 = vmatmul.bf16.gmra.mxu1 %v10621_v19 }
 0x780   :  { %v5852_v29 = vadd.f32 %v5851_v7, %v5803_v32  ;;  %5997 = vmatmul.bf16.gmra.mxu0 %v10620_v33  ;;  %6095 = vmatmul.bf16.gmra.mxu2 %v10120_v40 }
 0x781   :  { %6144 = vmatmul.bf16.gmra.mxu3 %v10198_v5 }
 0x783   :  { %v5900_v54 = vpop.f32.mrf.mxu2  ;;  %v5853_v21 = vpop.f32.mrf.mxu1 }
 0x784   :  { %v5949_v24 = vpop.f32.mrf.mxu3  ;;  %v5901_v47 = vadd.f32 %v5900_v54, %v5852_v29 }
 0x785   :  { %v5804_v34 = vpop.f32.mrf.mxu0 }
 0x786   :  { %v5805_v43 = vadd.f32 %v10201_v15, %v5804_v34  ;;  %v10271_v61 = vadd.f32 %v5949_v24, %v5901_v47 }
 0x788   :  { %v5854_v37 = vadd.f32 %v5853_v21, %v5805_v43 }
 0x78b   :  { %v5902_v8 = vpop.f32.mrf.mxu2  ;;  %v5856_v4 = vpop.f32.mrf.mxu1 }
 0x78c   :  { %v5951_v52 = vpop.f32.mrf.mxu3  ;;  %v5903_v50 = vadd.f32 %v5902_v8, %v5854_v37 }
 0x78d   :  { %v5807_v17 = vpop.f32.mrf.mxu0 }
 0x78e   :  { %v5808_v10 = vadd.f32 %v10201_v15, %v5807_v17  ;;  %v10274_v40 = vadd.f32 %v5951_v52, %v5903_v50  ;;  %6051 = vmatmul.bf16.gmra.mxu1 %v10623_v63 }
 0x790   :  { %v5857_v5 = vadd.f32 %v5856_v4, %v5808_v10  ;;  %6002 = vmatmul.bf16.gmra.mxu0 %v10622_v11  ;;  %6100 = vmatmul.bf16.gmra.mxu2 %v10134_v18 }
 0x791   :  { %6149 = vmatmul.bf16.gmra.mxu3 %v10208_v12 }
 0x793   :  { %v5905_v23 = vpop.f32.mrf.mxu2  ;;  %v5858_v6 = vpop.f32.mrf.mxu1 }
 0x794   :  { %v5954_v38 = vpop.f32.mrf.mxu3  ;;  %v5906_v49 = vadd.f32 %v5905_v23, %v5857_v5 }
 0x795   :  { %v5809_v9 = vpop.f32.mrf.mxu0 }
 0x796   :  { %v5810_v53 = vadd.f32 %v10201_v15, %v5809_v9  ;;  %v10281_v13 = vadd.f32 %v5954_v38, %v5906_v49 }
 0x798   :  { %v5859_v30 = vadd.f32 %v5858_v6, %v5810_v53 }
 0x79b   :  { %v5907_v60 = vpop.f32.mrf.mxu2  ;;  %v6017_v56 = vpop.f32.mrf.mxu1 }
 0x79c   :  { %v5956_v36 = vpop.f32.mrf.mxu3  ;;  %v5908_v46 = vadd.f32 %v5907_v60, %v5859_v30 }
 0x79d   :  { %v5968_v14 = vpop.f32.mrf.mxu0 }
 0x79e   :  { %v10283_v42 = vadd.f32 %v5956_v36, %v5908_v46  ;;  %v5969_v18 = vadd.f32 %v5968_v14, %v10211_v31 }
 0x7a0   :  { %v6018_v12 = vadd.f32 %v6017_v56, %v5969_v18 }
 0x7a3   :  { %v6066_v25 = vpop.f32.mrf.mxu2  ;;  %v6019_v41 = vpop.f32.mrf.mxu1 }
 0x7a4   :  { %v6115_v55 = vpop.f32.mrf.mxu3  ;;  %v6067_v1 = vadd.f32 %v6066_v25, %v6018_v12 }
 0x7a5   :  { %v5970_v48 = vpop.f32.mrf.mxu0 }
 0x7a6   :  { %v6116_v0 = vadd.f32 %v6115_v55, %v6067_v1  ;;  %v5971_v15 = vadd.f32 %v5970_v48, %v10214_v57 }
 0x7a8   :  { %6155 = vst [vmem:[#allocation13] sm:$0xff] %v6116_v0  ;;  %v6020_v22 = vadd.f32 %v6019_v41, %v5971_v15 }
 0x7ab   :  { %v6068_v39 = vpop.f32.mrf.mxu2  ;;  %v6022_v45 = vpop.f32.mrf.mxu1 }
 0x7ac   :  { %v6117_v35 = vpop.f32.mrf.mxu3  ;;  %v6069_v44 = vadd.f32 %v6068_v39, %v6020_v22 }
 0x7ad   :  { %v5973_v27 = vpop.f32.mrf.mxu0 }
 0x7ae   :  { %v6118_v7 = vadd.f32 %v6117_v35, %v6069_v44  ;;  %v5974_v32 = vadd.f32 %v5973_v27, %v10221_v28 }
 0x7b0   :  { %6156 = vst [vmem:[#allocation13 + $0x8] sm:$0xff] %v6118_v7  ;;  %v6023_v31 = vadd.f32 %v6022_v45, %v5974_v32 }
 0x7b3   :  { %v6071_v29 = vpop.f32.mrf.mxu2  ;;  %v6024_v24 = vpop.f32.mrf.mxu1 }
 0x7b4   :  { %v6120_v33 = vpop.f32.mrf.mxu3  ;;  %v6072_v19 = vadd.f32 %v6071_v29, %v6023_v31 }
 0x7b5   :  { %v5975_v54 = vpop.f32.mrf.mxu0 }
 0x7b6   :  { %v6121_v47 = vadd.f32 %v6120_v33, %v6072_v19  ;;  %v5976_v57 = vadd.f32 %v5975_v54, %v10224_v51 }
 0x7b8   :  { %6157 = vst [vmem:[#allocation13 + $0x10] sm:$0xff] %v6121_v47  ;;  %v6025_v34 = vadd.f32 %v6024_v24, %v5976_v57 }
 0x7bb   :  { %v6073_v21 = vpop.f32.mrf.mxu2  ;;  %v6027_v52 = vpop.f32.mrf.mxu1 }
 0x7bc   :  { %v6122_v43 = vpop.f32.mrf.mxu3  ;;  %v6074_v37 = vadd.f32 %v6073_v21, %v6025_v34 }
 0x7bd   :  { %v5978_v8 = vpop.f32.mrf.mxu0 }
 0x7be   :  { %v6123_v50 = vadd.f32 %v6122_v43, %v6074_v37  ;;  %v5979_v28 = vadd.f32 %v5978_v8, %v10231_v20 }
 0x7c0   :  { %6158 = vst [vmem:[#allocation13 + $0x18] sm:$0xff] %v6123_v50  ;;  %v6028_v17 = vadd.f32 %v6027_v52, %v5979_v28 }
 0x7c3   :  { %v6076_v4 = vpop.f32.mrf.mxu2  ;;  %v6029_v63 = vpop.f32.mrf.mxu1 }
 0x7c4   :  { %v6125_v10 = vpop.f32.mrf.mxu3  ;;  %v6077_v5 = vadd.f32 %v6076_v4, %v6028_v17 }
 0x7c5   :  { %v5980_v11 = vpop.f32.mrf.mxu0 }
 0x7c6   :  { %v6126_v23 = vadd.f32 %v6125_v10, %v6077_v5  ;;  %v5981_v51 = vadd.f32 %v5980_v11, %v10234_v58 }
 0x7c8   :  { %6159 = vst [vmem:[#allocation13 + $0x20] sm:$0xff] %v6126_v23  ;;  %v6030_v38 = vadd.f32 %v6029_v63, %v5981_v51 }
 0x7cb   :  { %v6078_v49 = vpop.f32.mrf.mxu2  ;;  %v6032_v30 = vpop.f32.mrf.mxu1 }
 0x7cc   :  { %v6127_v9 = vpop.f32.mrf.mxu3  ;;  %v6079_v6 = vadd.f32 %v6078_v49, %v6030_v38 }
 0x7cd   :  { %v5983_v53 = vpop.f32.mrf.mxu0 }
 0x7ce   :  { %v6128_v60 = vadd.f32 %v6127_v9, %v6079_v6  ;;  %v5984_v20 = vadd.f32 %v5983_v53, %v10241_v59 }
 0x7d0   :  { %6160 = vst [vmem:[#allocation13 + $0x28] sm:$0xff] %v6128_v60  ;;  %v6033_v36 = vadd.f32 %v6032_v30, %v5984_v20 }
 0x7d3   :  { %v6081_v46 = vpop.f32.mrf.mxu2  ;;  %v6034_v12 = vpop.f32.mrf.mxu1 }
 0x7d4   :  { %v6130_v14 = vpop.f32.mrf.mxu3  ;;  %v6082_v56 = vadd.f32 %v6081_v46, %v6033_v36 }
 0x7d5   :  { %v5985_v18 = vpop.f32.mrf.mxu0 }
 0x7d6   :  { %v6131_v25 = vadd.f32 %v6130_v14, %v6082_v56  ;;  %v5986_v58 = vadd.f32 %v5985_v18, %v10244_v16 }
 0x7d8   :  { %6161 = vst [vmem:[#allocation13 + $0x30] sm:$0xff] %v6131_v25  ;;  %v6035_v55 = vadd.f32 %v6034_v12, %v5986_v58 }
 0x7db   :  { %v6083_v1 = vpop.f32.mrf.mxu2  ;;  %v6037_v15 = vpop.f32.mrf.mxu1 }
 0x7dc   :  { %v6132_v48 = vpop.f32.mrf.mxu3  ;;  %v6084_v41 = vadd.f32 %v6083_v1, %v6035_v55 }
 0x7dd   :  { %v5988_v0 = vpop.f32.mrf.mxu0 }
 0x7de   :  { %v6133_v22 = vadd.f32 %v6132_v48, %v6084_v41  ;;  %v5989_v59 = vadd.f32 %v5988_v0, %v10251_v62 }
 0x7e0   :  { %6162 = vst [vmem:[#allocation13 + $0x38] sm:$0xff] %v6133_v22  ;;  %v6038_v39 = vadd.f32 %v6037_v15, %v5989_v59 }
 0x7e3   :  { %v6086_v35 = vpop.f32.mrf.mxu2  ;;  %v6039_v7 = vpop.f32.mrf.mxu1 }
 0x7e4   :  { %v6135_v44 = vpop.f32.mrf.mxu3  ;;  %v6087_v27 = vadd.f32 %v6086_v35, %v6038_v39 }
 0x7e5   :  { %v5990_v45 = vpop.f32.mrf.mxu0 }
 0x7e6   :  { %v6136_v32 = vadd.f32 %v6135_v44, %v6087_v27  ;;  %v5991_v16 = vadd.f32 %v5990_v45, %v10254_v2 }
 0x7e8   :  { %6163 = vst [vmem:[#allocation13 + $0x40] sm:$0xff] %v6136_v32  ;;  %v6040_v31 = vadd.f32 %v6039_v7, %v5991_v16 }
 0x7eb   :  { %v6088_v29 = vpop.f32.mrf.mxu2  ;;  %v6042_v24 = vpop.f32.mrf.mxu1 }
 0x7ec   :  { %v6137_v33 = vpop.f32.mrf.mxu3  ;;  %v6089_v19 = vadd.f32 %v6088_v29, %v6040_v31 }
 0x7ed   :  { %v5993_v54 = vpop.f32.mrf.mxu0 }
 0x7ee   :  { %v6138_v47 = vadd.f32 %v6137_v33, %v6089_v19  ;;  %v5994_v62 = vadd.f32 %v5993_v54, %v10261_v3 }
 0x7f0   :  { %6164 = vst [vmem:[#allocation13 + $0x48] sm:$0xff] %v6138_v47  ;;  %v6043_v57 = vadd.f32 %v6042_v24, %v5994_v62 }
 0x7f3   :  { %v6091_v34 = vpop.f32.mrf.mxu2  ;;  %v6044_v8 = vpop.f32.mrf.mxu1 }
 0x7f4   :  { %v6140_v21 = vpop.f32.mrf.mxu3  ;;  %v6092_v43 = vadd.f32 %v6091_v34, %v6043_v57 }
 0x7f5   :  { %v5995_v37 = vpop.f32.mrf.mxu0 }
 0x7f6   :  { %v6141_v52 = vadd.f32 %v6140_v21, %v6092_v43  ;;  %v5996_v2 = vadd.f32 %v5995_v37, %v10264_v26 }
 0x7f8   :  { %6165 = vst [vmem:[#allocation13 + $0x50] sm:$0xff] %v6141_v52  ;;  %v6045_v50 = vadd.f32 %v6044_v8, %v5996_v2 }
 0x7fb   :  { %v6093_v28 = vpop.f32.mrf.mxu2  ;;  %v6047_v5 = vpop.f32.mrf.mxu1 }
 0x7fc   :  { %v6142_v17 = vpop.f32.mrf.mxu3  ;;  %v6094_v4 = vadd.f32 %v6093_v28, %v6045_v50 }
 0x7fd   :  { %v5998_v10 = vpop.f32.mrf.mxu0 }
 0x7fe   :  { %v6143_v11 = vadd.f32 %v6142_v17, %v6094_v4  ;;  %v5999_v3 = vadd.f32 %v5998_v10, %v10271_v61 }
 0x800   :  { %6166 = vst [vmem:[#allocation13 + $0x58] sm:$0xff] %v6143_v11  ;;  %v6048_v63 = vadd.f32 %v6047_v5, %v5999_v3 }
 0x803   :  { %v6096_v23 = vpop.f32.mrf.mxu2  ;;  %v6049_v9 = vpop.f32.mrf.mxu1 }
 0x804   :  { %v6145_v51 = vpop.f32.mrf.mxu3  ;;  %v6097_v38 = vadd.f32 %v6096_v23, %v6048_v63 }
 0x805   :  { %v6000_v49 = vpop.f32.mrf.mxu0 }
 0x806   :  { %v6146_v6 = vadd.f32 %v6145_v51, %v6097_v38  ;;  %v6001_v26 = vadd.f32 %v6000_v49, %v10274_v40 }
 0x808   :  { %6167 = vst [vmem:[#allocation13 + $0x60] sm:$0xff] %v6146_v6  ;;  %v6050_v53 = vadd.f32 %v6049_v9, %v6001_v26 }
 0x80b   :  { %v6098_v30 = vpop.f32.mrf.mxu2  ;;  %v6052_v61 = vpop.f32.mrf.mxu1 }
 0x80c   :  { %v6147_v60 = vpop.f32.mrf.mxu3  ;;  %v6099_v20 = vadd.f32 %v6098_v30, %v6050_v53 }
 0x80d   :  { %v6003_v36 = vpop.f32.mrf.mxu0 }
 0x80e   :  { %v6148_v46 = vadd.f32 %v6147_v60, %v6099_v20  ;;  %v6004_v14 = vadd.f32 %v6003_v36, %v10281_v13 }
 0x810   :  { %6168 = vst [vmem:[#allocation13 + $0x68] sm:$0xff] %v6148_v46  ;;  %v6053_v56 = vadd.f32 %v6052_v61, %v6004_v14 }
 0x813   :  { %v6101_v18 = vpop.f32.mrf.mxu2  ;;  %v6054_v40 = vpop.f32.mrf.mxu1 }
 0x814   :  { %v6150_v12 = vpop.f32.mrf.mxu3  ;;  %v6102_v25 = vadd.f32 %v6101_v18, %v6053_v56 }
 0x815   :  { %v6005_v58 = vpop.f32.mrf.mxu0 }
 0x816   :  { %v6151_v55 = vadd.f32 %v6150_v12, %v6102_v25  ;;  %v6006_v1 = vadd.f32 %v6005_v58, %v10283_v42 }
 0x818   :  { %6169 = vst [vmem:[#allocation13 + $0x70] sm:$0xff] %v6151_v55  ;;  %v6055_v48 = vadd.f32 %v6054_v40, %v6006_v1 }
 0x81b   :  { %v6103_v13 = vpop.f32.mrf.mxu2 }
 0x81c   :  { %v6104_v41 = vadd.f32 %v6103_v13, %v6055_v48  ;;  %v6152_v0 = vpop.f32.mrf.mxu3 }
 0x81e   :  { %v6153_v15 = vadd.f32 %v6152_v0, %v6104_v41 }
 0x820   :  { %6170 = vst [vmem:[#allocation13 + $0x78] sm:$0xff] %v6153_v15 }
 0x821   :  { %6185 = dma.vmem_to_hbm [thread:$0]  %s6178_s3, 2048, %s6180_s25, [#allocation4], %s8648_s5, %s8648_s5, %s8649_s26  }
 0x822   :  { %8634 = dma.done.wait [#allocation4], 2048  }
 0x823   :  { %8635 = vsyncadd [#allocation4], 4294965248 }
 0x824   :  { %6192 = vsyncpa [#allocation3], 1 }
 0x825   :  { %6193 = vsyncpa [#allocation6], 1 }
 0x826   :  { %6194 = vsyncpa [#allocation9], 1 }
 0x827   :  { %6195 = vsyncpa [#allocation12], 1 }
 0x828   :  { %6196 = vsyncpa [#allocation4], 1 }

</bundles_post_ra>
